<compile_context>
chip_gen: v5e
topology: v5e:2x2
jax: 0.10.0
libtpu: 0.0.40
codegen_flags: <defaults>
</compile_context>

<pallas_src>
import functools

import numpy as np
import jax
import jax.numpy as jnp
from jax.experimental import pallas as pl
from jax.experimental.pallas import tpu as pltpu

BN_EPS = 1e-5
ADAIN_EPS = 1e-5

# Reduced synthetic config (t, c, n, s).  Reversing the encoder-derived layer
# list gives the fixed decoder executed by the fused kernel below:
#   AdaIN -> invres(16->16, s1, t2, identity) -> invres(16->8, s2, t2)
#         -> invres(8->32, s1, t1) -> ConvT(32->3, k3, s2, p1, op1) + BN + ReLU6
MOBV2_ENCODER_CFG = [(1, 8, 1, 1), (2, 16, 2, 2)]
MOBV2_DECODER_INSERT_LAYER = (0,)
DECODER_INPUT_C = 16
DECODER_INPUT_HW = (8, 8)

_WEIGHT_ORDER = ("we1", "be1", "wd1", "bd1", "wp1", "bp1",
                 "we2", "be2", "wd2", "bd2", "wp2", "bp2", "g2",
                 "wd3", "bd3", "wp3", "bp3",
                 "ws4", "bs4", "g4")


def _full_spec(arr):
    nd = arr.ndim
    return pl.BlockSpec(arr.shape, lambda i, nd=nd: (0,) * nd)


# --------------------------- in-kernel helpers -----------------------------

def _col_index(m, w):
    """Column (x) coordinate of every flattened-spatial lane (w must be 2**k)."""
    return jax.lax.broadcasted_iota(jnp.int32, (1, m), 1) & (w - 1)


def _shift2d(x, dh, dw, w, col):
    """y[:, i*w + j] = x[:, (i+dh)*w + (j+dw)], zero outside the HxW grid.

    x is (C, H*W) with spatial flattened on the lane axis.  Row under/overflow
    falls off the ends of the flat axis (zero-filled concat, XLU work); column
    wrap across row boundaries is killed with a lane mask on the output column.
    """
    ch, m = x.shape
    s = dh * w + dw
    if s > 0:
        y = jnp.concatenate([x[:, s:], jnp.zeros((ch, s), x.dtype)], axis=1)
    elif s < 0:
        y = jnp.concatenate([jnp.zeros((ch, -s), x.dtype), x[:, :s]], axis=1)
    else:
        y = x
    if dw != 0:
        keep = (col < (w - dw)) if dw > 0 else (col >= -dw)
        y = jnp.where(keep, y, jnp.zeros_like(y))
    return y


def _dw3x3(h, wd, w, col):
    """Depthwise 3x3 'same' conv with flipped transposed-conv taps (f32 VPU).

    h: (C, H*W) f32, wd: (C, 9) f32 with tap index t = (dh+1)*3 + (dw+1)
    (BN scale already folded into wd).
    """
    acc = h * wd[:, 4:5]
    for dh in (-1, 0, 1):
        for dw in (-1, 0, 1):
            if dh == 0 and dw == 0:
                continue
            t = (dh + 1) * 3 + (dw + 1)
            acc = acc + _shift2d(h, dh, dw, w, col) * wd[:, t:t + 1]
    return acc


# ------------------------------ fused kernel -------------------------------

def _decoder_kernel(c_ref, s_ref,
                    we1_ref, be1_ref, wd1_ref, bd1_ref, wp1_ref, bp1_ref,
                    we2_ref, be2_ref, wd2_ref, bd2_ref, wp2_ref, bp2_ref, g2_ref,
                    wd3_ref, bd3_ref, wp3_ref, bp3_ref,
                    ws4_ref, bs4_ref, g4_ref,
                    o_ref, *, h0, w0):
    f32, bf16 = jnp.float32, jnp.bfloat16
    m1 = h0 * w0                       # 8x8   spatial, flattened on lanes
    w1 = 2 * w0                        # 16x16 spatial after the stride-2 block
    col1 = _col_index(m1, w0)
    col2 = _col_index(4 * m1, w1)

    # ---- AdaIN (per-channel stats over the spatial/lane axis) ----
    c = c_ref[0].astype(f32)                                   # (16, 64)
    st = s_ref[0].astype(f32)
    mu_c = jnp.mean(c, axis=1, keepdims=True)
    var_c = jnp.mean((c - mu_c) ** 2, axis=1, keepdims=True)
    mu_s = jnp.mean(st, axis=1, keepdims=True)
    var_s = jnp.mean((st - mu_s) ** 2, axis=1, keepdims=True)
    x1 = ((c - mu_c) * jax.lax.rsqrt(var_c + ADAIN_EPS)
          * jnp.sqrt(var_s + ADAIN_EPS) + mu_s).astype(bf16)   # (16, 64)

    # ---- block 1: invres 16->16, stride 1, expand 2, identity residual ----
    h = jnp.dot(we1_ref[...], x1, preferred_element_type=f32) + be1_ref[...]
    h = jnp.clip(h, 0.0, 6.0)                                  # (32, 64)
    d = jnp.clip(_dw3x3(h, wd1_ref[...], w0, col1) + bd1_ref[...], 0.0, 6.0)
    y = jnp.dot(wp1_ref[...], d.astype(bf16), preferred_element_type=f32)
    x2 = (y + bp1_ref[...] + x1.astype(f32)).astype(bf16)      # (16, 64)

    # ---- block 2: invres 16->8, stride-2 transposed depthwise (polyphase) ----
    h = jnp.dot(we2_ref[...], x2, preferred_element_type=f32) + be2_ref[...]
    h = jnp.clip(h, 0.0, 6.0)                                  # (16, 64)
    wd = wd2_ref[...]                                          # (16, 9)
    hc = _shift2d(h, 0, 1, w0, col1)
    hr = _shift2d(h, 1, 0, w0, col1)
    hrc = _shift2d(h, 1, 1, w0, col1)
    p00 = h * wd[:, 4:5]                                       # O[2i  , 2j  ]
    p01 = h * wd[:, 3:4] + hc * wd[:, 5:6]                     # O[2i  , 2j+1]
    p10 = h * wd[:, 1:2] + hr * wd[:, 7:8]                     # O[2i+1, 2j  ]
    p11 = (h * wd[:, 0:1] + hc * wd[:, 2:3]
           + hr * wd[:, 6:7] + hrc * wd[:, 8:9])               # O[2i+1, 2j+1]
    dpb = jnp.concatenate([p00, p01, p10, p11], axis=1)        # (16, 256) phase-blocked
    dpb = jnp.clip(dpb + bd2_ref[...], 0.0, 6.0).astype(bf16)
    y = jnp.dot(wp2_ref[...], dpb, preferred_element_type=f32) + bp2_ref[...]
    # in-kernel depth-to-space: permutation matmul (phase-blocked -> row-major
    # 16x16); exact, since the operand is already bf16-rounded like the old
    # inter-block activation was.
    x3 = jnp.dot(y.astype(bf16), g2_ref[...], preferred_element_type=f32)   # (8, 256)

    # ---- block 3: invres 8->32, stride 1, expand 1 (no expand conv) ----
    d = jnp.clip(_dw3x3(x3, wd3_ref[...], w1, col2) + bd3_ref[...], 0.0, 6.0)
    y = jnp.dot(wp3_ref[...], d.astype(bf16), preferred_element_type=f32)
    x4 = (y + bp3_ref[...]).astype(bf16)                       # (32, 256)

    # ---- stem: dense ConvT(32->3, k3, s2, p1, op1) + BN + ReLU6, polyphase ----
    # K-stack the 4 shifted patches (K = 4*32 = 128) and all 4 phases' taps
    # (4 row-blocks of 8, channels 0..2 valid) into one MXU matmul.
    xs = jnp.concatenate(
        [x4,
         _shift2d(x4, 0, 1, w1, col2),
         _shift2d(x4, 1, 0, w1, col2),
         _shift2d(x4, 1, 1, w1, col2)], axis=0)                # (128, 256) bf16
    ys = jnp.dot(ws4_ref[...], xs, preferred_element_type=f32) + bs4_ref[...]
    ys = jnp.clip(ys, 0.0, 6.0)                                # (32, 256)
    ppb = jnp.concatenate([ys[0:8], ys[8:16], ys[16:24], ys[24:32]], axis=1)  # (8, 1024)
    # in-kernel depth-to-space to row-major 32x32 (NCHW) lanes -> lane-dense
    # final store (values bf16-rounded, consistent with the bf16 policy).
    z = jnp.dot(ppb.astype(bf16), g4_ref[...], preferred_element_type=f32)   # (8, 1024)
    o_ref[0] = z[0:3, :]


# ------------------------- parameter construction --------------------------

class KeyGen:
    def __init__(self, seed=0):
        self._key = jax.random.PRNGKey(seed)

    def __call__(self):
        self._key, k = jax.random.split(self._key)
        return k


def init_bn(kg, c):
    gamma = 1.0 + 0.1 * jax.random.normal(kg(), (c,), jnp.float32)
    beta = 0.1 * jax.random.normal(kg(), (c,), jnp.float32)
    mean = 0.1 * jax.random.normal(kg(), (c,), jnp.float32)
    var = 0.9 + 0.2 * jax.random.uniform(kg(), (c,), jnp.float32)
    scale = gamma / jnp.sqrt(var + BN_EPS)
    bias = beta - mean * scale
    return scale, bias


def _fold_invres(kg, in_c, out_c, stride, expand):
    """Inverted-residual block params; BN scales folded into the weights."""
    del stride
    hidden = int(round((out_c if expand != 1 else in_c) * expand))
    p = {}
    if expand != 1:
        w = 0.1 * jax.random.normal(kg(), (in_c, hidden, 1, 1), jnp.float32)[:, :, 0, 0]
        s, b = init_bn(kg, hidden)
        p["we"] = (s[:, None] * w.T).astype(jnp.bfloat16)        # (hid, in)
        p["be"] = b.reshape(hidden, 1)
    wdw = 0.1 * jax.random.normal(kg(), (hidden, 1, 3, 3), jnp.float32)
    wdw_f = jnp.transpose(jnp.flip(wdw[:, 0], (-2, -1)), (1, 2, 0)).reshape(9, hidden)
    s, b = init_bn(kg, hidden)
    p["wd"] = (wdw_f * s[None, :]).T                             # (hid, 9) f32 (VPU taps)
    p["bd"] = b.reshape(hidden, 1)
    wpr = 0.1 * jax.random.normal(kg(), (out_c, hidden, 1, 1), jnp.float32)[:, :, 0, 0]
    s, b = init_bn(kg, out_c)
    p["wp"] = (s[:, None] * wpr).astype(jnp.bfloat16)            # (out, hid)
    p["bp"] = b.reshape(out_c, 1)
    return p


def _fold_stem(kg, in_c, out_c):
    """Dense ConvT(in->out, k3, s2, p1, op1) + BN as one K-stacked (32, 4*in) weight.

    Row-block 8*p holds output phase p = 2a+b (channels 0..out_c-1, rest zero);
    column-block in_c*slot multiplies patch slot in [x00, x(0,+1), x(+1,0), x(+1,+1)].
    """
    assert out_c <= 8
    w = 0.1 * jax.random.normal(kg(), (in_c, out_c, 3, 3), jnp.float32)
    wft = jnp.transpose(jnp.flip(w, (-2, -1)), (2, 3, 1, 0)).reshape(9, out_c, in_c)
    s, b = init_bn(kg, out_c)
    tap = wft * s[None, :, None]                                 # BN scale folded
    ws = jnp.zeros((32, 4 * in_c), jnp.float32)
    phase_taps = ([(4, 0)],                                      # (2i  , 2j  )
                  [(3, 0), (5, 1)],                              # (2i  , 2j+1)
                  [(1, 0), (7, 2)],                              # (2i+1, 2j  )
                  [(0, 0), (2, 1), (6, 2), (8, 3)])              # (2i+1, 2j+1)
    for ph, taps in enumerate(phase_taps):
        for t, slot in taps:
            ws = ws.at[8 * ph:8 * ph + out_c,
                       in_c * slot:in_c * (slot + 1)].set(tap[t])
    bs = jnp.zeros((32, 1), jnp.float32)
    for ph in range(4):
        bs = bs.at[8 * ph:8 * ph + out_c, 0].set(b)
    return {"ws": ws.astype(jnp.bfloat16), "bs": bs}


def _interleave_matrix(h, w, dtype):
    """0/1 matrix G s.t. [p00|p01|p10|p11] @ G is the row-major (2h, 2w) image.

    G[(2a+b)*h*w + i*w + j, (2i+a)*2w + 2j+b] = 1.
    """
    m = h * w
    src = np.arange(4 * m)
    ph, rem = src // m, src % m
    a, b = ph // 2, ph % 2
    i, j = rem // w, rem % w
    dst = (2 * i + a) * (2 * w) + (2 * j + b)
    g = np.zeros((4 * m, 4 * m), np.float32)
    g[src, dst] = 1.0
    return jnp.asarray(g, dtype)


def build_decoder_params(seed=0):
    kg = KeyGen(seed)
    # Drawn in the original (pre-reversed) build order so the synthetic weight
    # draws match the previously validated revision.
    stem = _fold_stem(kg, 32, 3)                    # executed last
    l3 = _fold_invres(kg, 8, 32, 1, 1)              # executed 3rd
    l2 = _fold_invres(kg, 16, 8, 2, 2)              # executed 2nd (stride 2)
    l1 = _fold_invres(kg, 16, 16, 1, 2)             # executed 1st (identity)
    params = {}
    for suffix, blk in (("1", l1), ("2", l2), ("3", l3)):
        for k, v in blk.items():
            params[k + suffix] = v
    h0, w0 = DECODER_INPUT_HW
    params["g2"] = _interleave_matrix(h0, w0, jnp.bfloat16)
    params["ws4"], params["bs4"] = stem["ws"], stem["bs"]
    params["g4"] = _interleave_matrix(2 * h0, 2 * w0, jnp.bfloat16)
    return params


# --------------------------------- forward ---------------------------------

def decoder_forward(params, c_nchw, en_s_tensors_nchw):
    n, c0, h0, w0 = c_nchw.shape
    assert c0 == DECODER_INPUT_C and (h0, w0) == DECODER_INPUT_HW, (c0, h0, w0)
    s_nchw = en_s_tensors_nchw[0]          # single AdaIN insert layer (index 0)
    ns, cs, hs, ws_ = s_nchw.shape
    # NCHW already IS the channels-on-sublane / spatial-on-lane layout: pure
    # reshapes only, no transpose/cast kernels in front of the fused call.
    x = c_nchw.reshape(n, c0, h0 * w0)
    sty = s_nchw.reshape(ns, cs, hs * ws_)
    weights = [params[k] for k in _WEIGHT_ORDER]

    m1, m2, m3 = h0 * w0, 4 * h0 * w0, 16 * h0 * w0
    mac = (32 * 16 * m1 + 16 * 32 * m1                    # block 1
           + 16 * 16 * m1 + 8 * 16 * m2 + 8 * m2 * m2     # block 2 (+ interleave)
           + 32 * 8 * m2                                  # block 3
           + 32 * 128 * m2 + 8 * m3 * m3)                 # stem (+ interleave)
    wbytes = sum(int(w.size) * w.dtype.itemsize for w in weights)
    cost = pl.CostEstimate(
        flops=int(2 * n * mac),
        transcendentals=int(32 * n),
        bytes_accessed=int(4 * x.size + 4 * sty.size + 4 * n * 3 * m3 + wbytes))

    out = pl.pallas_call(
        functools.partial(_decoder_kernel, h0=h0, w0=w0),
        out_shape=jax.ShapeDtypeStruct((n, 3, m3), jnp.float32),
        grid=(n,),
        in_specs=[pl.BlockSpec((1, c0, m1), lambda i: (i, 0, 0)),
                  pl.BlockSpec((1, cs, hs * ws_), lambda i: (i, 0, 0))]
                 + [_full_spec(w) for w in weights],
        out_specs=pl.BlockSpec((1, 3, m3), lambda i: (i, 0, 0)),
        compiler_params=pltpu.CompilerParams(
            dimension_semantics=("parallel",),
            vmem_limit_bytes=32 * 1024 * 1024),
        cost_estimate=cost,
    )(x, sty, *weights)
    # lanes are already row-major 32x32 per channel -> pure (free) reshape.
    return out.reshape(n, 3, 4 * h0, 4 * w0)


# ----------------------------------- main -----------------------------------

if __name__ == "__main__":
    params = build_decoder_params(seed=0)
    key = jax.random.PRNGKey(0)
    k1, k2 = jax.random.split(key)
    # decoder input feature map (NCHW): 16 channels, 8x8 spatial
    c = jax.random.normal(k1, (2, 16, 8, 8), jnp.float32)
    # one encoded style tensor for the single AdaIN insert layer
    s = jax.random.normal(k2, (2, 16, 8, 8), jnp.float32)

    out = jax.jit(decoder_forward)(params, c, [s])
    out = jax.block_until_ready(out)
    assert out.shape == (2, 3, 32, 32), out.shape
    assert bool(jnp.all(jnp.isfinite(out)))
    print("KERNEL_OK")
</pallas_src>

<mosaic_0001>
module attributes {stable_mosaic.version = 11 : i64} {
  func.func @_decoder_kernel(%arg0: i32, %arg1: memref<1x16x64xf32, #tpu.memory_space<vmem>>, %arg2: memref<1x16x64xf32, #tpu.memory_space<vmem>>, %arg3: memref<32x16xbf16, #tpu.memory_space<vmem>>, %arg4: memref<32x1xf32, #tpu.memory_space<vmem>>, %arg5: memref<32x9xf32, #tpu.memory_space<vmem>>, %arg6: memref<32x1xf32, #tpu.memory_space<vmem>>, %arg7: memref<16x32xbf16, #tpu.memory_space<vmem>>, %arg8: memref<16x1xf32, #tpu.memory_space<vmem>>, %arg9: memref<16x16xbf16, #tpu.memory_space<vmem>>, %arg10: memref<16x1xf32, #tpu.memory_space<vmem>>, %arg11: memref<16x9xf32, #tpu.memory_space<vmem>>, %arg12: memref<16x1xf32, #tpu.memory_space<vmem>>, %arg13: memref<8x16xbf16, #tpu.memory_space<vmem>>, %arg14: memref<8x1xf32, #tpu.memory_space<vmem>>, %arg15: memref<256x256xbf16, #tpu.memory_space<vmem>>, %arg16: memref<8x9xf32, #tpu.memory_space<vmem>>, %arg17: memref<8x1xf32, #tpu.memory_space<vmem>>, %arg18: memref<32x8xbf16, #tpu.memory_space<vmem>>, %arg19: memref<32x1xf32, #tpu.memory_space<vmem>>, %arg20: memref<32x128xbf16, #tpu.memory_space<vmem>>, %arg21: memref<32x1xf32, #tpu.memory_space<vmem>>, %arg22: memref<1024x1024xbf16, #tpu.memory_space<vmem>>, %arg23: memref<1x3x1024xf32, #tpu.memory_space<vmem>>) attributes {dimension_semantics = [#tpu.dimension_semantics<parallel>], iteration_bounds = array<i64: 2>, scalar_prefetch = 0 : i64, scratch_operands = 0 : i64, tpu.core_type = #tpu.core_type<tc>, window_params = [{transform_indices = @transform_0, window_bounds = array<i64: 1, 16, 64>}, {transform_indices = @transform_1, window_bounds = array<i64: 1, 16, 64>}, {pipeline_mode = #tpu.pipeline_mode<synchronous>, transform_indices = @transform_2, window_bounds = array<i64: 32, 16>}, {pipeline_mode = #tpu.pipeline_mode<synchronous>, transform_indices = @transform_3, window_bounds = array<i64: 32, 1>}, {pipeline_mode = #tpu.pipeline_mode<synchronous>, transform_indices = @transform_4, window_bounds = array<i64: 32, 9>}, {pipeline_mode = #tpu.pipeline_mode<synchronous>, transform_indices = @transform_5, window_bounds = array<i64: 32, 1>}, {pipeline_mode = #tpu.pipeline_mode<synchronous>, transform_indices = @transform_6, window_bounds = array<i64: 16, 32>}, {pipeline_mode = #tpu.pipeline_mode<synchronous>, transform_indices = @transform_7, window_bounds = array<i64: 16, 1>}, {pipeline_mode = #tpu.pipeline_mode<synchronous>, transform_indices = @transform_8, window_bounds = array<i64: 16, 16>}, {pipeline_mode = #tpu.pipeline_mode<synchronous>, transform_indices = @transform_9, window_bounds = array<i64: 16, 1>}, {pipeline_mode = #tpu.pipeline_mode<synchronous>, transform_indices = @transform_10, window_bounds = array<i64: 16, 9>}, {pipeline_mode = #tpu.pipeline_mode<synchronous>, transform_indices = @transform_11, window_bounds = array<i64: 16, 1>}, {pipeline_mode = #tpu.pipeline_mode<synchronous>, transform_indices = @transform_12, window_bounds = array<i64: 8, 16>}, {pipeline_mode = #tpu.pipeline_mode<synchronous>, transform_indices = @transform_13, window_bounds = array<i64: 8, 1>}, {pipeline_mode = #tpu.pipeline_mode<synchronous>, transform_indices = @transform_14, window_bounds = array<i64: 256, 256>}, {pipeline_mode = #tpu.pipeline_mode<synchronous>, transform_indices = @transform_15, window_bounds = array<i64: 8, 9>}, {pipeline_mode = #tpu.pipeline_mode<synchronous>, transform_indices = @transform_16, window_bounds = array<i64: 8, 1>}, {pipeline_mode = #tpu.pipeline_mode<synchronous>, transform_indices = @transform_17, window_bounds = array<i64: 32, 8>}, {pipeline_mode = #tpu.pipeline_mode<synchronous>, transform_indices = @transform_18, window_bounds = array<i64: 32, 1>}, {pipeline_mode = #tpu.pipeline_mode<synchronous>, transform_indices = @transform_19, window_bounds = array<i64: 32, 128>}, {pipeline_mode = #tpu.pipeline_mode<synchronous>, transform_indices = @transform_20, window_bounds = array<i64: 32, 1>}, {pipeline_mode = #tpu.pipeline_mode<synchronous>, transform_indices = @transform_21, window_bounds = array<i64: 1024, 1024>}, {transform_indices = @transform_22, window_bounds = array<i64: 1, 3, 1024>}]} {
    %0 = tpu.iota {dimensions = array<i32: 1>} : vector<1x64xi32>
    %c7_i32 = arith.constant 7 : i32
    %1 = vector.broadcast %c7_i32 : i32 to vector<1x64xi32>
    %2 = arith.andi %0, %1 : vector<1x64xi32>
    %3 = tpu.iota {dimensions = array<i32: 1>} : vector<1x256xi32>
    %c15_i32 = arith.constant 15 : i32
    %4 = vector.broadcast %c15_i32 : i32 to vector<1x256xi32>
    %5 = arith.andi %3, %4 : vector<1x256xi32>
    %c0 = arith.constant 0 : index
    %c0_0 = arith.constant 0 : index
    %c0_1 = arith.constant 0 : index
    %6 = vector.load %arg1[%c0, %c0_0, %c0_1] : memref<1x16x64xf32, #tpu.memory_space<vmem>>, vector<1x16x64xf32>
    %7 = vector.shape_cast %6 : vector<1x16x64xf32> to vector<16x64xf32>
    %c0_2 = arith.constant 0 : index
    %c0_3 = arith.constant 0 : index
    %c0_4 = arith.constant 0 : index
    %8 = vector.load %arg2[%c0_2, %c0_3, %c0_4] : memref<1x16x64xf32, #tpu.memory_space<vmem>>, vector<1x16x64xf32>
    %9 = vector.shape_cast %8 : vector<1x16x64xf32> to vector<16x64xf32>
    %cst = arith.constant dense<0.000000e+00> : vector<16xf32>
    %10 = vector.multi_reduction <add>, %7, %cst [1] : vector<16x64xf32> to vector<16xf32>
    %11 = vector.shape_cast %10 : vector<16xf32> to vector<16x1xf32>
    %cst_5 = arith.constant 6.400000e+01 : f32
    %12 = vector.broadcast %cst_5 : f32 to vector<16x1xf32>
    %13 = arith.divf %11, %12 : vector<16x1xf32>
    %14 = vector.broadcast %13 : vector<16x1xf32> to vector<16x64xf32>
    %15 = arith.subf %7, %14 : vector<16x64xf32>
    %16 = arith.mulf %15, %15 : vector<16x64xf32>
    %cst_6 = arith.constant dense<0.000000e+00> : vector<16xf32>
    %17 = vector.multi_reduction <add>, %16, %cst_6 [1] : vector<16x64xf32> to vector<16xf32>
    %18 = vector.shape_cast %17 : vector<16xf32> to vector<16x1xf32>
    %cst_7 = arith.constant 6.400000e+01 : f32
    %19 = vector.broadcast %cst_7 : f32 to vector<16x1xf32>
    %20 = arith.divf %18, %19 : vector<16x1xf32>
    %cst_8 = arith.constant dense<0.000000e+00> : vector<16xf32>
    %21 = vector.multi_reduction <add>, %9, %cst_8 [1] : vector<16x64xf32> to vector<16xf32>
    %22 = vector.shape_cast %21 : vector<16xf32> to vector<16x1xf32>
    %cst_9 = arith.constant 6.400000e+01 : f32
    %23 = vector.broadcast %cst_9 : f32 to vector<16x1xf32>
    %24 = arith.divf %22, %23 : vector<16x1xf32>
    %25 = vector.broadcast %24 : vector<16x1xf32> to vector<16x64xf32>
    %26 = arith.subf %9, %25 : vector<16x64xf32>
    %27 = arith.mulf %26, %26 : vector<16x64xf32>
    %cst_10 = arith.constant dense<0.000000e+00> : vector<16xf32>
    %28 = vector.multi_reduction <add>, %27, %cst_10 [1] : vector<16x64xf32> to vector<16xf32>
    %29 = vector.shape_cast %28 : vector<16xf32> to vector<16x1xf32>
    %cst_11 = arith.constant 6.400000e+01 : f32
    %30 = vector.broadcast %cst_11 : f32 to vector<16x1xf32>
    %31 = arith.divf %29, %30 : vector<16x1xf32>
    %32 = vector.broadcast %13 : vector<16x1xf32> to vector<16x64xf32>
    %33 = arith.subf %7, %32 : vector<16x64xf32>
    %cst_12 = arith.constant 9.99999974E-6 : f32
    %34 = vector.broadcast %cst_12 : f32 to vector<16x1xf32>
    %35 = arith.addf %20, %34 : vector<16x1xf32>
    %36 = math.rsqrt %35 : vector<16x1xf32>
    %37 = vector.broadcast %36 : vector<16x1xf32> to vector<16x64xf32>
    %38 = arith.mulf %33, %37 : vector<16x64xf32>
    %cst_13 = arith.constant 9.99999974E-6 : f32
    %39 = vector.broadcast %cst_13 : f32 to vector<16x1xf32>
    %40 = arith.addf %31, %39 : vector<16x1xf32>
    %41 = math.sqrt %40 : vector<16x1xf32>
    %42 = vector.broadcast %41 : vector<16x1xf32> to vector<16x64xf32>
    %43 = arith.mulf %38, %42 : vector<16x64xf32>
    %44 = vector.broadcast %24 : vector<16x1xf32> to vector<16x64xf32>
    %45 = arith.addf %43, %44 : vector<16x64xf32>
    %46 = arith.truncf %45 : vector<16x64xf32> to vector<16x64xbf16>
    %c0_14 = arith.constant 0 : index
    %c0_15 = arith.constant 0 : index
    %47 = vector.load %arg3[%c0_14, %c0_15] : memref<32x16xbf16, #tpu.memory_space<vmem>>, vector<32x16xbf16>
    %cst_16 = arith.constant dense<0.000000e+00> : vector<32x64xf32>
    %48 = tpu.matmul %47, %46, %cst_16 {dimension_numbers = #tpu.dot_dimension_numbers<[1], [0], [0], [1], [0, 0, 1, 1], [], []>} : vector<32x16xbf16>, vector<16x64xbf16>, vector<32x64xf32> -> vector<32x64xf32>
    %c0_17 = arith.constant 0 : index
    %c0_18 = arith.constant 0 : index
    %49 = vector.load %arg4[%c0_17, %c0_18] : memref<32x1xf32, #tpu.memory_space<vmem>>, vector<32x1xf32>
    %50 = vector.broadcast %49 : vector<32x1xf32> to vector<32x64xf32>
    %51 = arith.addf %48, %50 : vector<32x64xf32>
    %cst_19 = arith.constant 0.000000e+00 : f32
    %cst_20 = arith.constant 6.000000e+00 : f32
    %52 = vector.broadcast %cst_19 : f32 to vector<32x64xf32>
    %53 = arith.maximumf %52, %51 : vector<32x64xf32>
    %54 = vector.broadcast %cst_20 : f32 to vector<32x64xf32>
    %55 = arith.minimumf %54, %53 : vector<32x64xf32>
    %c0_21 = arith.constant 0 : index
    %c0_22 = arith.constant 0 : index
    %56 = vector.load %arg5[%c0_21, %c0_22] : memref<32x9xf32, #tpu.memory_space<vmem>>, vector<32x9xf32>
    %57 = vector.extract_strided_slice %56 {offsets = [0, 4], sizes = [32, 1], strides = [1, 1]} : vector<32x9xf32> to vector<32x1xf32>
    %58 = vector.broadcast %57 : vector<32x1xf32> to vector<32x64xf32>
    %59 = arith.mulf %55, %58 : vector<32x64xf32>
    %cst_23 = arith.constant 0.000000e+00 : f32
    %60 = vector.broadcast %cst_23 : f32 to vector<32x9xf32>
    %61 = vector.extract_strided_slice %55 {offsets = [0, 0], sizes = [32, 55], strides = [1, 1]} : vector<32x64xf32> to vector<32x55xf32>
    %62 = tpu.concatenate %60, %61 in 1 : vector<32x9xf32>, vector<32x55xf32> -> vector<32x64xf32>
    %c1_i32 = arith.constant 1 : i32
    %63 = vector.broadcast %c1_i32 : i32 to vector<1x64xi32>
    %64 = arith.cmpi sge, %2, %63 : vector<1x64xi32>
    %cst_24 = arith.constant 0.000000e+00 : f32
    %65 = vector.broadcast %cst_24 : f32 to vector<32x64xf32>
    %66 = vector.shape_cast %64 : vector<1x64xi1> to vector<1x64xi1>
    %67 = vector.broadcast %66 : vector<1x64xi1> to vector<32x64xi1>
    %68 = arith.select %67, %62, %65 : vector<32x64xi1>, vector<32x64xf32>
    %69 = vector.extract_strided_slice %56 {offsets = [0, 0], sizes = [32, 1], strides = [1, 1]} : vector<32x9xf32> to vector<32x1xf32>
    %70 = vector.broadcast %69 : vector<32x1xf32> to vector<32x64xf32>
    %71 = arith.mulf %68, %70 : vector<32x64xf32>
    %72 = arith.addf %59, %71 : vector<32x64xf32>
    %cst_25 = arith.constant 0.000000e+00 : f32
    %73 = vector.broadcast %cst_25 : f32 to vector<32x8xf32>
    %74 = vector.extract_strided_slice %55 {offsets = [0, 0], sizes = [32, 56], strides = [1, 1]} : vector<32x64xf32> to vector<32x56xf32>
    %75 = tpu.concatenate %73, %74 in 1 : vector<32x8xf32>, vector<32x56xf32> -> vector<32x64xf32>
    %76 = vector.extract_strided_slice %56 {offsets = [0, 1], sizes = [32, 1], strides = [1, 1]} : vector<32x9xf32> to vector<32x1xf32>
    %77 = vector.broadcast %76 : vector<32x1xf32> to vector<32x64xf32>
    %78 = arith.mulf %75, %77 : vector<32x64xf32>
    %79 = arith.addf %72, %78 : vector<32x64xf32>
    %cst_26 = arith.constant 0.000000e+00 : f32
    %80 = vector.broadcast %cst_26 : f32 to vector<32x7xf32>
    %81 = vector.extract_strided_slice %55 {offsets = [0, 0], sizes = [32, 57], strides = [1, 1]} : vector<32x64xf32> to vector<32x57xf32>
    %82 = tpu.concatenate %80, %81 in 1 : vector<32x7xf32>, vector<32x57xf32> -> vector<32x64xf32>
    %c7_i32_27 = arith.constant 7 : i32
    %83 = vector.broadcast %c7_i32_27 : i32 to vector<1x64xi32>
    %84 = arith.cmpi slt, %2, %83 : vector<1x64xi32>
    %cst_28 = arith.constant 0.000000e+00 : f32
    %85 = vector.broadcast %cst_28 : f32 to vector<32x64xf32>
    %86 = vector.shape_cast %84 : vector<1x64xi1> to vector<1x64xi1>
    %87 = vector.broadcast %86 : vector<1x64xi1> to vector<32x64xi1>
    %88 = arith.select %87, %82, %85 : vector<32x64xi1>, vector<32x64xf32>
    %89 = vector.extract_strided_slice %56 {offsets = [0, 2], sizes = [32, 1], strides = [1, 1]} : vector<32x9xf32> to vector<32x1xf32>
    %90 = vector.broadcast %89 : vector<32x1xf32> to vector<32x64xf32>
    %91 = arith.mulf %88, %90 : vector<32x64xf32>
    %92 = arith.addf %79, %91 : vector<32x64xf32>
    %cst_29 = arith.constant 0.000000e+00 : f32
    %93 = vector.broadcast %cst_29 : f32 to vector<32x1xf32>
    %94 = vector.extract_strided_slice %55 {offsets = [0, 0], sizes = [32, 63], strides = [1, 1]} : vector<32x64xf32> to vector<32x63xf32>
    %95 = tpu.concatenate %93, %94 in 1 : vector<32x1xf32>, vector<32x63xf32> -> vector<32x64xf32>
    %c1_i32_30 = arith.constant 1 : i32
    %96 = vector.broadcast %c1_i32_30 : i32 to vector<1x64xi32>
    %97 = arith.cmpi sge, %2, %96 : vector<1x64xi32>
    %cst_31 = arith.constant 0.000000e+00 : f32
    %98 = vector.broadcast %cst_31 : f32 to vector<32x64xf32>
    %99 = vector.shape_cast %97 : vector<1x64xi1> to vector<1x64xi1>
    %100 = vector.broadcast %99 : vector<1x64xi1> to vector<32x64xi1>
    %101 = arith.select %100, %95, %98 : vector<32x64xi1>, vector<32x64xf32>
    %102 = vector.extract_strided_slice %56 {offsets = [0, 3], sizes = [32, 1], strides = [1, 1]} : vector<32x9xf32> to vector<32x1xf32>
    %103 = vector.broadcast %102 : vector<32x1xf32> to vector<32x64xf32>
    %104 = arith.mulf %101, %103 : vector<32x64xf32>
    %105 = arith.addf %92, %104 : vector<32x64xf32>
    %106 = vector.extract_strided_slice %55 {offsets = [0, 1], sizes = [32, 63], strides = [1, 1]} : vector<32x64xf32> to vector<32x63xf32>
    %cst_32 = arith.constant 0.000000e+00 : f32
    %107 = vector.broadcast %cst_32 : f32 to vector<32x1xf32>
    %108 = tpu.concatenate %106, %107 in 1 : vector<32x63xf32>, vector<32x1xf32> -> vector<32x64xf32>
    %c7_i32_33 = arith.constant 7 : i32
    %109 = vector.broadcast %c7_i32_33 : i32 to vector<1x64xi32>
    %110 = arith.cmpi slt, %2, %109 : vector<1x64xi32>
    %cst_34 = arith.constant 0.000000e+00 : f32
    %111 = vector.broadcast %cst_34 : f32 to vector<32x64xf32>
    %112 = vector.shape_cast %110 : vector<1x64xi1> to vector<1x64xi1>
    %113 = vector.broadcast %112 : vector<1x64xi1> to vector<32x64xi1>
    %114 = arith.select %113, %108, %111 : vector<32x64xi1>, vector<32x64xf32>
    %115 = vector.extract_strided_slice %56 {offsets = [0, 5], sizes = [32, 1], strides = [1, 1]} : vector<32x9xf32> to vector<32x1xf32>
    %116 = vector.broadcast %115 : vector<32x1xf32> to vector<32x64xf32>
    %117 = arith.mulf %114, %116 : vector<32x64xf32>
    %118 = arith.addf %105, %117 : vector<32x64xf32>
    %119 = vector.extract_strided_slice %55 {offsets = [0, 7], sizes = [32, 57], strides = [1, 1]} : vector<32x64xf32> to vector<32x57xf32>
    %cst_35 = arith.constant 0.000000e+00 : f32
    %120 = vector.broadcast %cst_35 : f32 to vector<32x7xf32>
    %121 = tpu.concatenate %119, %120 in 1 : vector<32x57xf32>, vector<32x7xf32> -> vector<32x64xf32>
    %c1_i32_36 = arith.constant 1 : i32
    %122 = vector.broadcast %c1_i32_36 : i32 to vector<1x64xi32>
    %123 = arith.cmpi sge, %2, %122 : vector<1x64xi32>
    %cst_37 = arith.constant 0.000000e+00 : f32
    %124 = vector.broadcast %cst_37 : f32 to vector<32x64xf32>
    %125 = vector.shape_cast %123 : vector<1x64xi1> to vector<1x64xi1>
    %126 = vector.broadcast %125 : vector<1x64xi1> to vector<32x64xi1>
    %127 = arith.select %126, %121, %124 : vector<32x64xi1>, vector<32x64xf32>
    %128 = vector.extract_strided_slice %56 {offsets = [0, 6], sizes = [32, 1], strides = [1, 1]} : vector<32x9xf32> to vector<32x1xf32>
    %129 = vector.broadcast %128 : vector<32x1xf32> to vector<32x64xf32>
    %130 = arith.mulf %127, %129 : vector<32x64xf32>
    %131 = arith.addf %118, %130 : vector<32x64xf32>
    %132 = vector.extract_strided_slice %55 {offsets = [0, 8], sizes = [32, 56], strides = [1, 1]} : vector<32x64xf32> to vector<32x56xf32>
    %cst_38 = arith.constant 0.000000e+00 : f32
    %133 = vector.broadcast %cst_38 : f32 to vector<32x8xf32>
    %134 = tpu.concatenate %132, %133 in 1 : vector<32x56xf32>, vector<32x8xf32> -> vector<32x64xf32>
    %135 = vector.extract_strided_slice %56 {offsets = [0, 7], sizes = [32, 1], strides = [1, 1]} : vector<32x9xf32> to vector<32x1xf32>
    %136 = vector.broadcast %135 : vector<32x1xf32> to vector<32x64xf32>
    %137 = arith.mulf %134, %136 : vector<32x64xf32>
    %138 = arith.addf %131, %137 : vector<32x64xf32>
    %139 = vector.extract_strided_slice %55 {offsets = [0, 9], sizes = [32, 55], strides = [1, 1]} : vector<32x64xf32> to vector<32x55xf32>
    %cst_39 = arith.constant 0.000000e+00 : f32
    %140 = vector.broadcast %cst_39 : f32 to vector<32x9xf32>
    %141 = tpu.concatenate %139, %140 in 1 : vector<32x55xf32>, vector<32x9xf32> -> vector<32x64xf32>
    %c7_i32_40 = arith.constant 7 : i32
    %142 = vector.broadcast %c7_i32_40 : i32 to vector<1x64xi32>
    %143 = arith.cmpi slt, %2, %142 : vector<1x64xi32>
    %cst_41 = arith.constant 0.000000e+00 : f32
    %144 = vector.broadcast %cst_41 : f32 to vector<32x64xf32>
    %145 = vector.shape_cast %143 : vector<1x64xi1> to vector<1x64xi1>
    %146 = vector.broadcast %145 : vector<1x64xi1> to vector<32x64xi1>
    %147 = arith.select %146, %141, %144 : vector<32x64xi1>, vector<32x64xf32>
    %148 = vector.extract_strided_slice %56 {offsets = [0, 8], sizes = [32, 1], strides = [1, 1]} : vector<32x9xf32> to vector<32x1xf32>
    %149 = vector.broadcast %148 : vector<32x1xf32> to vector<32x64xf32>
    %150 = arith.mulf %147, %149 : vector<32x64xf32>
    %151 = arith.addf %138, %150 : vector<32x64xf32>
    %c0_42 = arith.constant 0 : index
    %c0_43 = arith.constant 0 : index
    %152 = vector.load %arg6[%c0_42, %c0_43] : memref<32x1xf32, #tpu.memory_space<vmem>>, vector<32x1xf32>
    %153 = vector.broadcast %152 : vector<32x1xf32> to vector<32x64xf32>
    %154 = arith.addf %151, %153 : vector<32x64xf32>
    %cst_44 = arith.constant 0.000000e+00 : f32
    %cst_45 = arith.constant 6.000000e+00 : f32
    %155 = vector.broadcast %cst_44 : f32 to vector<32x64xf32>
    %156 = arith.maximumf %155, %154 : vector<32x64xf32>
    %157 = vector.broadcast %cst_45 : f32 to vector<32x64xf32>
    %158 = arith.minimumf %157, %156 : vector<32x64xf32>
    %c0_46 = arith.constant 0 : index
    %c0_47 = arith.constant 0 : index
    %159 = vector.load %arg7[%c0_46, %c0_47] : memref<16x32xbf16, #tpu.memory_space<vmem>>, vector<16x32xbf16>
    %160 = arith.truncf %158 : vector<32x64xf32> to vector<32x64xbf16>
    %cst_48 = arith.constant dense<0.000000e+00> : vector<16x64xf32>
    %161 = tpu.matmul %159, %160, %cst_48 {dimension_numbers = #tpu.dot_dimension_numbers<[1], [0], [0], [1], [0, 0, 1, 1], [], []>} : vector<16x32xbf16>, vector<32x64xbf16>, vector<16x64xf32> -> vector<16x64xf32>
    %c0_49 = arith.constant 0 : index
    %c0_50 = arith.constant 0 : index
    %162 = vector.load %arg8[%c0_49, %c0_50] : memref<16x1xf32, #tpu.memory_space<vmem>>, vector<16x1xf32>
    %163 = vector.broadcast %162 : vector<16x1xf32> to vector<16x64xf32>
    %164 = arith.addf %161, %163 : vector<16x64xf32>
    %165 = arith.extf %46 : vector<16x64xbf16> to vector<16x64xf32>
    %166 = arith.addf %164, %165 : vector<16x64xf32>
    %167 = arith.truncf %166 : vector<16x64xf32> to vector<16x64xbf16>
    %c0_51 = arith.constant 0 : index
    %c0_52 = arith.constant 0 : index
    %168 = vector.load %arg9[%c0_51, %c0_52] : memref<16x16xbf16, #tpu.memory_space<vmem>>, vector<16x16xbf16>
    %cst_53 = arith.constant dense<0.000000e+00> : vector<16x64xf32>
    %169 = tpu.matmul %168, %167, %cst_53 {dimension_numbers = #tpu.dot_dimension_numbers<[1], [0], [0], [1], [0, 0, 1, 1], [], []>} : vector<16x16xbf16>, vector<16x64xbf16>, vector<16x64xf32> -> vector<16x64xf32>
    %c0_54 = arith.constant 0 : index
    %c0_55 = arith.constant 0 : index
    %170 = vector.load %arg10[%c0_54, %c0_55] : memref<16x1xf32, #tpu.memory_space<vmem>>, vector<16x1xf32>
    %171 = vector.broadcast %170 : vector<16x1xf32> to vector<16x64xf32>
    %172 = arith.addf %169, %171 : vector<16x64xf32>
    %cst_56 = arith.constant 0.000000e+00 : f32
    %cst_57 = arith.constant 6.000000e+00 : f32
    %173 = vector.broadcast %cst_56 : f32 to vector<16x64xf32>
    %174 = arith.maximumf %173, %172 : vector<16x64xf32>
    %175 = vector.broadcast %cst_57 : f32 to vector<16x64xf32>
    %176 = arith.minimumf %175, %174 : vector<16x64xf32>
    %c0_58 = arith.constant 0 : index
    %c0_59 = arith.constant 0 : index
    %177 = vector.load %arg11[%c0_58, %c0_59] : memref<16x9xf32, #tpu.memory_space<vmem>>, vector<16x9xf32>
    %178 = vector.extract_strided_slice %176 {offsets = [0, 1], sizes = [16, 63], strides = [1, 1]} : vector<16x64xf32> to vector<16x63xf32>
    %cst_60 = arith.constant 0.000000e+00 : f32
    %179 = vector.broadcast %cst_60 : f32 to vector<16x1xf32>
    %180 = tpu.concatenate %178, %179 in 1 : vector<16x63xf32>, vector<16x1xf32> -> vector<16x64xf32>
    %c7_i32_61 = arith.constant 7 : i32
    %181 = vector.broadcast %c7_i32_61 : i32 to vector<1x64xi32>
    %182 = arith.cmpi slt, %2, %181 : vector<1x64xi32>
    %cst_62 = arith.constant 0.000000e+00 : f32
    %183 = vector.broadcast %cst_62 : f32 to vector<16x64xf32>
    %184 = vector.shape_cast %182 : vector<1x64xi1> to vector<1x64xi1>
    %185 = vector.broadcast %184 : vector<1x64xi1> to vector<16x64xi1>
    %186 = arith.select %185, %180, %183 : vector<16x64xi1>, vector<16x64xf32>
    %187 = vector.extract_strided_slice %176 {offsets = [0, 8], sizes = [16, 56], strides = [1, 1]} : vector<16x64xf32> to vector<16x56xf32>
    %cst_63 = arith.constant 0.000000e+00 : f32
    %188 = vector.broadcast %cst_63 : f32 to vector<16x8xf32>
    %189 = tpu.concatenate %187, %188 in 1 : vector<16x56xf32>, vector<16x8xf32> -> vector<16x64xf32>
    %190 = vector.extract_strided_slice %176 {offsets = [0, 9], sizes = [16, 55], strides = [1, 1]} : vector<16x64xf32> to vector<16x55xf32>
    %cst_64 = arith.constant 0.000000e+00 : f32
    %191 = vector.broadcast %cst_64 : f32 to vector<16x9xf32>
    %192 = tpu.concatenate %190, %191 in 1 : vector<16x55xf32>, vector<16x9xf32> -> vector<16x64xf32>
    %c7_i32_65 = arith.constant 7 : i32
    %193 = vector.broadcast %c7_i32_65 : i32 to vector<1x64xi32>
    %194 = arith.cmpi slt, %2, %193 : vector<1x64xi32>
    %cst_66 = arith.constant 0.000000e+00 : f32
    %195 = vector.broadcast %cst_66 : f32 to vector<16x64xf32>
    %196 = vector.shape_cast %194 : vector<1x64xi1> to vector<1x64xi1>
    %197 = vector.broadcast %196 : vector<1x64xi1> to vector<16x64xi1>
    %198 = arith.select %197, %192, %195 : vector<16x64xi1>, vector<16x64xf32>
    %199 = vector.extract_strided_slice %177 {offsets = [0, 4], sizes = [16, 1], strides = [1, 1]} : vector<16x9xf32> to vector<16x1xf32>
    %200 = vector.broadcast %199 : vector<16x1xf32> to vector<16x64xf32>
    %201 = arith.mulf %176, %200 : vector<16x64xf32>
    %202 = vector.extract_strided_slice %177 {offsets = [0, 3], sizes = [16, 1], strides = [1, 1]} : vector<16x9xf32> to vector<16x1xf32>
    %203 = vector.broadcast %202 : vector<16x1xf32> to vector<16x64xf32>
    %204 = arith.mulf %176, %203 : vector<16x64xf32>
    %205 = vector.extract_strided_slice %177 {offsets = [0, 5], sizes = [16, 1], strides = [1, 1]} : vector<16x9xf32> to vector<16x1xf32>
    %206 = vector.broadcast %205 : vector<16x1xf32> to vector<16x64xf32>
    %207 = arith.mulf %186, %206 : vector<16x64xf32>
    %208 = arith.addf %204, %207 : vector<16x64xf32>
    %209 = vector.extract_strided_slice %177 {offsets = [0, 1], sizes = [16, 1], strides = [1, 1]} : vector<16x9xf32> to vector<16x1xf32>
    %210 = vector.broadcast %209 : vector<16x1xf32> to vector<16x64xf32>
    %211 = arith.mulf %176, %210 : vector<16x64xf32>
    %212 = vector.extract_strided_slice %177 {offsets = [0, 7], sizes = [16, 1], strides = [1, 1]} : vector<16x9xf32> to vector<16x1xf32>
    %213 = vector.broadcast %212 : vector<16x1xf32> to vector<16x64xf32>
    %214 = arith.mulf %189, %213 : vector<16x64xf32>
    %215 = arith.addf %211, %214 : vector<16x64xf32>
    %216 = vector.extract_strided_slice %177 {offsets = [0, 0], sizes = [16, 1], strides = [1, 1]} : vector<16x9xf32> to vector<16x1xf32>
    %217 = vector.broadcast %216 : vector<16x1xf32> to vector<16x64xf32>
    %218 = arith.mulf %176, %217 : vector<16x64xf32>
    %219 = vector.extract_strided_slice %177 {offsets = [0, 2], sizes = [16, 1], strides = [1, 1]} : vector<16x9xf32> to vector<16x1xf32>
    %220 = vector.broadcast %219 : vector<16x1xf32> to vector<16x64xf32>
    %221 = arith.mulf %186, %220 : vector<16x64xf32>
    %222 = arith.addf %218, %221 : vector<16x64xf32>
    %223 = vector.extract_strided_slice %177 {offsets = [0, 6], sizes = [16, 1], strides = [1, 1]} : vector<16x9xf32> to vector<16x1xf32>
    %224 = vector.broadcast %223 : vector<16x1xf32> to vector<16x64xf32>
    %225 = arith.mulf %189, %224 : vector<16x64xf32>
    %226 = arith.addf %222, %225 : vector<16x64xf32>
    %227 = vector.extract_strided_slice %177 {offsets = [0, 8], sizes = [16, 1], strides = [1, 1]} : vector<16x9xf32> to vector<16x1xf32>
    %228 = vector.broadcast %227 : vector<16x1xf32> to vector<16x64xf32>
    %229 = arith.mulf %198, %228 : vector<16x64xf32>
    %230 = arith.addf %226, %229 : vector<16x64xf32>
    %231 = tpu.concatenate %201, %208, %215, %230 in 1 : vector<16x64xf32>, vector<16x64xf32>, vector<16x64xf32>, vector<16x64xf32> -> vector<16x256xf32>
    %c0_67 = arith.constant 0 : index
    %c0_68 = arith.constant 0 : index
    %232 = vector.load %arg12[%c0_67, %c0_68] : memref<16x1xf32, #tpu.memory_space<vmem>>, vector<16x1xf32>
    %233 = vector.broadcast %232 : vector<16x1xf32> to vector<16x256xf32>
    %234 = arith.addf %231, %233 : vector<16x256xf32>
    %cst_69 = arith.constant 0.000000e+00 : f32
    %cst_70 = arith.constant 6.000000e+00 : f32
    %235 = vector.broadcast %cst_69 : f32 to vector<16x256xf32>
    %236 = arith.maximumf %235, %234 : vector<16x256xf32>
    %237 = vector.broadcast %cst_70 : f32 to vector<16x256xf32>
    %238 = arith.minimumf %237, %236 : vector<16x256xf32>
    %239 = arith.truncf %238 : vector<16x256xf32> to vector<16x256xbf16>
    %c0_71 = arith.constant 0 : index
    %c0_72 = arith.constant 0 : index
    %240 = vector.load %arg13[%c0_71, %c0_72] : memref<8x16xbf16, #tpu.memory_space<vmem>>, vector<8x16xbf16>
    %cst_73 = arith.constant dense<0.000000e+00> : vector<8x256xf32>
    %241 = tpu.matmul %240, %239, %cst_73 {dimension_numbers = #tpu.dot_dimension_numbers<[1], [0], [0], [1], [0, 0, 1, 1], [], []>} : vector<8x16xbf16>, vector<16x256xbf16>, vector<8x256xf32> -> vector<8x256xf32>
    %c0_74 = arith.constant 0 : index
    %c0_75 = arith.constant 0 : index
    %242 = vector.load %arg14[%c0_74, %c0_75] : memref<8x1xf32, #tpu.memory_space<vmem>>, vector<8x1xf32>
    %243 = vector.broadcast %242 : vector<8x1xf32> to vector<8x256xf32>
    %244 = arith.addf %241, %243 : vector<8x256xf32>
    %245 = arith.truncf %244 : vector<8x256xf32> to vector<8x256xbf16>
    %c0_76 = arith.constant 0 : index
    %c0_77 = arith.constant 0 : index
    %246 = vector.load %arg15[%c0_76, %c0_77] : memref<256x256xbf16, #tpu.memory_space<vmem>>, vector<256x256xbf16>
    %cst_78 = arith.constant dense<0.000000e+00> : vector<8x256xf32>
    %247 = tpu.matmul %245, %246, %cst_78 {dimension_numbers = #tpu.dot_dimension_numbers<[1], [0], [0], [1], [0, 0, 1, 1], [], []>} : vector<8x256xbf16>, vector<256x256xbf16>, vector<8x256xf32> -> vector<8x256xf32>
    %c0_79 = arith.constant 0 : index
    %c0_80 = arith.constant 0 : index
    %248 = vector.load %arg16[%c0_79, %c0_80] : memref<8x9xf32, #tpu.memory_space<vmem>>, vector<8x9xf32>
    %249 = vector.extract_strided_slice %248 {offsets = [0, 4], sizes = [8, 1], strides = [1, 1]} : vector<8x9xf32> to vector<8x1xf32>
    %250 = vector.broadcast %249 : vector<8x1xf32> to vector<8x256xf32>
    %251 = arith.mulf %247, %250 : vector<8x256xf32>
    %cst_81 = arith.constant 0.000000e+00 : f32
    %252 = vector.broadcast %cst_81 : f32 to vector<8x17xf32>
    %253 = vector.extract_strided_slice %247 {offsets = [0, 0], sizes = [8, 239], strides = [1, 1]} : vector<8x256xf32> to vector<8x239xf32>
    %254 = tpu.concatenate %252, %253 in 1 : vector<8x17xf32>, vector<8x239xf32> -> vector<8x256xf32>
    %c1_i32_82 = arith.constant 1 : i32
    %255 = vector.broadcast %c1_i32_82 : i32 to vector<1x256xi32>
    %256 = arith.cmpi sge, %5, %255 : vector<1x256xi32>
    %cst_83 = arith.constant 0.000000e+00 : f32
    %257 = vector.broadcast %cst_83 : f32 to vector<8x256xf32>
    %258 = vector.shape_cast %256 : vector<1x256xi1> to vector<1x256xi1>
    %259 = vector.broadcast %258 : vector<1x256xi1> to vector<8x256xi1>
    %260 = arith.select %259, %254, %257 : vector<8x256xi1>, vector<8x256xf32>
    %261 = vector.extract_strided_slice %248 {offsets = [0, 0], sizes = [8, 1], strides = [1, 1]} : vector<8x9xf32> to vector<8x1xf32>
    %262 = vector.broadcast %261 : vector<8x1xf32> to vector<8x256xf32>
    %263 = arith.mulf %260, %262 : vector<8x256xf32>
    %264 = arith.addf %251, %263 : vector<8x256xf32>
    %cst_84 = arith.constant 0.000000e+00 : f32
    %265 = vector.broadcast %cst_84 : f32 to vector<8x16xf32>
    %266 = vector.extract_strided_slice %247 {offsets = [0, 0], sizes = [8, 240], strides = [1, 1]} : vector<8x256xf32> to vector<8x240xf32>
    %267 = tpu.concatenate %265, %266 in 1 : vector<8x16xf32>, vector<8x240xf32> -> vector<8x256xf32>
    %268 = vector.extract_strided_slice %248 {offsets = [0, 1], sizes = [8, 1], strides = [1, 1]} : vector<8x9xf32> to vector<8x1xf32>
    %269 = vector.broadcast %268 : vector<8x1xf32> to vector<8x256xf32>
    %270 = arith.mulf %267, %269 : vector<8x256xf32>
    %271 = arith.addf %264, %270 : vector<8x256xf32>
    %cst_85 = arith.constant 0.000000e+00 : f32
    %272 = vector.broadcast %cst_85 : f32 to vector<8x15xf32>
    %273 = vector.extract_strided_slice %247 {offsets = [0, 0], sizes = [8, 241], strides = [1, 1]} : vector<8x256xf32> to vector<8x241xf32>
    %274 = tpu.concatenate %272, %273 in 1 : vector<8x15xf32>, vector<8x241xf32> -> vector<8x256xf32>
    %c15_i32_86 = arith.constant 15 : i32
    %275 = vector.broadcast %c15_i32_86 : i32 to vector<1x256xi32>
    %276 = arith.cmpi slt, %5, %275 : vector<1x256xi32>
    %cst_87 = arith.constant 0.000000e+00 : f32
    %277 = vector.broadcast %cst_87 : f32 to vector<8x256xf32>
    %278 = vector.shape_cast %276 : vector<1x256xi1> to vector<1x256xi1>
    %279 = vector.broadcast %278 : vector<1x256xi1> to vector<8x256xi1>
    %280 = arith.select %279, %274, %277 : vector<8x256xi1>, vector<8x256xf32>
    %281 = vector.extract_strided_slice %248 {offsets = [0, 2], sizes = [8, 1], strides = [1, 1]} : vector<8x9xf32> to vector<8x1xf32>
    %282 = vector.broadcast %281 : vector<8x1xf32> to vector<8x256xf32>
    %283 = arith.mulf %280, %282 : vector<8x256xf32>
    %284 = arith.addf %271, %283 : vector<8x256xf32>
    %cst_88 = arith.constant 0.000000e+00 : f32
    %285 = vector.broadcast %cst_88 : f32 to vector<8x1xf32>
    %286 = vector.extract_strided_slice %247 {offsets = [0, 0], sizes = [8, 255], strides = [1, 1]} : vector<8x256xf32> to vector<8x255xf32>
    %287 = tpu.concatenate %285, %286 in 1 : vector<8x1xf32>, vector<8x255xf32> -> vector<8x256xf32>
    %c1_i32_89 = arith.constant 1 : i32
    %288 = vector.broadcast %c1_i32_89 : i32 to vector<1x256xi32>
    %289 = arith.cmpi sge, %5, %288 : vector<1x256xi32>
    %cst_90 = arith.constant 0.000000e+00 : f32
    %290 = vector.broadcast %cst_90 : f32 to vector<8x256xf32>
    %291 = vector.shape_cast %289 : vector<1x256xi1> to vector<1x256xi1>
    %292 = vector.broadcast %291 : vector<1x256xi1> to vector<8x256xi1>
    %293 = arith.select %292, %287, %290 : vector<8x256xi1>, vector<8x256xf32>
    %294 = vector.extract_strided_slice %248 {offsets = [0, 3], sizes = [8, 1], strides = [1, 1]} : vector<8x9xf32> to vector<8x1xf32>
    %295 = vector.broadcast %294 : vector<8x1xf32> to vector<8x256xf32>
    %296 = arith.mulf %293, %295 : vector<8x256xf32>
    %297 = arith.addf %284, %296 : vector<8x256xf32>
    %298 = vector.extract_strided_slice %247 {offsets = [0, 1], sizes = [8, 255], strides = [1, 1]} : vector<8x256xf32> to vector<8x255xf32>
    %cst_91 = arith.constant 0.000000e+00 : f32
    %299 = vector.broadcast %cst_91 : f32 to vector<8x1xf32>
    %300 = tpu.concatenate %298, %299 in 1 : vector<8x255xf32>, vector<8x1xf32> -> vector<8x256xf32>
    %c15_i32_92 = arith.constant 15 : i32
    %301 = vector.broadcast %c15_i32_92 : i32 to vector<1x256xi32>
    %302 = arith.cmpi slt, %5, %301 : vector<1x256xi32>
    %cst_93 = arith.constant 0.000000e+00 : f32
    %303 = vector.broadcast %cst_93 : f32 to vector<8x256xf32>
    %304 = vector.shape_cast %302 : vector<1x256xi1> to vector<1x256xi1>
    %305 = vector.broadcast %304 : vector<1x256xi1> to vector<8x256xi1>
    %306 = arith.select %305, %300, %303 : vector<8x256xi1>, vector<8x256xf32>
    %307 = vector.extract_strided_slice %248 {offsets = [0, 5], sizes = [8, 1], strides = [1, 1]} : vector<8x9xf32> to vector<8x1xf32>
    %308 = vector.broadcast %307 : vector<8x1xf32> to vector<8x256xf32>
    %309 = arith.mulf %306, %308 : vector<8x256xf32>
    %310 = arith.addf %297, %309 : vector<8x256xf32>
    %311 = vector.extract_strided_slice %247 {offsets = [0, 15], sizes = [8, 241], strides = [1, 1]} : vector<8x256xf32> to vector<8x241xf32>
    %cst_94 = arith.constant 0.000000e+00 : f32
    %312 = vector.broadcast %cst_94 : f32 to vector<8x15xf32>
    %313 = tpu.concatenate %311, %312 in 1 : vector<8x241xf32>, vector<8x15xf32> -> vector<8x256xf32>
    %c1_i32_95 = arith.constant 1 : i32
    %314 = vector.broadcast %c1_i32_95 : i32 to vector<1x256xi32>
    %315 = arith.cmpi sge, %5, %314 : vector<1x256xi32>
    %cst_96 = arith.constant 0.000000e+00 : f32
    %316 = vector.broadcast %cst_96 : f32 to vector<8x256xf32>
    %317 = vector.shape_cast %315 : vector<1x256xi1> to vector<1x256xi1>
    %318 = vector.broadcast %317 : vector<1x256xi1> to vector<8x256xi1>
    %319 = arith.select %318, %313, %316 : vector<8x256xi1>, vector<8x256xf32>
    %320 = vector.extract_strided_slice %248 {offsets = [0, 6], sizes = [8, 1], strides = [1, 1]} : vector<8x9xf32> to vector<8x1xf32>
    %321 = vector.broadcast %320 : vector<8x1xf32> to vector<8x256xf32>
    %322 = arith.mulf %319, %321 : vector<8x256xf32>
    %323 = arith.addf %310, %322 : vector<8x256xf32>
    %324 = vector.extract_strided_slice %247 {offsets = [0, 16], sizes = [8, 240], strides = [1, 1]} : vector<8x256xf32> to vector<8x240xf32>
    %cst_97 = arith.constant 0.000000e+00 : f32
    %325 = vector.broadcast %cst_97 : f32 to vector<8x16xf32>
    %326 = tpu.concatenate %324, %325 in 1 : vector<8x240xf32>, vector<8x16xf32> -> vector<8x256xf32>
    %327 = vector.extract_strided_slice %248 {offsets = [0, 7], sizes = [8, 1], strides = [1, 1]} : vector<8x9xf32> to vector<8x1xf32>
    %328 = vector.broadcast %327 : vector<8x1xf32> to vector<8x256xf32>
    %329 = arith.mulf %326, %328 : vector<8x256xf32>
    %330 = arith.addf %323, %329 : vector<8x256xf32>
    %331 = vector.extract_strided_slice %247 {offsets = [0, 17], sizes = [8, 239], strides = [1, 1]} : vector<8x256xf32> to vector<8x239xf32>
    %cst_98 = arith.constant 0.000000e+00 : f32
    %332 = vector.broadcast %cst_98 : f32 to vector<8x17xf32>
    %333 = tpu.concatenate %331, %332 in 1 : vector<8x239xf32>, vector<8x17xf32> -> vector<8x256xf32>
    %c15_i32_99 = arith.constant 15 : i32
    %334 = vector.broadcast %c15_i32_99 : i32 to vector<1x256xi32>
    %335 = arith.cmpi slt, %5, %334 : vector<1x256xi32>
    %cst_100 = arith.constant 0.000000e+00 : f32
    %336 = vector.broadcast %cst_100 : f32 to vector<8x256xf32>
    %337 = vector.shape_cast %335 : vector<1x256xi1> to vector<1x256xi1>
    %338 = vector.broadcast %337 : vector<1x256xi1> to vector<8x256xi1>
    %339 = arith.select %338, %333, %336 : vector<8x256xi1>, vector<8x256xf32>
    %340 = vector.extract_strided_slice %248 {offsets = [0, 8], sizes = [8, 1], strides = [1, 1]} : vector<8x9xf32> to vector<8x1xf32>
    %341 = vector.broadcast %340 : vector<8x1xf32> to vector<8x256xf32>
    %342 = arith.mulf %339, %341 : vector<8x256xf32>
    %343 = arith.addf %330, %342 : vector<8x256xf32>
    %c0_101 = arith.constant 0 : index
    %c0_102 = arith.constant 0 : index
    %344 = vector.load %arg17[%c0_101, %c0_102] : memref<8x1xf32, #tpu.memory_space<vmem>>, vector<8x1xf32>
    %345 = vector.broadcast %344 : vector<8x1xf32> to vector<8x256xf32>
    %346 = arith.addf %343, %345 : vector<8x256xf32>
    %cst_103 = arith.constant 0.000000e+00 : f32
    %cst_104 = arith.constant 6.000000e+00 : f32
    %347 = vector.broadcast %cst_103 : f32 to vector<8x256xf32>
    %348 = arith.maximumf %347, %346 : vector<8x256xf32>
    %349 = vector.broadcast %cst_104 : f32 to vector<8x256xf32>
    %350 = arith.minimumf %349, %348 : vector<8x256xf32>
    %c0_105 = arith.constant 0 : index
    %c0_106 = arith.constant 0 : index
    %351 = vector.load %arg18[%c0_105, %c0_106] : memref<32x8xbf16, #tpu.memory_space<vmem>>, vector<32x8xbf16>
    %352 = arith.truncf %350 : vector<8x256xf32> to vector<8x256xbf16>
    %cst_107 = arith.constant dense<0.000000e+00> : vector<32x256xf32>
    %353 = tpu.matmul %351, %352, %cst_107 {dimension_numbers = #tpu.dot_dimension_numbers<[1], [0], [0], [1], [0, 0, 1, 1], [], []>} : vector<32x8xbf16>, vector<8x256xbf16>, vector<32x256xf32> -> vector<32x256xf32>
    %c0_108 = arith.constant 0 : index
    %c0_109 = arith.constant 0 : index
    %354 = vector.load %arg19[%c0_108, %c0_109] : memref<32x1xf32, #tpu.memory_space<vmem>>, vector<32x1xf32>
    %355 = vector.broadcast %354 : vector<32x1xf32> to vector<32x256xf32>
    %356 = arith.addf %353, %355 : vector<32x256xf32>
    %357 = arith.truncf %356 : vector<32x256xf32> to vector<32x256xbf16>
    %358 = vector.extract_strided_slice %357 {offsets = [0, 1], sizes = [32, 255], strides = [1, 1]} : vector<32x256xbf16> to vector<32x255xbf16>
    %cst_110 = arith.constant 0.000000e+00 : bf16
    %359 = vector.broadcast %cst_110 : bf16 to vector<32x1xbf16>
    %360 = tpu.concatenate %358, %359 in 1 : vector<32x255xbf16>, vector<32x1xbf16> -> vector<32x256xbf16>
    %c15_i32_111 = arith.constant 15 : i32
    %361 = vector.broadcast %c15_i32_111 : i32 to vector<1x256xi32>
    %362 = arith.cmpi slt, %5, %361 : vector<1x256xi32>
    %cst_112 = arith.constant 0.000000e+00 : bf16
    %363 = vector.broadcast %cst_112 : bf16 to vector<32x256xbf16>
    %364 = vector.shape_cast %362 : vector<1x256xi1> to vector<1x256xi1>
    %365 = vector.broadcast %364 : vector<1x256xi1> to vector<32x256xi1>
    %366 = arith.select %365, %360, %363 : vector<32x256xi1>, vector<32x256xbf16>
    %367 = vector.extract_strided_slice %357 {offsets = [0, 16], sizes = [32, 240], strides = [1, 1]} : vector<32x256xbf16> to vector<32x240xbf16>
    %cst_113 = arith.constant 0.000000e+00 : bf16
    %368 = vector.broadcast %cst_113 : bf16 to vector<32x16xbf16>
    %369 = tpu.concatenate %367, %368 in 1 : vector<32x240xbf16>, vector<32x16xbf16> -> vector<32x256xbf16>
    %370 = vector.extract_strided_slice %357 {offsets = [0, 17], sizes = [32, 239], strides = [1, 1]} : vector<32x256xbf16> to vector<32x239xbf16>
    %cst_114 = arith.constant 0.000000e+00 : bf16
    %371 = vector.broadcast %cst_114 : bf16 to vector<32x17xbf16>
    %372 = tpu.concatenate %370, %371 in 1 : vector<32x239xbf16>, vector<32x17xbf16> -> vector<32x256xbf16>
    %c15_i32_115 = arith.constant 15 : i32
    %373 = vector.broadcast %c15_i32_115 : i32 to vector<1x256xi32>
    %374 = arith.cmpi slt, %5, %373 : vector<1x256xi32>
    %cst_116 = arith.constant 0.000000e+00 : bf16
    %375 = vector.broadcast %cst_116 : bf16 to vector<32x256xbf16>
    %376 = vector.shape_cast %374 : vector<1x256xi1> to vector<1x256xi1>
    %377 = vector.broadcast %376 : vector<1x256xi1> to vector<32x256xi1>
    %378 = arith.select %377, %372, %375 : vector<32x256xi1>, vector<32x256xbf16>
    %379 = tpu.concatenate %357, %366, %369, %378 in 0 : vector<32x256xbf16>, vector<32x256xbf16>, vector<32x256xbf16>, vector<32x256xbf16> -> vector<128x256xbf16>
    %c0_117 = arith.constant 0 : index
    %c0_118 = arith.constant 0 : index
    %380 = vector.load %arg20[%c0_117, %c0_118] : memref<32x128xbf16, #tpu.memory_space<vmem>>, vector<32x128xbf16>
    %cst_119 = arith.constant dense<0.000000e+00> : vector<32x256xf32>
    %381 = tpu.matmul %380, %379, %cst_119 {dimension_numbers = #tpu.dot_dimension_numbers<[1], [0], [0], [1], [0, 0, 1, 1], [], []>} : vector<32x128xbf16>, vector<128x256xbf16>, vector<32x256xf32> -> vector<32x256xf32>
    %c0_120 = arith.constant 0 : index
    %c0_121 = arith.constant 0 : index
    %382 = vector.load %arg21[%c0_120, %c0_121] : memref<32x1xf32, #tpu.memory_space<vmem>>, vector<32x1xf32>
    %383 = vector.broadcast %382 : vector<32x1xf32> to vector<32x256xf32>
    %384 = arith.addf %381, %383 : vector<32x256xf32>
    %cst_122 = arith.constant 0.000000e+00 : f32
    %cst_123 = arith.constant 6.000000e+00 : f32
    %385 = vector.broadcast %cst_122 : f32 to vector<32x256xf32>
    %386 = arith.maximumf %385, %384 : vector<32x256xf32>
    %387 = vector.broadcast %cst_123 : f32 to vector<32x256xf32>
    %388 = arith.minimumf %387, %386 : vector<32x256xf32>
    %389 = vector.extract_strided_slice %388 {offsets = [0, 0], sizes = [8, 256], strides = [1, 1]} : vector<32x256xf32> to vector<8x256xf32>
    %390 = vector.extract_strided_slice %388 {offsets = [8, 0], sizes = [8, 256], strides = [1, 1]} : vector<32x256xf32> to vector<8x256xf32>
    %391 = vector.extract_strided_slice %388 {offsets = [16, 0], sizes = [8, 256], strides = [1, 1]} : vector<32x256xf32> to vector<8x256xf32>
    %392 = vector.extract_strided_slice %388 {offsets = [24, 0], sizes = [8, 256], strides = [1, 1]} : vector<32x256xf32> to vector<8x256xf32>
    %393 = tpu.concatenate %389, %390, %391, %392 in 1 : vector<8x256xf32>, vector<8x256xf32>, vector<8x256xf32>, vector<8x256xf32> -> vector<8x1024xf32>
    %394 = arith.truncf %393 : vector<8x1024xf32> to vector<8x1024xbf16>
    %c0_124 = arith.constant 0 : index
    %c0_125 = arith.constant 0 : index
    %395 = vector.load %arg22[%c0_124, %c0_125] : memref<1024x1024xbf16, #tpu.memory_space<vmem>>, vector<1024x1024xbf16>
    %cst_126 = arith.constant dense<0.000000e+00> : vector<8x1024xf32>
    %396 = tpu.matmul %394, %395, %cst_126 {dimension_numbers = #tpu.dot_dimension_numbers<[1], [0], [0], [1], [0, 0, 1, 1], [], []>} : vector<8x1024xbf16>, vector<1024x1024xbf16>, vector<8x1024xf32> -> vector<8x1024xf32>
    %397 = vector.extract_strided_slice %396 {offsets = [0, 0], sizes = [3, 1024], strides = [1, 1]} : vector<8x1024xf32> to vector<3x1024xf32>
    %c0_127 = arith.constant 0 : index
    %c0_128 = arith.constant 0 : index
    %c0_129 = arith.constant 0 : index
    %398 = vector.load %arg23[%c0_127, %c0_128, %c0_129] : memref<1x3x1024xf32, #tpu.memory_space<vmem>>, vector<1x3x1024xf32>
    %399 = vector.shape_cast %398 : vector<1x3x1024xf32> to vector<3x1024xf32>
    %400 = vector.shape_cast %397 : vector<3x1024xf32> to vector<1x3x1024xf32>
    tpu.vector_store %arg23[%c0_127, %c0_128, %c0_129], %400 {strides = array<i32>} : memref<1x3x1024xf32, #tpu.memory_space<vmem>>, vector<1x3x1024xf32>,
    return
  }
  func.func @transform_0(%arg0: i32) -> (i32, i32, i32) {
    %c0_i32 = arith.constant 0 : i32
    %c0_i32_0 = arith.constant 0 : i32
    %c0_i32_1 = arith.constant 0 : i32
    return %arg0, %c0_i32, %c0_i32_0 : i32, i32, i32
  }
  func.func @transform_1(%arg0: i32) -> (i32, i32, i32) {
    %c0_i32 = arith.constant 0 : i32
    %c0_i32_0 = arith.constant 0 : i32
    %c0_i32_1 = arith.constant 0 : i32
    return %arg0, %c0_i32, %c0_i32_0 : i32, i32, i32
  }
  func.func @transform_2(%arg0: i32) -> (i32, i32) {
    %c0_i32 = arith.constant 0 : i32
    %c0_i32_0 = arith.constant 0 : i32
    %c0_i32_1 = arith.constant 0 : i32
    return %c0_i32, %c0_i32_0 : i32, i32
  }
  func.func @transform_3(%arg0: i32) -> (i32, i32) {
    %c0_i32 = arith.constant 0 : i32
    %c0_i32_0 = arith.constant 0 : i32
    %c0_i32_1 = arith.constant 0 : i32
    return %c0_i32, %c0_i32_0 : i32, i32
  }
  func.func @transform_4(%arg0: i32) -> (i32, i32) {
    %c0_i32 = arith.constant 0 : i32
    %c0_i32_0 = arith.constant 0 : i32
    %c0_i32_1 = arith.constant 0 : i32
    return %c0_i32, %c0_i32_0 : i32, i32
  }
  func.func @transform_5(%arg0: i32) -> (i32, i32) {
    %c0_i32 = arith.constant 0 : i32
    %c0_i32_0 = arith.constant 0 : i32
    %c0_i32_1 = arith.constant 0 : i32
    return %c0_i32, %c0_i32_0 : i32, i32
  }
  func.func @transform_6(%arg0: i32) -> (i32, i32) {
    %c0_i32 = arith.constant 0 : i32
    %c0_i32_0 = arith.constant 0 : i32
    %c0_i32_1 = arith.constant 0 : i32
    return %c0_i32, %c0_i32_0 : i32, i32
  }
  func.func @transform_7(%arg0: i32) -> (i32, i32) {
    %c0_i32 = arith.constant 0 : i32
    %c0_i32_0 = arith.constant 0 : i32
    %c0_i32_1 = arith.constant 0 : i32
    return %c0_i32, %c0_i32_0 : i32, i32
  }
  func.func @transform_8(%arg0: i32) -> (i32, i32) {
    %c0_i32 = arith.constant 0 : i32
    %c0_i32_0 = arith.constant 0 : i32
    %c0_i32_1 = arith.constant 0 : i32
    return %c0_i32, %c0_i32_0 : i32, i32
  }
  func.func @transform_9(%arg0: i32) -> (i32, i32) {
    %c0_i32 = arith.constant 0 : i32
    %c0_i32_0 = arith.constant 0 : i32
    %c0_i32_1 = arith.constant 0 : i32
    return %c0_i32, %c0_i32_0 : i32, i32
  }
  func.func @transform_10(%arg0: i32) -> (i32, i32) {
    %c0_i32 = arith.constant 0 : i32
    %c0_i32_0 = arith.constant 0 : i32
    %c0_i32_1 = arith.constant 0 : i32
    return %c0_i32, %c0_i32_0 : i32, i32
  }
  func.func @transform_11(%arg0: i32) -> (i32, i32) {
    %c0_i32 = arith.constant 0 : i32
    %c0_i32_0 = arith.constant 0 : i32
    %c0_i32_1 = arith.constant 0 : i32
    return %c0_i32, %c0_i32_0 : i32, i32
  }
  func.func @transform_12(%arg0: i32) -> (i32, i32) {
    %c0_i32 = arith.constant 0 : i32
    %c0_i32_0 = arith.constant 0 : i32
    %c0_i32_1 = arith.constant 0 : i32
    return %c0_i32, %c0_i32_0 : i32, i32
  }
  func.func @transform_13(%arg0: i32) -> (i32, i32) {
    %c0_i32 = arith.constant 0 : i32
    %c0_i32_0 = arith.constant 0 : i32
    %c0_i32_1 = arith.constant 0 : i32
    return %c0_i32, %c0_i32_0 : i32, i32
  }
  func.func @transform_14(%arg0: i32) -> (i32, i32) {
    %c0_i32 = arith.constant 0 : i32
    %c0_i32_0 = arith.constant 0 : i32
    %c0_i32_1 = arith.constant 0 : i32
    return %c0_i32, %c0_i32_0 : i32, i32
  }
  func.func @transform_15(%arg0: i32) -> (i32, i32) {
    %c0_i32 = arith.constant 0 : i32
    %c0_i32_0 = arith.constant 0 : i32
    %c0_i32_1 = arith.constant 0 : i32
    return %c0_i32, %c0_i32_0 : i32, i32
  }
  func.func @transform_16(%arg0: i32) -> (i32, i32) {
    %c0_i32 = arith.constant 0 : i32
    %c0_i32_0 = arith.constant 0 : i32
    %c0_i32_1 = arith.constant 0 : i32
    return %c0_i32, %c0_i32_0 : i32, i32
  }
  func.func @transform_17(%arg0: i32) -> (i32, i32) {
    %c0_i32 = arith.constant 0 : i32
    %c0_i32_0 = arith.constant 0 : i32
    %c0_i32_1 = arith.constant 0 : i32
    return %c0_i32, %c0_i32_0 : i32, i32
  }
  func.func @transform_18(%arg0: i32) -> (i32, i32) {
    %c0_i32 = arith.constant 0 : i32
    %c0_i32_0 = arith.constant 0 : i32
    %c0_i32_1 = arith.constant 0 : i32
    return %c0_i32, %c0_i32_0 : i32, i32
  }
  func.func @transform_19(%arg0: i32) -> (i32, i32) {
    %c0_i32 = arith.constant 0 : i32
    %c0_i32_0 = arith.constant 0 : i32
    %c0_i32_1 = arith.constant 0 : i32
    return %c0_i32, %c0_i32_0 : i32, i32
  }
  func.func @transform_20(%arg0: i32) -> (i32, i32) {
    %c0_i32 = arith.constant 0 : i32
    %c0_i32_0 = arith.constant 0 : i32
    %c0_i32_1 = arith.constant 0 : i32
    return %c0_i32, %c0_i32_0 : i32, i32
  }
  func.func @transform_21(%arg0: i32) -> (i32, i32) {
    %c0_i32 = arith.constant 0 : i32
    %c0_i32_0 = arith.constant 0 : i32
    %c0_i32_1 = arith.constant 0 : i32
    return %c0_i32, %c0_i32_0 : i32, i32
  }
  func.func @transform_22(%arg0: i32) -> (i32, i32, i32) {
    %c0_i32 = arith.constant 0 : i32
    %c0_i32_0 = arith.constant 0 : i32
    %c0_i32_1 = arith.constant 0 : i32
    return %arg0, %c0_i32, %c0_i32_0 : i32, i32, i32
  }
}

</mosaic_0001>

<bundles_post_ra>
// kernel: decoder_forward.1
= control target key start
LH: loop header
LB: loop body
LE: loop exit
PB: predicated region body
PF: predicated region fallthrough
CT: control target
= control target key end

     0   :  { %s11019_s0 = inlined_call_operand.vmem [shape: f32[2,16,64], index: 0, kind: input, shape index: {}]   ;;  %s11020_s1 = inlined_call_operand.vmem [shape: f32[2,16,64], index: 1, kind: input, shape index: {}]   ;;  %s11021_s2 = inlined_call_operand.vmem [shape: bf16[32,16], index: 2, kind: input, shape index: {}]   ;;  %s11022_s3 = inlined_call_operand.vmem [shape: f32[32,1], index: 3, kind: input, shape index: {}]   ;;  %s11023_s4 = inlined_call_operand.vmem [shape: f32[32,9], index: 4, kind: input, shape index: {}]   ;;  %s11024_s5 = inlined_call_operand.vmem [shape: f32[32,1], index: 5, kind: input, shape index: {}]   ;;  %s11025_s6 = inlined_call_operand.hbm [shape: bf16[16,32], index: 6, kind: input, shape index: {}]   ;;  %s11026_s7 = inlined_call_operand.vmem [shape: f32[16,1], index: 7, kind: input, shape index: {}]   ;;  %s11027_s8 = inlined_call_operand.hbm [shape: bf16[16,16], index: 8, kind: input, shape index: {}]   ;;  %s11028_s9 = inlined_call_operand.vmem [shape: f32[16,1], index: 9, kind: input, shape index: {}]   ;;  %s11029_s10 = inlined_call_operand.hbm [shape: f32[16,9], index: 10, kind: input, shape index: {}]   ;;  %s11030_s11 = inlined_call_operand.vmem [shape: f32[16,1], index: 11, kind: input, shape index: {}]   ;;  %s11031_s12 = inlined_call_operand.hbm [shape: bf16[8,16], index: 12, kind: input, shape index: {}]   ;;  %s11032_s13 = inlined_call_operand.vmem [shape: f32[8,1], index: 13, kind: input, shape index: {}]   ;;  %s11033_s14 = inlined_call_operand.hbm [shape: bf16[256,256], index: 14, kind: input, shape index: {}]   ;;  %s11034_s15 = inlined_call_operand.hbm [shape: f32[8,9], index: 15, kind: input, shape index: {}]   ;;  %s11035_s16 = inlined_call_operand.vmem [shape: f32[8,1], index: 16, kind: input, shape index: {}]   ;;  %s11036_s17 = inlined_call_operand.vmem [shape: bf16[32,8], index: 17, kind: input, shape index: {}]   ;;  %s11037_s18 = inlined_call_operand.vmem [shape: f32[32,1], index: 18, kind: input, shape index: {}]   ;;  %s11038_s19 = inlined_call_operand.hbm [shape: bf16[32,128], index: 19, kind: input, shape index: {}]   ;;  %s11039_s20 = inlined_call_operand.vmem [shape: f32[32,1], index: 20, kind: input, shape index: {}]   ;;  %s11040_s21 = inlined_call_operand.hbm [shape: bf16[1024,1024], index: 21, kind: input, shape index: {}]   ;;  %s11041_s22 = inlined_call_operand.vmem [shape: f32[2,3,1024], index: 22, kind: output, shape index: {}]  }
   0x1   :  { %11052 = sst [smem:[#allocation21_spill]] %s11019_s0 }
   0x2   :  { %11053 = sst [smem:[#allocation22_spill]] %s11020_s1 }
   0x3   :  { %11054 = sst [smem:[#allocation23_spill]] %s11021_s2 }
   0x4   :  { %11055 = sst [smem:[#allocation24_spill]] %s11022_s3 }
   0x5   :  { %11056 = sst [smem:[#allocation25_spill]] %s11023_s4 }
   0x6   :  { %11057 = sst [smem:[#allocation26_spill]] %s11024_s5 }
   0x7   :  { %11058 = sst [smem:[#allocation27_spill]] %s11025_s6 }
   0x8   :  { %11059 = sst [smem:[#allocation28_spill]] %s11027_s8 }
   0x9   :  { %11060 = sst [smem:[#allocation29_spill]] %s11031_s12 }
   0xa   :  { %11061 = sst [smem:[#allocation30_spill]] %s11034_s15 }
   0xb   :  { %11062 = sst [smem:[#allocation31_spill]] %s11039_s20 }
   0xc   :  { %11063 = sst [smem:[#allocation32_spill]] %s11041_s22 }
   0xd   :  { %27 = vsyncpa [#allocation3], 0 }
   0xe   :  { %28 = vsyncpa [#allocation5], 0 }
   0xf   :  { %29 = vsyncpa [#allocation8], 0 }
  0x10   :  { %30 = vsyncpa [#allocation11], 0 }
  0x11   :  { %31 = vsyncpa [#allocation14], 0  ;;  %s9976_s3 = smov 0  }
  0x12 LB: > { %11064 = sst [smem:[#allocation20_spill]] %s9820_s3  ;;  %s9982_s28 = sadd.s32 4294967295, %s9820_s3   ;;  %s9820_s3 = sphi %s9976_s3, %s37_s3  }
  0x13   : > { %p6557_p0 = scmp.ge.s32.totalorder %s9820_s3, 1  ;;  %p540_p1 = scmp.lt.s32.totalorder %s9820_s3, 3 }
  0x14   : > { %p9414_p2 = scmp.eq.s32.totalorder %s9982_s28, 0  ;;  %s11065_s8 = sld [smem:[#allocation28_spill]] }
  0x15   : > { %p9990_p3 = pnand %p6557_p0, %p540_p1  ;;  %s11067_s12 = sld [smem:[#allocation29_spill]] }
  0x16   : > { %s9822_s24 = smov [#allocation4]   ;;  %s9823_s26 = smov [#allocation7]  }
  0x17   : > { %p9389_p4 = pneg %p9990_p3  ;;  %s582_s6 = sshll.u32 %s9822_s24, 4  ;;  %s583_s6 = int_to_ptr.vmem [resolvable:$true] %s582_s6 }
  0x18   : > { %s617_s2 = sshll.u32 %s9823_s26, 4  ;;  %s11069_s15 = sld [smem:[#allocation30_spill]]  ;;  %s618_s2 = int_to_ptr.vmem [resolvable:$true] %s617_s2 }
  0x19   : > { %p10001_p5 = pnand %p9414_p2, %p9389_p4  ;;  %s9824_s23 = smov 64  }
  0x1a   : > { %s580_s4 = sshll.u32 %s11065_s8, 4  ;;  %s9825_s1 = smov 4   ;;  %s581_s4 = int_to_ptr.hbm [resolvable:$true] %s580_s4 }
  0x1b   : > { %s615_s5 = sshll.u32 %s11067_s12, 4  ;;  %s9826_s24 = smov [#allocation10]   ;;  %s616_s5 = int_to_ptr.hbm [resolvable:$true] %s615_s5 }
  0x1c   : > { %9395 = dma.hbm_to_vmem [thread:$0]  (!%p10001_p5), %s581_s4, 128, %s583_s6, [#allocation5], %s9824_s23, %s9824_s23, %s9825_s1  }
  0x1d   : > { %9401 = dma.hbm_to_vmem [thread:$0]  (!%p10001_p5), %s616_s5, 64, %s618_s2, [#allocation8]  }
  0x1e   : > { %s644_s30 = sshll.u32 %s11069_s15, 4  ;;  %s646_s8 = sshll.u32 %s9826_s24, 4  ;;  %s645_s30 = int_to_ptr.hbm [resolvable:$true] %s644_s30  ;;  %s647_s8 = int_to_ptr.vmem [resolvable:$true] %s646_s8 }
  0x1f   : > { %s11070_s3 = sld [smem:[#allocation27_spill]]  ;;  %s597_s22 = sshll.u32 %s11029_s10, 4  ;;  %s598_s22 = int_to_ptr.hbm [resolvable:$true] %s597_s22 }
  0x20   : > { %9407 = dma.hbm_to_vmem [thread:$0]  (!%p10001_p5), %s645_s30, 128, %s647_s8, [#allocation11]  }
  0x21   : > { %s9827_s20 = smov [#allocation2]   ;;  %s9828_s12 = smov [#allocation6]  }
  0x22   : > { %s565_s4 = sshll.u32 %s9827_s20, 4  ;;  %s9829_s5 = smov 128   ;;  %s566_s4 = int_to_ptr.vmem [resolvable:$true] %s565_s4 }
  0x23   : > { %s9830_s8 = smov 8   ;;  %s629_s20 = sshll.u32 %s11033_s14, 4  ;;  %s630_s20 = int_to_ptr.hbm [resolvable:$true] %s629_s20 }
  0x24   : > { %s9831_s2 = smov [#allocation9]   ;;  %s9832_s29 = smov [#allocation12]  }
  0x25   : > { %s563_s27 = sshll.u32 %s11070_s3, 4  ;;  %s599_s3 = sshll.u32 %s9828_s12, 4  ;;  %s564_s27 = int_to_ptr.hbm [resolvable:$true] %s563_s27  ;;  %s600_s3 = int_to_ptr.vmem [resolvable:$true] %s599_s3 }
  0x26   : > { %9392 = dma.hbm_to_vmem [thread:$0]  (!%p10001_p5), %s564_s27, 128, %s566_s4, [#allocation3], %s9824_s23, %s9824_s23, %s9825_s1  }
  0x27   : > { %9398 = dma.hbm_to_vmem [thread:$0]  (!%p10001_p5), %s598_s22, 256, %s600_s3, [#allocation5], %s9829_s5, %s9829_s5, %s9830_s8  }
  0x28   : > { %s631_s30 = sshll.u32 %s9831_s2, 4  ;;  %s664_s27 = sshll.u32 %s11038_s19, 4  ;;  %s632_s30 = int_to_ptr.vmem [resolvable:$true] %s631_s30  ;;  %s665_s27 = int_to_ptr.hbm [resolvable:$true] %s664_s27 }
  0x29   : > { %9404 = dma.hbm_to_vmem [thread:$0]  (!%p10001_p5), %s630_s20, 4096, %s632_s30, [#allocation8], %s9829_s5, %s9829_s5, %s9830_s8  }
  0x2a   : > { %s666_s4 = sshll.u32 %s9832_s29, 4  ;;  %s681_s3 = sshll.u32 %s11040_s21, 4  ;;  %s667_s4 = int_to_ptr.vmem [resolvable:$true] %s666_s4  ;;  %s682_s3 = int_to_ptr.hbm [resolvable:$true] %s681_s3 }
  0x2b   : > { %9410 = dma.hbm_to_vmem [thread:$0]  (!%p10001_p5), %s665_s27, 256, %s667_s4, [#allocation11], %s9824_s23, %s9824_s23, %s9825_s1  }
  0x2c   : > { %s9833_s15 = smov [#allocation13]   ;;  %s9834_s2 = smov 512  }
  0x2d   : > { %s683_s6 = sshll.u32 %s9833_s15, 4  ;;  %s9835_s24 = smov 32   ;;  %s684_s6 = int_to_ptr.vmem [resolvable:$true] %s683_s6 }
  0x2e   : > { %9413 = dma.hbm_to_vmem [thread:$0]  (!%p10001_p5), %s682_s3, 65536, %s684_s6, [#allocation14], %s9834_s2, %s9834_s2, %s9835_s24  }
  0x2f   : > { %715 = sbr.rel (%p9990_p3) target bundleno = 2907 (0xb5b), region = 108 }
  0x34   : > { %9799 = dma.done.wait (%p9414_p2), [#allocation3], 128  }
  0x35   : > { %9801 = vsyncadd (%p9414_p2), [#allocation3], 4294967168 }
  0x36   : > { %9803 = dma.done.wait (%p9414_p2), [#allocation5], 384  }
  0x37   : > { %9805 = vsyncadd (%p9414_p2), [#allocation5], 4294966912 }
  0x38   : > { %9807 = dma.done.wait (%p9414_p2), [#allocation8], 4160  }
  0x39   : > { %9809 = vsyncadd (%p9414_p2), [#allocation8], 4294963136 }
  0x3a   : > { %9811 = dma.done.wait (%p9414_p2), [#allocation11], 384  }
  0x3b   : > { %9813 = vsyncadd (%p9414_p2), [#allocation11], 4294966912 }
  0x3c   : > { %9815 = dma.done.wait (%p9414_p2), [#allocation14], 65536  }
  0x3d   : > { %9817 = vsyncadd (%p9414_p2), [#allocation14], 4294901760  ;;  %p818_p6 = scmp.lt.s32.totalorder %s9982_s28, 1  ;;  %s11071_s1 = sld [smem:[#allocation22_spill]]  ;;  %vm846_vm0 = vcmask 523264   ;;  %v9836_v8 = vmov 64.0  }
  0x3e   : > { %s11072_s30 = sld [smem:[#allocation21_spill]]  ;;  %9544 = vrcp.f32 %v9836_v8  ;;  %v9837_v53 = vmov 0   ;;  %vm994_vm12 = vcmask 130048   ;;  %s9846_s3 = smov 7   ;;  %vm1072_vm13 = vcmask 72704  }
  0x3f   : > { %s11099_s28 = smov (!%p818_p6, %s9982_s28), 1  ;;  %s11073_s4 = sld [smem:[#allocation24_spill]]  ;;  %9479 = vset.pattern.permute.xlu1 %v9837_v53  ;;  %9478 = vset.pattern.permute.xlu0 %v9837_v53  ;;  %vm1120_vm15 = vcmask 64512  }
  0x40   : > { %s8802_s0 = sshll.u32 %s11099_s28, 4  ;;  %9477 = vset.pattern.permute.xlu2 %v9837_v53  ;;  %s11074_s24 = sld [smem:[#allocation25_spill]] }
  0x41   : > { %s11075_s29 = sld [smem:[#allocation23_spill]]  ;;  %s9847_s15 = smov 8  }
  0x42   : > { %s9848_s6 = smov 9   ;;  %s9849_s2 = smov 1  }
  0x43   : > { %s827_s5 = scalar_lea.vmem %s11071_s1, %s8802_s0  ;;  %s9851_s25 = smov 127  }
  0x44   : > { %s822_s26 = scalar_lea.vmem %s11072_s30, %s8802_s0  ;;  %v844_v0 = vld [vmem:[%s827_s5] sm:$0xff]  ;;  %v845_v4 = vld [vmem:[%s827_s5 + $0x8] sm:$0xff]  ;;  %v9545_v9 = vpop.eup %9544  ;;  %s9850_s0 = smov 120  }
  0x45   : > { %v842_v1 = vld [vmem:[%s822_s26] sm:$0xff]  ;;  %v874_v2 = vsel %vm846_vm0, %v844_v0, 0.0  ;;  %v843_v5 = vld [vmem:[%s822_s26 + $0x8] sm:$0xff]  ;;  %v877_v6 = vsel %vm846_vm0, %v845_v4, 0.0  ;;  %v854_v10 = vmul.f32 64.0, %v9545_v9  ;;  %vm858_vm1 = vweird.f32 %v9545_v9  ;;  %v957_v50 = vld [vmem:[%s11073_s4 + $0x18] sm:$0xff] }
  0x46   : > { %v847_v3 = vsel %vm846_vm0, %v842_v1, 0.0  ;;  %875 = vadd.xlane.f32.xlu0 %v874_v2  ;;  %v850_v7 = vsel %vm846_vm0, %v843_v5, 0.0  ;;  %v954_v51 = vld [vmem:[%s11073_s4] sm:$0xff]  ;;  %v956_v56 = vld [vmem:[%s11073_s4 + $0x10] sm:$0xff]  ;;  %v10127_v2 = vld [vmem:[%s11074_s24 + $0x18] sm:$0xff]  ;;  %s9852_s23 = smov 121  }
  0x47   : > { %848 = vadd.xlane.f32.xlu1 %v847_v3  ;;  %v855_v11 = vsub.f32 1.0, %v854_v10  ;;  %v10121_v62 = vld [vmem:[%s11074_s24 + $0x10] sm:$0xff]  ;;  %s9853_s1 = smov 119   ;;  %s11076_s20 = sld [smem:[#allocation26_spill]] }
  0x48   : > { %s9854_s12 = smov 64   ;;  %s9856_s5 = smov 17  }
  0x49   : > { %v856_v12 = vmul.f32 %v9545_v9, %v855_v11  ;;  %s9857_s8 = smov 16   ;;  %s9858_s30 = smov 113  }
  0x4a   : > { %s9859_s26 = smov 112   ;;  %s9860_s27 = smov 111  }
  0x4b   : > { %v857_v13 = vadd.f32 %v9545_v9, %v856_v12 }
  0x4d   : > { %v859_v14 = vsel %vm858_vm1, %v9545_v9, %v857_v13  ;;  %vm1254_vm1 = vcmask 515072  }
  0x4e   : > { %878 = vadd.xlane.f32.xlu0 %v877_v6 }
  0x4f   : > { %851 = vadd.xlane.f32.xlu1 %v850_v7  ;;  %v11048_v7 = vmov 4  }
  0xb9   : > { %v876_v15 = vpop.xlane.xlu0 %875 }
  0xba   : > { %v849_v16 = vpop.xlane.xlu1 %848  ;;  %v10085_v17 = vmul.f32 %v876_v15, %v859_v14 }
  0xbb   : > { %v860_v18 = vmul.f32 %v859_v14, %v849_v16 }
  0xbc   : > { %v882_v20 = vsub.f32 %v844_v0, %v10085_v17 }
  0xbd   : > { %v10087_v19 = vsub.f32 %v842_v1, %v860_v18 }
  0xbe   : > { %v884_v21 = vmul.f32 %v882_v20, %v882_v20 }
  0xbf   : > { %v864_v22 = vmul.f32 %v10087_v19, %v10087_v19 }
  0xc0   : > { %v886_v23 = vsel %vm846_vm0, %v884_v21, 0.0 }
  0xc1   : > { %v866_v24 = vsel %vm846_vm0, %v864_v22, 0.0  ;;  %887 = vadd.xlane.f32.xlu2 %v886_v23  ;;  %v879_v25 = vpop.xlane.xlu0 %878  ;;  %v10136_v22 = vld [vmem:[%s11074_s24] sm:$0xff] }
  0xc2   : > { %867 = vadd.xlane.f32.xlu0 %v866_v24  ;;  %v852_v26 = vpop.xlane.xlu1 %851  ;;  %v10094_v27 = vmul.f32 %v879_v25, %v859_v14  ;;  %v9839_v24 = vmov 1  }
  0xc3   : > { %v861_v28 = vmul.f32 %v859_v14, %v852_v26 }
  0xc4   : > { %v883_v29 = vsub.f32 %v845_v4, %v10094_v27 }
  0xc5   : > { %v10097_v30 = vsub.f32 %v843_v5, %v861_v28  ;;  %v955_v28 = vld [vmem:[%s11073_s4 + $0x8] sm:$0xff] }
  0xc6   : > { %v885_v31 = vmul.f32 %v883_v29, %v883_v29 }
  0xc7   : > { %v865_v32 = vmul.f32 %v10097_v30, %v10097_v30 }
  0xc8   : > { %v889_v33 = vsel %vm846_vm0, %v885_v31, 0.0 }
  0xc9   : > { %v869_v34 = vsel %vm846_vm0, %v865_v32, 0.0  ;;  %890 = vadd.xlane.f32.xlu2 %v889_v33 }
  0xca   : > { %870 = vadd.xlane.f32.xlu1 %v869_v34 }
  0xd6   : > { %975 = vperm.xlu0 %9478, %v957_v50  }
  0xde   : > { %1093 = vperm.xlu0 %9478, %v10121_v62  }
  0xe1   : > { %970 = vperm.xlu2 %9477, %v956_v56  }
  0xe3   : > { %960 = vperm.xlu1 %9479, %v954_v51  }
  0xe6   : > { %9483 = vset.pattern.permute.xlu0 %v9839_v24 }
  0xe7   : > { %1134 = vperm.xlu0 %9483, %v10121_v62  }
  0xe9   : > { %965 = vperm.xlu2 %9477, %v955_v28  }
  0xeb   : > { %9481 = vset.pattern.permute.xlu1 %v11048_v7 }
  0xec   : > { %1049 = vperm.xlu1 %9481, %v10127_v2  }
  0xef   : > { %9485 = vset.pattern.permute.xlu0 %v11048_v7 }
  0xf1   : > { %9480 = vset.pattern.permute.xlu2 %v11048_v7 }
  0xf2   : > { %1044 = vperm.xlu2 %9480, %v10121_v62  }
  0xf4   : > { %1034 = vperm.xlu1 %9481, %v10136_v22  }
  0xfa   : > { %9482 = vset.pattern.permute.xlu2 %v9837_v53 }
  0xfb   : > { %1097 = vperm.xlu2 %9482, %v10127_v2  }
  0xfc   : > { %9487 = vset.pattern.permute.xlu1 %v9837_v53 }
 0x103   : > { %9484 = vset.pattern.permute.xlu2 %v9839_v24 }
 0x104   : > { %1138 = vperm.xlu2 %9484, %v10127_v2  }
 0x10c   : > { %9486 = vset.pattern.permute.xlu2 %v9837_v53 }
 0x10d   : > { %1085 = vperm.xlu2 %9486, %v10136_v22  }
 0x134   : > { %v888_v35 = vpop.xlane.xlu2 %887 }
 0x135   : > { %v868_v36 = vpop.xlane.xlu0 %867  ;;  %v892_v37 = vmul.f32 %v888_v35, %v859_v14 }
 0x136   : > { %v872_v38 = vmul.f32 %v868_v36, %v859_v14 }
 0x137   : > { %v918_v39 = vadd.f32 1e-05, %v892_v37  ;;  %v10157_v37 = vld [vmem:[%s11074_s24 + $0x8] sm:$0xff] }
 0x138   : > { %v894_v40 = vadd.f32 1e-05, %v872_v38  ;;  %1039 = vperm.xlu0 %9485, %v10157_v37   ;;  %1089 = vperm.xlu1 %9487, %v10157_v37  }
 0x139   : > { %9546 = vrsqrt.f32 %v918_v39  ;;  %vm927_vm5 = vcmp.eq.f32.partialorder %v918_v39, inf  ;;  %v930_v10 = vand.u32 2147483648, %v918_v39  ;;  %vm929_vm6 = vcmp.eq.f32.partialorder %v918_v39, 0.0 }
 0x13a   : > { %9548 = vrsqrt.f32 %v894_v40  ;;  %vm902_vm3 = vweird.f32 %v894_v40 }
 0x13c   : > { %v891_v41 = vpop.xlane.xlu2 %890 }
 0x13d   : > { %v871_v42 = vpop.xlane.xlu1 %870  ;;  %v893_v43 = vmul.f32 %v891_v41, %v859_v14  ;;  %v9841_v41 = vmov 3  }
 0x13e   : > { %v873_v44 = vmul.f32 %v871_v42, %v859_v14  ;;  %v9842_v42 = vmov 5  }
 0x13f   : > { %v9547_v45 = vpop.eup %9546  ;;  %v10103_v46 = vadd.f32 1e-05, %v893_v43  ;;  %v8806_v43 = vld [vmem:[%s11075_s29 + $0x8] sm:$0xff] }
 0x140   : > { %v895_v47 = vadd.f32 1e-05, %v873_v44  ;;  %v9549_v48 = vpop.eup %9548  ;;  %v921_v49 = vmul.f32 %v9547_v45, %v918_v39  ;;  %9493 = vset.pattern.permute.xlu0 %v9841_v41  ;;  %v9843_v44 = vmov 6  }
 0x141   : > { %v897_v52 = vmul.f32 %v9549_v48, %v894_v40  ;;  %9550 = vrsqrt.f32 %v10103_v46  ;;  %vm903_vm2 = vweird.f32 %v9549_v48  ;;  %vm939_vm10 = vcmp.eq.f32.partialorder %v10103_v46, inf  ;;  %1231 = vperm.xlu0 %9493, %v10127_v2  }
 0x142   : > { %9552 = vrsqrt.f32 %v895_v47  ;;  %v922_v54 = vmul.f32 %v9547_v45, %v921_v49  ;;  %vm904_vm4 = vmor %vm902_vm3, %vm903_vm2  ;;  %vm912_vm8 = vweird.f32 %v895_v47  ;;  %v942_v26 = vand.u32 2147483648, %v10103_v46 }
 0x143   : > { %v898_v55 = vmul.f32 %v9549_v48, %v897_v52  ;;  %vm941_vm11 = vcmp.eq.f32.partialorder %v10103_v46, 0.0  ;;  %v9840_v40 = vmov 2   ;;  %vm1344_vm3 = vcmask 457728  }
 0x144   : > { %v923_v57 = vmul.f32 0.5, %v922_v54  ;;  %9489 = vset.pattern.permute.xlu1 %v9840_v40  ;;  %9488 = vset.pattern.permute.xlu2 %v9840_v40 }
 0x145   : > { %v899_v58 = vmul.f32 0.5, %v898_v55  ;;  %1186 = vperm.xlu1 %9489, %v10127_v2   ;;  %1182 = vperm.xlu2 %9488, %v10121_v62  }
 0x146   : > { %v924_v59 = vsub.f32 1.5, %v923_v57 }
 0x147   : > { %v9551_v60 = vpop.eup %9550  ;;  %v900_v61 = vsub.f32 1.5, %v899_v58 }
 0x148   : > { %v9553_v63 = vpop.eup %9552  ;;  %v925_v0 = vmul.f32 %v9547_v45, %v924_v59  ;;  %v933_v1 = vmul.f32 %v9551_v60, %v10103_v46  ;;  %v9844_v45 = vmov 8   ;;  %v976_v50 = vpop.permute.xlu0 %975 }
 0x149   : > { %v901_v3 = vmul.f32 %v9549_v48, %v900_v61  ;;  %v907_v4 = vmul.f32 %v9553_v63, %v895_v47  ;;  %vm913_vm7 = vweird.f32 %v9553_v63  ;;  %9497 = vset.pattern.permute.xlu0 %v9842_v42  ;;  %v971_v47 = vpop.permute.xlu2 %970 }
 0x14a   : > { %v926_v5 = vmul.f32 %v925_v0, %v918_v39  ;;  %v934_v6 = vmul.f32 %v9551_v60, %v933_v1  ;;  %vm914_vm9 = vmor %vm912_vm8, %vm913_vm7  ;;  %1276 = vperm.xlu0 %9497, %v10127_v2   ;;  %vm1385_vm7 = vcmask 449536   ;;  %vm1475_vm8 = vcmask 261120  }
 0x14b   : > { %v905_v8 = vsel %vm904_vm4, %v9549_v48, %v901_v3  ;;  %v908_v9 = vmul.f32 %v9553_v63, %v907_v4  ;;  %vm1299_vm4 = vcmask 465920  }
 0x14c   : > { %v916_v11 = vmul.f32 %v905_v8, %v10087_v19  ;;  %v928_v12 = vsel %vm927_vm5, %v918_v39, %v926_v5  ;;  %v935_v13 = vmul.f32 0.5, %v934_v6  ;;  %v8805_v39 = vld [vmem:[%s11075_s29] sm:$0xff]  ;;  %vm1161_vm5 = vcmask 56320  }
 0x14d   : > { %v909_v14 = vmul.f32 0.5, %v908_v9  ;;  %v931_v15 = vsel %vm929_vm6, %v930_v10, %v928_v12  ;;  %9491 = vset.pattern.permute.xlu1 %v9839_v24  ;;  %9490 = vset.pattern.permute.xlu2 %v9839_v24  ;;  %vm1209_vm6 = vcmask 7168  }
 0x14e   : > { %v936_v16 = vsub.f32 1.5, %v935_v13  ;;  %v944_v21 = vmul.f32 %v931_v15, %v916_v11  ;;  %1130 = vperm.xlu1 %9491, %v10157_v37   ;;  %1126 = vperm.xlu2 %9490, %v10136_v22  }
 0x14f   : > { %v910_v18 = vsub.f32 1.5, %v909_v14 }
 0x150   : > { %v937_v20 = vmul.f32 %v9551_v60, %v936_v16  ;;  %v946_v32 = vadd.f32 %v944_v21, %v10085_v17  ;;  %v10234_v54 = vpop.permute.xlu0 %1093 }
 0x151   : > { %v911_v23 = vmul.f32 %v9553_v63, %v910_v18  ;;  %v966_v49 = vpop.permute.xlu2 %965 }
 0x152   : > { %v938_v19 = vmul.f32 %v937_v20, %v10103_v46  ;;  %v10152_v36 = vpack.c.bf16 %v946_v32, %v946_v32  ;;  %9501 = vset.pattern.permute.xlu0 %v9843_v44  ;;  %v1420_v32 = vld [vmem:[%s11076_s20 + $0x10] sm:$0xff] }
 0x153   : > { %v915_v25 = vsel %vm914_vm9, %v9553_v63, %v911_v23  ;;  %1321 = vperm.xlu0 %9501, %v10127_v2  }
 0x154   : > { %v917_v29 = vmul.f32 %v915_v25, %v10097_v30  ;;  %v940_v31 = vsel %vm939_vm10, %v10103_v46, %v938_v19  ;;  %v990_v17 = vunpack.c.l.b16 %v10152_v36  ;;  %v11050_v46 = vmov 7  }
 0x155   : > { %v943_v33 = vsel %vm941_vm11, %v942_v26, %v940_v31  ;;  %v961_v48 = vpop.permute.xlu1 %960  ;;  %vm2055_vm11 = vcmask 121856  }
 0x156   : > { %v945_v34 = vmul.f32 %v943_v33, %v917_v29  ;;  %9492 = vset.pattern.permute.xlu1 %v9841_v41  ;;  %9494 = vset.pattern.permute.xlu2 %v9840_v40 }
 0x157   : > { %1227 = vperm.xlu1 %9492, %v10121_v62   ;;  %1174 = vperm.xlu2 %9494, %v10136_v22  }
 0x158   : > { %v947_v35 = vadd.f32 %v945_v34, %v10094_v27 }
 0x159   : > { %v10232_v52 = vpop.permute.xlu2 %1044  ;;  %v10242_v60 = vpop.permute.xlu0 %1134 }
 0x15a   : > { %v10159_v38 = vpack.c.bf16 %v947_v35, %v947_v35  ;;  %v1459_v35 = vld [vmem:[%s11026_s7 + $0x8] sm:$0xff] }
 0x15b   : > { %9507 = vset.pattern.permute.xlu0 %v9844_v45 }
 0x15c   : > { %v991_v30 = vunpack.c.l.b16 %v10159_v38  ;;  %1403 = vperm.xlu0 %9507, %v10121_v62  }
 0x15e   : > { %v992_v27 = vpack.c.b16 %v991_v30, %v990_v17  ;;  %v10230_v51 = vpop.permute.xlu1 %1049 }
 0x15f   : > { %9495 = vset.pattern.permute.xlu1 %v9840_v40  ;;  %9498 = vset.pattern.permute.xlu2 %v9841_v41 }
 0x160   : > { %1008 = vmatpush.bf16.msra.mxu0 %v992_v27  ;;  %1178 = vperm.xlu1 %9495, %v10157_v37  }
 0x161   : > { %1219 = vperm.xlu2 %9498, %v10136_v22   ;;  %v10238_v56 = vpop.permute.xlu2 %1097 }
 0x163   : > { %6590 = vmatmul.msk.bf16.vlgmr.msra.gmra.mxu0 %vm994_vm12, %v8805_v39  ;;  %v10340_v39 = vld [vmem:[#allocation6 + $0x8] sm:$0xff] }
 0x164   : > { %9508 = vset.pattern.permute.xlu0 %v11050_v46 }
 0x165   : > { %1362 = vperm.xlu0 %9508, %v10127_v2  }
 0x166   : > { %v10236_v55 = vpop.permute.xlu1 %1034 }
 0x168   : > { %9496 = vset.pattern.permute.xlu1 %v9842_v42 }
 0x169   : > { %1272 = vperm.xlu1 %9496, %v10121_v62   ;;  %9502 = vset.pattern.permute.xlu2 %v9842_v42  ;;  %v10252_v0 = vpop.permute.xlu2 %1138 }
 0x16a   : > { %1264 = vperm.xlu2 %9502, %v10136_v22  }
 0x171   : > { %9499 = vset.pattern.permute.xlu1 %v9841_v41  ;;  %v10263_v9 = vpop.permute.xlu2 %1085 }
 0x172   : > { %1223 = vperm.xlu1 %9499, %v10157_v37   ;;  %9505 = vset.pattern.permute.xlu2 %v9843_v44 }
 0x173   : > { %6591 = vmatmul.msk.bf16.gmra.mxu0 %vm994_vm12, %v8806_v43  ;;  %1309 = vperm.xlu2 %9505, %v10136_v22  }
 0x17a   : > { %9500 = vset.pattern.permute.xlu1 %v9843_v44 }
 0x17b   : > { %1317 = vperm.xlu1 %9500, %v10121_v62   ;;  %9509 = vset.pattern.permute.xlu2 %v9844_v45 }
 0x17c   : > { %1407 = vperm.xlu2 %9509, %v10127_v2  }
 0x183   : > { %9503 = vset.pattern.permute.xlu1 %v9842_v42 }
 0x184   : > { %1268 = vperm.xlu1 %9503, %v10157_v37  }
 0x18c   : > { %9504 = vset.pattern.permute.xlu1 %v11050_v46 }
 0x18d   : > { %1358 = vperm.xlu1 %9504, %v10121_v62  }
 0x195   : > { %9506 = vset.pattern.permute.xlu1 %v9843_v44 }
 0x196   : > { %1313 = vperm.xlu1 %9506, %v10157_v37  }
 0x19e   : > { %9510 = vset.pattern.permute.xlu1 %v11050_v46 }
 0x19f   : > { %1350 = vperm.xlu1 %9510, %v10136_v22   ;;  %v10271_v13 = vpop.permute.xlu2 %1182 }
 0x1a7   : > { %9511 = vset.pattern.permute.xlu1 %v9844_v45 }
 0x1a8   : > { %v10282_v20 = vpop.permute.xlu2 %1126 }
 0x1aa   : > { %v10240_v59 = vpop.permute.xlu1 %1089  ;;  %v1040_v4 = vpop.permute.xlu0 %1039 }
 0x1b1   : > { %v10297_v25 = vpop.permute.xlu2 %1174 }
 0x1b3   : > { %v10323_v33 = vpop.permute.xlu0 %1231 }
 0x1b7   : > { %v10254_v3 = vpop.permute.xlu1 %1186 }
 0x1bb   : > { %v10306_v28 = vpop.permute.xlu2 %1219 }
 0x1bc   : > { %v10338_v30 = vpop.permute.xlu0 %1276 }
 0x1c0   : > { %v10265_v11 = vpop.permute.xlu1 %1130 }
 0x1c4   : > { %v10315_v31 = vpop.permute.xlu2 %1264 }
 0x1c9   : > { %v10279_v15 = vpop.permute.xlu1 %1227 }
 0x1cd   : > { %v10332_v17 = vpop.permute.xlu2 %1309 }
 0x1d2   : > { %v10288_v23 = vpop.permute.xlu1 %1178 }
 0x1d6   : > { %v10346_v43 = vpop.permute.xlu2 %1407 }
 0x1db   : > { %v10299_v26 = vpop.permute.xlu1 %1272 }
 0x1e0   : > { %v1010_v57 = vpop.f32.mrf.mxu0 }
 0x1e1   : > { %v1011_v58 = vadd.f32 %v1010_v57, %v961_v48  ;;  %v836_v57 = vlaneseq }
 0x1e3   : > { %v1020_v61 = vmax.f32 %v1011_v58, 0.0  ;;  %v1418_v58 = vld [vmem:[%s11076_s20] sm:$0xff] }
 0x1e4   : > { %v10308_v29 = vpop.permute.xlu1 %1223 }
 0x1e5   : > { %v10244_v62 = vmin.f32 %v1020_v61, 6.0 }
 0x1e7   : > { %1149 = vrot.lane.b32.xlu0 %v10244_v62, %s9846_s3  ;;  %1108 = vrot.lane.b32.xlu1 %v10244_v62, %s9847_s15 }
 0x1e8   : > { %1060 = vrot.lane.b32.xlu2 %v10244_v62, %s9848_s6  ;;  %v1012_v63 = vpop.f32.mrf.mxu0 }
 0x1e9   : > { %v1013_v1 = vadd.f32 %v1012_v63, %v966_v49  ;;  %v10356_v49 = vld [vmem:[#allocation6] sm:$0xff] }
 0x1eb   : > { %v1021_v2 = vmax.f32 %v1013_v1, 0.0 }
 0x1ed   : > { %v1025_v5 = vmin.f32 %v1021_v2, 6.0  ;;  %v10325_v34 = vpop.permute.xlu1 %1317 }
 0x1ef   : > { %v10256_v6 = vmul.f32 %v1040_v4, %v1025_v5  ;;  %1197 = vrot.lane.b32.xlu0 %v10244_v62, %s9849_s2  ;;  %1332 = vrot.lane.b32.xlu1 %v10244_v62, %s9850_s0  ;;  %v1458_v4 = vld [vmem:[%s11026_s7] sm:$0xff] }
 0x1f0   : > { %1151 = vrot.lane.b32.xlu2 %v1025_v5, %s9846_s3  ;;  %v1015_v8 = vpop.f32.mrf.mxu0 }
 0x1f1   : > { %v1016_v10 = vadd.f32 %v1015_v8, %v971_v47  ;;  %v10349_v47 = vpop.permute.xlu0 %1321 }
 0x1f3   : > { %v1022_v12 = vmax.f32 %v1016_v10, 0.0 }
 0x1f5   : > { %v10273_v14 = vmin.f32 %v1022_v12, 6.0 }
 0x1f6   : > { %v1269_v27 = vpop.permute.xlu1 %1268 }
 0x1f7   : > { %1242 = vrot.lane.b32.xlu0 %v10244_v62, %s9851_s25  ;;  %1062 = vrot.lane.b32.xlu1 %v1025_v5, %s9848_s6 }
 0x1f8   : > { %1199 = vrot.lane.b32.xlu2 %v1025_v5, %s9849_s2  ;;  %v1017_v16 = vpop.f32.mrf.mxu0 }
 0x1f9   : > { %v1018_v18 = vadd.f32 %v1017_v16, %v976_v50  ;;  %v10363_v61 = vpop.permute.xlu0 %1403 }
 0x1fb   : > { %v1023_v21 = vmax.f32 %v1018_v18, 0.0 }
 0x1fd   : > { %v10290_v19 = vmin.f32 %v1023_v21, 6.0  ;;  %v1501_v21 = vld [vmem:[%s11028_s9 + $0x8] sm:$0xff] }
 0x1ff   : > { %1287 = vrot.lane.b32.xlu0 %v10244_v62, %s9852_s23  ;;  %1112 = vrot.lane.b32.xlu1 %v10273_v14, %s9847_s15  ;;  %v10351_v48 = vpop.permute.xlu1 %1358 }
 0x200   : > { %1244 = vrot.lane.b32.xlu2 %v1025_v5, %s9851_s25 }
 0x207   : > { %1110 = vrot.lane.b32.xlu0 %v1025_v5, %s9847_s15  ;;  %1153 = vrot.lane.b32.xlu1 %v10273_v14, %s9846_s3 }
 0x208   : > { %1289 = vrot.lane.b32.xlu2 %v1025_v5, %s9852_s23  ;;  %v1314_v63 = vpop.permute.xlu1 %1313 }
 0x20f   : > { %1201 = vrot.lane.b32.xlu0 %v10273_v14, %s9849_s2  ;;  %1066 = vrot.lane.b32.xlu1 %v10290_v19, %s9848_s6 }
 0x210   : > { %1334 = vrot.lane.b32.xlu2 %v1025_v5, %s9850_s0 }
 0x211   : > { %v1351_v8 = vpop.permute.xlu1 %1350 }
 0x217   : > { %1114 = vrot.lane.b32.xlu0 %v10290_v19, %s9847_s15  ;;  %1375 = vrot.lane.b32.xlu1 %v1025_v5, %s9853_s1  ;;  %v10377_v5 = vpop.permute.xlu0 %1362 }
 0x218   : > { %1064 = vrot.lane.b32.xlu2 %v10273_v14, %s9848_s6 }
 0x21f   : > { %1354 = vperm.xlu0 %9508, %v10157_v37   ;;  %1248 = vrot.lane.b32.xlu1 %v10290_v19, %s9851_s25 }
 0x220   : > { %1246 = vrot.lane.b32.xlu2 %v10273_v14, %s9851_s25 }
 0x227   : > { %9512 = vset.pattern.permute.xlu0 %v9837_v53  ;;  %1293 = vrot.lane.b32.xlu1 %v10290_v19, %s9852_s23 }
 0x228   : > { %1291 = vrot.lane.b32.xlu2 %v10273_v14, %s9852_s23  ;;  %1434 = vperm.xlu0 %9512, %v1420_v32   ;;  %s9855_s23 = smov 15  }
 0x22f   : > { %1338 = vrot.lane.b32.xlu1 %v10290_v19, %s9850_s0 }
 0x230   : > { %1336 = vrot.lane.b32.xlu2 %v10273_v14, %s9850_s0  ;;  %1467 = vperm.xlu0 %9512, %v1459_v35   ;;  %v1052_v35 = vmul.f32 %v10236_v55, %v10244_v62 }
 0x237   : > { %1379 = vrot.lane.b32.xlu1 %v10290_v19, %s9853_s1 }
 0x238   : > { %1377 = vrot.lane.b32.xlu2 %v10273_v14, %s9853_s1  ;;  %1631 = vperm.xlu0 %9512, %v10340_v39  }
 0x23f   : > { %1399 = vperm.xlu1 %9511, %v10157_v37   ;;  %v10368_v37 = vand.u32 127, %v836_v57 }
 0x240   : > { %1373 = vrot.lane.b32.xlu2 %v10244_v62, %s9853_s1  ;;  %9519 = vset.pattern.permute.xlu0 %v9844_v45  ;;  %v1421_v62 = vld [vmem:[%s11076_s20 + $0x18] sm:$0xff] }
 0x241   : > { %1661 = vperm.xlu0 %9519, %v10356_v49   ;;  %v838_v2 = vand.u32 7, %v10368_v37 }
 0x242   : > { %v1061_v50 = vpop.permute.xlu2 %1060 }
 0x243   : > { %vm10381_vm14 = vcmp.ge.s32.totalorder %v838_v2, 1  ;;  %v1073_v12 = vsel %vm1072_vm13, 0.0, %v1061_v50  ;;  %vm10398_vm2 = vcmp.lt.s32.totalorder %v838_v2, 7 }
 0x244   : > { %v1080_v18 = vsel %vm10381_vm14, %v1073_v12, 0.0 }
 0x245   : > { %v1100_v32 = vmul.f32 %v10263_v9, %v1080_v18 }
 0x247   : > { %9514 = vset.pattern.permute.xlu1 %v9837_v53  ;;  %v1104_v12 = vadd.f32 %v1100_v32, %v1052_v35 }
 0x248   : > { %1155 = vrot.lane.b32.xlu2 %v10290_v19, %s9846_s3  ;;  %1424 = vperm.xlu1 %9514, %v1418_v58  }
 0x249   : > { %9524 = vset.pattern.permute.xlu0 %v9842_v42 }
 0x24a   : > { %v10371_v1 = vpop.permute.xlu2 %1151 }
 0x250   : > { %1203 = vrot.lane.b32.xlu2 %v10290_v19, %s9849_s2  ;;  %1462 = vperm.xlu1 %9514, %v1458_v4  }
 0x252   : > { %v10386_v16 = vpop.permute.xlu2 %1199 }
 0x258   : > { %1395 = vperm.xlu2 %9509, %v10136_v22   ;;  %1509 = vperm.xlu1 %9514, %v1501_v21  }
 0x259   : > { %v1150_v50 = vpop.permute.xlu0 %1149  ;;  %v1109_v57 = vpop.permute.xlu1 %1108 }
 0x25a   : > { %v1245_v58 = vpop.permute.xlu2 %1244  ;;  %v1121_v4 = vsel %vm1120_vm15, 0.0, %v1109_v57 }
 0x25b   : > { %v1256_v9 = vsel %vm1254_vm1, %v1245_v58, 0.0  ;;  %v1141_v18 = vmul.f32 %v10282_v20, %v1121_v4 }
 0x25c   : > { %v1260_v22 = vsel %vm10398_vm2, %v1256_v9, 0.0  ;;  %v1419_v9 = vld [vmem:[%s11076_s20 + $0x8] sm:$0xff] }
 0x25d   : > { %v10406_v21 = vmul.f32 %v1269_v27, %v1260_v22  ;;  %v1145_v55 = vadd.f32 %v1141_v18, %v1104_v12  ;;  %v1162_v12 = vsel %vm1161_vm5, 0.0, %v1150_v50 }
 0x25e   : > { %v1169_v22 = vsel %vm10398_vm2, %v1162_v12, 0.0 }
 0x260   : > { %9513 = vset.pattern.permute.xlu2 %v9837_v53  ;;  %1627 = vperm.xlu1 %9514, %v10356_v49  }
 0x261   : > { %1439 = vperm.xlu2 %9513, %v1421_v62   ;;  %v1198_v2 = vpop.permute.xlu0 %1197  ;;  %v1333_v32 = vpop.permute.xlu1 %1332 }
 0x262   : > { %v1290_v20 = vpop.permute.xlu2 %1289  ;;  %v1345_v35 = vsel %vm1344_vm3, %v1333_v32, 0.0  ;;  %v1210_v18 = vsel %vm1209_vm6, 0.0, %v1198_v2 }
 0x263   : > { %v1301_v27 = vsel %vm1299_vm4, %v1290_v20, 0.0  ;;  %v1365_v57 = vmul.f32 %v1351_v8, %v1345_v35  ;;  %v1214_v32 = vsel %vm10381_vm14, %v1210_v18, 0.0  ;;  %v1189_v20 = vmul.f32 %v10297_v25, %v1169_v22 }
 0x264   : > { %v1305_v58 = vsel %vm10381_vm14, %v1301_v27, 0.0  ;;  %v1234_v35 = vmul.f32 %v10306_v28, %v1214_v32  ;;  %v1500_v27 = vld [vmem:[%s11028_s9] sm:$0xff]  ;;  %v1163_v32 = vsel %vm1161_vm5, 0.0, %v10371_v1 }
 0x265   : > { %v1325_v4 = vmul.f32 %v1314_v63, %v1305_v58  ;;  %v1193_v58 = vadd.f32 %v1189_v20, %v1145_v55 }
 0x267   : > { %v1238_v25 = vadd.f32 %v1234_v35, %v1193_v58  ;;  %v1211_v35 = vsel %vm1209_vm6, 0.0, %v10386_v16 }
 0x268   : > { %9516 = vset.pattern.permute.xlu1 %v9840_v40  ;;  %v1215_v16 = vsel %vm10381_vm14, %v1211_v35, 0.0 }
 0x269   : > { %1429 = vperm.xlu2 %9513, %v1419_v9   ;;  %v1243_v8 = vpop.permute.xlu0 %1242  ;;  %v1063_v62 = vpop.permute.xlu1 %1062  ;;  %1641 = vperm.xlu1 %9516, %v10340_v39  }
 0x26a   : > { %v1255_v63 = vsel %vm1254_vm1, %v1243_v8, 0.0  ;;  %v1335_v50 = vpop.permute.xlu2 %1334  ;;  %v1074_v9 = vsel %vm1072_vm13, 0.0, %v1063_v62 }
 0x26b   : > { %v1259_v2 = vsel %vm10398_vm2, %v1255_v63, 0.0 }
 0x26c   : > { %v1279_v12 = vmul.f32 %v10315_v31, %v1259_v2  ;;  %v1081_v31 = vsel %vm10381_vm14, %v1074_v9, 0.0 }
 0x26d   : > { %v1101_v20 = vmul.f32 %v10240_v59, %v1081_v31 }
 0x26e   : > { %v1283_v63 = vadd.f32 %v1279_v12, %v1238_v25  ;;  %v1170_v12 = vsel %vm10398_vm2, %v1163_v32, 0.0  ;;  %v1235_v25 = vmul.f32 %v10308_v29, %v1215_v16 }
 0x26f   : > { %v1105_v59 = vadd.f32 %v1101_v20, %v10256_v6 }
 0x271   : > { %1504 = vperm.xlu2 %9513, %v1500_v27   ;;  %v1288_v8 = vpop.permute.xlu0 %1287  ;;  %v1113_v46 = vpop.permute.xlu1 %1112  ;;  %9518 = vset.pattern.permute.xlu1 %v9843_v44 }
 0x272   : > { %v1300_v18 = vsel %vm1299_vm4, %v1288_v8, 0.0  ;;  %v1065_v22 = vpop.permute.xlu2 %1064  ;;  %1653 = vperm.xlu1 %9518, %v10340_v39  }
 0x273   : > { %v1304_v28 = vsel %vm10381_vm14, %v1300_v18, 0.0 }
 0x274   : > { %v1324_v55 = vmul.f32 %v10332_v17, %v1304_v28 }
 0x276   : > { %v1328_v62 = vadd.f32 %v1324_v55, %v1283_v63 }
 0x278   : > { %v10449_v2 = vadd.f32 %v1365_v57, %v1328_v62  ;;  %v1190_v57 = vmul.f32 %v10288_v23, %v1170_v12  ;;  %v1346_v23 = vsel %vm1344_vm3, %v1335_v50, 0.0  ;;  %v1054_v50 = vmul.f32 %v10232_v52, %v10273_v14 }
 0x279   : > { %v1111_v27 = vpop.permute.xlu0 %1110  ;;  %v1154_v58 = vpop.permute.xlu1 %1153  ;;  %9515 = vset.pattern.permute.xlu2 %v9840_v40 }
 0x27a   : > { %v1122_v17 = vsel %vm1120_vm15, 0.0, %v1111_v27  ;;  %v1247_v9 = vpop.permute.xlu2 %1246  ;;  %1637 = vperm.xlu2 %9515, %v10356_v49   ;;  %9521 = vset.pattern.permute.xlu1 %v9841_v41 }
 0x27b   : > { %v1142_v1 = vmul.f32 %v10265_v11, %v1122_v17 }
 0x27d   : > { %v1146_v8 = vadd.f32 %v1142_v1, %v1105_v59  ;;  %v1075_v59 = vsel %vm1072_vm13, 0.0, %v1065_v22 }
 0x27f   : > { %v1194_v18 = vadd.f32 %v1190_v57, %v1146_v8  ;;  %v1164_v57 = vsel %vm1161_vm5, 0.0, %v1154_v58 }
 0x280   : > { %v1171_v22 = vsel %vm10398_vm2, %v1164_v57, 0.0 }
 0x281   : > { %v1239_v28 = vadd.f32 %v1235_v25, %v1194_v18  ;;  %v1202_v63 = vpop.permute.xlu0 %1201  ;;  %v1067_v31 = vpop.permute.xlu1 %1066  ;;  %v1123_v25 = vsel %vm1120_vm15, 0.0, %v1113_v46  ;;  %v1191_v58 = vmul.f32 %v10271_v13, %v1171_v22 }
 0x282   : > { %v1292_v55 = vpop.permute.xlu2 %1291  ;;  %9517 = vset.pattern.permute.xlu2 %v9843_v44  ;;  %v1212_v8 = vsel %vm1209_vm6, 0.0, %v1202_v63  ;;  %v1076_v18 = vsel %vm1072_vm13, 0.0, %v1067_v31 }
 0x283   : > { %v1284_v62 = vadd.f32 %v10406_v21, %v1239_v28  ;;  %1649 = vperm.xlu2 %9517, %v10356_v49   ;;  %v1082_v21 = vsel %vm10381_vm14, %v1075_v59, 0.0  ;;  %v1083_v52 = vsel %vm10381_vm14, %v1076_v18, 0.0 }
 0x284   : > { %v1102_v16 = vmul.f32 %v10234_v54, %v1082_v21  ;;  %v1143_v54 = vmul.f32 %v10242_v60, %v1123_v25  ;;  %v1055_v21 = vmul.f32 %v10230_v51, %v10290_v19 }
 0x285   : > { %v1329_v6 = vadd.f32 %v1325_v4, %v1284_v62  ;;  %v1216_v62 = vsel %vm10381_vm14, %v1212_v8, 0.0 }
 0x286   : > { %v1106_v28 = vadd.f32 %v1102_v16, %v1054_v50  ;;  %v1236_v31 = vmul.f32 %v10279_v15, %v1216_v62 }
 0x288   : > { %v1147_v63 = vadd.f32 %v1143_v54, %v1106_v28 }
 0x289   : > { %v1115_v11 = vpop.permute.xlu0 %1114  ;;  %v10468_v32 = vpop.permute.xlu1 %1375 }
 0x28a   : > { %v1337_v20 = vpop.permute.xlu2 %1336  ;;  %v1195_v59 = vadd.f32 %v1191_v58, %v1147_v63 }
 0x28b   : > { %9520 = vset.pattern.permute.xlu2 %v9844_v45 }
 0x28c   : > { %v1240_v57 = vadd.f32 %v1236_v31, %v1195_v59 }
 0x291   : > { %v1355_v29 = vpop.permute.xlu0 %1354  ;;  %v1249_v35 = vpop.permute.xlu1 %1248 }
 0x292   : > { %v1366_v27 = vmul.f32 %v1355_v29, %v1346_v23  ;;  %v1378_v12 = vpop.permute.xlu2 %1377  ;;  %v1257_v23 = vsel %vm1254_vm1, %v1247_v9, 0.0  ;;  %v1124_v29 = vsel %vm1120_vm15, 0.0, %v1115_v11  ;;  %v1302_v9 = vsel %vm1299_vm4, %v1292_v55, 0.0 }
 0x293   : > { %v1261_v13 = vsel %vm10398_vm2, %v1257_v23, 0.0  ;;  %v1144_v16 = vmul.f32 %v10252_v0, %v1124_v29  ;;  %v1258_v11 = vsel %vm1254_vm1, %v1249_v35, 0.0  ;;  %v1306_v22 = vsel %vm10381_vm14, %v1302_v9, 0.0 }
 0x294   : > { %v10472_v17 = vadd.f32 %v1366_v27, %v1329_v6  ;;  %v1103_v27 = vmul.f32 %v10238_v56, %v1083_v52  ;;  %v1281_v8 = vmul.f32 %v10299_v26, %v1261_v13  ;;  %v1388_v55 = vsel %vm1385_vm7, %v1378_v12, 0.0 }
 0x295   : > { %v1262_v35 = vsel %vm10398_vm2, %v1258_v11, 0.0  ;;  %v1347_v26 = vsel %vm1344_vm3, %v1337_v20, 0.0  ;;  %v1326_v54 = vmul.f32 %v10325_v34, %v1306_v22  ;;  %v1392_v58 = vsel %vm10398_vm2, %v1388_v55, 0.0 }
 0x296   : > { %v1107_v15 = vadd.f32 %v1103_v27, %v1055_v21  ;;  %v1285_v19 = vadd.f32 %v1281_v8, %v1240_v57  ;;  %v1282_v12 = vmul.f32 %v10338_v30, %v1262_v35 }
 0x298   : > { %v1148_v18 = vadd.f32 %v1144_v16, %v1107_v15  ;;  %v1387_v16 = vsel %vm1385_vm7, %v10468_v32, 0.0 }
 0x299   : > { %v1294_v4 = vpop.permute.xlu1 %1293 }
 0x29a   : > { %v10477_v1 = vpop.permute.xlu2 %1373  ;;  %v1303_v51 = vsel %vm1299_vm4, %v1294_v4, 0.0  ;;  %v1435_v30 = vpop.permute.xlu0 %1434  ;;  %vm2226_vm4 = vcmask 1043456  }
 0x29b   : > { %v1307_v4 = vsel %vm10381_vm14, %v1303_v51, 0.0 }
 0x29c   : > { %v1327_v63 = vmul.f32 %v10349_v47, %v1307_v4  ;;  %v1386_v47 = vsel %vm1385_vm7, %v10477_v1, 0.0 }
 0x29d   : > { %v1390_v21 = vsel %vm10398_vm2, %v1386_v47, 0.0  ;;  %v1692_v47 = vld [vmem:[%s11030_s11] sm:$0xff] }
 0x2a1   : > { %v1339_v6 = vpop.permute.xlu1 %1338 }
 0x2a2   : > { %v1156_v14 = vpop.permute.xlu2 %1155  ;;  %v1348_v20 = vsel %vm1344_vm3, %v1339_v6, 0.0 }
 0x2a3   : > { %v1165_v46 = vsel %vm1161_vm5, 0.0, %v1156_v14  ;;  %v1330_v14 = vadd.f32 %v1326_v54, %v1285_v19  ;;  %v1368_v59 = vmul.f32 %v10377_v5, %v1348_v20 }
 0x2a4   : > { %v1172_v60 = vsel %vm10398_vm2, %v1165_v46, 0.0  ;;  %v1367_v46 = vmul.f32 %v10351_v48, %v1347_v26 }
 0x2a5   : > { %v1192_v56 = vmul.f32 %v10254_v3, %v1172_v60 }
 0x2a6   : > { %v1371_v27 = vadd.f32 %v1367_v46, %v1330_v14  ;;  %v1494_v14 = vunpack.c.l.bf16 %v10159_v38 }
 0x2a7   : > { %v1196_v28 = vadd.f32 %v1192_v56, %v1148_v18  ;;  %v1391_v56 = vsel %vm10398_vm2, %v1387_v16, 0.0 }
 0x2a9   : > { %v1380_v50 = vpop.permute.xlu1 %1379 }
 0x2aa   : > { %v1204_v25 = vpop.permute.xlu2 %1203  ;;  %v1389_v34 = vsel %vm1385_vm7, %v1380_v50, 0.0 }
 0x2ab   : > { %v1213_v0 = vsel %vm1209_vm6, 0.0, %v1204_v25  ;;  %v1393_v60 = vsel %vm10398_vm2, %v1389_v34, 0.0 }
 0x2ac   : > { %v1217_v3 = vsel %vm10381_vm14, %v1213_v0, 0.0 }
 0x2ad   : > { %v1237_v62 = vmul.f32 %v10323_v33, %v1217_v3  ;;  %v1412_v33 = vmul.f32 %v10363_v61, %v1392_v58  ;;  %v1413_v61 = vmul.f32 %v10346_v43, %v1393_v60  ;;  %v1468_v58 = vpop.permute.xlu0 %1467  ;;  %v11081_v60 = vmov 7  }
 0x2af   : > { %v1241_v52 = vadd.f32 %v1237_v62, %v1196_v28  ;;  %v1416_v48 = vadd.f32 %v1412_v33, %v1371_v27  ;;  %v8807_v62 = vld [vmem:[#allocation2] sm:$0xff] }
 0x2b1   : > { %v1286_v23 = vadd.f32 %v1282_v12, %v1241_v52  ;;  %v1400_v31 = vpop.permute.xlu1 %1399  ;;  %v1444_v13 = vadd.f32 %v1435_v30, %v1416_v48  ;;  %v11082_v48 = vmov 4  }
 0x2b2   : > { %v1396_v10 = vpop.permute.xlu2 %1395  ;;  %v1411_v50 = vmul.f32 %v1400_v31, %v1391_v56 }
 0x2b3   : > { %v1331_v29 = vadd.f32 %v1327_v63, %v1286_v23  ;;  %v1410_v57 = vmul.f32 %v1396_v10, %v1390_v21  ;;  %v1448_v15 = vmax.f32 %v1444_v13, 0.0  ;;  %v8808_v23 = vld [vmem:[#allocation4] sm:$0xff] }
 0x2b4   : > { %v1415_v51 = vadd.f32 %v1411_v50, %v10472_v17  ;;  %v1493_v17 = vunpack.c.l.bf16 %v10152_v36 }
 0x2b5   : > { %v1372_v6 = vadd.f32 %v1368_v59, %v1331_v29  ;;  %v1414_v25 = vadd.f32 %v1410_v57, %v10449_v2  ;;  %v1452_v43 = vmin.f32 %v1448_v15, 6.0 }
 0x2b7   : > { %v1417_v5 = vadd.f32 %v1413_v61, %v1372_v6  ;;  %v1632_v61 = vpop.permute.xlu0 %1631 }
 0x2ba   : > { %v1425_v1 = vpop.permute.xlu1 %1424 }
 0x2bb   : > { %v1440_v9 = vpop.permute.xlu2 %1439  ;;  %v1442_v18 = vadd.f32 %v1425_v1, %v1414_v25 }
 0x2bc   : > { %v1445_v11 = vadd.f32 %v1440_v9, %v1417_v5 }
 0x2bd   : > { %v1446_v19 = vmax.f32 %v1442_v18, 0.0 }
 0x2be   : > { %v1449_v8 = vmax.f32 %v1445_v11, 0.0 }
 0x2bf   : > { %v1450_v3 = vmin.f32 %v1446_v19, 6.0  ;;  %v1662_v57 = vpop.permute.xlu0 %1661 }
 0x2c0   : > { %v1453_v22 = vmin.f32 %v1449_v8, 6.0 }
 0x2c2   : > { %v1457_v0 = vpack.c.bf16 %v1453_v22, %v1452_v43  ;;  %v1463_v2 = vpop.permute.xlu1 %1462 }
 0x2c3   : > { %v1430_v32 = vpop.permute.xlu2 %1429 }
 0x2c4   : > { %v1443_v55 = vadd.f32 %v1430_v32, %v1415_v51  ;;  %1485 = vmatpush.bf16.msra.mxu1 %v1457_v0 }
 0x2c6   : > { %v1447_v35 = vmax.f32 %v1443_v55, 0.0 }
 0x2c8   : > { %v1451_v26 = vmin.f32 %v1447_v35, 6.0 }
 0x2ca   : > { %v1456_v28 = vpack.c.bf16 %v1451_v26, %v1450_v3  ;;  %v1510_v36 = vpop.permute.xlu1 %1509 }
 0x2cb   : > { %v1505_v33 = vpop.permute.xlu2 %1504 }
 0x2cc   : > { %1486 = vmatpush.bf16.msra.mxu1 %v1456_v28 }
 0x2cf   : > { %6596 = vmatmul.msk.bf16.vlgmr.msra.gmra.mxu1 %vm1475_vm8, %v8807_v62 }
 0x2d2   : > { %v1628_v13 = vpop.permute.xlu1 %1627 }
 0x2d4   : > { %v1638_v6 = vpop.permute.xlu2 %1637 }
 0x2db   : > { %v1642_v16 = vpop.permute.xlu1 %1641 }
 0x2dd   : > { %v1650_v21 = vpop.permute.xlu2 %1649 }
 0x2e4   : > { %v1654_v9 = vpop.permute.xlu1 %1653 }
 0x34c   : > { %v1488_v54 = vpop.f32.mrf.mxu1 }
 0x34d   : > { %v1489_v4 = vadd.f32 %v1488_v54, %v1463_v2 }
 0x34f   : > { %v1495_v46 = vadd.f32 %v1493_v17, %v1489_v4 }
 0x354   : > { %v1490_v12 = vpop.f32.mrf.mxu1 }
 0x355   : > { %v1491_v52 = vadd.f32 %v1490_v12, %v1468_v58 }
 0x357   : > { %v1496_v63 = vadd.f32 %v1494_v14, %v1491_v52 }
 0x359   : > { %v1497_v20 = vpack.c.bf16 %v1496_v63, %v1495_v46  ;;  %v1693_v46 = vld [vmem:[%s11030_s11 + $0x8] sm:$0xff] }
 0x35b   : > { %1527 = vmatpush.bf16.msra.mxu2 %v1497_v20 }
 0x35e   : > { %6601 = vmatmul.msk.bf16.vlgmr.msra.gmra.mxu2 %vm994_vm12, %v8808_v23 }
 0x3e1   : > { %v1529_v34 = vpop.f32.mrf.mxu2 }
 0x3e2   : > { %v1530_v10 = vadd.f32 %v1529_v34, %v1505_v33 }
 0x3e4   : > { %v1534_v31 = vmax.f32 %v1530_v10, 0.0 }
 0x3e6   : > { %v10549_v29 = vmin.f32 %v1534_v31, 6.0 }
 0x3e8   : > { %1560 = vrot.lane.b32.xlu1 %v10549_v29, %s9853_s1  ;;  %1542 = vrot.lane.b32.xlu0 %v10549_v29, %s9851_s25  ;;  %v1634_v8 = vmul.f32 %v1628_v13, %v10549_v29 }
 0x3e9   : > { %v1531_v38 = vpop.f32.mrf.mxu2 }
 0x3ea   : > { %v1532_v27 = vadd.f32 %v1531_v38, %v1510_v36  ;;  %v1719_v38 = vld [vmem:[%s11032_s13] sm:$0xff] }
 0x3ec   : > { %v1535_v59 = vmax.f32 %v1532_v27, 0.0 }
 0x3ee   : > { %v10555_v30 = vmin.f32 %v1535_v59, 6.0 }
 0x3f0   : > { %1583 = vperm.xlu1 %9521, %v10356_v49   ;;  %1552 = vrot.lane.b32.xlu0 %v10549_v29, %s9850_s0  ;;  %v1635_v62 = vmul.f32 %v1632_v61, %v10555_v30 }
 0x3f1   : > { %1544 = vrot.lane.b32.xlu2 %v10555_v30, %s9851_s25 }
 0x3f8   : > { %9523 = vset.pattern.permute.xlu1 %v9842_v42  ;;  %1562 = vrot.lane.b32.xlu0 %v10555_v30, %s9853_s1 }
 0x3f9   : > { %1554 = vrot.lane.b32.xlu2 %v10555_v30, %s9850_s0  ;;  %1593 = vperm.xlu1 %9523, %v10356_v49  }
 0x400   : > { %1597 = vperm.xlu0 %9524, %v10340_v39  }
 0x401   : > { %1665 = vperm.xlu2 %9520, %v10340_v39   ;;  %9526 = vset.pattern.permute.xlu1 %v9839_v24 }
 0x402   : > { %1609 = vperm.xlu1 %9526, %v10340_v39  }
 0x408   : > { %9530 = vset.pattern.permute.xlu0 %v9837_v53 }
 0x409   : > { %9522 = vset.pattern.permute.xlu2 %v9841_v41 }
 0x40a   : > { %1587 = vperm.xlu2 %9522, %v10340_v39   ;;  %9528 = vset.pattern.permute.xlu1 %v11081_v60 }
 0x40b   : > { %1619 = vperm.xlu1 %9528, %v10340_v39  }
 0x412   : > { %9525 = vset.pattern.permute.xlu2 %v9839_v24 }
 0x413   : > { %1605 = vperm.xlu2 %9525, %v10356_v49   ;;  %9529 = vset.pattern.permute.xlu1 %v9837_v53 }
 0x414   : > { %1696 = vperm.xlu1 %9529, %v1692_v47  }
 0x41b   : > { %9527 = vset.pattern.permute.xlu2 %v11081_v60 }
 0x41c   : > { %1615 = vperm.xlu2 %9527, %v10356_v49   ;;  %9532 = vset.pattern.permute.xlu1 %v11082_v48 }
 0x41d   : > { %1577 = vperm.xlu1 %9532, %v10340_v39  }
 0x424   : > { %9531 = vset.pattern.permute.xlu2 %v11082_v48 }
 0x425   : > { %1572 = vperm.xlu2 %9531, %v10356_v49   ;;  %9535 = vset.pattern.permute.xlu1 %v9839_v24 }
 0x42d   : > { %9534 = vset.pattern.permute.xlu2 %v9837_v53 }
 0x44b   : > { %v1545_v5 = vpop.permute.xlu2 %1544 }
 0x44c   : > { %v1549_v50 = vsel %vm1254_vm1, %v1545_v5, 0.0  ;;  %v6662_v5 = vld [vmem:[#allocation9 + $0x70] sm:$0xf] }
 0x44d   : > { %v1551_v18 = vsel %vm10398_vm2, %v1549_v50, 0.0  ;;  %v8822_v50 = vld [vmem:[#allocation9 + $0x64] sm:$0xf0] }
 0x44e   : > { %v1645_v26 = vmul.f32 %v1642_v16, %v1551_v18 }
 0x450   : > { %v1647_v4 = vadd.f32 %v1645_v26, %v1635_v62  ;;  %v8819_v26 = vld [vmem:[#allocation9 + $0x54] sm:$0xf] }
 0x453   : > { %v1555_v39 = vpop.permute.xlu2 %1554 }
 0x454   : > { %v1559_v32 = vsel %vm1344_vm3, %v1555_v39, 0.0  ;;  %v6664_v39 = vld [vmem:[#allocation9 + $0x78] sm:$0xf0] }
 0x455   : > { %v1657_v54 = vmul.f32 %v1654_v9, %v1559_v32  ;;  %v8824_v9 = vld [vmem:[#allocation9 + $0x74] sm:$0xf0] }
 0x457   : > { %v1659_v52 = vadd.f32 %v1657_v54, %v1647_v4 }
 0x45a   : > { %v1543_v15 = vpop.permute.xlu0 %1542  ;;  %v1561_v56 = vpop.permute.xlu1 %1560 }
 0x45b   : > { %v1548_v11 = vsel %vm1254_vm1, %v1543_v15, 0.0  ;;  %v1566_v24 = vsel %vm1385_vm7, %v1561_v56, 0.0  ;;  %v1666_v55 = vpop.permute.xlu2 %1665  ;;  %v6663_v15 = vor.u32 %v8824_v9, %v6662_v5  ;;  %vm2117_vm1 = vcmask 924672  }
 0x45c   : > { %v1550_v49 = vsel %vm10398_vm2, %v1548_v11, 0.0  ;;  %v1568_v43 = vsel %vm10398_vm2, %v1566_v24, 0.0  ;;  %v8823_v11 = vld [vmem:[#allocation9 + $0x74] sm:$0xf] }
 0x45d   : > { %v1644_v1 = vmul.f32 %v1638_v6, %v1550_v49  ;;  %v1668_v19 = vmul.f32 %v1662_v57, %v1568_v43  ;;  %1948 = vmatpush.bf16.msrb.mxu0 %v6663_v15  ;;  %v8837_v15 = vld [vmem:[#allocation9 + $0xe4] sm:$0xf] }
 0x45f   : > { %v1646_v51 = vadd.f32 %v1644_v1, %v1634_v8  ;;  %v8821_v8 = vld [vmem:[#allocation9 + $0x64] sm:$0xf] }
 0x462   : > { %v1553_v25 = vpop.permute.xlu0 %1552  ;;  %v1584_v3 = vpop.permute.xlu1 %1583 }
 0x463   : > { %v1558_v22 = vsel %vm1344_vm3, %v1553_v25, 0.0  ;;  %v1590_v31 = vmul.f32 %v1584_v3, %v10549_v29  ;;  %v6656_v25 = vld [vmem:[#allocation9 + $0x68] sm:$0xf0]  ;;  %v8820_v3 = vld [vmem:[#allocation9 + $0x54] sm:$0xf0]  ;;  %vm2136_vm3 = vcmask 916480  }
 0x464   : > { %v1656_v0 = vmul.f32 %v1650_v21, %v1558_v22  ;;  %v1588_v63 = vpop.permute.xlu2 %1587 }
 0x465   : > { %v1591_v33 = vmul.f32 %v1588_v63, %v10555_v30  ;;  %v8817_v63 = vld [vmem:[#allocation9 + $0x44] sm:$0xf] }
 0x466   : > { %v1658_v35 = vadd.f32 %v1656_v0, %v1646_v51 }
 0x468   : > { %v1670_v28 = vadd.f32 %v1668_v19, %v1658_v35  ;;  %v6646_v35 = vld [vmem:[#allocation9 + $0x50] sm:$0xf] }
 0x469   : > { %v6647_v54 = vor.u32 %v8820_v3, %v6646_v35  ;;  %v6710_v3 = vld [vmem:[#allocation9 + $0xd0] sm:$0xf] }
 0x46a   : > { %v1563_v2 = vpop.permute.xlu0 %1562  ;;  %1682 = vrot.lane.b32.xlu0 %v1670_v28, %s9854_s12 }
 0x46b   : > { %v1567_v58 = vsel %vm1385_vm7, %v1563_v2, 0.0  ;;  %v1594_v20 = vpop.permute.xlu1 %1593  ;;  %v6648_v2 = vld [vmem:[#allocation9 + $0x58] sm:$0xf0] }
 0x46c   : > { %v1569_v12 = vsel %vm10398_vm2, %v1567_v58, 0.0  ;;  %v1600_v34 = vmul.f32 %v1594_v20, %v1550_v49  ;;  %v6667_v49 = vor.u32 %v8823_v11, %v6664_v39  ;;  %v6651_v4 = vor.u32 %v8819_v26, %v6648_v2  ;;  %v6640_v20 = vld [vmem:[#allocation9 + $0x48] sm:$0xf0]  ;;  %v8836_v26 = vld [vmem:[#allocation9 + $0xd4] sm:$0xf0] }
 0x46d   : > { %v1669_v17 = vmul.f32 %v1666_v55, %v1569_v12  ;;  %v1606_v27 = vpop.permute.xlu2 %1605  ;;  %v6720_v11 = vld [vmem:[#allocation9 + $0xe8] sm:$0xf0]  ;;  %v6711_v2 = vor.u32 %v8836_v26, %v6710_v3  ;;  %vm2153_vm2 = vcmask 908288  }
 0x46e   : > { %v1602_v36 = vadd.f32 %v1600_v34, %v1590_v31  ;;  %v1612_v57 = vmul.f32 %v1606_v27, %v10549_v29  ;;  %1974 = vmatpush.bf16.msrb.mxu1 %v6667_v49  ;;  %v6728_v31 = vld [vmem:[#allocation9 + $0xf8] sm:$0xf0]  ;;  %v6726_v49 = vld [vmem:[#allocation9 + $0xf0] sm:$0xf] }
 0x46f   : > { %v1671_v14 = vadd.f32 %v1669_v17, %v1659_v52  ;;  %v6638_v17 = vld [vmem:[#allocation9 + $0x40] sm:$0xf] }
 0x471   : > { %1684 = vrot.lane.b32.xlu2 %v1671_v14, %s9854_s12 }
 0x472   : > { %v1598_v23 = vpop.permute.xlu0 %1597  ;;  %1701 = vperm.xlu0 %9530, %v1693_v46   ;;  %v8818_v46 = vld [vmem:[#allocation9 + $0x44] sm:$0xf0] }
 0x473   : > { %v1601_v10 = vmul.f32 %v1598_v23, %v1551_v18  ;;  %v6659_v18 = vor.u32 %v8821_v8, %v6656_v25  ;;  %v6639_v23 = vor.u32 %v8818_v46, %v6638_v17  ;;  %v8835_v8 = vld [vmem:[#allocation9 + $0xd4] sm:$0xf]  ;;  %v6712_v25 = vld [vmem:[#allocation9 + $0xd8] sm:$0xf0]  ;;  %v8832_v46 = vld [vmem:[#allocation9 + $0xb4] sm:$0xf0] }
 0x474   : > { %v1610_v59 = vpop.permute.xlu1 %1609 }
 0x475   : > { %v1603_v7 = vadd.f32 %v1601_v10, %v1591_v33  ;;  %v1613_v51 = vmul.f32 %v1610_v59, %v10555_v30  ;;  %1975 = vmatpush.bf16.msrb.mxu1 %v6659_v18  ;;  %v6643_v33 = vor.u32 %v8817_v63, %v6640_v20  ;;  %v8839_v10 = vld [vmem:[#allocation9 + $0xf4] sm:$0xf]  ;;  %v6718_v18 = vld [vmem:[#allocation9 + $0xe0] sm:$0xf] }
 0x476   : > { %v1616_v47 = vpop.permute.xlu2 %1615  ;;  %v8827_v20 = vld [vmem:[#allocation9 + $0x94] sm:$0xf] }
 0x477   : > { %1676 = vrot.lane.b32.xlu1 %v1603_v7, %s9854_s12  ;;  %v1622_v61 = vmul.f32 %v1616_v47, %v1558_v22  ;;  %v8816_v47 = vld [vmem:[#allocation9 + $0x34] sm:$0xf0] }
 0x479   : > { %1674 = vrot.lane.b32.xlu2 %v1602_v36, %s9854_s12  ;;  %v1624_v56 = vadd.f32 %v1622_v61, %v1612_v57  ;;  %1976 = vmatpush.bf16.msrb.mxu1 %v6651_v4  ;;  %v6630_v36 = vld [vmem:[#allocation9 + $0x30] sm:$0xf]  ;;  %v6731_v61 = vor.u32 %v8839_v10, %v6728_v31  ;;  %v6632_v57 = vld [vmem:[#allocation9 + $0x38] sm:$0xf0]  ;;  %v6702_v4 = vld [vmem:[#allocation9 + $0xc0] sm:$0xf] }
 0x47a   : > { %1722 = vperm.xlu0 %9530, %v1719_v38   ;;  %s11091_s12 = sld [smem:[#allocation31_spill]] }
 0x47d   : > { %v1620_v6 = vpop.permute.xlu1 %1619  ;;  %1977 = vmatpush.bf16.msrb.mxu1 %v6643_v33 }
 0x47e   : > { %v1623_v43 = vmul.f32 %v1620_v6, %v1559_v32  ;;  %v8815_v6 = vld [vmem:[#allocation9 + $0x34] sm:$0xf] }
 0x47f   : > { %v1573_v13 = vpop.permute.xlu2 %1572  ;;  %v6635_v39 = vor.u32 %v8815_v6, %v6632_v57  ;;  %v8826_v57 = vld [vmem:[#allocation9 + $0x84] sm:$0xf0] }
 0x480   : > { %v1625_v28 = vadd.f32 %v1623_v43, %v1613_v51  ;;  %v1580_v62 = vmul.f32 %v1573_v13, %v10549_v29  ;;  %v8838_v51 = vld [vmem:[#allocation9 + $0xe4] sm:$0xf0] }
 0x481   : > { %1978 = vmatpush.bf16.msrb.mxu1 %v6635_v39  ;;  %v6719_v35 = vor.u32 %v8838_v51, %v6718_v18  ;;  %v8812_v39 = vld [vmem:[#allocation9 + $0x14] sm:$0xf0] }
 0x482   : > { %9533 = vset.pattern.permute.xlu0 %v11082_v48  ;;  %v6654_v48 = vld [vmem:[#allocation9 + $0x60] sm:$0xf] }
 0x483   : > { %v6655_v22 = vor.u32 %v8822_v50, %v6654_v48  ;;  %v6723_v48 = vor.u32 %v8837_v15, %v6720_v11  ;;  %v6614_v11 = vld [vmem:[#allocation9 + $0x10] sm:$0xf] }
 0x485   : > { %1949 = vmatpush.bf16.msrb.mxu0 %v6655_v22 }
 0x486   : > { %v1697_v21 = vpop.permute.xlu1 %1696 }
 0x489   : > { %1950 = vmatpush.bf16.msrb.mxu0 %v6647_v54  ;;  %v6696_v54 = vld [vmem:[#allocation9 + $0xb8] sm:$0xf0] }
 0x48d   : > { %1951 = vmatpush.bf16.msrb.mxu0 %v6639_v23  ;;  %v6680_v23 = vld [vmem:[#allocation9 + $0x98] sm:$0xf0] }
 0x48e   : > { %v6683_v10 = vor.u32 %v8827_v20, %v6680_v23 }
 0x48f   : > { %v1578_v19 = vpop.permute.xlu1 %1577 }
 0x490   : > { %v1581_v7 = vmul.f32 %v1578_v19, %v10555_v30  ;;  %v1718_v30 = vld [vmem:[#allocation7] sm:$0xf]  ;;  %v8833_v19 = vld [vmem:[#allocation9 + $0xc4] sm:$0xf] }
 0x4cb   : > { %v1685_v16 = vpop.permute.xlu2 %1684 }
 0x4cc   : > { %v1691_v32 = vsel %vm846_vm0, %v1625_v28, %v1685_v16  ;;  %v6631_v16 = vor.u32 %v8816_v47, %v6630_v36  ;;  %v8828_v36 = vld [vmem:[#allocation9 + $0x94] sm:$0xf0]  ;;  %v8813_v47 = vld [vmem:[#allocation9 + $0x24] sm:$0xf] }
 0x4ce   : > { %1952 = vmatpush.bf16.msrb.mxu0 %v6631_v16  ;;  %v6670_v16 = vld [vmem:[#allocation9 + $0x80] sm:$0xf] }
 0x4d3   : > { %v1675_v55 = vpop.permute.xlu2 %1674 }
 0x4d4   : > { %v1688_v58 = vsel %vm846_vm0, %v1580_v62, %v1675_v55  ;;  %v6704_v55 = vld [vmem:[#allocation9 + $0xc8] sm:$0xf0]  ;;  %v8831_v62 = vld [vmem:[#allocation9 + $0xb4] sm:$0xf] }
 0x4d5   : > { %v1704_v34 = vadd.f32 %v1697_v21, %v1688_v58  ;;  %v6707_v28 = vor.u32 %v8833_v19, %v6704_v55  ;;  %v6699_v58 = vor.u32 %v8831_v62, %v6696_v54 }
 0x4d7   : > { %v1708_v9 = vmax.f32 %v1704_v34, 0.0  ;;  %v6686_v34 = vld [vmem:[#allocation9 + $0xa0] sm:$0xf] }
 0x4dc   : > { %v1683_v1 = vpop.permute.xlu0 %1682 }
 0x4dd   : > { %v1690_v24 = vsel %vm846_vm0, %v1624_v56, %v1683_v1  ;;  %v8840_v1 = vld [vmem:[#allocation9 + $0xf4] sm:$0xf0] }
 0x4de   : > { %v1705_v0 = vadd.f32 %v1697_v21, %v1690_v24  ;;  %v1712_v24 = vmin.f32 %v1708_v9, 6.0  ;;  %v6727_v43 = vor.u32 %v8840_v1, %v6726_v49  ;;  %v6672_v9 = vld [vmem:[#allocation9 + $0x88] sm:$0xf0]  ;;  %v6616_v49 = vld [vmem:[#allocation9 + $0x18] sm:$0xf0] }
 0x4e0   : > { %v1709_v12 = vmax.f32 %v1705_v0, 0.0  ;;  %v6715_v0 = vor.u32 %v8835_v8, %v6712_v25  ;;  %v6608_v25 = vld [vmem:[#allocation9 + $0x8] sm:$0xf0] }
 0x4e2   : > { %v1713_v59 = vmin.f32 %v1709_v12, 6.0  ;;  %v8829_v12 = vld [vmem:[#allocation9 + $0xa4] sm:$0xf] }
 0x4e4   : > { %v1702_v52 = vpop.permute.xlu0 %1701 }
 0x4e5   : > { %v1707_v14 = vadd.f32 %v1702_v52, %v1691_v32  ;;  %v8834_v32 = vld [vmem:[#allocation9 + $0xc4] sm:$0xf0] }
 0x4e6   : > { %v6703_v17 = vor.u32 %v8834_v32, %v6702_v4 }
 0x4e7   : > { %v1711_v29 = vmax.f32 %v1707_v14, 0.0  ;;  %v6694_v14 = vld [vmem:[#allocation9 + $0xb0] sm:$0xf] }
 0x4e8   : > { %v6695_v33 = vor.u32 %v8832_v46, %v6694_v14 }
 0x4e9   : > { %v1715_v38 = vmin.f32 %v1711_v29, 6.0  ;;  %v1677_v27 = vpop.permute.xlu1 %1676  ;;  %v8830_v29 = vld [vmem:[#allocation9 + $0xa4] sm:$0xf0] }
 0x4ea   : > { %v1689_v13 = vsel %vm846_vm0, %v1581_v7, %v1677_v27  ;;  %v6687_v31 = vor.u32 %v8830_v29, %v6686_v34  ;;  %v6678_v7 = vld [vmem:[#allocation9 + $0x90] sm:$0xf]  ;;  %v6622_v27 = vld [vmem:[#allocation9 + $0x20] sm:$0xf]  ;;  %vm2014_vm0 = vcmask 138240  }
 0x4eb   : > { %v1706_v5 = vadd.f32 %v1702_v52, %v1689_v13  ;;  %v1717_v21 = vpack.c.bf16 %v1715_v38, %v1713_v59  ;;  %v6688_v52 = vld [vmem:[#allocation9 + $0xa8] sm:$0xf0]  ;;  %v6679_v38 = vor.u32 %v8828_v36, %v6678_v7  ;;  %v8814_v59 = vld [vmem:[#allocation9 + $0x24] sm:$0xf0]  ;;  %v839_v7 = vadd.s32 128, %v10368_v37 }
 0x4ec   : > { %v6691_v63 = vor.u32 %v8829_v12, %v6688_v52  ;;  %v6623_v6 = vor.u32 %v8814_v59, %v6622_v27  ;;  %v6624_v13 = vld [vmem:[#allocation9 + $0x28] sm:$0xf0]  ;;  %v1723_v18 = vpop.permute.xlu0 %1722  ;;  %v2186_v12 = vld [vmem:[%s11037_s18] sm:$0xff] }
 0x4ed   : > { %1748 = vmatpush.bf16.msrb.mxu2 %v1717_v21  ;;  %v1710_v56 = vmax.f32 %v1706_v5, 0.0  ;;  %v8825_v5 = vld [vmem:[#allocation9 + $0x84] sm:$0xf]  ;;  %v6671_v21 = vor.u32 %v8826_v57, %v6670_v16  ;;  %v841_v59 = vand.u32 15, %v839_v7 }
 0x4ee   : > { %1953 = vmatpush.bf16.msrb.mxu0 %v6623_v6  ;;  %v6675_v15 = vor.u32 %v8825_v5, %v6672_v9 }
 0x4ef   : > { %v1714_v50 = vmin.f32 %v1710_v56, 6.0  ;;  %v6615_v56 = vor.u32 %v8812_v39, %v6614_v11  ;;  %vm10679_vm9 = vcmp.ge.s32.totalorder %v841_v59, 1  ;;  %vm10693_vm13 = vcmp.lt.s32.totalorder %v841_v59, 15 }
 0x4f0   : > { %6603 = vmatmul.msk.bf16.vlgmr.msrb.gmra.mxu2 %vm994_vm12, %v1718_v30 }
 0x4f1   : > { %1987 = vmatpush.bf16.msra.mxu2 %v6731_v61  ;;  %v1716_v22 = vpack.c.bf16 %v1714_v50, %v1712_v24  ;;  %v6627_v61 = vor.u32 %v8813_v47, %v6624_v13  ;;  %v8810_v24 = vld [vmem:[#allocation9 + $0x4] sm:$0xf0]  ;;  %v8809_v50 = vld [vmem:[#allocation9 + $0x4] sm:$0xf]  ;;  %v840_v47 = vand.u32 15, %v10368_v37 }
 0x4f2   : > { %1954 = vmatpush.bf16.msrb.mxu0 %v6615_v56 }
 0x4f3   : > { %1735 = vmatpush.bf16.msra.mxu3 %v1716_v22  ;;  %1979 = vmatpush.bf16.msrb.mxu1 %v6627_v61  ;;  %v2000_v22 = vld [vmem:[#allocation10] sm:$0xff]  ;;  %vm10685_vm10 = vcmp.ge.s32.totalorder %v840_v47, 1  ;;  %vm10700_vm14 = vcmp.lt.s32.totalorder %v840_v47, 15 }
 0x4f4   : > { %2003 = vperm.xlu0 %9533, %v2000_v22   ;;  %2044 = vperm.xlu1 %9535, %v2000_v22  }
 0x4f5   : > { %1988 = vmatpush.bf16.msra.mxu2 %v6723_v48  ;;  %v6606_v48 = vld [vmem:[#allocation9] sm:$0xf]  ;;  %2028 = vperm.xlu2 %9534, %v2000_v22  }
 0x4f6   : > { %6602 = vmatmul.msk.bf16.vlgmr.msra.gmra.mxu3 %vm994_vm12, %v1718_v30  ;;  %v8811_v30 = vld [vmem:[#allocation9 + $0x14] sm:$0xf]  ;;  %v6607_v8 = vor.u32 %v8810_v24, %v6606_v48 }
 0x4f7   : > { %1961 = vmatpush.bf16.msrb.mxu3 %v6727_v43  ;;  %v6619_v1 = vor.u32 %v8811_v30, %v6616_v49  ;;  %v6611_v43 = vor.u32 %v8809_v50, %v6608_v25 }
 0x4f8   : > { %1955 = vmatpush.bf16.msrb.mxu0 %v6607_v8 }
 0x4f9   : > { %1989 = vmatpush.bf16.msra.mxu2 %v6715_v0  ;;  %1980 = vmatpush.bf16.msrb.mxu1 %v6619_v1 }
 0x4fb   : > { %1962 = vmatpush.bf16.msrb.mxu3 %v6719_v35 }
 0x4fc   : > { %9536 = vset.pattern.permute.xlu1 %v9840_v40  ;;  %9542 = vset.pattern.permute.xlu0 %v9837_v53 }
 0x4fd   : > { %1990 = vmatpush.bf16.msra.mxu2 %v6707_v28  ;;  %1981 = vmatpush.bf16.msrb.mxu1 %v6611_v43 }
 0x4fe   : > { %2069 = vperm.xlu1 %9536, %v2000_v22  }
 0x4ff   : > { %1963 = vmatpush.bf16.msrb.mxu3 %v6711_v2 }
 0x501   : > { %1991 = vmatpush.bf16.msra.mxu2 %v6699_v58  ;;  %v2188_v58 = vld [vmem:[%s11037_s18 + $0x10] sm:$0xff] }
 0x503   : > { %1964 = vmatpush.bf16.msrb.mxu3 %v6703_v17 }
 0x505   : > { %1992 = vmatpush.bf16.msra.mxu2 %v6691_v63 }
 0x506   : > { %9537 = vset.pattern.permute.xlu1 %v9841_v41 }
 0x507   : > { %1965 = vmatpush.bf16.msrb.mxu3 %v6695_v33  ;;  %2087 = vperm.xlu1 %9537, %v2000_v22  }
 0x509   : > { %1993 = vmatpush.bf16.msra.mxu2 %v6683_v10 }
 0x50b   : > { %1966 = vmatpush.bf16.msrb.mxu3 %v6687_v31 }
 0x50d   : > { %1994 = vmatpush.bf16.msra.mxu2 %v6675_v15 }
 0x50f   : > { %1967 = vmatpush.bf16.msrb.mxu3 %v6679_v38  ;;  %9538 = vset.pattern.permute.xlu1 %v9842_v42 }
 0x510   : > { %2106 = vperm.xlu1 %9538, %v2000_v22  }
 0x513   : > { %1968 = vmatpush.bf16.msrb.mxu3 %v6671_v21 }
 0x518   : > { %9539 = vset.pattern.permute.xlu1 %v9843_v44 }
 0x519   : > { %2125 = vperm.xlu1 %9539, %v2000_v22  }
 0x521   : > { %9540 = vset.pattern.permute.xlu1 %v11081_v60 }
 0x54f   : > { %v2029_v17 = vpop.permute.xlu2 %2028 }
 0x566   : > { %v2045_v52 = vpop.permute.xlu1 %2044  ;;  %v2004_v33 = vpop.permute.xlu0 %2003 }
 0x570   : > { %v2070_v14 = vpop.permute.xlu1 %2069 }
 0x573   : > { %v1750_v51 = vpop.f32.mrf.mxu2 }
 0x574   : > { %v1751_v0 = vadd.f32 %v1750_v51, %v1723_v18 }
 0x576   : > { %v1755_v19 = vpack.c.bf16 %v1751_v0, %v1751_v0 }
 0x578   : > { %1969 = vmatmul.bf16.vlgmr.msrb.gmra.mxu3 %v1755_v19  ;;  %1995 = vmatmul.bf16.vlgmr.msra.gmra.mxu2 %v1755_v19 }
 0x579   : > { %v1737_v55 = vpop.f32.mrf.mxu3  ;;  %v10671_v63 = vpop.permute.xlu1 %2087 }
 0x57a   : > { %v1738_v35 = vadd.f32 %v1737_v55, %v1723_v18 }
 0x57b   : > { %v1752_v3 = vpop.f32.mrf.mxu2 }
 0x57c   : > { %v1754_v26 = vpack.c.bf16 %v1738_v35, %v1738_v35 }
 0x57e   : > { %1956 = vmatmul.bf16.vlgmr.msrb.gmra.mxu0 %v1754_v26  ;;  %1982 = vmatmul.bf16.vlgmr.msrb.gmra.mxu1 %v1754_v26 }
 0x581   : > { %v1739_v40 = vpop.f32.mrf.mxu3 }
 0x582   : > { %v10673_v23 = vpop.permute.xlu1 %2106 }
 0x58b   : > { %v10675_v29 = vpop.permute.xlu1 %2125 }
 0x5fb   : > { %v1957_v41 = vpop.f32.mrf.mxu0  ;;  %v1970_v28 = vpop.f32.mrf.mxu3 }
 0x5fc   : > { %v10632_v62 = vadd.f32 %v1970_v28, %v1957_v41  ;;  %v1983_v54 = vpop.f32.mrf.mxu1  ;;  %v1996_v2 = vpop.f32.mrf.mxu2 }
 0x5fd   : > { %v10634_v4 = vadd.f32 %v1996_v2, %v1983_v54 }
 0x5fe   : > { %2051 = vrot.lane.b32.xlu0 %v10632_v62, %s9855_s23  ;;  %2010 = vrot.lane.b32.xlu2 %v10632_v62, %s9856_s5  ;;  %v2006_v25 = vmul.f32 %v2004_v33, %v10632_v62 }
 0x5ff   : > { %2012 = vrot.lane.b32.xlu1 %v10634_v4, %s9856_s5  ;;  %v2007_v39 = vmul.f32 %v2004_v33, %v10634_v4 }
 0x603   : > { %v1959_v42 = vpop.f32.mrf.mxu0  ;;  %v1972_v44 = vpop.f32.mrf.mxu3 }
 0x604   : > { %v1985_v32 = vpop.f32.mrf.mxu1  ;;  %v1998_v60 = vpop.f32.mrf.mxu2 }
 0x606   : > { %2076 = vrot.lane.b32.xlu0 %v10632_v62, %s9849_s2  ;;  %2037 = vrot.lane.b32.xlu2 %v10634_v4, %s9857_s8 }
 0x607   : > { %2035 = vrot.lane.b32.xlu1 %v10632_v62, %s9857_s8 }
 0x60e   : > { %2094 = vrot.lane.b32.xlu0 %v10632_v62, %s9851_s25  ;;  %2053 = vrot.lane.b32.xlu2 %v10634_v4, %s9855_s23 }
 0x60f   : > { %2142 = vperm.xlu1 %9540, %v2000_v22  }
 0x616   : > { %2113 = vrot.lane.b32.xlu0 %v10632_v62, %s9858_s30  ;;  %2078 = vrot.lane.b32.xlu2 %v10634_v4, %s9849_s2 }
 0x617   : > { %9541 = vset.pattern.permute.xlu1 %v9844_v45  ;;  %v2168_v45 = vld [vmem:[%s11035_s16] sm:$0xff] }
 0x618   : > { %2161 = vperm.xlu1 %9541, %v2000_v22  }
 0x61e   : > { %2132 = vrot.lane.b32.xlu0 %v10632_v62, %s9859_s26  ;;  %2096 = vrot.lane.b32.xlu2 %v10634_v4, %s9851_s25 }
 0x620   : > { %9543 = vset.pattern.permute.xlu1 %v9837_v53 }
 0x626   : > { %2149 = vrot.lane.b32.xlu0 %v10632_v62, %s9860_s27  ;;  %2115 = vrot.lane.b32.xlu2 %v10634_v4, %s9858_s30  ;;  %s11096_s30 = sld [smem:[#allocation32_spill]] }
 0x62e   : > { %2171 = vperm.xlu0 %9542, %v2168_v45   ;;  %2134 = vrot.lane.b32.xlu2 %v10634_v4, %s9859_s26 }
 0x636   : > { %2151 = vrot.lane.b32.xlu2 %v10634_v4, %s9860_s27 }
 0x63e   : > { %2202 = vperm.xlu2 %9534, %v2188_v58  }
 0x646   : > { %2192 = vperm.xlu2 %9534, %v2186_v12  }
 0x658   : > { %v2011_v46 = vpop.permute.xlu2 %2010 }
 0x659   : > { %v2018_v9 = vsel %vm2014_vm0, 0.0, %v2011_v46 }
 0x65a   : > { %v2025_v11 = vsel %vm10685_vm10, %v2018_v9, 0.0 }
 0x65b   : > { %v2031_v50 = vmul.f32 %v2029_v17, %v2025_v11 }
 0x65d   : > { %v2033_v55 = vadd.f32 %v2031_v50, %v2006_v25  ;;  %v2187_v25 = vld [vmem:[%s11037_s18 + $0x8] sm:$0xff] }
 0x660   : > { %v2038_v20 = vpop.permute.xlu2 %2037 }
 0x668   : > { %v2054_v34 = vpop.permute.xlu2 %2053 }
 0x670   : > { %v2052_v10 = vpop.permute.xlu0 %2051  ;;  %v2079_v31 = vpop.permute.xlu2 %2078 }
 0x671   : > { %v2013_v36 = vpop.permute.xlu1 %2012  ;;  %v2056_v56 = vsel %vm2055_vm11, %v2052_v10, %v2054_v34  ;;  %v2059_v18 = vsel %vm2055_vm11, 0.0, %v2052_v10 }
 0x672   : > { %v2015_v13 = vsel %vm2014_vm0, %v2011_v46, %v2013_v36  ;;  %v2067_v22 = vsel %vm10693_vm13, %v2056_v56, 0.0  ;;  %v2066_v3 = vsel %vm10700_vm14, %v2059_v18, 0.0 }
 0x673   : > { %v2026_v5 = vsel %vm10679_vm9, %v2015_v13, 0.0  ;;  %v2073_v35 = vmul.f32 %v2070_v14, %v2067_v22  ;;  %v2072_v42 = vmul.f32 %v2070_v14, %v2066_v3  ;;  %v8842_v3 = vld [vmem:[%s11036_s17 + $0x8] sm:$0xff] }
 0x674   : > { %v2032_v37 = vmul.f32 %v2029_v17, %v2026_v5 }
 0x676   : > { %v2034_v8 = vadd.f32 %v2032_v37, %v2007_v39  ;;  %v2189_v39 = vld [vmem:[%s11037_s18 + $0x18] sm:$0xff] }
 0x677   : > { %2207 = vperm.xlu1 %9543, %v2189_v39  }
 0x678   : > { %v2077_v38 = vpop.permute.xlu0 %2076  ;;  %v2097_v27 = vpop.permute.xlu2 %2096 }
 0x679   : > { %v2036_v57 = vpop.permute.xlu1 %2035  ;;  %v2080_v51 = vsel %vm1209_vm6, %v2077_v38, %v2079_v31  ;;  %v2083_v26 = vsel %vm1209_vm6, 0.0, %v2077_v38 }
 0x67a   : > { %v2039_v15 = vsel %vm994_vm12, %v2036_v57, %v2038_v20  ;;  %v2042_v1 = vsel %vm994_vm12, 0.0, %v2036_v57  ;;  %vm2098_vm12 = vcmask 1039360   ;;  %v2085_v40 = vsel %vm10679_vm9, %v2080_v51, 0.0 }
 0x67b   : > { %v2048_v49 = vmul.f32 %v2045_v52, %v2039_v15  ;;  %v2047_v0 = vmul.f32 %v2045_v52, %v2042_v1  ;;  %v2102_v28 = vsel %vm2098_vm12, %v2097_v27, 0.0  ;;  %v2091_v44 = vmul.f32 %v10671_v63, %v2085_v40 }
 0x67c   : > { %v2084_v45 = vsel %vm10685_vm10, %v2083_v26, 0.0  ;;  %v2104_v58 = vsel %vm10693_vm13, %v2102_v28, 0.0 }
 0x67d   : > { %v2050_v19 = vadd.f32 %v2048_v49, %v2034_v8  ;;  %v2049_v62 = vadd.f32 %v2047_v0, %v2033_v55  ;;  %v2090_v33 = vmul.f32 %v10671_v63, %v2084_v45  ;;  %v2110_v34 = vmul.f32 %v10673_v23, %v2104_v58 }
 0x67f   : > { %v2075_v54 = vadd.f32 %v2073_v35, %v2050_v19  ;;  %v2074_v17 = vadd.f32 %v2072_v42, %v2049_v62  ;;  %2197 = vperm.xlu1 %9543, %v2187_v25   ;;  %v8841_v35 = vld [vmem:[%s11036_s17] sm:$0xff] }
 0x680   : > { %v2095_v61 = vpop.permute.xlu0 %2094  ;;  %v2116_v16 = vpop.permute.xlu2 %2115 }
 0x681   : > { %v2143_v41 = vpop.permute.xlu1 %2142  ;;  %v2099_v2 = vsel %vm2098_vm12, %v2095_v61, %v2097_v27  ;;  %v2121_v32 = vsel %vm2117_vm1, %v2116_v16, 0.0  ;;  %v2093_v46 = vadd.f32 %v2091_v44, %v2075_v54  ;;  %v2092_v38 = vadd.f32 %v2090_v33, %v2074_v17 }
 0x682   : > { %v2103_v12 = vsel %vm10700_vm14, %v2099_v2, 0.0  ;;  %v2123_v14 = vsel %vm10679_vm9, %v2121_v32, 0.0 }
 0x683   : > { %v2109_v10 = vmul.f32 %v10673_v23, %v2103_v12  ;;  %v2129_v27 = vmul.f32 %v10675_v29, %v2123_v14  ;;  %v2112_v47 = vadd.f32 %v2110_v34, %v2093_v46 }
 0x685   : > { %v2111_v61 = vadd.f32 %v2109_v10, %v2092_v38  ;;  %v2131_v9 = vadd.f32 %v2129_v27, %v2112_v47 }
 0x688   : > { %v2114_v48 = vpop.permute.xlu0 %2113  ;;  %v2135_v24 = vpop.permute.xlu2 %2134 }
 0x689   : > { %v2118_v60 = vsel %vm2117_vm1, %v2114_v48, %v2116_v16  ;;  %v2140_v7 = vsel %vm2136_vm3, %v2135_v24, 0.0 }
 0x68a   : > { %v2122_v20 = vsel %vm10685_vm10, %v2118_v60, 0.0  ;;  %v2162_v63 = vpop.permute.xlu1 %2161  ;;  %v2146_v16 = vmul.f32 %v2143_v41, %v2140_v7 }
 0x68b   : > { %v2128_v59 = vmul.f32 %v10675_v29, %v2122_v20 }
 0x68c   : > { %v2148_v11 = vadd.f32 %v2146_v16, %v2131_v9  ;;  %v2386_v9 = vld [vmem:[%s11091_s12 + $0x18] sm:$0xff] }
 0x68d   : > { %v2130_v21 = vadd.f32 %v2128_v59, %v2111_v61 }
 0x690   : > { %v2133_v4 = vpop.permute.xlu0 %2132  ;;  %v2152_v52 = vpop.permute.xlu2 %2151 }
 0x691   : > { %v2157_v31 = vsel %vm2153_vm2, %v2152_v52, 0.0  ;;  %v2137_v36 = vsel %vm2136_vm3, %v2133_v4, %v2135_v24 }
 0x692   : > { %v2159_v6 = vsel %vm10693_vm13, %v2157_v31, 0.0  ;;  %v2145_v23 = vmul.f32 %v2143_v41, %v2137_v36 }
 0x693   : > { %v2165_v15 = vmul.f32 %v2162_v63, %v2159_v6 }
 0x694   : > { %v2147_v29 = vadd.f32 %v2145_v23, %v2130_v21  ;;  %v2384_v21 = vld [vmem:[%s11091_s12 + $0x8] sm:$0xff] }
 0x695   : > { %v2167_v49 = vadd.f32 %v2165_v15, %v2148_v11  ;;  %v2317_v11 = vunpack.c.l.b16 %v9837_v53 }
 0x698   : > { %v2150_v13 = vpop.permute.xlu0 %2149  ;;  %v2203_v26 = vpop.permute.xlu2 %2202 }
 0x699   : > { %v2154_v57 = vsel %vm2153_vm2, %v2150_v13, %v2152_v52 }
 0x69a   : > { %v2158_v5 = vsel %vm10700_vm14, %v2154_v57, 0.0  ;;  %v2383_v57 = vld [vmem:[%s11091_s12] sm:$0xff] }
 0x69b   : > { %v2164_v37 = vmul.f32 %v2162_v63, %v2158_v5  ;;  %v2385_v5 = vld [vmem:[%s11091_s12 + $0x10] sm:$0xff] }
 0x69d   : > { %v2166_v56 = vadd.f32 %v2164_v37, %v2147_v29  ;;  %v2318_v29 = vunpack.c.h.b16 %v9837_v53 }
 0x6a0   : > { %v2172_v1 = vpop.permute.xlu0 %2171  ;;  %v2193_v62 = vpop.permute.xlu2 %2192 }
 0x6a1   : > { %v2174_v48 = vadd.f32 %v2172_v1, %v2166_v56  ;;  %v2175_v24 = vadd.f32 %v2172_v1, %v2167_v49  ;;  %v6882_v49 = vld [vmem:[#allocation13 + $0x100] sm:$0xf] }
 0x6a3   : > { %v2176_v50 = vmax.f32 %v2174_v48, 0.0  ;;  %v2177_v8 = vmax.f32 %v2175_v24, 0.0 }
 0x6a5   : > { %v2178_v22 = vmin.f32 %v2176_v50, 6.0  ;;  %v2179_v18 = vmin.f32 %v2177_v8, 6.0 }
 0x6a7   : > { %v2184_v51 = vpack.c.bf16 %v2178_v22, %v2178_v22  ;;  %v2185_v0 = vpack.c.bf16 %v2179_v18, %v2179_v18 }
 0x6a9   : > { %v2228_v19 = vsel %vm2226_vm4, %v2184_v51, 0  ;;  %v2231_v55 = vsel %vm2226_vm4, %v2185_v0, 0  ;;  %v7106_v0 = vld [vmem:[#allocation13 + $0x2c0] sm:$0xf] }
 0x6aa   : > { %2240 = vmatpush.bf16.msrb.mxu2 %v2228_v19  ;;  %2259 = vmatpush.bf16.msra.mxu3 %v2231_v55 }
 0x6ad   : > { %6740 = vmatmul.msk.bf16.vlgmr.msrb.gmra.mxu2 %vm1120_vm15, %v8841_v35  ;;  %6742 = vmatmul.msk.bf16.vlgmr.msra.gmra.mxu3 %vm1120_vm15, %v8841_v35 }
 0x6bd   : > { %6741 = vmatmul.msk.bf16.gmra.mxu2 %vm1120_vm15, %v8842_v3  ;;  %6743 = vmatmul.msk.bf16.gmra.mxu3 %vm1120_vm15, %v8842_v3  ;;  %vm2311_vm15 = vmpackc.low %vm10693_vm13, %vm10700_vm14 }
 0x6be   : > { %v2312_v15 = vsel %vm2311_vm15, 65537, %v9837_v53 }
 0x6bf   : > { %v2314_v37 = vperm.slane %v2312_v15, 4  ;;  %v2313_v50 = vperm.slane %v2312_v15, 0  ;;  %v9033_v15 = vld [vmem:[#allocation13 + $0x5dc] sm:$0xf0] }
 0x6c1   : > { %v2322_v39 = vunpack.c.l.b16 %v2314_v37  ;;  %v2323_v56 = vunpack.c.h.b16 %v2314_v37  ;;  %v2315_v22 = vunpack.c.l.b16 %v2313_v50  ;;  %v2316_v18 = vunpack.c.h.b16 %v2313_v50  ;;  %v8843_v50 = vld [vmem:[#allocation12] sm:$0xff] }
 0x6c3   : > { %vm2326_vm5 = vcmp.ne.s32.totalorder %v2322_v39, %v2317_v11  ;;  %vm2327_vm6 = vcmp.ne.s32.totalorder %v2323_v56, %v2318_v29  ;;  %vm2319_vm8 = vcmp.ne.s32.totalorder %v2315_v22, %v2317_v11  ;;  %vm2320_vm0 = vcmp.ne.s32.totalorder %v2316_v18, %v2318_v29  ;;  %v7746_v11 = vld [vmem:[#allocation13 + $0x7c0] sm:$0xf] }
 0x6c4   : > { %vm10808_vm7 = vmpackc.low %vm2327_vm6, %vm2326_vm5  ;;  %v9097_v29 = vld [vmem:[#allocation13 + $0x7dc] sm:$0xf0] }
 0x6c5   : > { %vm10818_vm9 = vmpackc.low %vm2320_vm0, %vm2319_vm8  ;;  %v6850_v18 = vld [vmem:[#allocation13 + $0xc0] sm:$0xf] }
 0x6e9   : > { %v2208_v40 = vpop.permute.xlu1 %2207 }
 0x6f1   : > { %v2198_v4 = vpop.permute.xlu1 %2197 }
 0x730   : > { %v2242_v41 = vpop.f32.mrf.mxu2  ;;  %v2261_v28 = vpop.f32.mrf.mxu3 }
 0x731   : > { %v2243_v54 = vadd.f32 %v2242_v41, %v2193_v62  ;;  %v2262_v2 = vadd.f32 %v2261_v28, %v2193_v62 }
 0x733   : > { %v2271_v32 = vpack.c.bf16 %v2262_v2, %v2243_v54 }
 0x735   : > { %v2279_v12 = vunpack.c.l.b16 %v2271_v32  ;;  %v2280_v52 = vunpack.c.h.b16 %v2271_v32 }
 0x738   : > { %v2244_v42 = vpop.f32.mrf.mxu2  ;;  %v2263_v44 = vpop.f32.mrf.mxu3 }
 0x739   : > { %v2245_v60 = vadd.f32 %v2244_v42, %v2198_v4  ;;  %v2264_v45 = vadd.f32 %v2263_v44, %v2198_v4 }
 0x73b   : > { %v2272_v58 = vpack.c.bf16 %v2264_v45, %v2245_v60 }
 0x73d   : > { %v2281_v17 = vunpack.c.l.b16 %v2272_v58  ;;  %v2282_v46 = vunpack.c.h.b16 %v2272_v58 }
 0x73f   : > { %v10757_v14 = vpack.c.b16 %v2282_v46, %v2280_v52  ;;  %v10759_v20 = vpack.c.b16 %v2281_v17, %v2279_v12  ;;  %v6978_v52 = vld [vmem:[#allocation13 + $0x1c0] sm:$0xf] }
 0x740   : > { %v2247_v33 = vpop.f32.mrf.mxu2  ;;  %v2266_v34 = vpop.f32.mrf.mxu3 }
 0x741   : > { %2354 = vrot.lane.b32.xlu0 %v10757_v14, %s9860_s27  ;;  %2352 = vrot.lane.b32.xlu1 %v10759_v20, %s9860_s27  ;;  %v2248_v10 = vadd.f32 %v2247_v33, %v2203_v26  ;;  %v2267_v31 = vadd.f32 %v2266_v34, %v2203_v26  ;;  %v8905_v33 = vld [vmem:[#allocation13 + $0x1dc] sm:$0xf0] }
 0x742   : > { %v7234_v34 = vld [vmem:[#allocation13 + $0x3c0] sm:$0xf] }
 0x743   : > { %v2273_v38 = vpack.c.bf16 %v2267_v31, %v2248_v10  ;;  %v6979_v10 = vor.u32 %v8905_v33, %v6978_v52  ;;  %v8969_v31 = vld [vmem:[#allocation13 + $0x3dc] sm:$0xf0] }
 0x744   : > { %v6786_v52 = vld [vmem:[#allocation13 + $0x40] sm:$0xf] }
 0x745   : > { %v2283_v6 = vunpack.c.l.b16 %v2273_v38  ;;  %v2284_v63 = vunpack.c.h.b16 %v2273_v38  ;;  %v7235_v38 = vor.u32 %v8969_v31, %v7234_v34  ;;  %5553 = vmatpush.bf16.msra.mxu2 %v6979_v10  ;;  %v8921_v34 = vld [vmem:[#allocation13 + $0x25c] sm:$0xf0] }
 0x746   : > { %v7362_v10 = vld [vmem:[#allocation13 + $0x4c0] sm:$0xf] }
 0x747   : > { %5566 = vmatpush.bf16.msrb.mxu3 %v7235_v38  ;;  %v9001_v31 = vld [vmem:[#allocation13 + $0x4dc] sm:$0xf0] }
 0x748   : > { %v2249_v7 = vpop.f32.mrf.mxu2  ;;  %v2268_v36 = vpop.f32.mrf.mxu3 }
 0x749   : > { %v2250_v27 = vadd.f32 %v2249_v7, %v2208_v40  ;;  %v2269_v59 = vadd.f32 %v2268_v36, %v2208_v40  ;;  %v6946_v7 = vld [vmem:[#allocation13 + $0x180] sm:$0xf] }
 0x74a   : > { %v8897_v36 = vld [vmem:[#allocation13 + $0x19c] sm:$0xf0] }
 0x74b   : > { %v2274_v47 = vpack.c.bf16 %v2269_v59, %v2250_v27  ;;  %v7202_v27 = vld [vmem:[#allocation13 + $0x380] sm:$0xf] }
 0x74c   : > { %v8961_v59 = vld [vmem:[#allocation13 + $0x39c] sm:$0xf0] }
 0x74d   : > { %v2285_v13 = vunpack.c.l.b16 %v2274_v47  ;;  %v2286_v61 = vunpack.c.h.b16 %v2274_v47 }
 0x74f   : > { %v10765_v16 = vpack.c.b16 %v2286_v61, %v2284_v63  ;;  %v10767_v23 = vpack.c.b16 %v2285_v13, %v2283_v6  ;;  %v6947_v63 = vor.u32 %v8897_v36, %v6946_v7  ;;  %v6914_v13 = vld [vmem:[#allocation13 + $0x140] sm:$0xf] }
 0x750   : > { %v8889_v61 = vld [vmem:[#allocation13 + $0x15c] sm:$0xf0] }
 0x751   : > { %2358 = vrot.lane.b32.xlu2 %v10765_v16, %s9860_s27  ;;  %2356 = vrot.lane.b32.xlu0 %v10767_v23, %s9860_s27  ;;  %v6915_v37 = vor.u32 %v8889_v61, %v6914_v13  ;;  %v7618_v7 = vld [vmem:[#allocation13 + $0x6c0] sm:$0xf] }
 0x752   : > { %2339 = vrot.lane.b32.xlu1 %v10765_v16, %s9859_s26  ;;  %5554 = vmatpush.bf16.msra.mxu2 %v6947_v63  ;;  %v9065_v36 = vld [vmem:[#allocation13 + $0x6dc] sm:$0xf0] }
 0x753   : > { %v8849_v63 = vld [vmem:[#allocation13 + $0x1c] sm:$0xf0] }
 0x754   : > { %v7010_v13 = vld [vmem:[#allocation13 + $0x200] sm:$0xf] }
 0x755   : > { %v8913_v61 = vld [vmem:[#allocation13 + $0x21c] sm:$0xf0] }
 0x756   : > { %5555 = vmatpush.bf16.msra.mxu2 %v6915_v37  ;;  %v8002_v37 = vld [vmem:[#allocation13 + $0x9c0] sm:$0xf] }
 0x759   : > { %2337 = vrot.lane.b32.xlu2 %v10767_v23, %s9859_s26  ;;  %2333 = vrot.lane.b32.xlu0 %v10759_v20, %s9859_s26 }
 0x75a   : > { %2295 = vrot.lane.b32.xlu1 %v10767_v23, %s9851_s25 }
 0x761   : > { %2335 = vrot.lane.b32.xlu2 %v10757_v14, %s9859_s26  ;;  %2297 = vrot.lane.b32.xlu0 %v10765_v16, %s9851_s25 }
 0x762   : > { %2293 = vrot.lane.b32.xlu1 %v10757_v14, %s9851_s25 }
 0x769   : > { %2291 = vrot.lane.b32.xlu2 %v10759_v20, %s9851_s25  ;;  %2389 = vperm.xlu0 %9542, %v2383_v57   ;;  %v7203_v57 = vor.u32 %v8961_v59, %v7202_v27  ;;  %v6754_v27 = vld [vmem:[#allocation13] sm:$0xf]  ;;  %v8844_v59 = vld [vmem:[#allocation12 + $0x8] sm:$0xff]  ;;  %s8804_s25 = sshll.u32 %s11099_s28, 5 }
 0x76a   : > { %2399 = vperm.xlu1 %9543, %v2385_v5   ;;  %v7170_v5 = vld [vmem:[#allocation13 + $0x340] sm:$0xf]  ;;  %s10937_s0 = scalar_lea.vmem %s11096_s30, %s8804_s25 }
 0x76b   : > { %5567 = vmatpush.bf16.msrb.mxu3 %v7203_v57  ;;  %v7619_v57 = vor.u32 %v9065_v36, %v7618_v7 }
 0x771   : > { %2394 = vperm.xlu2 %9534, %v2384_v21   ;;  %2404 = vperm.xlu0 %9542, %v2386_v9   ;;  %v8953_v21 = vld [vmem:[#allocation13 + $0x35c] sm:$0xf0] }
 0x772   : > { %v7490_v9 = vld [vmem:[#allocation13 + $0x5c0] sm:$0xf]  ;;  %v7171_v39 = vor.u32 %v8953_v21, %v7170_v5 }
 0x773   : > { %v7491_v56 = vor.u32 %v9033_v15, %v7490_v9  ;;  %v7330_v5 = vld [vmem:[#allocation13 + $0x480] sm:$0xf] }
 0x774   : > { %5568 = vmatpush.bf16.msrb.mxu3 %v7171_v39  ;;  %v8993_v21 = vld [vmem:[#allocation13 + $0x49c] sm:$0xf0] }
 0x775   : > { %v7586_v9 = vld [vmem:[#allocation13 + $0x680] sm:$0xf] }
 0x776   : > { %v9057_v15 = vld [vmem:[#allocation13 + $0x69c] sm:$0xf0] }
 0x777   : > { %v8258_v39 = vld [vmem:[#allocation13 + $0xbc0] sm:$0xf] }
 0x7ab   : > { %v2359_v1 = vpop.permute.xlu2 %2358 }
 0x7ac   : > { %v2369_v43 = vsel %vm2153_vm2, %v2359_v1, 0 }
 0x7ad   : > { %v2374_v30 = vsel %vm10808_vm7, %v2369_v43, 0  ;;  %v7138_v43 = vld [vmem:[#allocation13 + $0x300] sm:$0xf] }
 0x7ae   : > { %2438 = vmatpush.bf16.msra.mxu0 %v2374_v30  ;;  %v7747_v30 = vor.u32 %v9097_v29, %v7746_v11  ;;  %v9161_v11 = vld [vmem:[#allocation13 + $0x9dc] sm:$0xf0]  ;;  %v6755_v29 = vor.u32 %v8849_v63, %v6754_v27 }
 0x7af   : > { %v9129_v27 = vld [vmem:[#allocation13 + $0x8dc] sm:$0xf0] }
 0x7b0   : > { %v8450_v63 = vld [vmem:[#allocation13 + $0xd40] sm:$0xf] }
 0x7b3   : > { %v2355_v48 = vpop.permute.xlu0 %2354  ;;  %v2338_v8 = vpop.permute.xlu2 %2337 }
 0x7b4   : > { %v2366_v24 = vsel %vm2153_vm2, %v2355_v48, 0  ;;  %v2353_v25 = vpop.permute.xlu1 %2352 }
 0x7b5   : > { %v2372_v53 = vsel %vm10808_vm7, %v2366_v24, 0  ;;  %v2361_v26 = vsel %vm2153_vm2, %v2353_v25, %v2355_v48  ;;  %v8945_v48 = vld [vmem:[#allocation13 + $0x31c] sm:$0xf0] }
 0x7b6   : > { %2439 = vmatpush.bf16.msra.mxu0 %v2372_v53  ;;  %v2371_v28 = vsel %vm10818_vm9, %v2361_v26, 0  ;;  %v7458_v24 = vld [vmem:[#allocation13 + $0x580] sm:$0xf] }
 0x7b7   : > { %v9025_v53 = vld [vmem:[#allocation13 + $0x59c] sm:$0xf0] }
 0x7b8   : > { %v9089_v25 = vld [vmem:[#allocation13 + $0x79c] sm:$0xf0]  ;;  %v7459_v22 = vor.u32 %v9025_v53, %v7458_v24 }
 0x7b9   : > { %v7682_v26 = vld [vmem:[#allocation13 + $0x740] sm:$0xf] }
 0x7ba   : > { %v8985_v24 = vld [vmem:[#allocation13 + $0x45c] sm:$0xf0] }
 0x7bb   : > { %v2336_v40 = vpop.permute.xlu2 %2335  ;;  %v7554_v53 = vld [vmem:[#allocation13 + $0x640] sm:$0xf] }
 0x7bc   : > { %v2347_v41 = vsel %vm2136_vm3, %v2336_v40, 0 }
 0x7c3   : > { %v2357_v51 = vpop.permute.xlu0 %2356  ;;  %v2292_v45 = vpop.permute.xlu2 %2291 }
 0x7c4   : > { %v2362_v19 = vsel %vm2153_vm2, %v2357_v51, %v2359_v1  ;;  %v2340_v55 = vpop.permute.xlu1 %2339  ;;  %v8881_v1 = vld [vmem:[#allocation13 + $0x11c] sm:$0xf0] }
 0x7c5   : > { %v2373_v35 = vsel %vm10818_vm9, %v2362_v19, 0  ;;  %v2350_v3 = vsel %vm2136_vm3, %v2340_v55, 0  ;;  %v2343_v2 = vsel %vm2136_vm3, %v2338_v8, %v2340_v55  ;;  %v7714_v8 = vld [vmem:[#allocation13 + $0x780] sm:$0xf] }
 0x7c6   : > { %2440 = vmatpush.bf16.msra.mxu0 %v2350_v3  ;;  %2419 = vmatpush.bf16.msra.mxu1 %v2373_v35  ;;  %v8873_v51 = vld [vmem:[#allocation13 + $0xdc] sm:$0xf0]  ;;  %v7715_v19 = vor.u32 %v9089_v25, %v7714_v8 }
 0x7c7   : > { %v8937_v55 = vld [vmem:[#allocation13 + $0x2dc] sm:$0xf0] }
 0x7c8   : > { %v7426_v35 = vld [vmem:[#allocation13 + $0x540] sm:$0xf] }
 0x7c9   : > { %v9017_v3 = vld [vmem:[#allocation13 + $0x55c] sm:$0xf0] }
 0x7ca   : > { %2441 = vmatpush.bf16.msra.mxu0 %v2347_v41  ;;  %2420 = vmatpush.bf16.msra.mxu1 %v2371_v28  ;;  %v7427_v41 = vor.u32 %v9017_v3, %v7426_v35  ;;  %v6818_v28 = vld [vmem:[#allocation13 + $0x80] sm:$0xf] }
 0x7cb   : > { %v2334_v62 = vpop.permute.xlu0 %2333  ;;  %v9049_v8 = vld [vmem:[#allocation13 + $0x65c] sm:$0xf0] }
 0x7cc   : > { %v2296_v54 = vpop.permute.xlu1 %2295  ;;  %v2342_v4 = vsel %vm2136_vm3, %v2334_v62, %v2336_v40  ;;  %v9081_v40 = vld [vmem:[#allocation13 + $0x75c] sm:$0xf0] }
 0x7cd   : > { %v8865_v62 = vld [vmem:[#allocation13 + $0x9c] sm:$0xf0] }
 0x7ce   : > { %2421 = vmatpush.bf16.msra.mxu1 %v2343_v2  ;;  %v7683_v2 = vor.u32 %v9081_v40, %v7682_v26  ;;  %v7970_v25 = vld [vmem:[#allocation13 + $0x980] sm:$0xf] }
 0x7cf   : > { %v7522_v35 = vld [vmem:[#allocation13 + $0x600] sm:$0xf] }
 0x7d0   : > { %v9041_v3 = vld [vmem:[#allocation13 + $0x61c] sm:$0xf0] }
 0x7d1   : > { %v7938_v40 = vld [vmem:[#allocation13 + $0x940] sm:$0xf] }
 0x7d2   : > { %2422 = vmatpush.bf16.msra.mxu1 %v2342_v4  ;;  %v8929_v4 = vld [vmem:[#allocation13 + $0x29c] sm:$0xf0] }
 0x7d3   : > { %v2298_v42 = vpop.permute.xlu0 %2297 }
 0x7d4   : > { %v2301_v44 = vsel %vm2098_vm12, %v2296_v54, %v2298_v42  ;;  %v2309_v32 = vsel %vm2098_vm12, %v2298_v42, 0  ;;  %v2294_v60 = vpop.permute.xlu1 %2293  ;;  %v7074_v54 = vld [vmem:[#allocation13 + $0x280] sm:$0xf] }
 0x7d5   : > { %v2331_v58 = vsel %vm10818_vm9, %v2301_v44, 0  ;;  %v2332_v12 = vsel %vm10808_vm7, %v2309_v32, 0  ;;  %v2300_v17 = vsel %vm2098_vm12, %v2292_v45, %v2294_v60  ;;  %v2306_v46 = vsel %vm2098_vm12, %v2294_v60, 0  ;;  %v7394_v42 = vld [vmem:[#allocation13 + $0x500] sm:$0xf] }
 0x7d6   : > { %2423 = vmatpush.bf16.msra.mxu1 %v2331_v58  ;;  %2442 = vmatpush.bf16.msra.mxu0 %v2332_v12  ;;  %v2329_v47 = vsel %vm10818_vm9, %v2300_v17, 0  ;;  %v2330_v6 = vsel %vm10808_vm7, %v2306_v46, 0  ;;  %v9009_v44 = vld [vmem:[#allocation13 + $0x51c] sm:$0xf0]  ;;  %v6819_v45 = vor.u32 %v8865_v62, %v6818_v28  ;;  %v7075_v58 = vor.u32 %v8929_v4, %v7074_v54 }
 0x7d7   : > { %v7650_v32 = vld [vmem:[#allocation13 + $0x700] sm:$0xf]  ;;  %v7395_v12 = vor.u32 %v9009_v44, %v7394_v42  ;;  %v7523_v42 = vor.u32 %v9041_v3, %v7522_v35 }
 0x7d8   : > { %v9073_v60 = vld [vmem:[#allocation13 + $0x71c] sm:$0xf0] }
 0x7d9   : > { %v8857_v17 = vld [vmem:[#allocation13 + $0x5c] sm:$0xf0]  ;;  %v7651_v33 = vor.u32 %v9073_v60, %v7650_v32 }
 0x7da   : > { %2424 = vmatpush.bf16.msra.mxu1 %v2329_v47  ;;  %2443 = vmatpush.bf16.msra.mxu0 %v2330_v6  ;;  %v7042_v46 = vld [vmem:[#allocation13 + $0x240] sm:$0xf]  ;;  %v6787_v38 = vor.u32 %v8857_v17, %v6786_v52  ;;  %v7363_v6 = vor.u32 %v9001_v31, %v7362_v10 }
 0x7db   : > { %v7043_v47 = vor.u32 %v8921_v34, %v7042_v46  ;;  %v8514_v28 = vld [vmem:[#allocation13 + $0xdc0] sm:$0xf] }
 0x7dc   : > { %v9289_v62 = vld [vmem:[#allocation13 + $0xddc] sm:$0xf0] }
 0x7dd   : > { %v9353_v4 = vld [vmem:[#allocation13 + $0xfdc] sm:$0xf0]  ;;  %v8515_v60 = vor.u32 %v9289_v62, %v8514_v28 }
 0x7de   : > { %2425 = vmatpush.bf16.msra.mxu1 %v10767_v23  ;;  %2444 = vmatpush.bf16.msra.mxu0 %v10765_v16  ;;  %v6883_v23 = vor.u32 %v8881_v1, %v6882_v49  ;;  %v7139_v16 = vor.u32 %v8945_v48, %v7138_v43  ;;  %v7011_v49 = vor.u32 %v8913_v61, %v7010_v13  ;;  %v7298_v48 = vld [vmem:[#allocation13 + $0x440] sm:$0xf] }
 0x7df   : > { %v7331_v1 = vor.u32 %v8993_v21, %v7330_v5  ;;  %v7587_v43 = vor.u32 %v9057_v15, %v7586_v9  ;;  %v9201_v17 = vld [vmem:[#allocation13 + $0xb1c] sm:$0xf0] }
 0x7e0   : > { %5556 = vmatpush.bf16.msra.mxu2 %v6883_v23  ;;  %5569 = vmatpush.bf16.msrb.mxu3 %v7139_v16  ;;  %v9153_v23 = vld [vmem:[#allocation13 + $0x99c] sm:$0xf0] }
 0x7e1   : > { %v8226_v16 = vld [vmem:[#allocation13 + $0xb80] sm:$0xf] }
 0x7e2   : > { %2426 = vmatpush.bf16.msra.mxu1 %v10759_v20  ;;  %2445 = vmatpush.bf16.msra.mxu0 %v10757_v14  ;;  %v6851_v20 = vor.u32 %v8873_v51, %v6850_v18  ;;  %v7107_v14 = vor.u32 %v8937_v55, %v7106_v0  ;;  %v7299_v18 = vor.u32 %v8985_v24, %v7298_v48  ;;  %v7266_v51 = vld [vmem:[#allocation13 + $0x400] sm:$0xf] }
 0x7e3   : > { %v7555_v0 = vor.u32 %v9049_v8, %v7554_v53  ;;  %v8977_v55 = vld [vmem:[#allocation13 + $0x41c] sm:$0xf0] }
 0x7e4   : > { %5557 = vmatpush.bf16.msra.mxu2 %v6851_v20  ;;  %5570 = vmatpush.bf16.msrb.mxu3 %v7107_v14  ;;  %v9145_v20 = vld [vmem:[#allocation13 + $0x95c] sm:$0xf0]  ;;  %v7267_v54 = vor.u32 %v8977_v55, %v7266_v51 }
 0x7e5   : > { %2427 = vmatmul.bf16.vlgmr.msra.gmra.mxu1 %v8843_v50  ;;  %2446 = vmatmul.bf16.vlgmr.msra.gmra.mxu0 %v8843_v50  ;;  %v8194_v14 = vld [vmem:[#allocation13 + $0xb40] sm:$0xf]  ;;  %v7939_v44 = vor.u32 %v9145_v20, %v7938_v40 }
 0x7e6   : > { %5579 = vmatpush.bf16.msrb.mxu1 %v7491_v56  ;;  %5592 = vmatpush.bf16.msrb.mxu0 %v7747_v30  ;;  %v9225_v56 = vld [vmem:[#allocation13 + $0xbdc] sm:$0xf0]  ;;  %v8003_v30 = vor.u32 %v9161_v11, %v8002_v37 }
 0x7e7   : > { %v8259_v50 = vor.u32 %v9225_v56, %v8258_v39  ;;  %v8482_v46 = vld [vmem:[#allocation13 + $0xd80] sm:$0xf] }
 0x7e8   : > { %5558 = vmatpush.bf16.msra.mxu2 %v6819_v45  ;;  %5571 = vmatpush.bf16.msrb.mxu3 %v7075_v58  ;;  %v7906_v45 = vld [vmem:[#allocation13 + $0x900] sm:$0xf] }
 0x7e9   : > { %v9137_v58 = vld [vmem:[#allocation13 + $0x91c] sm:$0xf0] }
 0x7ea   : > { %5580 = vmatpush.bf16.msrb.mxu1 %v7459_v22  ;;  %5593 = vmatpush.bf16.msrb.mxu0 %v7715_v19  ;;  %v9217_v22 = vld [vmem:[#allocation13 + $0xb9c] sm:$0xf0]  ;;  %v7971_v19 = vor.u32 %v9153_v23, %v7970_v25  ;;  %v7907_v31 = vor.u32 %v9137_v58, %v7906_v45 }
 0x7eb   : > { %v8227_v26 = vor.u32 %v9217_v22, %v8226_v16  ;;  %v8738_v34 = vld [vmem:[#allocation13 + $0xf80] sm:$0xf] }
 0x7ec   : > { %5559 = vmatpush.bf16.msra.mxu2 %v6787_v38  ;;  %5572 = vmatpush.bf16.msrb.mxu3 %v7043_v47  ;;  %v9345_v10 = vld [vmem:[#allocation13 + $0xf9c] sm:$0xf0] }
 0x7ed   : > { %v7874_v38 = vld [vmem:[#allocation13 + $0x8c0] sm:$0xf]  ;;  %v8739_v47 = vor.u32 %v9345_v10, %v8738_v34 }
 0x7ee   : > { %5581 = vmatpush.bf16.msrb.mxu1 %v7427_v41  ;;  %5594 = vmatpush.bf16.msrb.mxu0 %v7683_v2  ;;  %v9209_v41 = vld [vmem:[#allocation13 + $0xb5c] sm:$0xf0]  ;;  %v7875_v5 = vor.u32 %v9129_v27, %v7874_v38 }
 0x7ef   : > { %v8770_v2 = vld [vmem:[#allocation13 + $0xfc0] sm:$0xf]  ;;  %v8195_v32 = vor.u32 %v9209_v41, %v8194_v14 }
 0x7f0   : > { %5560 = vmatpush.bf16.msra.mxu2 %v6755_v29  ;;  %5573 = vmatpush.bf16.msrb.mxu3 %v7011_v49  ;;  %v8771_v52 = vor.u32 %v9353_v4, %v8770_v2  ;;  %v9273_v13 = vld [vmem:[#allocation13 + $0xd5c] sm:$0xf0] }
 0x7f1   : > { %v8706_v61 = vld [vmem:[#allocation13 + $0xf40] sm:$0xf]  ;;  %v8451_v9 = vor.u32 %v9273_v13, %v8450_v63  ;;  %v8965_v13 = vld [vmem:[#allocation13 + $0x3c4] sm:$0xf] }
 0x7f2   : > { %5582 = vmatpush.bf16.msrb.mxu1 %v7395_v12  ;;  %5595 = vmatpush.bf16.msrb.mxu0 %v7651_v33  ;;  %v8162_v12 = vld [vmem:[#allocation13 + $0xb00] sm:$0xf] }
 0x7f3   : > { %v9281_v33 = vld [vmem:[#allocation13 + $0xd9c] sm:$0xf0]  ;;  %v8163_v7 = vor.u32 %v9201_v17, %v8162_v12 }
 0x7f4   : > { %5605 = vmatpush.bf16.msrb.mxu2 %v8003_v30  ;;  %5618 = vmatpush.bf16.msra.mxu3 %v8259_v50  ;;  %v8483_v36 = vor.u32 %v9281_v33, %v8482_v46  ;;  %v7842_v37 = vld [vmem:[#allocation13 + $0x880] sm:$0xf] }
 0x7f5   : > { %2432 = vmatmul.bf16.gmra.mxu1 %v8844_v59  ;;  %2451 = vmatmul.bf16.gmra.mxu0 %v8844_v59  ;;  %v8130_v59 = vld [vmem:[#allocation13 + $0xac0] sm:$0xf] }
 0x7f6   : > { %5583 = vmatpush.bf16.msrb.mxu1 %v7363_v6  ;;  %5596 = vmatpush.bf16.msrb.mxu0 %v7619_v57  ;;  %v9193_v6 = vld [vmem:[#allocation13 + $0xadc] sm:$0xf0] }
 0x7f7   : > { %v9337_v57 = vld [vmem:[#allocation13 + $0xf5c] sm:$0xf0]  ;;  %v8131_v21 = vor.u32 %v9193_v6, %v8130_v59  ;;  %v8901_v59 = vld [vmem:[#allocation13 + $0x1c4] sm:$0xf] }
 0x7f8   : > { %5606 = vmatpush.bf16.msrb.mxu2 %v7971_v19  ;;  %5619 = vmatpush.bf16.msra.mxu3 %v8227_v26  ;;  %v8707_v15 = vor.u32 %v9337_v57, %v8706_v61  ;;  %v9121_v11 = vld [vmem:[#allocation13 + $0x89c] sm:$0xf0]  ;;  %v7236_v61 = vld [vmem:[#allocation13 + $0x3e0] sm:$0xf0] }
 0x7f9   : > { %v8098_v29 = vld [vmem:[#allocation13 + $0xa80] sm:$0xf]  ;;  %v7843_v39 = vor.u32 %v9121_v11, %v7842_v37  ;;  %v2395_v37 = vpop.permute.xlu2 %2394 }
 0x7fa   : > { %5584 = vmatpush.bf16.msrb.mxu1 %v7331_v1  ;;  %5597 = vmatpush.bf16.msrb.mxu0 %v7587_v43  ;;  %v9185_v56 = vld [vmem:[#allocation13 + $0xa9c] sm:$0xf0] }
 0x7fb   : > { %v8418_v49 = vld [vmem:[#allocation13 + $0xd00] sm:$0xf]  ;;  %v8099_v43 = vor.u32 %v9185_v56, %v8098_v29  ;;  %v8957_v56 = vld [vmem:[#allocation13 + $0x384] sm:$0xf] }
 0x7fc   : > { %5607 = vmatpush.bf16.msrb.mxu2 %v7939_v44  ;;  %5620 = vmatpush.bf16.msra.mxu3 %v8195_v32  ;;  %v9265_v1 = vld [vmem:[#allocation13 + $0xd1c] sm:$0xf0] }
 0x7fd   : > { %v8419_v30 = vor.u32 %v9265_v1, %v8418_v49  ;;  %v8674_v48 = vld [vmem:[#allocation13 + $0xf00] sm:$0xf]  ;;  %v7204_v49 = vld [vmem:[#allocation13 + $0x3a0] sm:$0xf0] }
 0x7fe   : > { %5585 = vmatpush.bf16.msrb.mxu1 %v7299_v18  ;;  %5598 = vmatpush.bf16.msrb.mxu0 %v7555_v0  ;;  %v9329_v24 = vld [vmem:[#allocation13 + $0xf1c] sm:$0xf0] }
 0x7ff   : > { %v8675_v53 = vor.u32 %v9329_v24, %v8674_v48  ;;  %v7810_v50 = vld [vmem:[#allocation13 + $0x840] sm:$0xf] }
 0x800   : > { %5608 = vmatpush.bf16.msrb.mxu2 %v7907_v31  ;;  %5621 = vmatpush.bf16.msra.mxu3 %v8163_v7  ;;  %v9113_v8 = vld [vmem:[#allocation13 + $0x85c] sm:$0xf0]  ;;  %v2390_v31 = vpop.permute.xlu0 %2389 }
 0x801   : > { %v8066_v25 = vld [vmem:[#allocation13 + $0xa40] sm:$0xf]  ;;  %v7811_v23 = vor.u32 %v9113_v8, %v7810_v50  ;;  %v8885_v50 = vld [vmem:[#allocation13 + $0x144] sm:$0xf] }
 0x802   : > { %5586 = vmatpush.bf16.msrb.mxu1 %v7267_v54  ;;  %5599 = vmatpush.bf16.msrb.mxu0 %v7523_v42  ;;  %v9177_v16 = vld [vmem:[#allocation13 + $0xa5c] sm:$0xf0]  ;;  %v6916_v8 = vld [vmem:[#allocation13 + $0x160] sm:$0xf0] }
 0x803   : > { %v8386_v22 = vld [vmem:[#allocation13 + $0xcc0] sm:$0xf]  ;;  %v8067_v51 = vor.u32 %v9177_v16, %v8066_v25  ;;  %v8949_v25 = vld [vmem:[#allocation13 + $0x344] sm:$0xf] }
 0x804   : > { %5609 = vmatpush.bf16.msrb.mxu2 %v7875_v5  ;;  %5622 = vmatpush.bf16.msra.mxu3 %v8131_v21  ;;  %v9257_v18 = vld [vmem:[#allocation13 + $0xcdc] sm:$0xf0] }
 0x805   : > { %v8387_v0 = vor.u32 %v9257_v18, %v8386_v22  ;;  %v8642_v19 = vld [vmem:[#allocation13 + $0xec0] sm:$0xf]  ;;  %v7172_v22 = vld [vmem:[#allocation13 + $0x360] sm:$0xf0] }
 0x806   : > { %5631 = vmatpush.bf16.msra.mxu1 %v8515_v60  ;;  %5644 = vmatpush.bf16.msra.mxu0 %v8771_v52  ;;  %v9321_v55 = vld [vmem:[#allocation13 + $0xedc] sm:$0xf0]  ;;  %v9029_v18 = vld [vmem:[#allocation13 + $0x5c4] sm:$0xf] }
 0x807   : > { %v8643_v35 = vor.u32 %v9321_v55, %v8642_v19  ;;  %v7778_v3 = vld [vmem:[#allocation13 + $0x800] sm:$0xf]  ;;  %v7748_v19 = vld [vmem:[#allocation13 + $0x7e0] sm:$0xf0] }
 0x808   : > { %5610 = vmatpush.bf16.msrb.mxu2 %v7843_v39  ;;  %5623 = vmatpush.bf16.msra.mxu3 %v8099_v43  ;;  %v9105_v26 = vld [vmem:[#allocation13 + $0x81c] sm:$0xf0]  ;;  %v6948_v39 = vld [vmem:[#allocation13 + $0x1a0] sm:$0xf0] }
 0x809   : > { %v8034_v40 = vld [vmem:[#allocation13 + $0xa00] sm:$0xf]  ;;  %v7779_v20 = vor.u32 %v9105_v26, %v7778_v3  ;;  %v6919_v3 = vor.u32 %v8885_v50, %v6916_v8  ;;  %v7175_v26 = vor.u32 %v8949_v25, %v7172_v22  ;;  %v9069_v50 = vld [vmem:[#allocation13 + $0x704] sm:$0xf] }
 0x80a   : > { %5632 = vmatpush.bf16.msra.mxu1 %v8483_v36  ;;  %5645 = vmatpush.bf16.msra.mxu0 %v8739_v47  ;;  %v9169_v14 = vld [vmem:[#allocation13 + $0xa1c] sm:$0xf0]  ;;  %v6980_v47 = vld [vmem:[#allocation13 + $0x1e0] sm:$0xf0] }
 0x80b   : > { %v8354_v41 = vld [vmem:[#allocation13 + $0xc80] sm:$0xf]  ;;  %v8035_v62 = vor.u32 %v9169_v14, %v8034_v40  ;;  %v6983_v21 = vor.u32 %v8901_v59, %v6980_v47  ;;  %v8877_v40 = vld [vmem:[#allocation13 + $0x104] sm:$0xf]  ;;  %v2400_v14 = vpop.permute.xlu1 %2399 }
 0x80c   : > { %5611 = vmatpush.bf16.msrb.mxu2 %v7811_v23  ;;  %5624 = vmatpush.bf16.msra.mxu3 %v8067_v51  ;;  %v9249_v28 = vld [vmem:[#allocation13 + $0xc9c] sm:$0xf0]  ;;  %v7492_v51 = vld [vmem:[#allocation13 + $0x5e0] sm:$0xf0] }
 0x80d   : > { %v8355_v54 = vor.u32 %v9249_v28, %v8354_v41  ;;  %v8610_v2 = vld [vmem:[#allocation13 + $0xe80] sm:$0xf]  ;;  %v9013_v59 = vld [vmem:[#allocation13 + $0x544] sm:$0xf] }
 0x80e   : > { %5633 = vmatpush.bf16.msra.mxu1 %v8451_v9  ;;  %5646 = vmatpush.bf16.msra.mxu0 %v8707_v15  ;;  %v9313_v4 = vld [vmem:[#allocation13 + $0xe9c] sm:$0xf0]  ;;  %v7239_v9 = vor.u32 %v8965_v13, %v7236_v61  ;;  %v8893_v15 = vld [vmem:[#allocation13 + $0x184] sm:$0xf] }
 0x80f   : > { %v8611_v42 = vor.u32 %v9313_v4, %v8610_v2  ;;  %v8322_v44 = vld [vmem:[#allocation13 + $0xc40] sm:$0xf]  ;;  %v6951_v24 = vor.u32 %v8893_v15, %v6948_v39  ;;  %v8941_v2 = vld [vmem:[#allocation13 + $0x304] sm:$0xf] }
 0x810   : > { %5612 = vmatpush.bf16.msrb.mxu2 %v7779_v20  ;;  %5625 = vmatpush.bf16.msra.mxu3 %v8035_v62  ;;  %v9241_v32 = vld [vmem:[#allocation13 + $0xc5c] sm:$0xf0]  ;;  %v6884_v20 = vld [vmem:[#allocation13 + $0x120] sm:$0xf0]  ;;  %v7495_v62 = vor.u32 %v9029_v18, %v7492_v51 }
 0x811   : > { %v8578_v60 = vld [vmem:[#allocation13 + $0xe40] sm:$0xf]  ;;  %v8323_v45 = vor.u32 %v9241_v32, %v8322_v44  ;;  %v7140_v4 = vld [vmem:[#allocation13 + $0x320] sm:$0xf0] }
 0x812   : > { %5634 = vmatpush.bf16.msra.mxu1 %v8419_v30  ;;  %5647 = vmatpush.bf16.msra.mxu0 %v8675_v53  ;;  %v9305_v58 = vld [vmem:[#allocation13 + $0xe5c] sm:$0xf0]  ;;  %v7207_v53 = vor.u32 %v8957_v56, %v7204_v49  ;;  %v7428_v47 = vld [vmem:[#allocation13 + $0x560] sm:$0xf0] }
 0x813   : > { %v8579_v12 = vor.u32 %v9305_v58, %v8578_v60  ;;  %v8290_v52 = vld [vmem:[#allocation13 + $0xc00] sm:$0xf]  ;;  %v7460_v60 = vld [vmem:[#allocation13 + $0x5a0] sm:$0xf0] }
 0x814   : > { %v9233_v17 = vld [vmem:[#allocation13 + $0xc1c] sm:$0xf0]  ;;  %v7716_v58 = vld [vmem:[#allocation13 + $0x7a0] sm:$0xf0] }
 0x815   : > { %v8546_v46 = vld [vmem:[#allocation13 + $0xe00] sm:$0xf]  ;;  %v8291_v33 = vor.u32 %v9233_v17, %v8290_v52  ;;  %v8869_v17 = vld [vmem:[#allocation13 + $0xc4] sm:$0xf] }
 0x816   : > { %5635 = vmatpush.bf16.msra.mxu1 %v8387_v0  ;;  %5648 = vmatpush.bf16.msra.mxu0 %v8643_v35  ;;  %v9297_v34 = vld [vmem:[#allocation13 + $0xe1c] sm:$0xf0]  ;;  %v9093_v0 = vld [vmem:[#allocation13 + $0x7c4] sm:$0xf] }
 0x817   : > { %v8547_v10 = vor.u32 %v9297_v34, %v8546_v46  ;;  %v6887_v46 = vor.u32 %v8877_v40, %v6884_v20  ;;  %v6852_v34 = vld [vmem:[#allocation13 + $0xe0] sm:$0xf0] }
 0x818   : > { %v6820_v15 = vld [vmem:[#allocation13 + $0xa0] sm:$0xf0] }
 0x819   : > { %v7652_v8 = vld [vmem:[#allocation13 + $0x720] sm:$0xf0] }
 0x81a   : > { %5636 = vmatpush.bf16.msra.mxu1 %v8355_v54  ;;  %5649 = vmatpush.bf16.msra.mxu0 %v8611_v42  ;;  %v7751_v54 = vor.u32 %v9093_v0, %v7748_v19  ;;  %v9021_v42 = vld [vmem:[#allocation13 + $0x584] sm:$0xf] }
 0x81b   : > { %v6788_v51 = vld [vmem:[#allocation13 + $0x60] sm:$0xf0] }
 0x81c   : > { %v8917_v0 = vld [vmem:[#allocation13 + $0x244] sm:$0xf] }
 0x81d   : > { %v7044_v19 = vld [vmem:[#allocation13 + $0x260] sm:$0xf0] }
 0x81e   : > { %5637 = vmatpush.bf16.msra.mxu1 %v8323_v45  ;;  %5650 = vmatpush.bf16.msra.mxu0 %v8579_v12  ;;  %v9085_v45 = vld [vmem:[#allocation13 + $0x784] sm:$0xf] }
 0x81f   : > { %v8997_v40 = vld [vmem:[#allocation13 + $0x4c4] sm:$0xf] }
 0x820   : > { %v7364_v20 = vld [vmem:[#allocation13 + $0x4e0] sm:$0xf0] }
 0x822   : > { %5638 = vmatpush.bf16.msra.mxu1 %v8291_v33  ;;  %5651 = vmatpush.bf16.msra.mxu0 %v8547_v10  ;;  %v7143_v33 = vor.u32 %v8941_v2, %v7140_v4  ;;  %v8933_v10 = vld [vmem:[#allocation13 + $0x2c4] sm:$0xf] }
 0x862   : > { %v2428_v7 = vpop.f32.mrf.mxu1  ;;  %v2447_v36 = vpop.f32.mrf.mxu0 }
 0x863   : > { %v2429_v38 = vadd.f32 %v2428_v7, %v2390_v31  ;;  %v2448_v27 = vadd.f32 %v2447_v36, %v2390_v31  ;;  %v7108_v31 = vld [vmem:[#allocation13 + $0x2e0] sm:$0xf0] }
 0x865   : > { %v2457_v6 = vmax.f32 %v2429_v38, 0.0  ;;  %v2458_v63 = vmax.f32 %v2448_v27, 0.0  ;;  %v7463_v38 = vor.u32 %v9021_v42, %v7460_v60  ;;  %v7719_v27 = vor.u32 %v9085_v45, %v7716_v58  ;;  %v6756_v60 = vld [vmem:[#allocation13 + $0x20] sm:$0xf0] }
 0x866   : > { %v7047_v42 = vor.u32 %v8917_v0, %v7044_v19  ;;  %v8909_v45 = vld [vmem:[#allocation13 + $0x204] sm:$0xf] }
 0x867   : > { %v2465_v57 = vmin.f32 %v2457_v6, 6.0  ;;  %v2466_v5 = vmin.f32 %v2458_v63, 6.0  ;;  %v9077_v6 = vld [vmem:[#allocation13 + $0x744] sm:$0xf] }
 0x868   : > { %v7684_v63 = vld [vmem:[#allocation13 + $0x760] sm:$0xf0] }
 0x869   : > { %v10848_v11 = vpack.c.bf16 %v2465_v57, %v2465_v57  ;;  %v10850_v29 = vpack.c.bf16 %v2466_v5, %v2466_v5  ;;  %v6855_v57 = vor.u32 %v8869_v17, %v6852_v34  ;;  %v7111_v5 = vor.u32 %v8933_v10, %v7108_v31  ;;  %v7012_v17 = vld [vmem:[#allocation13 + $0x220] sm:$0xf0] }
 0x86a   : > { %v2430_v1 = vpop.f32.mrf.mxu1  ;;  %v2449_v43 = vpop.f32.mrf.mxu0  ;;  %v7687_v49 = vor.u32 %v9077_v6, %v7684_v63  ;;  %v9053_v34 = vld [vmem:[#allocation13 + $0x684] sm:$0xf] }
 0x86b   : > { %v2431_v30 = vadd.f32 %v2430_v1, %v2395_v37  ;;  %v2450_v48 = vadd.f32 %v2449_v43, %v2395_v37  ;;  %5561 = vmatmul.bf16.vlgmr.msra.gmra.mxu2 %v10848_v11  ;;  %5574 = vmatmul.bf16.vlgmr.msrb.gmra.mxu3 %v10850_v29  ;;  %v2405_v37 = vpop.permute.xlu0 %2404  ;;  %v8925_v1 = vld [vmem:[#allocation13 + $0x284] sm:$0xf] }
 0x86c   : > { %5657 = vmatpush.bf16.msra.mxu2 %v6983_v21  ;;  %5670 = vmatpush.bf16.msrb.mxu3 %v7239_v9  ;;  %v7431_v21 = vor.u32 %v9013_v59, %v7428_v47  ;;  %v8861_v9 = vld [vmem:[#allocation13 + $0x84] sm:$0xf]  ;;  %v7015_v59 = vor.u32 %v8909_v45, %v7012_v17 }
 0x86d   : > { %v2459_v23 = vmax.f32 %v2431_v30, 0.0  ;;  %v2460_v16 = vmax.f32 %v2450_v48, 0.0  ;;  %v7076_v43 = vld [vmem:[#allocation13 + $0x2a0] sm:$0xf0]  ;;  %v6823_v22 = vor.u32 %v8861_v9, %v6820_v15 }
 0x86e   : > { %v9005_v30 = vld [vmem:[#allocation13 + $0x504] sm:$0xf]  ;;  %v7079_v18 = vor.u32 %v8925_v1, %v7076_v43 }
 0x86f   : > { %v2467_v55 = vmin.f32 %v2459_v23, 6.0  ;;  %v2468_v35 = vmin.f32 %v2460_v16, 6.0  ;;  %v8853_v16 = vld [vmem:[#allocation13 + $0x44] sm:$0xf] }
 0x870   : > { %5658 = vmatpush.bf16.msra.mxu2 %v6951_v24  ;;  %5671 = vmatpush.bf16.msrb.mxu3 %v7207_v53  ;;  %v7396_v53 = vld [vmem:[#allocation13 + $0x520] sm:$0xf0]  ;;  %v6791_v4 = vor.u32 %v8853_v16, %v6788_v51 }
 0x871   : > { %v10854_v41 = vpack.c.bf16 %v2467_v55, %v2467_v55  ;;  %v10856_v28 = vpack.c.bf16 %v2468_v35, %v2468_v35  ;;  %v7588_v10 = vld [vmem:[#allocation13 + $0x6a0] sm:$0xf0] }
 0x872   : > { %v2433_v44 = vpop.f32.mrf.mxu1  ;;  %v2452_v32 = vpop.f32.mrf.mxu0  ;;  %v9157_v31 = vld [vmem:[#allocation13 + $0x9c4] sm:$0xf]  ;;  %v7591_v6 = vor.u32 %v9053_v34, %v7588_v10 }
 0x873   : > { %v2434_v12 = vadd.f32 %v2433_v44, %v2400_v14  ;;  %v2453_v52 = vadd.f32 %v2452_v32, %v2400_v14  ;;  %5587 = vmatmul.bf16.vlgmr.msrb.gmra.mxu1 %v10854_v41  ;;  %5600 = vmatmul.bf16.vlgmr.msrb.gmra.mxu0 %v10856_v28  ;;  %v9061_v14 = vld [vmem:[#allocation13 + $0x6c4] sm:$0xf]  ;;  %v7367_v44 = vor.u32 %v8997_v40, %v7364_v20 }
 0x874   : > { %5659 = vmatpush.bf16.msra.mxu2 %v6919_v3  ;;  %5672 = vmatpush.bf16.msrb.mxu3 %v7175_v26  ;;  %v7399_v3 = vor.u32 %v9005_v30, %v7396_v53  ;;  %v7655_v26 = vor.u32 %v9069_v50, %v7652_v8  ;;  %v8845_v32 = vld [vmem:[#allocation13 + $0x4] sm:$0xf] }
 0x875   : > { %v2461_v7 = vmax.f32 %v2434_v12, 0.0  ;;  %v2462_v36 = vmax.f32 %v2453_v52, 0.0  ;;  %5683 = vmatpush.bf16.msrb.mxu1 %v7495_v62  ;;  %5696 = vmatpush.bf16.msrb.mxu0 %v7751_v54  ;;  %v7620_v62 = vld [vmem:[#allocation13 + $0x6e0] sm:$0xf0] }
 0x876   : > { %v7623_v52 = vor.u32 %v9061_v14, %v7620_v62  ;;  %v8981_v63 = vld [vmem:[#allocation13 + $0x444] sm:$0xf] }
 0x877   : > { %v2469_v13 = vmin.f32 %v2461_v7, 6.0  ;;  %v2470_v61 = vmin.f32 %v2462_v36, 6.0  ;;  %v8004_v7 = vld [vmem:[#allocation13 + $0x9e0] sm:$0xf0] }
 0x878   : > { %5660 = vmatpush.bf16.msra.mxu2 %v6887_v46  ;;  %5673 = vmatpush.bf16.msrb.mxu3 %v7143_v33  ;;  %v8989_v46 = vld [vmem:[#allocation13 + $0x484] sm:$0xf] }
 0x879   : > { %v10860_v39 = vpack.c.bf16 %v2469_v13, %v2469_v13  ;;  %v10862_v56 = vpack.c.bf16 %v2470_v61, %v2470_v61  ;;  %5684 = vmatpush.bf16.msrb.mxu1 %v7463_v38  ;;  %5697 = vmatpush.bf16.msrb.mxu0 %v7719_v27  ;;  %v7332_v33 = vld [vmem:[#allocation13 + $0x4a0] sm:$0xf0]  ;;  %v6759_v27 = vor.u32 %v8845_v32, %v6756_v60 }
 0x87a   : > { %v2435_v48 = vpop.f32.mrf.mxu1  ;;  %v2454_v24 = vpop.f32.mrf.mxu0  ;;  %v9221_v36 = vld [vmem:[#allocation13 + $0xbc4] sm:$0xf]  ;;  %v7335_v47 = vor.u32 %v8989_v46, %v7332_v33  ;;  %v8007_v61 = vor.u32 %v9157_v31, %v8004_v7 }
 0x87b   : > { %v2436_v25 = vadd.f32 %v2435_v48, %v2405_v37  ;;  %v2455_v23 = vadd.f32 %v2454_v24, %v2405_v37  ;;  %5613 = vmatmul.bf16.vlgmr.msrb.gmra.mxu2 %v10860_v39  ;;  %5626 = vmatmul.bf16.vlgmr.msra.gmra.mxu3 %v10862_v56  ;;  %v8260_v38 = vld [vmem:[#allocation13 + $0xbe0] sm:$0xf0] }
 0x87c   : > { %5661 = vmatpush.bf16.msra.mxu2 %v6855_v57  ;;  %5674 = vmatpush.bf16.msrb.mxu3 %v7111_v5  ;;  %v7300_v13 = vld [vmem:[#allocation13 + $0x460] sm:$0xf0]  ;;  %v8263_v57 = vor.u32 %v9221_v36, %v8260_v38 }
 0x87d   : > { %v2463_v55 = vmax.f32 %v2436_v25, 0.0  ;;  %v2464_v35 = vmax.f32 %v2455_v23, 0.0  ;;  %5685 = vmatpush.bf16.msrb.mxu1 %v7431_v21  ;;  %5698 = vmatpush.bf16.msrb.mxu0 %v7687_v49  ;;  %v9045_v5 = vld [vmem:[#allocation13 + $0x644] sm:$0xf]  ;;  %v7303_v1 = vor.u32 %v8981_v63, %v7300_v13 }
 0x87e   : > { %v7556_v21 = vld [vmem:[#allocation13 + $0x660] sm:$0xf0] }
 0x87f   : > { %v2471_v54 = vmin.f32 %v2463_v55, 6.0  ;;  %v2472_v2 = vmin.f32 %v2464_v35, 6.0  ;;  %v9149_v9 = vld [vmem:[#allocation13 + $0x984] sm:$0xf]  ;;  %v7559_v43 = vor.u32 %v9045_v5, %v7556_v21 }
 0x880   : > { %5662 = vmatpush.bf16.msra.mxu2 %v6823_v22  ;;  %5675 = vmatpush.bf16.msrb.mxu3 %v7079_v18  ;;  %v7972_v15 = vld [vmem:[#allocation13 + $0x9a0] sm:$0xf0] }
 0x881   : > { %v10866_v58 = vpack.c.bf16 %v2471_v54, %v2471_v54  ;;  %v10868_v12 = vpack.c.bf16 %v2472_v2, %v2472_v2  ;;  %5686 = vmatpush.bf16.msrb.mxu1 %v7399_v3  ;;  %5699 = vmatpush.bf16.msrb.mxu0 %v7655_v26  ;;  %v9213_v37 = vld [vmem:[#allocation13 + $0xb84] sm:$0xf]  ;;  %v7975_v53 = vor.u32 %v9149_v9, %v7972_v15 }
 0x882   : > { %v8228_v49 = vld [vmem:[#allocation13 + $0xba0] sm:$0xf0] }
 0x883   : > { %5639 = vmatmul.bf16.vlgmr.msra.gmra.mxu1 %v10866_v58  ;;  %5652 = vmatmul.bf16.vlgmr.msra.gmra.mxu0 %v10868_v12  ;;  %v8973_v30 = vld [vmem:[#allocation13 + $0x404] sm:$0xf]  ;;  %v8231_v50 = vor.u32 %v9213_v37, %v8228_v49 }
 0x884   : > { %5663 = vmatpush.bf16.msra.mxu2 %v6791_v4  ;;  %5676 = vmatpush.bf16.msrb.mxu3 %v7047_v42  ;;  %v7268_v48 = vld [vmem:[#allocation13 + $0x420] sm:$0xf0] }
 0x885   : > { %5687 = vmatpush.bf16.msrb.mxu1 %v7367_v44  ;;  %5700 = vmatpush.bf16.msrb.mxu0 %v7623_v52  ;;  %v9037_v24 = vld [vmem:[#allocation13 + $0x604] sm:$0xf]  ;;  %v7271_v55 = vor.u32 %v8973_v30, %v7268_v48 }
 0x886   : > { %v7524_v8 = vld [vmem:[#allocation13 + $0x620] sm:$0xf0] }
 0x887   : > { %v9141_v25 = vld [vmem:[#allocation13 + $0x944] sm:$0xf]  ;;  %v7527_v35 = vor.u32 %v9037_v24, %v7524_v8 }
 0x888   : > { %5664 = vmatpush.bf16.msra.mxu2 %v6759_v27  ;;  %5677 = vmatpush.bf16.msrb.mxu3 %v7015_v59  ;;  %v7940_v23 = vld [vmem:[#allocation13 + $0x960] sm:$0xf0] }
 0x889   : > { %5688 = vmatpush.bf16.msrb.mxu1 %v7335_v47  ;;  %5701 = vmatpush.bf16.msrb.mxu0 %v7591_v6  ;;  %v9205_v16 = vld [vmem:[#allocation13 + $0xb44] sm:$0xf]  ;;  %v7943_v3 = vor.u32 %v9141_v25, %v7940_v23 }
 0x88a   : > { %v8196_v22 = vld [vmem:[#allocation13 + $0xb60] sm:$0xf0] }
 0x88b   : > { %5665 = vmatmul.bf16.vlgmr.msra.gmra.mxu2 %v10848_v11  ;;  %5678 = vmatmul.bf16.vlgmr.msrb.gmra.mxu3 %v10850_v29  ;;  %v9285_v18 = vld [vmem:[#allocation13 + $0xdc4] sm:$0xf]  ;;  %v8199_v26 = vor.u32 %v9205_v16, %v8196_v22 }
 0x88c   : > { %5709 = vmatpush.bf16.msrb.mxu2 %v8007_v61  ;;  %5722 = vmatpush.bf16.msra.mxu3 %v8263_v57  ;;  %v8516_v51 = vld [vmem:[#allocation13 + $0xde0] sm:$0xf0] }
 0x88d   : > { %v9349_v0 = vld [vmem:[#allocation13 + $0xfc4] sm:$0xf]  ;;  %5689 = vmatpush.bf16.msrb.mxu1 %v7303_v1  ;;  %5702 = vmatpush.bf16.msrb.mxu0 %v7559_v43  ;;  %v8519_v14 = vor.u32 %v9285_v18, %v8516_v51 }
 0x88e   : > { %v8772_v19 = vld [vmem:[#allocation13 + $0xfe0] sm:$0xf0] }
 0x88f   : > { %v9133_v40 = vld [vmem:[#allocation13 + $0x904] sm:$0xf]  ;;  %v8775_v62 = vor.u32 %v9349_v0, %v8772_v19 }
 0x890   : > { %5710 = vmatpush.bf16.msrb.mxu2 %v7975_v53  ;;  %5723 = vmatpush.bf16.msra.mxu3 %v8231_v50  ;;  %v7908_v20 = vld [vmem:[#allocation13 + $0x920] sm:$0xf0] }
 0x891   : > { %v9197_v54 = vld [vmem:[#allocation13 + $0xb04] sm:$0xf]  ;;  %5690 = vmatpush.bf16.msrb.mxu1 %v7271_v55  ;;  %5703 = vmatpush.bf16.msrb.mxu0 %v7527_v35  ;;  %v7911_v60 = vor.u32 %v9133_v40, %v7908_v20 }
 0x892   : > { %v8164_v2 = vld [vmem:[#allocation13 + $0xb20] sm:$0xf0] }
 0x893   : > { %v9277_v4 = vld [vmem:[#allocation13 + $0xd84] sm:$0xf]  ;;  %v8167_v45 = vor.u32 %v9197_v54, %v8164_v2  ;;  %v7242_v54 = vld [vmem:[#allocation13 + $0x3c8] sm:$0xf] }
 0x894   : > { %v8484_v42 = vld [vmem:[#allocation13 + $0xda0] sm:$0xf0]  ;;  %5711 = vmatpush.bf16.msrb.mxu2 %v7943_v3  ;;  %5724 = vmatpush.bf16.msra.mxu3 %v8199_v26  ;;  %v8970_v2 = vld [vmem:[#allocation13 + $0x3e4] sm:$0xf0] }
 0x895   : > { %v9341_v44 = vld [vmem:[#allocation13 + $0xf84] sm:$0xf]  ;;  %5735 = vmatpush.bf16.msra.mxu1 %v8519_v14  ;;  %5748 = vmatpush.bf16.msra.mxu0 %v8775_v62  ;;  %v8487_v46 = vor.u32 %v9277_v4, %v8484_v42  ;;  %v6986_v14 = vld [vmem:[#allocation13 + $0x1c8] sm:$0xf] }
 0x896   : > { %v8740_v32 = vld [vmem:[#allocation13 + $0xfa0] sm:$0xf0]  ;;  %5691 = vmatmul.bf16.vlgmr.msrb.gmra.mxu1 %v10854_v41  ;;  %5704 = vmatmul.bf16.vlgmr.msrb.gmra.mxu0 %v10856_v28  ;;  %v8906_v62 = vld [vmem:[#allocation13 + $0x1e4] sm:$0xf0] }
 0x897   : > { %v9125_v52 = vld [vmem:[#allocation13 + $0x8c4] sm:$0xf]  ;;  %v8743_v33 = vor.u32 %v9341_v44, %v8740_v32 }
 0x898   : > { %v7876_v17 = vld [vmem:[#allocation13 + $0x8e0] sm:$0xf0]  ;;  %5712 = vmatpush.bf16.msrb.mxu2 %v7911_v60  ;;  %5725 = vmatpush.bf16.msra.mxu3 %v8167_v45 }
 0x899   : > { %v9189_v34 = vld [vmem:[#allocation13 + $0xac4] sm:$0xf]  ;;  %v7879_v27 = vor.u32 %v9125_v52, %v7876_v17  ;;  %5736 = vmatpush.bf16.msra.mxu1 %v8487_v46  ;;  %5749 = vmatpush.bf16.msra.mxu0 %v8743_v33  ;;  %v6987_v52 = vor.u32 %v8906_v62, %v6986_v14  ;;  %v7243_v17 = vor.u32 %v8970_v2, %v7242_v54  ;;  %v7434_v14 = vld [vmem:[#allocation13 + $0x548] sm:$0xf] }
 0x89a   : > { %v8132_v10 = vld [vmem:[#allocation13 + $0xae0] sm:$0xf0]  ;;  %v9018_v62 = vld [vmem:[#allocation13 + $0x564] sm:$0xf0] }
 0x89b   : > { %v9269_v31 = vld [vmem:[#allocation13 + $0xd44] sm:$0xf]  ;;  %v8135_v59 = vor.u32 %v9189_v34, %v8132_v10  ;;  %v6954_v34 = vld [vmem:[#allocation13 + $0x188] sm:$0xf] }
 0x89c   : > { %v8452_v7 = vld [vmem:[#allocation13 + $0xd60] sm:$0xf0]  ;;  %5713 = vmatpush.bf16.msrb.mxu2 %v7879_v27  ;;  %v8898_v10 = vld [vmem:[#allocation13 + $0x1a4] sm:$0xf0] }
 0x89d   : > { %v9333_v36 = vld [vmem:[#allocation13 + $0xf44] sm:$0xf]  ;;  %v8455_v63 = vor.u32 %v9269_v31, %v8452_v7  ;;  %5726 = vmatpush.bf16.msra.mxu3 %v8135_v59  ;;  %v7210_v31 = vld [vmem:[#allocation13 + $0x388] sm:$0xf] }
 0x89e   : > { %v8708_v38 = vld [vmem:[#allocation13 + $0xf60] sm:$0xf0]  ;;  %v8962_v7 = vld [vmem:[#allocation13 + $0x3a4] sm:$0xf0] }
 0x89f   : > { %v9117_v47 = vld [vmem:[#allocation13 + $0x884] sm:$0xf]  ;;  %v8711_v13 = vor.u32 %v9333_v36, %v8708_v38  ;;  %5737 = vmatpush.bf16.msra.mxu1 %v8455_v63  ;;  %v7211_v63 = vor.u32 %v8962_v7, %v7210_v31  ;;  %v7690_v54 = vld [vmem:[#allocation13 + $0x748] sm:$0xf] }
 0x8a0   : > { %v7844_v6 = vld [vmem:[#allocation13 + $0x8a0] sm:$0xf0]  ;;  %v9082_v2 = vld [vmem:[#allocation13 + $0x764] sm:$0xf0] }
 0x8a1   : > { %v9181_v61 = vld [vmem:[#allocation13 + $0xa84] sm:$0xf]  ;;  %v7847_v37 = vor.u32 %v9117_v47, %v7844_v6  ;;  %5750 = vmatpush.bf16.msra.mxu0 %v8711_v13  ;;  %v6955_v6 = vor.u32 %v8898_v10, %v6954_v34  ;;  %v7658_v34 = vld [vmem:[#allocation13 + $0x708] sm:$0xf] }
 0x8a2   : > { %v8100_v57 = vld [vmem:[#allocation13 + $0xaa0] sm:$0xf0]  ;;  %v9074_v10 = vld [vmem:[#allocation13 + $0x724] sm:$0xf0] }
 0x8a3   : > { %v9261_v5 = vld [vmem:[#allocation13 + $0xd04] sm:$0xf]  ;;  %v8103_v49 = vor.u32 %v9181_v61, %v8100_v57  ;;  %5714 = vmatpush.bf16.msrb.mxu2 %v7847_v37  ;;  %v6922_v61 = vld [vmem:[#allocation13 + $0x148] sm:$0xf] }
 0x8a4   : > { %v8420_v21 = vld [vmem:[#allocation13 + $0xd20] sm:$0xf0]  ;;  %v8890_v57 = vld [vmem:[#allocation13 + $0x164] sm:$0xf0] }
 0x8a5   : > { %v9325_v9 = vld [vmem:[#allocation13 + $0xf04] sm:$0xf]  ;;  %v8423_v30 = vor.u32 %v9261_v5, %v8420_v21  ;;  %5727 = vmatpush.bf16.msra.mxu3 %v8103_v49  ;;  %v7178_v5 = vld [vmem:[#allocation13 + $0x348] sm:$0xf] }
 0x8a6   : > { %v8676_v15 = vld [vmem:[#allocation13 + $0xf20] sm:$0xf0]  ;;  %v8954_v21 = vld [vmem:[#allocation13 + $0x364] sm:$0xf0] }
 0x8a7   : > { %v9109_v1 = vld [vmem:[#allocation13 + $0x844] sm:$0xf]  ;;  %v8679_v48 = vor.u32 %v9325_v9, %v8676_v15  ;;  %5738 = vmatpush.bf16.msra.mxu1 %v8423_v30  ;;  %v7498_v9 = vld [vmem:[#allocation13 + $0x5c8] sm:$0xf]  ;;  %v6923_v30 = vor.u32 %v8890_v57, %v6922_v61 }
 0x8a8   : > { %v7812_v43 = vld [vmem:[#allocation13 + $0x860] sm:$0xf0]  ;;  %v9034_v15 = vld [vmem:[#allocation13 + $0x5e4] sm:$0xf0] }
 0x8a9   : > { %v9173_v24 = vld [vmem:[#allocation13 + $0xa44] sm:$0xf]  ;;  %v7815_v16 = vor.u32 %v9109_v1, %v7812_v43  ;;  %5751 = vmatpush.bf16.msra.mxu0 %v8679_v48  ;;  %v7754_v37 = vld [vmem:[#allocation13 + $0x7c8] sm:$0xf]  ;;  %v7179_v48 = vor.u32 %v8954_v21, %v7178_v5 }
 0x8aa   : > { %v8068_v53 = vld [vmem:[#allocation13 + $0xa60] sm:$0xf0]  ;;  %v9098_v49 = vld [vmem:[#allocation13 + $0x7e4] sm:$0xf0] }
 0x8ab   : > { %v9253_v50 = vld [vmem:[#allocation13 + $0xcc4] sm:$0xf]  ;;  %v8071_v22 = vor.u32 %v9173_v24, %v8068_v53  ;;  %5715 = vmatpush.bf16.msrb.mxu2 %v7815_v16  ;;  %v6890_v24 = vld [vmem:[#allocation13 + $0x108] sm:$0xf] }
 0x8ac   : > { %v8388_v8 = vld [vmem:[#allocation13 + $0xce0] sm:$0xf0]  ;;  %v8882_v53 = vld [vmem:[#allocation13 + $0x124] sm:$0xf0] }
 0x8ad   : > { %v9317_v25 = vld [vmem:[#allocation13 + $0xec4] sm:$0xf]  ;;  %v8391_v19 = vor.u32 %v9253_v50, %v8388_v8  ;;  %5728 = vmatpush.bf16.msra.mxu3 %v8071_v22  ;;  %v7499_v50 = vor.u32 %v9034_v15, %v7498_v9  ;;  %v7755_v8 = vor.u32 %v9098_v49, %v7754_v37  ;;  %v7466_v16 = vld [vmem:[#allocation13 + $0x588] sm:$0xf] }
 0x8ae   : > { %v8644_v23 = vld [vmem:[#allocation13 + $0xee0] sm:$0xf0]  ;;  %v9026_v22 = vld [vmem:[#allocation13 + $0x5a4] sm:$0xf0] }
 0x8af   : > { %v9101_v18 = vld [vmem:[#allocation13 + $0x804] sm:$0xf]  ;;  %v8647_v55 = vor.u32 %v9317_v25, %v8644_v23  ;;  %5739 = vmatpush.bf16.msra.mxu1 %v8391_v19  ;;  %v7146_v25 = vld [vmem:[#allocation13 + $0x308] sm:$0xf] }
 0x8b0   : > { %v7780_v51 = vld [vmem:[#allocation13 + $0x820] sm:$0xf0]  ;;  %v8946_v23 = vld [vmem:[#allocation13 + $0x324] sm:$0xf0] }
 0x8b1   : > { %v9165_v0 = vld [vmem:[#allocation13 + $0xa04] sm:$0xf]  ;;  %v7783_v4 = vor.u32 %v9101_v18, %v7780_v51  ;;  %5752 = vmatpush.bf16.msra.mxu0 %v8647_v55  ;;  %v7722_v18 = vld [vmem:[#allocation13 + $0x788] sm:$0xf]  ;;  %v7147_v19 = vor.u32 %v8946_v23, %v7146_v25 }
 0x8b2   : > { %v8036_v35 = vld [vmem:[#allocation13 + $0xa20] sm:$0xf0]  ;;  %v9090_v51 = vld [vmem:[#allocation13 + $0x7a4] sm:$0xf0] }
 0x8b3   : > { %v9245_v3 = vld [vmem:[#allocation13 + $0xc84] sm:$0xf]  ;;  %v8039_v42 = vor.u32 %v9165_v0, %v8036_v35  ;;  %5716 = vmatpush.bf16.msrb.mxu2 %v7783_v4  ;;  %v6891_v0 = vor.u32 %v8882_v53, %v6890_v24  ;;  %v6858_v55 = vld [vmem:[#allocation13 + $0xc8] sm:$0xf] }
 0x8b4   : > { %v8356_v26 = vld [vmem:[#allocation13 + $0xca0] sm:$0xf0]  ;;  %v8874_v35 = vld [vmem:[#allocation13 + $0xe4] sm:$0xf0] }
 0x8b5   : > { %v9309_v40 = vld [vmem:[#allocation13 + $0xe84] sm:$0xf]  ;;  %v8359_v44 = vor.u32 %v9245_v3, %v8356_v26  ;;  %5729 = vmatpush.bf16.msra.mxu3 %v8039_v42  ;;  %v7467_v3 = vor.u32 %v9026_v22, %v7466_v16  ;;  %v7723_v26 = vor.u32 %v9090_v51, %v7722_v18  ;;  %v6859_v4 = vor.u32 %v8874_v35, %v6858_v55  ;;  %v7626_v61 = vld [vmem:[#allocation13 + $0x6c8] sm:$0xf] }
 0x8b6   : > { %v8612_v20 = vld [vmem:[#allocation13 + $0xea0] sm:$0xf0]  ;;  %5717 = vmatmul.bf16.vlgmr.msrb.gmra.mxu2 %v10860_v39  ;;  %v9066_v57 = vld [vmem:[#allocation13 + $0x6e4] sm:$0xf0] }
 0x8b7   : > { %v8615_v32 = vor.u32 %v9309_v40, %v8612_v20  ;;  %v9237_v60 = vld [vmem:[#allocation13 + $0xc44] sm:$0xf]  ;;  %5740 = vmatpush.bf16.msra.mxu1 %v8359_v44  ;;  %5761 = vmatpush.bf16.msra.mxu2 %v6987_v52  ;;  %v7114_v40 = vld [vmem:[#allocation13 + $0x2c8] sm:$0xf] }
 0x8b8   : > { %v8324_v45 = vld [vmem:[#allocation13 + $0xc60] sm:$0xf0]  ;;  %5730 = vmatmul.bf16.vlgmr.msra.gmra.mxu3 %v10862_v56  ;;  %v8938_v20 = vld [vmem:[#allocation13 + $0x2e4] sm:$0xf0] }
 0x8b9   : > { %v9301_v46 = vld [vmem:[#allocation13 + $0xe44] sm:$0xf]  ;;  %5753 = vmatpush.bf16.msra.mxu0 %v8615_v32  ;;  %v8327_v36 = vor.u32 %v9237_v60, %v8324_v45  ;;  %5774 = vmatpush.bf16.msrb.mxu3 %v7243_v17  ;;  %v7115_v42 = vor.u32 %v8938_v20, %v7114_v40  ;;  %v6826_v44 = vld [vmem:[#allocation13 + $0x88] sm:$0xf]  ;;  %v7435_v60 = vor.u32 %v9018_v62, %v7434_v14 }
 0x8ba   : > { %v8580_v33 = vld [vmem:[#allocation13 + $0xe60] sm:$0xf0]  ;;  %v8866_v32 = vld [vmem:[#allocation13 + $0xa4] sm:$0xf0]  ;;  %v7691_v45 = vor.u32 %v9082_v2, %v7690_v54 }
 0x8bb   : > { %v8583_v38 = vor.u32 %v9301_v46, %v8580_v33  ;;  %v9229_v27 = vld [vmem:[#allocation13 + $0xc04] sm:$0xf]  ;;  %5741 = vmatpush.bf16.msra.mxu1 %v8327_v36  ;;  %5762 = vmatpush.bf16.msra.mxu2 %v6955_v6  ;;  %v7082_v52 = vld [vmem:[#allocation13 + $0x288] sm:$0xf]  ;;  %v6827_v31 = vor.u32 %v8866_v32, %v6826_v44 }
 0x8bc   : > { %v8292_v59 = vld [vmem:[#allocation13 + $0xc20] sm:$0xf0]  ;;  %v8930_v17 = vld [vmem:[#allocation13 + $0x2a4] sm:$0xf0] }
 0x8bd   : > { %v9293_v47 = vld [vmem:[#allocation13 + $0xe04] sm:$0xf]  ;;  %5754 = vmatpush.bf16.msra.mxu0 %v8583_v38  ;;  %v8295_v1 = vor.u32 %v9229_v27, %v8292_v59  ;;  %5775 = vmatpush.bf16.msrb.mxu3 %v7211_v63  ;;  %v7402_v46 = vld [vmem:[#allocation13 + $0x508] sm:$0xf]  ;;  %v7083_v7 = vor.u32 %v8930_v17, %v7082_v52  ;;  %v7659_v59 = vor.u32 %v9074_v10, %v7658_v34 }
 0x8be   : > { %v8548_v13 = vld [vmem:[#allocation13 + $0xe20] sm:$0xf0]  ;;  %v9010_v33 = vld [vmem:[#allocation13 + $0x524] sm:$0xf0] }
 0x8bf   : > { %v8551_v43 = vor.u32 %v9293_v47, %v8548_v13  ;;  %5742 = vmatpush.bf16.msra.mxu1 %v8295_v1  ;;  %5763 = vmatpush.bf16.msra.mxu2 %v6923_v30  ;;  %v6794_v36 = vld [vmem:[#allocation13 + $0x48] sm:$0xf]  ;;  %v7403_v27 = vor.u32 %v9010_v33, %v7402_v46  ;;  %v7627_v1 = vor.u32 %v9066_v57, %v7626_v61 }
 0x8c0   : > { %v8858_v38 = vld [vmem:[#allocation13 + $0x64] sm:$0xf0] }
 0x8c1   : > { %5755 = vmatpush.bf16.msra.mxu0 %v8551_v43  ;;  %5776 = vmatpush.bf16.msrb.mxu3 %v7179_v48  ;;  %v7050_v47 = vld [vmem:[#allocation13 + $0x248] sm:$0xf]  ;;  %v6795_v5 = vor.u32 %v8858_v38, %v6794_v36 }
 0x8c2   : > { %5743 = vmatmul.bf16.vlgmr.msra.gmra.mxu1 %v10866_v58  ;;  %v8922_v6 = vld [vmem:[#allocation13 + $0x264] sm:$0xf0] }
 0x8c3   : > { %5787 = vmatpush.bf16.msrb.mxu1 %v7499_v50  ;;  %5764 = vmatpush.bf16.msra.mxu2 %v6891_v0  ;;  %v7370_v63 = vld [vmem:[#allocation13 + $0x4c8] sm:$0xf]  ;;  %v7051_v21 = vor.u32 %v8922_v6, %v7050_v47 }
 0x8c4   : > { %5756 = vmatmul.bf16.vlgmr.msra.gmra.mxu0 %v10868_v12  ;;  %v9002_v13 = vld [vmem:[#allocation13 + $0x4e4] sm:$0xf0] }
 0x8c5   : > { %5800 = vmatpush.bf16.msrb.mxu0 %v7755_v8  ;;  %5777 = vmatpush.bf16.msrb.mxu3 %v7147_v19  ;;  %v6762_v9 = vld [vmem:[#allocation13 + $0x8] sm:$0xf]  ;;  %v7371_v49 = vor.u32 %v9002_v13, %v7370_v63 }
 0x8c6   : > { %v8850_v15 = vld [vmem:[#allocation13 + $0x24] sm:$0xf0] }
 0x8c7   : > { %5788 = vmatpush.bf16.msrb.mxu1 %v7467_v3  ;;  %5765 = vmatpush.bf16.msra.mxu2 %v6859_v4  ;;  %v7018_v37 = vld [vmem:[#allocation13 + $0x208] sm:$0xf]  ;;  %v6763_v16 = vor.u32 %v8850_v15, %v6762_v9 }
 0x8c8   : > { %v8914_v43 = vld [vmem:[#allocation13 + $0x224] sm:$0xf0] }
 0x8c9   : > { %5801 = vmatpush.bf16.msrb.mxu0 %v7723_v26  ;;  %5778 = vmatpush.bf16.msrb.mxu3 %v7115_v42  ;;  %v7338_v30 = vld [vmem:[#allocation13 + $0x488] sm:$0xf]  ;;  %v7019_v22 = vor.u32 %v8914_v43, %v7018_v37 }
 0x8ca   : > { %v8994_v48 = vld [vmem:[#allocation13 + $0x4a4] sm:$0xf0] }
 0x8cb   : > { %5789 = vmatpush.bf16.msrb.mxu1 %v7435_v60  ;;  %5766 = vmatpush.bf16.msra.mxu2 %v6827_v31  ;;  %v7594_v24 = vld [vmem:[#allocation13 + $0x688] sm:$0xf]  ;;  %v7339_v18 = vor.u32 %v8994_v48, %v7338_v30 }
 0x8cc   : > { %v9058_v53 = vld [vmem:[#allocation13 + $0x6a4] sm:$0xf0] }
 0x8cd   : > { %5802 = vmatpush.bf16.msrb.mxu0 %v7691_v45  ;;  %5779 = vmatpush.bf16.msrb.mxu3 %v7083_v7  ;;  %v8010_v50 = vld [vmem:[#allocation13 + $0x9c8] sm:$0xf]  ;;  %v7595_v51 = vor.u32 %v9058_v53, %v7594_v24 }
 0x8ce   : > { %v9162_v8 = vld [vmem:[#allocation13 + $0x9e4] sm:$0xf0] }
 0x8cf   : > { %5790 = vmatpush.bf16.msrb.mxu1 %v7403_v27  ;;  %v8266_v25 = vld [vmem:[#allocation13 + $0xbc8] sm:$0xf]  ;;  %5767 = vmatpush.bf16.msra.mxu2 %v6795_v5  ;;  %v8011_v55 = vor.u32 %v9162_v8, %v8010_v50 }
 0x8d0   : > { %v9226_v23 = vld [vmem:[#allocation13 + $0xbe4] sm:$0xf0] }
 0x8d1   : > { %5803 = vmatpush.bf16.msrb.mxu0 %v7659_v59  ;;  %5780 = vmatpush.bf16.msrb.mxu3 %v7051_v21  ;;  %v7306_v0 = vld [vmem:[#allocation13 + $0x448] sm:$0xf]  ;;  %v8267_v35 = vor.u32 %v9226_v23, %v8266_v25 }
 0x8d2   : > { %v8986_v19 = vld [vmem:[#allocation13 + $0x464] sm:$0xf0] }
 0x8d3   : > { %5791 = vmatpush.bf16.msrb.mxu1 %v7371_v49  ;;  %v7562_v3 = vld [vmem:[#allocation13 + $0x648] sm:$0xf]  ;;  %5768 = vmatpush.bf16.msra.mxu2 %v6763_v16  ;;  %v7307_v54 = vor.u32 %v8986_v19, %v7306_v0 }
 0x8d4   : > { %v9050_v26 = vld [vmem:[#allocation13 + $0x664] sm:$0xf0] }
 0x8d5   : > { %5804 = vmatpush.bf16.msrb.mxu0 %v7627_v1  ;;  %v7978_v40 = vld [vmem:[#allocation13 + $0x988] sm:$0xf]  ;;  %5781 = vmatpush.bf16.msrb.mxu3 %v7019_v22  ;;  %v7563_v2 = vor.u32 %v9050_v26, %v7562_v3 }
 0x8d6   : > { %v9154_v20 = vld [vmem:[#allocation13 + $0x9a4] sm:$0xf0]  ;;  %5769 = vmatmul.bf16.vlgmr.msra.gmra.mxu2 %v10848_v11 }
 0x8d7   : > { %v8234_v14 = vld [vmem:[#allocation13 + $0xb88] sm:$0xf]  ;;  %5792 = vmatpush.bf16.msrb.mxu1 %v7339_v18  ;;  %5813 = vmatpush.bf16.msrb.mxu2 %v8011_v55  ;;  %v7979_v32 = vor.u32 %v9154_v20, %v7978_v40 }
 0x8d8   : > { %v9218_v62 = vld [vmem:[#allocation13 + $0xba4] sm:$0xf0]  ;;  %5782 = vmatmul.bf16.vlgmr.msrb.gmra.mxu3 %v10850_v29 }
 0x8d9   : > { %5805 = vmatpush.bf16.msrb.mxu0 %v7595_v51  ;;  %v7274_v4 = vld [vmem:[#allocation13 + $0x408] sm:$0xf]  ;;  %5826 = vmatpush.bf16.msra.mxu3 %v8267_v35  ;;  %v8235_v60 = vor.u32 %v9218_v62, %v8234_v14 }
 0x8da   : > { %v8978_v42 = vld [vmem:[#allocation13 + $0x424] sm:$0xf0] }
 0x8db   : > { %v7530_v44 = vld [vmem:[#allocation13 + $0x608] sm:$0xf]  ;;  %5793 = vmatpush.bf16.msrb.mxu1 %v7307_v54  ;;  %v7275_v36 = vor.u32 %v8978_v42, %v7274_v4  ;;  %5814 = vmatpush.bf16.msrb.mxu2 %v7979_v32 }
 0x8dc   : > { %v9042_v45 = vld [vmem:[#allocation13 + $0x624] sm:$0xf0] }
 0x8dd   : > { %v7946_v52 = vld [vmem:[#allocation13 + $0x948] sm:$0xf]  ;;  %5806 = vmatpush.bf16.msrb.mxu0 %v7563_v2  ;;  %v7531_v38 = vor.u32 %v9042_v45, %v7530_v44  ;;  %5827 = vmatpush.bf16.msra.mxu3 %v8235_v60 }
 0x8de   : > { %v9146_v17 = vld [vmem:[#allocation13 + $0x964] sm:$0xf0] }
 0x8df   : > { %v8202_v46 = vld [vmem:[#allocation13 + $0xb48] sm:$0xf]  ;;  %v7947_v27 = vor.u32 %v9146_v17, %v7946_v52  ;;  %5794 = vmatpush.bf16.msrb.mxu1 %v7275_v36 }
 0x8e0   : > { %v9210_v33 = vld [vmem:[#allocation13 + $0xb64] sm:$0xf0] }
 0x8e1   : > { %v8522_v34 = vld [vmem:[#allocation13 + $0xdc8] sm:$0xf]  ;;  %v8203_v59 = vor.u32 %v9210_v33, %v8202_v46  ;;  %5807 = vmatpush.bf16.msrb.mxu0 %v7531_v38  ;;  %5815 = vmatpush.bf16.msrb.mxu2 %v7947_v27 }
 0x8e2   : > { %v9290_v10 = vld [vmem:[#allocation13 + $0xde4] sm:$0xf0]  ;;  %5795 = vmatmul.bf16.vlgmr.msrb.gmra.mxu1 %v10854_v41 }
 0x8e3   : > { %v8778_v31 = vld [vmem:[#allocation13 + $0xfc8] sm:$0xf]  ;;  %v8523_v63 = vor.u32 %v9290_v10, %v8522_v34  ;;  %5828 = vmatpush.bf16.msra.mxu3 %v8203_v59 }
 0x8e4   : > { %v9354_v7 = vld [vmem:[#allocation13 + $0xfe4] sm:$0xf0]  ;;  %5808 = vmatmul.bf16.vlgmr.msrb.gmra.mxu0 %v10856_v28 }
 0x8e5   : > { %v7914_v47 = vld [vmem:[#allocation13 + $0x908] sm:$0xf]  ;;  %v8779_v13 = vor.u32 %v9354_v7, %v8778_v31  ;;  %5839 = vmatpush.bf16.msra.mxu1 %v8523_v63  ;;  %v8902_v63 = vld [vmem:[#allocation13 + $0x1cc] sm:$0xf] }
 0x8e6   : > { %v9138_v6 = vld [vmem:[#allocation13 + $0x924] sm:$0xf0] }
 0x8e7   : > { %v8170_v61 = vld [vmem:[#allocation13 + $0xb08] sm:$0xf]  ;;  %v7915_v37 = vor.u32 %v9138_v6, %v7914_v47  ;;  %5852 = vmatpush.bf16.msra.mxu0 %v8779_v13  ;;  %v6988_v13 = vld [vmem:[#allocation13 + $0x1e8] sm:$0xf0] }
 0x8e8   : > { %v9202_v57 = vld [vmem:[#allocation13 + $0xb24] sm:$0xf0] }
 0x8e9   : > { %v8490_v5 = vld [vmem:[#allocation13 + $0xd88] sm:$0xf]  ;;  %v8171_v49 = vor.u32 %v9202_v57, %v8170_v61  ;;  %5816 = vmatpush.bf16.msrb.mxu2 %v7915_v37  ;;  %v8966_v61 = vld [vmem:[#allocation13 + $0x3cc] sm:$0xf] }
 0x8ea   : > { %v9282_v21 = vld [vmem:[#allocation13 + $0xda4] sm:$0xf0]  ;;  %v7244_v57 = vld [vmem:[#allocation13 + $0x3e8] sm:$0xf0] }
 0x8eb   : > { %v8746_v9 = vld [vmem:[#allocation13 + $0xf88] sm:$0xf]  ;;  %v8491_v30 = vor.u32 %v9282_v21, %v8490_v5  ;;  %5829 = vmatpush.bf16.msra.mxu3 %v8171_v49 }
 0x8ec   : > { %v9346_v15 = vld [vmem:[#allocation13 + $0xfa4] sm:$0xf0] }
 0x8ed   : > { %v7882_v1 = vld [vmem:[#allocation13 + $0x8c8] sm:$0xf]  ;;  %v8747_v48 = vor.u32 %v9346_v15, %v8746_v9  ;;  %5840 = vmatpush.bf16.msra.mxu1 %v8491_v30 }
 0x8ee   : > { %v9130_v43 = vld [vmem:[#allocation13 + $0x8e4] sm:$0xf0] }
 0x8ef   : > { %v8138_v24 = vld [vmem:[#allocation13 + $0xac8] sm:$0xf]  ;;  %v7883_v16 = vor.u32 %v9130_v43, %v7882_v1  ;;  %5853 = vmatpush.bf16.msra.mxu0 %v8747_v48  ;;  %v6991_v1 = vor.u32 %v8902_v63, %v6988_v13  ;;  %v7247_v43 = vor.u32 %v8966_v61, %v7244_v57  ;;  %v9014_v63 = vld [vmem:[#allocation13 + $0x54c] sm:$0xf]  ;;  %v10888_v13 = vpop.f32.mrf.mxu2  ;;  %v10890_v61 = vpop.f32.mrf.mxu3 }
 0x8f0   : > { %v9194_v53 = vld [vmem:[#allocation13 + $0xae4] sm:$0xf0]  ;;  %v7436_v57 = vld [vmem:[#allocation13 + $0x568] sm:$0xf0] }
 0x8f1   : > { %v8458_v50 = vld [vmem:[#allocation13 + $0xd48] sm:$0xf]  ;;  %v8139_v22 = vor.u32 %v9194_v53, %v8138_v24  ;;  %5817 = vmatpush.bf16.msrb.mxu2 %v7883_v16  ;;  %v8894_v24 = vld [vmem:[#allocation13 + $0x18c] sm:$0xf] }
 0x8f2   : > { %v9274_v8 = vld [vmem:[#allocation13 + $0xd64] sm:$0xf0]  ;;  %v6956_v53 = vld [vmem:[#allocation13 + $0x1a8] sm:$0xf0] }
 0x8f3   : > { %v8714_v25 = vld [vmem:[#allocation13 + $0xf48] sm:$0xf]  ;;  %v8459_v0 = vor.u32 %v9274_v8, %v8458_v50  ;;  %5830 = vmatpush.bf16.msra.mxu3 %v8139_v22  ;;  %v8958_v50 = vld [vmem:[#allocation13 + $0x38c] sm:$0xf] }
 0x8f4   : > { %v9338_v23 = vld [vmem:[#allocation13 + $0xf64] sm:$0xf0]  ;;  %v7212_v8 = vld [vmem:[#allocation13 + $0x3a8] sm:$0xf0] }
 0x8f5   : > { %v7850_v18 = vld [vmem:[#allocation13 + $0x888] sm:$0xf]  ;;  %v8715_v19 = vor.u32 %v9338_v23, %v8714_v25  ;;  %5841 = vmatpush.bf16.msra.mxu1 %v8459_v0  ;;  %v7215_v0 = vor.u32 %v8958_v50, %v7212_v8  ;;  %v9006_v50 = vld [vmem:[#allocation13 + $0x50c] sm:$0xf] }
 0x8f6   : > { %v9122_v51 = vld [vmem:[#allocation13 + $0x8a4] sm:$0xf0]  ;;  %v7404_v8 = vld [vmem:[#allocation13 + $0x528] sm:$0xf0] }
 0x8f7   : > { %v8106_v55 = vld [vmem:[#allocation13 + $0xa88] sm:$0xf]  ;;  %v7851_v14 = vor.u32 %v9122_v51, %v7850_v18  ;;  %5854 = vmatpush.bf16.msra.mxu0 %v8715_v19  ;;  %v6959_v51 = vor.u32 %v8894_v24, %v6956_v53  ;;  %v8926_v24 = vld [vmem:[#allocation13 + $0x28c] sm:$0xf] }
 0x8f8   : > { %v9186_v35 = vld [vmem:[#allocation13 + $0xaa4] sm:$0xf0]  ;;  %v7084_v53 = vld [vmem:[#allocation13 + $0x2a8] sm:$0xf0] }
 0x8f9   : > { %v8426_v3 = vld [vmem:[#allocation13 + $0xd08] sm:$0xf]  ;;  %v8107_v62 = vor.u32 %v9186_v35, %v8106_v55  ;;  %5818 = vmatpush.bf16.msrb.mxu2 %v7851_v14  ;;  %v8886_v55 = vld [vmem:[#allocation13 + $0x14c] sm:$0xf] }
 0x8fa   : > { %v9266_v26 = vld [vmem:[#allocation13 + $0xd24] sm:$0xf0]  ;;  %v6924_v35 = vld [vmem:[#allocation13 + $0x168] sm:$0xf0] }
 0x8fb   : > { %v8682_v40 = vld [vmem:[#allocation13 + $0xf08] sm:$0xf]  ;;  %v8427_v4 = vor.u32 %v9266_v26, %v8426_v3  ;;  %5831 = vmatpush.bf16.msra.mxu3 %v8107_v62  ;;  %v8950_v3 = vld [vmem:[#allocation13 + $0x34c] sm:$0xf] }
 0x8fc   : > { %v9330_v20 = vld [vmem:[#allocation13 + $0xf24] sm:$0xf0]  ;;  %v7180_v26 = vld [vmem:[#allocation13 + $0x368] sm:$0xf0] }
 0x8fd   : > { %v7818_v54 = vld [vmem:[#allocation13 + $0x848] sm:$0xf]  ;;  %v8683_v42 = vor.u32 %v9330_v20, %v8682_v40  ;;  %5842 = vmatpush.bf16.msra.mxu1 %v8427_v4  ;;  %v9030_v40 = vld [vmem:[#allocation13 + $0x5cc] sm:$0xf]  ;;  %v6927_v4 = vor.u32 %v8886_v55, %v6924_v35 }
 0x8fe   : > { %v9114_v2 = vld [vmem:[#allocation13 + $0x864] sm:$0xf0]  ;;  %v7500_v20 = vld [vmem:[#allocation13 + $0x5e8] sm:$0xf0] }
 0x8ff   : > { %v8074_v44 = vld [vmem:[#allocation13 + $0xa48] sm:$0xf]  ;;  %v7819_v46 = vor.u32 %v9114_v2, %v7818_v54  ;;  %5855 = vmatpush.bf16.msra.mxu0 %v8683_v42  ;;  %v9094_v14 = vld [vmem:[#allocation13 + $0x7cc] sm:$0xf]  ;;  %v7183_v42 = vor.u32 %v8950_v3, %v7180_v26  ;;  %v5564_v26 = vpop.f32.mrf.mxu2 }
 0x900   : > { %v9178_v32 = vld [vmem:[#allocation13 + $0xa64] sm:$0xf0]  ;;  %v7756_v62 = vld [vmem:[#allocation13 + $0x7e8] sm:$0xf0] }
 0x901   : > { %v8394_v60 = vld [vmem:[#allocation13 + $0xcc8] sm:$0xf]  ;;  %v8075_v33 = vor.u32 %v9178_v32, %v8074_v44  ;;  %5819 = vmatpush.bf16.msrb.mxu2 %v7819_v46  ;;  %v8878_v44 = vld [vmem:[#allocation13 + $0x10c] sm:$0xf] }
 0x902   : > { %v9258_v45 = vld [vmem:[#allocation13 + $0xce4] sm:$0xf0]  ;;  %v6892_v32 = vld [vmem:[#allocation13 + $0x128] sm:$0xf0] }
 0x903   : > { %v8650_v52 = vld [vmem:[#allocation13 + $0xec8] sm:$0xf]  ;;  %v8395_v7 = vor.u32 %v9258_v45, %v8394_v60  ;;  %5832 = vmatpush.bf16.msra.mxu3 %v8075_v33  ;;  %v7503_v60 = vor.u32 %v9030_v40, %v7500_v20  ;;  %v7759_v45 = vor.u32 %v9094_v14, %v7756_v62  ;;  %v9022_v46 = vld [vmem:[#allocation13 + $0x58c] sm:$0xf]  ;;  %v5577_v40 = vpop.f32.mrf.mxu3 }
 0x904   : > { %v9322_v17 = vld [vmem:[#allocation13 + $0xee4] sm:$0xf0]  ;;  %v7468_v33 = vld [vmem:[#allocation13 + $0x5a8] sm:$0xf0] }
 0x905   : > { %v7786_v34 = vld [vmem:[#allocation13 + $0x808] sm:$0xf]  ;;  %v8651_v36 = vor.u32 %v9322_v17, %v8650_v52  ;;  %5843 = vmatpush.bf16.msra.mxu1 %v8395_v7  ;;  %v8942_v52 = vld [vmem:[#allocation13 + $0x30c] sm:$0xf] }
 0x906   : > { %v9106_v10 = vld [vmem:[#allocation13 + $0x824] sm:$0xf0]  ;;  %v7148_v17 = vld [vmem:[#allocation13 + $0x328] sm:$0xf0] }
 0x907   : > { %v8042_v31 = vld [vmem:[#allocation13 + $0xa08] sm:$0xf]  ;;  %v7787_v5 = vor.u32 %v9106_v10, %v7786_v34  ;;  %5856 = vmatpush.bf16.msra.mxu0 %v8651_v36  ;;  %v9086_v34 = vld [vmem:[#allocation13 + $0x78c] sm:$0xf]  ;;  %v7151_v7 = vor.u32 %v8942_v52, %v7148_v17 }
 0x908   : > { %v9170_v38 = vld [vmem:[#allocation13 + $0xa24] sm:$0xf0]  ;;  %v7724_v10 = vld [vmem:[#allocation13 + $0x7a8] sm:$0xf0] }
 0x909   : > { %v8362_v27 = vld [vmem:[#allocation13 + $0xc88] sm:$0xf]  ;;  %v8043_v21 = vor.u32 %v9170_v38, %v8042_v31  ;;  %5820 = vmatpush.bf16.msrb.mxu2 %v7787_v5  ;;  %v6895_v31 = vor.u32 %v8878_v44, %v6892_v32  ;;  %v8870_v36 = vld [vmem:[#allocation13 + $0xcc] sm:$0xf] }
 0x90a   : > { %v9250_v59 = vld [vmem:[#allocation13 + $0xca4] sm:$0xf0]  ;;  %v6860_v38 = vld [vmem:[#allocation13 + $0xe8] sm:$0xf0] }
 0x90b   : > { %v8618_v47 = vld [vmem:[#allocation13 + $0xe88] sm:$0xf]  ;;  %v8363_v9 = vor.u32 %v9250_v59, %v8362_v27  ;;  %5833 = vmatpush.bf16.msra.mxu3 %v8043_v21  ;;  %v7471_v27 = vor.u32 %v9022_v46, %v7468_v33  ;;  %v7727_v59 = vor.u32 %v9086_v34, %v7724_v10  ;;  %v9078_v5 = vld [vmem:[#allocation13 + $0x74c] sm:$0xf] }
 0x90c   : > { %v9314_v6 = vld [vmem:[#allocation13 + $0xea4] sm:$0xf0]  ;;  %5821 = vmatmul.bf16.vlgmr.msrb.gmra.mxu2 %v10860_v39  ;;  %v7692_v21 = vld [vmem:[#allocation13 + $0x768] sm:$0xf0] }
 0x90d   : > { %v8619_v15 = vor.u32 %v9314_v6, %v8618_v47  ;;  %v8330_v37 = vld [vmem:[#allocation13 + $0xc48] sm:$0xf]  ;;  %5844 = vmatpush.bf16.msra.mxu1 %v8363_v9  ;;  %5865 = vmatpush.bf16.msra.mxu2 %v6991_v1  ;;  %v8934_v47 = vld [vmem:[#allocation13 + $0x2cc] sm:$0xf]  ;;  %v6863_v9 = vor.u32 %v8870_v36, %v6860_v38 }
 0x90e   : > { %v9242_v49 = vld [vmem:[#allocation13 + $0xc64] sm:$0xf0]  ;;  %5834 = vmatmul.bf16.vlgmr.msra.gmra.mxu3 %v10862_v56  ;;  %v7116_v6 = vld [vmem:[#allocation13 + $0x2e8] sm:$0xf0] }
 0x90f   : > { %v8586_v30 = vld [vmem:[#allocation13 + $0xe48] sm:$0xf]  ;;  %5857 = vmatpush.bf16.msra.mxu0 %v8619_v15  ;;  %v8331_v25 = vor.u32 %v9242_v49, %v8330_v37  ;;  %5878 = vmatpush.bf16.msrb.mxu3 %v7247_v43  ;;  %v7119_v15 = vor.u32 %v8934_v47, %v7116_v6  ;;  %v10892_v37 = vpop.f32.mrf.mxu1  ;;  %v10894_v49 = vpop.f32.mrf.mxu0  ;;  %v8862_v1 = vld [vmem:[#allocation13 + $0x8c] sm:$0xf] }
 0x910   : > { %v9306_v48 = vld [vmem:[#allocation13 + $0xe64] sm:$0xf0]  ;;  %v6828_v43 = vld [vmem:[#allocation13 + $0xa8] sm:$0xf0] }
 0x911   : > { %v8587_v23 = vor.u32 %v9306_v48, %v8586_v30  ;;  %v8298_v16 = vld [vmem:[#allocation13 + $0xc08] sm:$0xf]  ;;  %5845 = vmatpush.bf16.msra.mxu1 %v8331_v25  ;;  %5866 = vmatpush.bf16.msra.mxu2 %v6959_v51  ;;  %v7439_v30 = vor.u32 %v9014_v63, %v7436_v57  ;;  %v7695_v48 = vor.u32 %v9078_v5, %v7692_v21  ;;  %v9070_v25 = vld [vmem:[#allocation13 + $0x70c] sm:$0xf] }
 0x912   : > { %v9234_v22 = vld [vmem:[#allocation13 + $0xc24] sm:$0xf0]  ;;  %v6796_v51 = vld [vmem:[#allocation13 + $0x68] sm:$0xf0] }
 0x913   : > { %v8554_v18 = vld [vmem:[#allocation13 + $0xe08] sm:$0xf]  ;;  %5858 = vmatpush.bf16.msra.mxu0 %v8587_v23  ;;  %v8299_v54 = vor.u32 %v9234_v22, %v8298_v16  ;;  %5879 = vmatpush.bf16.msrb.mxu3 %v7215_v0  ;;  %v7660_v23 = vld [vmem:[#allocation13 + $0x728] sm:$0xf0]  ;;  %v6831_v16 = vor.u32 %v8862_v1, %v6828_v43  ;;  %v7087_v22 = vor.u32 %v8926_v24, %v7084_v53 }
 0x914   : > { %v9298_v19 = vld [vmem:[#allocation13 + $0xe24] sm:$0xf0]  ;;  %v7407_v0 = vor.u32 %v9006_v50, %v7404_v8  ;;  %v8918_v55 = vld [vmem:[#allocation13 + $0x24c] sm:$0xf] }
 0x915   : > { %v8555_v2 = vor.u32 %v9298_v19, %v8554_v18  ;;  %5846 = vmatpush.bf16.msra.mxu1 %v8299_v54  ;;  %5867 = vmatpush.bf16.msra.mxu2 %v6927_v4  ;;  %v8854_v18 = vld [vmem:[#allocation13 + $0x4c] sm:$0xf]  ;;  %v7663_v19 = vor.u32 %v9070_v25, %v7660_v23 }
 0x916   : > { %v7052_v35 = vld [vmem:[#allocation13 + $0x268] sm:$0xf0]  ;;  %v6799_v54 = vor.u32 %v8854_v18, %v6796_v51 }
 0x917   : > { %5859 = vmatpush.bf16.msra.mxu0 %v8555_v2  ;;  %5880 = vmatpush.bf16.msrb.mxu3 %v7183_v42  ;;  %v8998_v3 = vld [vmem:[#allocation13 + $0x4cc] sm:$0xf]  ;;  %v7055_v2 = vor.u32 %v8918_v55, %v7052_v35  ;;  %v5590_v4 = vpop.f32.mrf.mxu1  ;;  %v5603_v42 = vpop.f32.mrf.mxu0 }
 0x918   : > { %5847 = vmatmul.bf16.vlgmr.msra.gmra.mxu1 %v10866_v58  ;;  %v7372_v20 = vld [vmem:[#allocation13 + $0x4e8] sm:$0xf0] }
 0x919   : > { %5891 = vmatpush.bf16.msrb.mxu1 %v7503_v60  ;;  %5868 = vmatpush.bf16.msra.mxu2 %v6895_v31  ;;  %v9062_v14 = vld [vmem:[#allocation13 + $0x6cc] sm:$0xf] }
 0x91a   : > { %5860 = vmatmul.bf16.vlgmr.msra.gmra.mxu0 %v10868_v12  ;;  %v7628_v62 = vld [vmem:[#allocation13 + $0x6e8] sm:$0xf0] }
 0x91b   : > { %5904 = vmatpush.bf16.msrb.mxu0 %v7759_v45  ;;  %5881 = vmatpush.bf16.msrb.mxu3 %v7151_v7  ;;  %v8846_v44 = vld [vmem:[#allocation13 + $0xc] sm:$0xf]  ;;  %v7375_v45 = vor.u32 %v8998_v3, %v7372_v20  ;;  %v7631_v52 = vor.u32 %v9062_v14, %v7628_v62 }
 0x91c   : > { %v6764_v32 = vld [vmem:[#allocation13 + $0x28] sm:$0xf0] }
 0x91d   : > { %5892 = vmatpush.bf16.msrb.mxu1 %v7471_v27  ;;  %5869 = vmatpush.bf16.msra.mxu2 %v6863_v9  ;;  %v8910_v60 = vld [vmem:[#allocation13 + $0x20c] sm:$0xf]  ;;  %v6767_v27 = vor.u32 %v8846_v44, %v6764_v32  ;;  %v10896_v9 = vpop.f32.mrf.mxu2 }
 0x91e   : > { %v7020_v17 = vld [vmem:[#allocation13 + $0x228] sm:$0xf0] }
 0x91f   : > { %5905 = vmatpush.bf16.msrb.mxu0 %v7727_v59  ;;  %5882 = vmatpush.bf16.msrb.mxu3 %v7119_v15  ;;  %v8990_v46 = vld [vmem:[#allocation13 + $0x48c] sm:$0xf]  ;;  %v7023_v59 = vor.u32 %v8910_v60, %v7020_v17  ;;  %v10898_v15 = vpop.f32.mrf.mxu3  ;;  %v10900_v50 = vpop.f32.mrf.mxu1 }
 0x920   : > { %v7340_v33 = vld [vmem:[#allocation13 + $0x4a8] sm:$0xf0]  ;;  %v10902_v8 = vpop.f32.mrf.mxu0 }
 0x921   : > { %5893 = vmatpush.bf16.msrb.mxu1 %v7439_v30  ;;  %5870 = vmatpush.bf16.msra.mxu2 %v6831_v16  ;;  %v9054_v34 = vld [vmem:[#allocation13 + $0x68c] sm:$0xf]  ;;  %v7343_v47 = vor.u32 %v8990_v46, %v7340_v33 }
 0x922   : > { %v7596_v10 = vld [vmem:[#allocation13 + $0x6a8] sm:$0xf0] }
 0x923   : > { %5906 = vmatpush.bf16.msrb.mxu0 %v7695_v48  ;;  %5883 = vmatpush.bf16.msrb.mxu3 %v7087_v22  ;;  %v9158_v31 = vld [vmem:[#allocation13 + $0x9cc] sm:$0xf]  ;;  %v7599_v6 = vor.u32 %v9054_v34, %v7596_v10 }
 0x924   : > { %v8012_v7 = vld [vmem:[#allocation13 + $0x9e8] sm:$0xf0] }
 0x925   : > { %5894 = vmatpush.bf16.msrb.mxu1 %v7407_v0  ;;  %v9222_v36 = vld [vmem:[#allocation13 + $0xbcc] sm:$0xf]  ;;  %5871 = vmatpush.bf16.msra.mxu2 %v6799_v54  ;;  %v8015_v5 = vor.u32 %v9158_v31, %v8012_v7  ;;  %v5616_v44 = vpop.f32.mrf.mxu2 }
 0x926   : > { %v8268_v38 = vld [vmem:[#allocation13 + $0xbe8] sm:$0xf0] }
 0x927   : > { %5907 = vmatpush.bf16.msrb.mxu0 %v7663_v19  ;;  %5884 = vmatpush.bf16.msrb.mxu3 %v7055_v2  ;;  %v8982_v63 = vld [vmem:[#allocation13 + $0x44c] sm:$0xf]  ;;  %v8271_v21 = vor.u32 %v9222_v36, %v8268_v38  ;;  %v5629_v32 = vpop.f32.mrf.mxu3  ;;  %v5642_v10 = vpop.f32.mrf.mxu1 }
 0x928   : > { %v7308_v57 = vld [vmem:[#allocation13 + $0x468] sm:$0xf0]  ;;  %v5655_v31 = vpop.f32.mrf.mxu0 }
 0x929   : > { %5895 = vmatpush.bf16.msrb.mxu1 %v7375_v45  ;;  %v9046_v1 = vld [vmem:[#allocation13 + $0x64c] sm:$0xf]  ;;  %5872 = vmatpush.bf16.msra.mxu2 %v6767_v27  ;;  %v7311_v25 = vor.u32 %v8982_v63, %v7308_v57 }
 0x92a   : > { %v7564_v43 = vld [vmem:[#allocation13 + $0x668] sm:$0xf0] }
 0x92b   : > { %5908 = vmatpush.bf16.msrb.mxu0 %v7631_v52  ;;  %v9150_v30 = vld [vmem:[#allocation13 + $0x98c] sm:$0xf]  ;;  %5885 = vmatpush.bf16.msrb.mxu3 %v7023_v59  ;;  %v7567_v23 = vor.u32 %v9046_v1, %v7564_v43 }
 0x92c   : > { %v7980_v48 = vld [vmem:[#allocation13 + $0x9a8] sm:$0xf0]  ;;  %5873 = vmatmul.bf16.vlgmr.msra.gmra.mxu2 %v10848_v11 }
 0x92d   : > { %v9214_v24 = vld [vmem:[#allocation13 + $0xb8c] sm:$0xf]  ;;  %5896 = vmatpush.bf16.msrb.mxu1 %v7343_v47  ;;  %5917 = vmatpush.bf16.msrb.mxu2 %v8015_v5  ;;  %v7983_v51 = vor.u32 %v9150_v30, %v7980_v48 }
 0x92e   : > { %v8236_v53 = vld [vmem:[#allocation13 + $0xba8] sm:$0xf0]  ;;  %5886 = vmatmul.bf16.vlgmr.msrb.gmra.mxu3 %v10850_v29 }
 0x92f   : > { %5909 = vmatpush.bf16.msrb.mxu0 %v7599_v6  ;;  %v8974_v16 = vld [vmem:[#allocation13 + $0x40c] sm:$0xf]  ;;  %5930 = vmatpush.bf16.msra.mxu3 %v8271_v21  ;;  %v8239_v0 = vor.u32 %v9214_v24, %v8236_v53 }
 0x930   : > { %v7276_v22 = vld [vmem:[#allocation13 + $0x428] sm:$0xf0] }
 0x931   : > { %v9038_v18 = vld [vmem:[#allocation13 + $0x60c] sm:$0xf]  ;;  %5897 = vmatpush.bf16.msrb.mxu1 %v7311_v25  ;;  %v7279_v54 = vor.u32 %v8974_v16, %v7276_v22  ;;  %5918 = vmatpush.bf16.msrb.mxu2 %v7983_v51  ;;  %v10908_v25 = vpop.f32.mrf.mxu2 }
 0x932   : > { %v7532_v19 = vld [vmem:[#allocation13 + $0x628] sm:$0xf0] }
 0x933   : > { %v9142_v55 = vld [vmem:[#allocation13 + $0x94c] sm:$0xf]  ;;  %5910 = vmatpush.bf16.msrb.mxu0 %v7567_v23  ;;  %v7535_v2 = vor.u32 %v9038_v18, %v7532_v19  ;;  %5931 = vmatpush.bf16.msra.mxu3 %v8239_v0  ;;  %v10910_v23 = vpop.f32.mrf.mxu3 }
 0x934   : > { %v7948_v35 = vld [vmem:[#allocation13 + $0x968] sm:$0xf0] }
 0x935   : > { %v9206_v3 = vld [vmem:[#allocation13 + $0xb4c] sm:$0xf]  ;;  %v7951_v4 = vor.u32 %v9142_v55, %v7948_v35  ;;  %5898 = vmatpush.bf16.msrb.mxu1 %v7279_v54 }
 0x936   : > { %v8204_v26 = vld [vmem:[#allocation13 + $0xb68] sm:$0xf0] }
 0x937   : > { %v9286_v40 = vld [vmem:[#allocation13 + $0xdcc] sm:$0xf]  ;;  %v8207_v42 = vor.u32 %v9206_v3, %v8204_v26  ;;  %5911 = vmatpush.bf16.msrb.mxu0 %v7535_v2  ;;  %5919 = vmatpush.bf16.msrb.mxu2 %v7951_v4 }
 0x938   : > { %v8524_v20 = vld [vmem:[#allocation13 + $0xde8] sm:$0xf0]  ;;  %5899 = vmatmul.bf16.vlgmr.msrb.gmra.mxu1 %v10854_v41 }
 0x939   : > { %v9350_v14 = vld [vmem:[#allocation13 + $0xfcc] sm:$0xf]  ;;  %v8527_v52 = vor.u32 %v9286_v40, %v8524_v20  ;;  %5932 = vmatpush.bf16.msra.mxu3 %v8207_v42  ;;  %v10912_v40 = vpop.f32.mrf.mxu1  ;;  %v10914_v20 = vpop.f32.mrf.mxu0 }
 0x93a   : > { %v8780_v62 = vld [vmem:[#allocation13 + $0xfe8] sm:$0xf0]  ;;  %5912 = vmatmul.bf16.vlgmr.msrb.gmra.mxu0 %v10856_v28 }
 0x93b   : > { %v9134_v60 = vld [vmem:[#allocation13 + $0x90c] sm:$0xf]  ;;  %v8783_v17 = vor.u32 %v9350_v14, %v8780_v62  ;;  %5943 = vmatpush.bf16.msra.mxu1 %v8527_v52  ;;  %v5681_v10 = vpop.f32.mrf.mxu3 }
 0x93c   : > { %v7916_v45 = vld [vmem:[#allocation13 + $0x928] sm:$0xf0]  ;;  %v9035_v10 = vld [vmem:[#allocation13 + $0x5ec] sm:$0xf0] }
 0x93d   : > { %v9198_v46 = vld [vmem:[#allocation13 + $0xb0c] sm:$0xf]  ;;  %v7919_v27 = vor.u32 %v9134_v60, %v7916_v45  ;;  %5956 = vmatpush.bf16.msra.mxu0 %v8783_v17 }
 0x93e   : > { %v8172_v33 = vld [vmem:[#allocation13 + $0xb28] sm:$0xf0] }
 0x93f   : > { %v9278_v34 = vld [vmem:[#allocation13 + $0xd8c] sm:$0xf]  ;;  %v8175_v59 = vor.u32 %v9198_v46, %v8172_v33  ;;  %5920 = vmatpush.bf16.msrb.mxu2 %v7919_v27 }
 0x940   : > { %v8492_v7 = vld [vmem:[#allocation13 + $0xda8] sm:$0xf0] }
 0x941   : > { %v9342_v36 = vld [vmem:[#allocation13 + $0xf8c] sm:$0xf]  ;;  %v8495_v63 = vor.u32 %v9278_v34, %v8492_v7  ;;  %5933 = vmatpush.bf16.msra.mxu3 %v8175_v59  ;;  %v5668_v34 = vpop.f32.mrf.mxu2 }
 0x942   : > { %v8748_v38 = vld [vmem:[#allocation13 + $0xfa8] sm:$0xf0] }
 0x943   : > { %v9126_v47 = vld [vmem:[#allocation13 + $0x8cc] sm:$0xf]  ;;  %v8751_v57 = vor.u32 %v9342_v36, %v8748_v38  ;;  %5944 = vmatpush.bf16.msra.mxu1 %v8495_v63 }
 0x944   : > { %v7884_v6 = vld [vmem:[#allocation13 + $0x8e8] sm:$0xf0] }
 0x945   : > { %v9190_v5 = vld [vmem:[#allocation13 + $0xacc] sm:$0xf]  ;;  %v7887_v24 = vor.u32 %v9126_v47, %v7884_v6  ;;  %5957 = vmatpush.bf16.msra.mxu0 %v8751_v57 }
 0x946   : > { %v8140_v21 = vld [vmem:[#allocation13 + $0xae8] sm:$0xf0] }
 0x947   : > { %v9270_v1 = vld [vmem:[#allocation13 + $0xd4c] sm:$0xf]  ;;  %v8143_v53 = vor.u32 %v9190_v5, %v8140_v21  ;;  %5921 = vmatpush.bf16.msrb.mxu2 %v7887_v24  ;;  %v6994_v5 = vld [vmem:[#allocation13 + $0x1d0] sm:$0xf]  ;;  %v5694_v21 = vpop.f32.mrf.mxu1 }
 0x948   : > { %v8460_v43 = vld [vmem:[#allocation13 + $0xd68] sm:$0xf0]  ;;  %v7154_v21 = vld [vmem:[#allocation13 + $0x310] sm:$0xf] }
 0x949   : > { %v9334_v30 = vld [vmem:[#allocation13 + $0xf4c] sm:$0xf]  ;;  %v8463_v18 = vor.u32 %v9270_v1, %v8460_v43  ;;  %5934 = vmatpush.bf16.msra.mxu3 %v8143_v53  ;;  %v5707_v1 = vpop.f32.mrf.mxu0  ;;  %v8907_v43 = vld [vmem:[#allocation13 + $0x1ec] sm:$0xf0] }
 0x94a   : > { %v8716_v48 = vld [vmem:[#allocation13 + $0xf68] sm:$0xf0]  ;;  %v7474_v1 = vld [vmem:[#allocation13 + $0x590] sm:$0xf] }
 0x94b   : > { %v9118_v16 = vld [vmem:[#allocation13 + $0x88c] sm:$0xf]  ;;  %v8719_v51 = vor.u32 %v9334_v30, %v8716_v48  ;;  %5945 = vmatpush.bf16.msra.mxu1 %v8463_v18  ;;  %v7250_v30 = vld [vmem:[#allocation13 + $0x3d0] sm:$0xf] }
 0x94c   : > { %v7852_v22 = vld [vmem:[#allocation13 + $0x8a8] sm:$0xf0]  ;;  %v8971_v48 = vld [vmem:[#allocation13 + $0x3ec] sm:$0xf0] }
 0x94d   : > { %v9182_v0 = vld [vmem:[#allocation13 + $0xa8c] sm:$0xf]  ;;  %v7855_v14 = vor.u32 %v9118_v16, %v7852_v22  ;;  %5958 = vmatpush.bf16.msra.mxu0 %v8719_v51 }
 0x94e   : > { %v8108_v19 = vld [vmem:[#allocation13 + $0xaa8] sm:$0xf0] }
 0x94f   : > { %v9262_v55 = vld [vmem:[#allocation13 + $0xd0c] sm:$0xf]  ;;  %v8111_v62 = vor.u32 %v9182_v0, %v8108_v19  ;;  %5922 = vmatpush.bf16.msrb.mxu2 %v7855_v14  ;;  %v6995_v0 = vor.u32 %v8907_v43, %v6994_v5  ;;  %v7251_v19 = vor.u32 %v8971_v48, %v7250_v30  ;;  %v7218_v14 = vld [vmem:[#allocation13 + $0x390] sm:$0xf] }
 0x950   : > { %v8428_v35 = vld [vmem:[#allocation13 + $0xd28] sm:$0xf0]  ;;  %v9027_v30 = vld [vmem:[#allocation13 + $0x5ac] sm:$0xf0] }
 0x951   : > { %v9326_v3 = vld [vmem:[#allocation13 + $0xf0c] sm:$0xf]  ;;  %v8431_v4 = vor.u32 %v9262_v55, %v8428_v35  ;;  %5935 = vmatpush.bf16.msra.mxu3 %v8111_v62  ;;  %v8963_v62 = vld [vmem:[#allocation13 + $0x3ac] sm:$0xf0] }
 0x952   : > { %v8684_v26 = vld [vmem:[#allocation13 + $0xf28] sm:$0xf0]  ;;  %v7730_v48 = vld [vmem:[#allocation13 + $0x790] sm:$0xf] }
 0x953   : > { %v9110_v54 = vld [vmem:[#allocation13 + $0x84c] sm:$0xf]  ;;  %v8687_v42 = vor.u32 %v9326_v3, %v8684_v26  ;;  %5946 = vmatpush.bf16.msra.mxu1 %v8431_v4  ;;  %v6962_v3 = vld [vmem:[#allocation13 + $0x190] sm:$0xf] }
 0x954   : > { %v7820_v2 = vld [vmem:[#allocation13 + $0x868] sm:$0xf0]  ;;  %v8899_v26 = vld [vmem:[#allocation13 + $0x1ac] sm:$0xf0] }
 0x955   : > { %v9174_v44 = vld [vmem:[#allocation13 + $0xa4c] sm:$0xf]  ;;  %v7823_v46 = vor.u32 %v9110_v54, %v7820_v2  ;;  %5959 = vmatpush.bf16.msra.mxu0 %v8687_v42  ;;  %v5576_v54 = vadd.f32 %v10890_v61, %v10888_v13  ;;  %v7186_v13 = vld [vmem:[#allocation13 + $0x350] sm:$0xf] }
 0x956   : > { %v8076_v32 = vld [vmem:[#allocation13 + $0xa68] sm:$0xf0]  ;;  %v8955_v61 = vld [vmem:[#allocation13 + $0x36c] sm:$0xf0] }
 0x957   : > { %v9254_v60 = vld [vmem:[#allocation13 + $0xccc] sm:$0xf]  ;;  %v8079_v33 = vor.u32 %v9174_v44, %v8076_v32  ;;  %5923 = vmatpush.bf16.msrb.mxu2 %v7823_v46  ;;  %v8891_v46 = vld [vmem:[#allocation13 + $0x16c] sm:$0xf0]  ;;  %v5589_v34 = vadd.f32 %v10892_v37, %v5576_v54  ;;  %v5718_v54 = vpop.f32.mrf.mxu2 }
 0x958   : > { %v8396_v45 = vld [vmem:[#allocation13 + $0xce8] sm:$0xf0]  ;;  %v8947_v37 = vld [vmem:[#allocation13 + $0x32c] sm:$0xf0] }
 0x959   : > { %v9318_v52 = vld [vmem:[#allocation13 + $0xecc] sm:$0xf]  ;;  %v8399_v38 = vor.u32 %v9254_v60, %v8396_v45  ;;  %5936 = vmatpush.bf16.msra.mxu3 %v8079_v33  ;;  %v6963_v60 = vor.u32 %v8899_v26, %v6962_v3  ;;  %v7219_v45 = vor.u32 %v8963_v62, %v7218_v14  ;;  %v7506_v33 = vld [vmem:[#allocation13 + $0x5d0] sm:$0xf]  ;;  %v5602_v43 = vadd.f32 %v10894_v49, %v5589_v34 }
 0x95a   : > { %v8652_v17 = vld [vmem:[#allocation13 + $0xee8] sm:$0xf0]  ;;  %v7122_v49 = vld [vmem:[#allocation13 + $0x2d0] sm:$0xf] }
 0x95b   : > { %v9102_v31 = vld [vmem:[#allocation13 + $0x80c] sm:$0xf]  ;;  %v8655_v27 = vor.u32 %v9318_v52, %v8652_v17  ;;  %5947 = vmatpush.bf16.msra.mxu1 %v8399_v38  ;;  %v6930_v17 = vld [vmem:[#allocation13 + $0x150] sm:$0xf] }
 0x95c   : > { %v7788_v7 = vld [vmem:[#allocation13 + $0x828] sm:$0xf0] }
 0x95d   : > { %v9166_v36 = vld [vmem:[#allocation13 + $0xa0c] sm:$0xf]  ;;  %v7791_v24 = vor.u32 %v9102_v31, %v7788_v7  ;;  %5960 = vmatpush.bf16.msra.mxu0 %v8655_v27  ;;  %v7762_v31 = vld [vmem:[#allocation13 + $0x7d0] sm:$0xf] }
 0x95e   : > { %v8044_v59 = vld [vmem:[#allocation13 + $0xa28] sm:$0xf0]  ;;  %v9099_v7 = vld [vmem:[#allocation13 + $0x7ec] sm:$0xf0] }
 0x95f   : > { %v9246_v47 = vld [vmem:[#allocation13 + $0xc8c] sm:$0xf]  ;;  %v8047_v53 = vor.u32 %v9166_v36, %v8044_v59  ;;  %5924 = vmatpush.bf16.msrb.mxu2 %v7791_v24  ;;  %v5680_v36 = vadd.f32 %v10910_v23, %v10908_v25  ;;  %v6931_v59 = vor.u32 %v8891_v46, %v6930_v17  ;;  %v7763_v5 = vor.u32 %v9099_v7, %v7762_v31  ;;  %v9091_v25 = vld [vmem:[#allocation13 + $0x7ac] sm:$0xf0] }
 0x960   : > { %v8364_v6 = vld [vmem:[#allocation13 + $0xca8] sm:$0xf0]  ;;  %v5615_v24 = vadd.f32 %v10896_v9, %v5602_v43  ;;  %v9083_v9 = vld [vmem:[#allocation13 + $0x76c] sm:$0xf0] }
 0x961   : > { %v9310_v63 = vld [vmem:[#allocation13 + $0xe8c] sm:$0xf]  ;;  %v8367_v16 = vor.u32 %v9246_v47, %v8364_v6  ;;  %5937 = vmatpush.bf16.msra.mxu3 %v8047_v53  ;;  %v7187_v47 = vor.u32 %v8955_v61, %v7186_v13  ;;  %v6898_v6 = vld [vmem:[#allocation13 + $0x110] sm:$0xf]  ;;  %v5693_v23 = vadd.f32 %v10912_v40, %v5680_v36  ;;  %v5744_v61 = vpop.f32.mrf.mxu1 }
 0x962   : > { %v8620_v57 = vld [vmem:[#allocation13 + $0xea8] sm:$0xf0]  ;;  %5925 = vmatmul.bf16.vlgmr.msrb.gmra.mxu2 %v10860_v39  ;;  %v9019_v40 = vld [vmem:[#allocation13 + $0x56c] sm:$0xf0]  ;;  %v5628_v26 = vadd.f32 %v10898_v15, %v5615_v24 }
 0x963   : > { %v8623_v22 = vor.u32 %v9310_v63, %v8620_v57  ;;  %v9238_v18 = vld [vmem:[#allocation13 + $0xc4c] sm:$0xf]  ;;  %5948 = vmatpush.bf16.msra.mxu1 %v8367_v16  ;;  %5969 = vmatpush.bf16.msra.mxu2 %v6995_v0  ;;  %v8883_v63 = vld [vmem:[#allocation13 + $0x12c] sm:$0xf0]  ;;  %v7507_v57 = vor.u32 %v9035_v10, %v7506_v33  ;;  %v7155_v16 = vor.u32 %v8947_v37, %v7154_v21  ;;  %v5757_v33 = vpop.f32.mrf.mxu0 }
 0x964   : > { %v8332_v51 = vld [vmem:[#allocation13 + $0xc68] sm:$0xf0]  ;;  %5938 = vmatmul.bf16.vlgmr.msra.gmra.mxu3 %v10862_v56  ;;  %v6899_v53 = vor.u32 %v8883_v63, %v6898_v6  ;;  %v7731_v0 = vor.u32 %v9091_v25, %v7730_v48  ;;  %v5706_v3 = vadd.f32 %v10914_v20, %v5693_v23  ;;  %v7410_v17 = vld [vmem:[#allocation13 + $0x510] sm:$0xf]  ;;  %v5641_v34 = vadd.f32 %v10900_v50, %v5628_v26 }
 0x965   : > { %v9302_v55 = vld [vmem:[#allocation13 + $0xe4c] sm:$0xf]  ;;  %5961 = vmatpush.bf16.msra.mxu0 %v8623_v22  ;;  %v8335_v2 = vor.u32 %v9238_v18, %v8332_v51  ;;  %5982 = vmatpush.bf16.msrb.mxu3 %v7251_v19  ;;  %v6866_v22 = vld [vmem:[#allocation13 + $0xd0] sm:$0xf]  ;;  %v7475_v51 = vor.u32 %v9027_v30, %v7474_v1  ;;  %v5720_v30 = vpop.f32.mrf.mxu2 }
 0x966   : > { %v8588_v35 = vld [vmem:[#allocation13 + $0xe68] sm:$0xf0]  ;;  %v8875_v18 = vld [vmem:[#allocation13 + $0xec] sm:$0xf0] }
 0x967   : > { %v8591_v4 = vor.u32 %v9302_v55, %v8588_v35  ;;  %v9230_v42 = vld [vmem:[#allocation13 + $0xc0c] sm:$0xf]  ;;  %5949 = vmatpush.bf16.msra.mxu1 %v8335_v2  ;;  %5970 = vmatpush.bf16.msra.mxu2 %v6963_v60  ;;  %v8939_v19 = vld [vmem:[#allocation13 + $0x2ec] sm:$0xf0]  ;;  %v6867_v14 = vor.u32 %v8875_v18, %v6866_v22  ;;  %v5731_v2 = vpop.f32.mrf.mxu3  ;;  %v5719_v60 = vadd.f32 %v5718_v54, %v5706_v3 }
 0x968   : > { %v8300_v44 = vld [vmem:[#allocation13 + $0xc28] sm:$0xf0]  ;;  %v7442_v55 = vld [vmem:[#allocation13 + $0x550] sm:$0xf]  ;;  %v7123_v62 = vor.u32 %v8939_v19, %v7122_v49 }
 0x969   : > { %v9294_v32 = vld [vmem:[#allocation13 + $0xe0c] sm:$0xf]  ;;  %5962 = vmatpush.bf16.msra.mxu0 %v8591_v4  ;;  %v8303_v38 = vor.u32 %v9230_v42, %v8300_v44  ;;  %5983 = vmatpush.bf16.msrb.mxu3 %v7219_v45  ;;  %v7698_v35 = vld [vmem:[#allocation13 + $0x750] sm:$0xf]  ;;  %v7443_v44 = vor.u32 %v9019_v40, %v7442_v55  ;;  %v5732_v13 = vadd.f32 %v5731_v2, %v5719_v60 }
 0x96a   : > { %v8556_v52 = vld [vmem:[#allocation13 + $0xe28] sm:$0xf0]  ;;  %v6834_v4 = vld [vmem:[#allocation13 + $0x90] sm:$0xf] }
 0x96b   : > { %v8559_v27 = vor.u32 %v9294_v32, %v8556_v52  ;;  %5950 = vmatpush.bf16.msra.mxu1 %v8303_v38  ;;  %5971 = vmatpush.bf16.msra.mxu2 %v6931_v59  ;;  %v8867_v42 = vld [vmem:[#allocation13 + $0xac] sm:$0xf0]  ;;  %v7699_v32 = vor.u32 %v9083_v9, %v7698_v35  ;;  %v5745_v38 = vadd.f32 %v5744_v61, %v5732_v13  ;;  %v5746_v35 = vpop.f32.mrf.mxu1  ;;  %v5759_v9 = vpop.f32.mrf.mxu0 }
 0x96c   : > { %v7090_v45 = vld [vmem:[#allocation13 + $0x290] sm:$0xf]  ;;  %v6835_v10 = vor.u32 %v8867_v42, %v6834_v4 }
 0x96d   : > { %5963 = vmatpush.bf16.msra.mxu0 %v8559_v27  ;;  %5984 = vmatpush.bf16.msrb.mxu3 %v7187_v47  ;;  %v8931_v52 = vld [vmem:[#allocation13 + $0x2ac] sm:$0xf0]  ;;  %v5758_v37 = vadd.f32 %v5757_v33, %v5745_v38 }
 0x96e   : > { %5951 = vmatmul.bf16.vlgmr.msra.gmra.mxu1 %v10866_v58  ;;  %v9011_v20 = vld [vmem:[#allocation13 + $0x52c] sm:$0xf0]  ;;  %v7091_v31 = vor.u32 %v8931_v52, %v7090_v45 }
 0x96f   : > { %5995 = vmatpush.bf16.msrb.mxu1 %v7507_v57  ;;  %5972 = vmatpush.bf16.msra.mxu2 %v6899_v53  ;;  %v7666_v46 = vld [vmem:[#allocation13 + $0x710] sm:$0xf]  ;;  %v7411_v27 = vor.u32 %v9011_v20, %v7410_v17  ;;  %v5733_v48 = vpop.f32.mrf.mxu3  ;;  %v5654_v53 = vadd.f32 %v10902_v8, %v5641_v34 }
 0x970   : > { %5964 = vmatmul.bf16.vlgmr.msra.gmra.mxu0 %v10868_v12  ;;  %v9075_v15 = vld [vmem:[#allocation13 + $0x72c] sm:$0xf0] }
 0x971   : > { %6008 = vmatpush.bf16.msrb.mxu0 %v7763_v5  ;;  %5985 = vmatpush.bf16.msrb.mxu3 %v7155_v16  ;;  %v6802_v7 = vld [vmem:[#allocation13 + $0x50] sm:$0xf]  ;;  %v7667_v59 = vor.u32 %v9075_v15, %v7666_v46  ;;  %v6393_v16 = vrot.slane %v5758_v37, 4 }
 0x972   : > { %v8859_v36 = vld [vmem:[#allocation13 + $0x6c] sm:$0xf0] }
 0x973   : > { %5996 = vmatpush.bf16.msrb.mxu1 %v7475_v51  ;;  %5973 = vmatpush.bf16.msra.mxu2 %v6867_v14  ;;  %v7058_v47 = vld [vmem:[#allocation13 + $0x250] sm:$0xf]  ;;  %v6803_v1 = vor.u32 %v8859_v36, %v6802_v7  ;;  %v6397_v40 = vsel %vm2226_vm4, %v5654_v53, %v6393_v16 }
 0x974   : > { %v8923_v6 = vld [vmem:[#allocation13 + $0x26c] sm:$0xf0]  ;;  %6405 = vst [vmem:[%s10937_s0] sm:$0x77] %v6397_v40 }
 0x975   : > { %6009 = vmatpush.bf16.msrb.mxu0 %v7731_v0  ;;  %5986 = vmatpush.bf16.msrb.mxu3 %v7123_v62  ;;  %v7378_v63 = vld [vmem:[#allocation13 + $0x4d0] sm:$0xf]  ;;  %v7059_v43 = vor.u32 %v8923_v6, %v7058_v47 }
 0x976   : > { %v9003_v57 = vld [vmem:[#allocation13 + $0x4ec] sm:$0xf0] }
 0x977   : > { %5997 = vmatpush.bf16.msrb.mxu1 %v7443_v44  ;;  %v7634_v5 = vld [vmem:[#allocation13 + $0x6d0] sm:$0xf]  ;;  %5974 = vmatpush.bf16.msra.mxu2 %v6835_v10  ;;  %v7379_v22 = vor.u32 %v9003_v57, %v7378_v63 }
 0x978   : > { %v9067_v21 = vld [vmem:[#allocation13 + $0x6ec] sm:$0xf0] }
 0x979   : > { %6010 = vmatpush.bf16.msrb.mxu0 %v7699_v32  ;;  %v6770_v50 = vld [vmem:[#allocation13 + $0x10] sm:$0xf]  ;;  %5987 = vmatpush.bf16.msrb.mxu3 %v7091_v31  ;;  %v7635_v18 = vor.u32 %v9067_v21, %v7634_v5 }
 0x97a   : > { %v8851_v25 = vld [vmem:[#allocation13 + $0x2c] sm:$0xf0] }
 0x97b   : > { %v7026_v23 = vld [vmem:[#allocation13 + $0x210] sm:$0xf]  ;;  %5998 = vmatpush.bf16.msrb.mxu1 %v7411_v27  ;;  %5975 = vmatpush.bf16.msra.mxu2 %v6803_v1  ;;  %v6771_v8 = vor.u32 %v8851_v25, %v6770_v50 }
 0x97c   : > { %v8915_v24 = vld [vmem:[#allocation13 + $0x22c] sm:$0xf0] }
 0x97d   : > { %6011 = vmatpush.bf16.msrb.mxu0 %v7667_v59  ;;  %v7346_v51 = vld [vmem:[#allocation13 + $0x490] sm:$0xf]  ;;  %5988 = vmatpush.bf16.msrb.mxu3 %v7059_v43  ;;  %v7027_v62 = vor.u32 %v8915_v24, %v7026_v23 }
 0x97e   : > { %v8995_v0 = vld [vmem:[#allocation13 + $0x4ac] sm:$0xf0] }
 0x97f   : > { %v7602_v49 = vld [vmem:[#allocation13 + $0x690] sm:$0xf]  ;;  %5999 = vmatpush.bf16.msrb.mxu1 %v7379_v22  ;;  %v7347_v54 = vor.u32 %v8995_v0, %v7346_v51  ;;  %5976 = vmatpush.bf16.msra.mxu2 %v6771_v8 }
 0x980   : > { %v9059_v19 = vld [vmem:[#allocation13 + $0x6ac] sm:$0xf0] }
 0x981   : > { %v8018_v55 = vld [vmem:[#allocation13 + $0x9d0] sm:$0xf]  ;;  %6012 = vmatpush.bf16.msrb.mxu0 %v7635_v18  ;;  %v7603_v2 = vor.u32 %v9059_v19, %v7602_v49  ;;  %5989 = vmatpush.bf16.msrb.mxu3 %v7027_v62 }
 0x982   : > { %v9163_v3 = vld [vmem:[#allocation13 + $0x9ec] sm:$0xf0]  ;;  %5977 = vmatmul.bf16.vlgmr.msra.gmra.mxu2 %v10848_v11 }
 0x983   : > { %v8274_v26 = vld [vmem:[#allocation13 + $0xbd0] sm:$0xf]  ;;  %v8019_v44 = vor.u32 %v9163_v3, %v8018_v55  ;;  %6000 = vmatpush.bf16.msrb.mxu1 %v7347_v54  ;;  %v5770_v54 = vpop.f32.mrf.mxu2 }
 0x984   : > { %v9227_v14 = vld [vmem:[#allocation13 + $0xbec] sm:$0xf0]  ;;  %5990 = vmatmul.bf16.vlgmr.msrb.gmra.mxu3 %v10850_v29 }
 0x985   : > { %v7314_v4 = vld [vmem:[#allocation13 + $0x450] sm:$0xf]  ;;  %v8275_v32 = vor.u32 %v9227_v14, %v8274_v26  ;;  %6013 = vmatpush.bf16.msrb.mxu0 %v7603_v2  ;;  %6021 = vmatpush.bf16.msrb.mxu2 %v8019_v44  ;;  %v5783_v2 = vpop.f32.mrf.mxu3 }
 0x986   : > { %v8987_v42 = vld [vmem:[#allocation13 + $0x46c] sm:$0xf0] }
 0x987   : > { %v7570_v60 = vld [vmem:[#allocation13 + $0x650] sm:$0xf]  ;;  %v7315_v15 = vor.u32 %v8987_v42, %v7314_v4  ;;  %6034 = vmatpush.bf16.msra.mxu3 %v8275_v32 }
 0x988   : > { %v9051_v45 = vld [vmem:[#allocation13 + $0x66c] sm:$0xf0] }
 0x989   : > { %v7986_v52 = vld [vmem:[#allocation13 + $0x990] sm:$0xf]  ;;  %v7571_v13 = vor.u32 %v9051_v45, %v7570_v60  ;;  %6001 = vmatpush.bf16.msrb.mxu1 %v7315_v15  ;;  %v5784_v60 = vadd.f32 %v5783_v2, %v5770_v54 }
 0x98a   : > { %v9155_v17 = vld [vmem:[#allocation13 + $0x9ac] sm:$0xf0] }
 0x98b   : > { %v8242_v20 = vld [vmem:[#allocation13 + $0xb90] sm:$0xf]  ;;  %v7987_v10 = vor.u32 %v9155_v17, %v7986_v52  ;;  %6014 = vmatpush.bf16.msrb.mxu0 %v7571_v13  ;;  %v5796_v13 = vpop.f32.mrf.mxu1 }
 0x98c   : > { %v9219_v46 = vld [vmem:[#allocation13 + $0xbac] sm:$0xf0] }
 0x98d   : > { %v7282_v61 = vld [vmem:[#allocation13 + $0x410] sm:$0xf]  ;;  %v8243_v31 = vor.u32 %v9219_v46, %v8242_v20  ;;  %6022 = vmatpush.bf16.msrb.mxu2 %v7987_v10 }
 0x98e   : > { %v8979_v33 = vld [vmem:[#allocation13 + $0x42c] sm:$0xf0] }
 0x98f   : > { %v7538_v34 = vld [vmem:[#allocation13 + $0x610] sm:$0xf]  ;;  %v7283_v5 = vor.u32 %v8979_v33, %v7282_v61  ;;  %6035 = vmatpush.bf16.msra.mxu3 %v8243_v31  ;;  %v5809_v61 = vpop.f32.mrf.mxu0  ;;  %v5797_v33 = vadd.f32 %v5796_v13, %v5784_v60  ;;  %v7220_v60 = vld [vmem:[#allocation13 + $0x3b0] sm:$0xf0] }
 0x990   : > { %v9043_v7 = vld [vmem:[#allocation13 + $0x62c] sm:$0xf0] }
 0x991   : > { %v7954_v36 = vld [vmem:[#allocation13 + $0x950] sm:$0xf]  ;;  %v7539_v21 = vor.u32 %v9043_v7, %v7538_v34  ;;  %6002 = vmatpush.bf16.msrb.mxu1 %v7283_v5 }
 0x992   : > { %v9147_v38 = vld [vmem:[#allocation13 + $0x96c] sm:$0xf0] }
 0x993   : > { %v8210_v27 = vld [vmem:[#allocation13 + $0xb50] sm:$0xf]  ;;  %v7955_v37 = vor.u32 %v9147_v38, %v7954_v36  ;;  %6015 = vmatpush.bf16.msrb.mxu0 %v7539_v21 }
 0x994   : > { %v9211_v59 = vld [vmem:[#allocation13 + $0xb6c] sm:$0xf0]  ;;  %6003 = vmatmul.bf16.vlgmr.msrb.gmra.mxu1 %v10854_v41 }
 0x995   : > { %v8530_v47 = vld [vmem:[#allocation13 + $0xdd0] sm:$0xf]  ;;  %v8211_v50 = vor.u32 %v9211_v59, %v8210_v27  ;;  %6023 = vmatpush.bf16.msrb.mxu2 %v7955_v37 }
 0x996   : > { %v9291_v6 = vld [vmem:[#allocation13 + $0xdec] sm:$0xf0]  ;;  %6016 = vmatmul.bf16.vlgmr.msrb.gmra.mxu0 %v10856_v28 }
 0x997   : > { %v8786_v63 = vld [vmem:[#allocation13 + $0xfd0] sm:$0xf]  ;;  %v8531_v30 = vor.u32 %v9291_v6, %v8530_v47  ;;  %6036 = vmatpush.bf16.msra.mxu3 %v8211_v50  ;;  %v10946_v6 = vadd.f32 %v5809_v61, %v5797_v33  ;;  %v5772_v50 = vpop.f32.mrf.mxu2  ;;  %v8887_v33 = vld [vmem:[#allocation13 + $0x154] sm:$0xf] }
 0x998   : > { %v9355_v57 = vld [vmem:[#allocation13 + $0xfec] sm:$0xf0] }
 0x999   : > { %v7922_v1 = vld [vmem:[#allocation13 + $0x910] sm:$0xf]  ;;  %v8787_v48 = vor.u32 %v9355_v57, %v8786_v63  ;;  %6047 = vmatpush.bf16.msra.mxu1 %v8531_v30 }
 0x99a   : > { %v9139_v43 = vld [vmem:[#allocation13 + $0x92c] sm:$0xf0] }
 0x99b   : > { %v8178_v25 = vld [vmem:[#allocation13 + $0xb10] sm:$0xf]  ;;  %v7923_v18 = vor.u32 %v9139_v43, %v7922_v1  ;;  %6060 = vmatpush.bf16.msra.mxu0 %v8787_v48  ;;  %v5785_v1 = vpop.f32.mrf.mxu3 }
 0x99c   : > { %v9203_v23 = vld [vmem:[#allocation13 + $0xb2c] sm:$0xf0]  ;;  %v8943_v1 = vld [vmem:[#allocation13 + $0x314] sm:$0xf] }
 0x99d   : > { %v8498_v24 = vld [vmem:[#allocation13 + $0xd90] sm:$0xf]  ;;  %v8179_v51 = vor.u32 %v9203_v23, %v8178_v25  ;;  %6024 = vmatpush.bf16.msrb.mxu2 %v7923_v18 }
 0x99e   : > { %v9283_v53 = vld [vmem:[#allocation13 + $0xdac] sm:$0xf0] }
 0x99f   : > { %v8754_v16 = vld [vmem:[#allocation13 + $0xf90] sm:$0xf]  ;;  %v8499_v19 = vor.u32 %v9283_v53, %v8498_v24  ;;  %6037 = vmatpush.bf16.msra.mxu3 %v8179_v51  ;;  %v8903_v51 = vld [vmem:[#allocation13 + $0x1d4] sm:$0xf] }
 0x9a0   : > { %v9347_v22 = vld [vmem:[#allocation13 + $0xfac] sm:$0xf0] }
 0x9a1   : > { %v7890_v0 = vld [vmem:[#allocation13 + $0x8d0] sm:$0xf]  ;;  %v8755_v55 = vor.u32 %v9347_v22, %v8754_v16  ;;  %6048 = vmatpush.bf16.msra.mxu1 %v8499_v19  ;;  %v6996_v19 = vld [vmem:[#allocation13 + $0x1f0] sm:$0xf0] }
 0x9a2   : > { %v9131_v49 = vld [vmem:[#allocation13 + $0x8ec] sm:$0xf0] }
 0x9a3   : > { %v8146_v40 = vld [vmem:[#allocation13 + $0xad0] sm:$0xf]  ;;  %v7891_v8 = vor.u32 %v9131_v49, %v7890_v0  ;;  %6061 = vmatpush.bf16.msra.mxu0 %v8755_v55  ;;  %v5798_v0 = vpop.f32.mrf.mxu1  ;;  %v5811_v49 = vpop.f32.mrf.mxu0  ;;  %v8967_v55 = vld [vmem:[#allocation13 + $0x3d4] sm:$0xf] }
 0x9a4   : > { %v9195_v35 = vld [vmem:[#allocation13 + $0xaec] sm:$0xf0]  ;;  %v8935_v0 = vld [vmem:[#allocation13 + $0x2d4] sm:$0xf] }
 0x9a5   : > { %v8466_v9 = vld [vmem:[#allocation13 + $0xd50] sm:$0xf]  ;;  %v8147_v62 = vor.u32 %v9195_v35, %v8146_v40  ;;  %6025 = vmatpush.bf16.msrb.mxu2 %v7891_v8  ;;  %v7252_v40 = vld [vmem:[#allocation13 + $0x3f0] sm:$0xf0] }
 0x9a6   : > { %v9275_v3 = vld [vmem:[#allocation13 + $0xd6c] sm:$0xf0]  ;;  %v7255_v54 = vor.u32 %v8967_v55, %v7252_v40  ;;  %v7124_v49 = vld [vmem:[#allocation13 + $0x2f0] sm:$0xf0] }
 0x9a7   : > { %v8722_v26 = vld [vmem:[#allocation13 + $0xf50] sm:$0xf]  ;;  %v8467_v44 = vor.u32 %v9275_v3, %v8466_v9  ;;  %6038 = vmatpush.bf16.msra.mxu3 %v8147_v62  ;;  %v6999_v62 = vor.u32 %v8903_v51, %v6996_v19  ;;  %v9015_v19 = vld [vmem:[#allocation13 + $0x554] sm:$0xf] }
 0x9a8   : > { %v9339_v14 = vld [vmem:[#allocation13 + $0xf6c] sm:$0xf0]  ;;  %v7444_v55 = vld [vmem:[#allocation13 + $0x570] sm:$0xf0] }
 0x9a9   : > { %v7858_v4 = vld [vmem:[#allocation13 + $0x890] sm:$0xf]  ;;  %v8723_v32 = vor.u32 %v9339_v14, %v8722_v26  ;;  %6049 = vmatpush.bf16.msra.mxu1 %v8467_v44  ;;  %v6964_v44 = vld [vmem:[#allocation13 + $0x1b0] sm:$0xf0] }
 0x9aa   : > { %v9123_v42 = vld [vmem:[#allocation13 + $0x8ac] sm:$0xf0]  ;;  %v9079_v40 = vld [vmem:[#allocation13 + $0x754] sm:$0xf] }
 0x9ab   : > { %v8114_v45 = vld [vmem:[#allocation13 + $0xa90] sm:$0xf]  ;;  %v7859_v34 = vor.u32 %v9123_v42, %v7858_v4  ;;  %6062 = vmatpush.bf16.msra.mxu0 %v8723_v32  ;;  %v8895_v42 = vld [vmem:[#allocation13 + $0x194] sm:$0xf] }
 0x9ac   : > { %v9187_v52 = vld [vmem:[#allocation13 + $0xaac] sm:$0xf0]  ;;  %v8959_v32 = vld [vmem:[#allocation13 + $0x394] sm:$0xf] }
 0x9ad   : > { %v8434_v17 = vld [vmem:[#allocation13 + $0xd10] sm:$0xf]  ;;  %v8115_v10 = vor.u32 %v9187_v52, %v8114_v45  ;;  %6026 = vmatpush.bf16.msrb.mxu2 %v7859_v34  ;;  %v7223_v13 = vor.u32 %v8959_v32, %v7220_v60  ;;  %v6932_v34 = vld [vmem:[#allocation13 + $0x170] sm:$0xf0] }
 0x9ae   : > { %v9267_v20 = vld [vmem:[#allocation13 + $0xd2c] sm:$0xf0]  ;;  %v9007_v32 = vld [vmem:[#allocation13 + $0x514] sm:$0xf] }
 0x9af   : > { %v8690_v46 = vld [vmem:[#allocation13 + $0xf10] sm:$0xf]  ;;  %v8435_v36 = vor.u32 %v9267_v20, %v8434_v17  ;;  %6039 = vmatpush.bf16.msra.mxu3 %v8115_v10  ;;  %v8951_v10 = vld [vmem:[#allocation13 + $0x354] sm:$0xf] }
 0x9b0   : > { %v9331_v15 = vld [vmem:[#allocation13 + $0xf2c] sm:$0xf0]  ;;  %v7412_v60 = vld [vmem:[#allocation13 + $0x530] sm:$0xf0] }
 0x9b1   : > { %v7826_v31 = vld [vmem:[#allocation13 + $0x850] sm:$0xf]  ;;  %v8691_v38 = vor.u32 %v9331_v15, %v8690_v46  ;;  %6050 = vmatpush.bf16.msra.mxu1 %v8435_v36  ;;  %v6967_v15 = vor.u32 %v8895_v42, %v6964_v44  ;;  %v7508_v36 = vld [vmem:[#allocation13 + $0x5f0] sm:$0xf0] }
 0x9b2   : > { %v9115_v7 = vld [vmem:[#allocation13 + $0x86c] sm:$0xf0]  ;;  %v8927_v42 = vld [vmem:[#allocation13 + $0x294] sm:$0xf] }
 0x9b3   : > { %v8082_v27 = vld [vmem:[#allocation13 + $0xa50] sm:$0xf]  ;;  %v7827_v21 = vor.u32 %v9115_v7, %v7826_v31  ;;  %6063 = vmatpush.bf16.msra.mxu0 %v8691_v38  ;;  %v7188_v31 = vld [vmem:[#allocation13 + $0x370] sm:$0xf0] }
 0x9b4   : > { %v9179_v59 = vld [vmem:[#allocation13 + $0xa6c] sm:$0xf0]  ;;  %v9031_v7 = vld [vmem:[#allocation13 + $0x5d4] sm:$0xf] }
 0x9b5   : > { %v8402_v47 = vld [vmem:[#allocation13 + $0xcd0] sm:$0xf]  ;;  %v8083_v37 = vor.u32 %v9179_v59, %v8082_v27  ;;  %6027 = vmatpush.bf16.msrb.mxu2 %v7827_v21  ;;  %v9095_v38 = vld [vmem:[#allocation13 + $0x7d4] sm:$0xf] }
 0x9b6   : > { %v9259_v63 = vld [vmem:[#allocation13 + $0xcec] sm:$0xf0]  ;;  %v7764_v27 = vld [vmem:[#allocation13 + $0x7f0] sm:$0xf0] }
 0x9b7   : > { %v8658_v57 = vld [vmem:[#allocation13 + $0xed0] sm:$0xf]  ;;  %v8403_v25 = vor.u32 %v9259_v63, %v8402_v47  ;;  %6040 = vmatpush.bf16.msra.mxu3 %v8083_v37  ;;  %v6935_v63 = vor.u32 %v8887_v33, %v6932_v34  ;;  %v6900_v21 = vld [vmem:[#allocation13 + $0x130] sm:$0xf0]  ;;  %v7511_v37 = vor.u32 %v9031_v7, %v7508_v36  ;;  %v7767_v50 = vor.u32 %v9095_v38, %v7764_v27 }
 0x9b8   : > { %v9323_v5 = vld [vmem:[#allocation13 + $0xeec] sm:$0xf0]  ;;  %v7092_v44 = vld [vmem:[#allocation13 + $0x2b0] sm:$0xf0] }
 0x9b9   : > { %v7794_v43 = vld [vmem:[#allocation13 + $0x810] sm:$0xf]  ;;  %v8659_v23 = vor.u32 %v9323_v5, %v8658_v57  ;;  %6051 = vmatpush.bf16.msra.mxu1 %v8403_v25  ;;  %v7191_v57 = vor.u32 %v8951_v10, %v7188_v31  ;;  %v8879_v5 = vld [vmem:[#allocation13 + $0x114] sm:$0xf]  ;;  %v7415_v10 = vor.u32 %v9007_v32, %v7412_v60 }
 0x9ba   : > { %v9107_v30 = vld [vmem:[#allocation13 + $0x82c] sm:$0xf0]  ;;  %v9087_v25 = vld [vmem:[#allocation13 + $0x794] sm:$0xf] }
 0x9bb   : > { %v8050_v48 = vld [vmem:[#allocation13 + $0xa10] sm:$0xf]  ;;  %v7795_v35 = vor.u32 %v9107_v30, %v7794_v43  ;;  %6064 = vmatpush.bf16.msra.mxu0 %v8659_v23  ;;  %v7156_v43 = vld [vmem:[#allocation13 + $0x330] sm:$0xf0] }
 0x9bc   : > { %v9171_v24 = vld [vmem:[#allocation13 + $0xa2c] sm:$0xf0]  ;;  %v9023_v30 = vld [vmem:[#allocation13 + $0x594] sm:$0xf] }
 0x9bd   : > { %v8370_v53 = vld [vmem:[#allocation13 + $0xc90] sm:$0xf]  ;;  %v8051_v9 = vor.u32 %v9171_v24, %v8050_v48  ;;  %6028 = vmatpush.bf16.msrb.mxu2 %v7795_v35  ;;  %v7476_v48 = vld [vmem:[#allocation13 + $0x5b0] sm:$0xf0]  ;;  %v6903_v24 = vor.u32 %v8879_v5, %v6900_v21 }
 0x9be   : > { %v9251_v16 = vld [vmem:[#allocation13 + $0xcac] sm:$0xf0]  ;;  %v7732_v23 = vld [vmem:[#allocation13 + $0x7b0] sm:$0xf0] }
 0x9bf   : > { %v8626_v22 = vld [vmem:[#allocation13 + $0xe90] sm:$0xf]  ;;  %v8371_v3 = vor.u32 %v9251_v16, %v8370_v53  ;;  %6041 = vmatpush.bf16.msra.mxu3 %v8051_v9  ;;  %v7159_v53 = vor.u32 %v8943_v1, %v7156_v43  ;;  %v8871_v16 = vld [vmem:[#allocation13 + $0xd4] sm:$0xf]  ;;  %v7735_v51 = vor.u32 %v9087_v25, %v7732_v23 }
 0x9c0   : > { %v9315_v18 = vld [vmem:[#allocation13 + $0xeac] sm:$0xf0]  ;;  %6029 = vmatmul.bf16.vlgmr.msrb.gmra.mxu2 %v10860_v39  ;;  %v7700_v35 = vld [vmem:[#allocation13 + $0x770] sm:$0xf0] }
 0x9c1   : > { %v8627_v26 = vor.u32 %v9315_v18, %v8626_v22  ;;  %v8338_v14 = vld [vmem:[#allocation13 + $0xc50] sm:$0xf]  ;;  %6052 = vmatpush.bf16.msra.mxu1 %v8371_v3  ;;  %6073 = vmatpush.bf16.msra.mxu2 %v6999_v62  ;;  %v6868_v22 = vld [vmem:[#allocation13 + $0xf0] sm:$0xf0]  ;;  %v7479_v18 = vor.u32 %v9023_v30, %v7476_v48  ;;  %v7127_v3 = vor.u32 %v8935_v0, %v7124_v49 }
 0x9c2   : > { %v9243_v8 = vld [vmem:[#allocation13 + $0xc6c] sm:$0xf0]  ;;  %6042 = vmatmul.bf16.vlgmr.msra.gmra.mxu3 %v10862_v56  ;;  %v6871_v9 = vor.u32 %v8871_v16, %v6868_v22  ;;  %v6836_v62 = vld [vmem:[#allocation13 + $0xb0] sm:$0xf0] }
 0x9c3   : > { %v8594_v2 = vld [vmem:[#allocation13 + $0xe50] sm:$0xf]  ;;  %6065 = vmatpush.bf16.msra.mxu0 %v8627_v26  ;;  %v8339_v45 = vor.u32 %v9243_v8, %v8338_v14  ;;  %6086 = vmatpush.bf16.msrb.mxu3 %v7255_v54  ;;  %v5822_v26 = vpop.f32.mrf.mxu2  ;;  %v5835_v14 = vpop.f32.mrf.mxu3  ;;  %v8863_v8 = vld [vmem:[#allocation13 + $0x94] sm:$0xf]  ;;  %v7447_v54 = vor.u32 %v9015_v19, %v7444_v55 }
 0x9c4   : > { %v9307_v4 = vld [vmem:[#allocation13 + $0xe6c] sm:$0xf0]  ;;  %v6804_v33 = vld [vmem:[#allocation13 + $0x70] sm:$0xf0] }
 0x9c5   : > { %v8595_v52 = vor.u32 %v9307_v4, %v8594_v2  ;;  %v8306_v17 = vld [vmem:[#allocation13 + $0xc10] sm:$0xf]  ;;  %6053 = vmatpush.bf16.msra.mxu1 %v8339_v45  ;;  %6074 = vmatpush.bf16.msra.mxu2 %v6967_v15  ;;  %v7703_v2 = vor.u32 %v9079_v40, %v7700_v35  ;;  %v5823_v4 = vadd.f32 %v5822_v26, %v10946_v6  ;;  %v9071_v45 = vld [vmem:[#allocation13 + $0x714] sm:$0xf] }
 0x9c6   : > { %v9235_v20 = vld [vmem:[#allocation13 + $0xc2c] sm:$0xf0]  ;;  %v6839_v15 = vor.u32 %v8863_v8, %v6836_v62  ;;  %v8919_v31 = vld [vmem:[#allocation13 + $0x254] sm:$0xf] }
 0x9c7   : > { %v8562_v46 = vld [vmem:[#allocation13 + $0xe10] sm:$0xf]  ;;  %6066 = vmatpush.bf16.msra.mxu0 %v8595_v52  ;;  %v8307_v59 = vor.u32 %v9235_v20, %v8306_v17  ;;  %6087 = vmatpush.bf16.msrb.mxu3 %v7223_v13  ;;  %v7668_v52 = vld [vmem:[#allocation13 + $0x730] sm:$0xf0]  ;;  %v5836_v17 = vadd.f32 %v5835_v14, %v5823_v4  ;;  %v5848_v20 = vpop.f32.mrf.mxu1  ;;  %v7095_v13 = vor.u32 %v8927_v42, %v7092_v44 }
 0x9c8   : > { %v9299_v61 = vld [vmem:[#allocation13 + $0xe2c] sm:$0xf0]  ;;  %v7671_v6 = vor.u32 %v9071_v45, %v7668_v52  ;;  %v7060_v7 = vld [vmem:[#allocation13 + $0x270] sm:$0xf0] }
 0x9c9   : > { %v8563_v47 = vor.u32 %v9299_v61, %v8562_v46  ;;  %6054 = vmatpush.bf16.msra.mxu1 %v8307_v59  ;;  %6075 = vmatpush.bf16.msra.mxu2 %v6935_v63  ;;  %v5861_v46 = vpop.f32.mrf.mxu0  ;;  %v8855_v61 = vld [vmem:[#allocation13 + $0x54] sm:$0xf]  ;;  %v5849_v34 = vadd.f32 %v5848_v20, %v5836_v17 }
 0x9ca   : > { %v8999_v36 = vld [vmem:[#allocation13 + $0x4d4] sm:$0xf]  ;;  %v6807_v63 = vor.u32 %v8855_v61, %v6804_v33 }
 0x9cb   : > { %6067 = vmatpush.bf16.msra.mxu0 %v8563_v47  ;;  %6088 = vmatpush.bf16.msrb.mxu3 %v7191_v57  ;;  %v7380_v38 = vld [vmem:[#allocation13 + $0x4f0] sm:$0xf0]  ;;  %v10953_v47 = vadd.f32 %v5861_v46, %v5849_v34  ;;  %v7063_v57 = vor.u32 %v8919_v31, %v7060_v7  ;;  %v5824_v5 = vpop.f32.mrf.mxu2  ;;  %v5837_v21 = vpop.f32.mrf.mxu3 }
 0x9cc   : > { %6055 = vmatmul.bf16.vlgmr.msra.gmra.mxu1 %v10866_v58  ;;  %v9063_v27 = vld [vmem:[#allocation13 + $0x6d4] sm:$0xf]  ;;  %v7383_v43 = vor.u32 %v8999_v36, %v7380_v38 }
 0x9cd   : > { %6099 = vmatpush.bf16.msrb.mxu1 %v7511_v37  ;;  %6076 = vmatpush.bf16.msra.mxu2 %v6903_v24  ;;  %v7636_v59 = vld [vmem:[#allocation13 + $0x6f0] sm:$0xf0] }
 0x9ce   : > { %6068 = vmatmul.bf16.vlgmr.msra.gmra.mxu0 %v10868_v12  ;;  %v8847_v37 = vld [vmem:[#allocation13 + $0x14] sm:$0xf]  ;;  %v7639_v30 = vor.u32 %v9063_v27, %v7636_v59 }
 0x9cf   : > { %6112 = vmatpush.bf16.msrb.mxu0 %v7767_v50  ;;  %6089 = vmatpush.bf16.msrb.mxu3 %v7159_v53  ;;  %v6772_v50 = vld [vmem:[#allocation13 + $0x30] sm:$0xf0]  ;;  %v5850_v22 = vpop.f32.mrf.mxu1 }
 0x9d0   : > { %v8911_v1 = vld [vmem:[#allocation13 + $0x214] sm:$0xf]  ;;  %v6775_v19 = vor.u32 %v8847_v37, %v6772_v50 }
 0x9d1   : > { %6100 = vmatpush.bf16.msrb.mxu1 %v7479_v18  ;;  %6077 = vmatpush.bf16.msra.mxu2 %v6871_v9  ;;  %v7028_v48 = vld [vmem:[#allocation13 + $0x230] sm:$0xf0]  ;;  %v5863_v18 = vpop.f32.mrf.mxu0 }
 0x9d2   : > { %v8991_v25 = vld [vmem:[#allocation13 + $0x494] sm:$0xf]  ;;  %v7031_v55 = vor.u32 %v8911_v1, %v7028_v48 }
 0x9d3   : > { %6113 = vmatpush.bf16.msrb.mxu0 %v7735_v51  ;;  %6090 = vmatpush.bf16.msrb.mxu3 %v7127_v3  ;;  %v7348_v23 = vld [vmem:[#allocation13 + $0x4b0] sm:$0xf0] }
 0x9d4   : > { %v9055_v24 = vld [vmem:[#allocation13 + $0x694] sm:$0xf]  ;;  %v7351_v40 = vor.u32 %v8991_v25, %v7348_v23 }
 0x9d5   : > { %6101 = vmatpush.bf16.msrb.mxu1 %v7447_v54  ;;  %6078 = vmatpush.bf16.msra.mxu2 %v6839_v15  ;;  %v7604_v53 = vld [vmem:[#allocation13 + $0x6b0] sm:$0xf0] }
 0x9d6   : > { %v9159_v16 = vld [vmem:[#allocation13 + $0x9d4] sm:$0xf]  ;;  %v7607_v35 = vor.u32 %v9055_v24, %v7604_v53 }
 0x9d7   : > { %6114 = vmatpush.bf16.msrb.mxu0 %v7703_v2  ;;  %6091 = vmatpush.bf16.msrb.mxu3 %v7095_v13  ;;  %v8020_v51 = vld [vmem:[#allocation13 + $0x9f0] sm:$0xf0] }
 0x9d8   : > { %v9223_v0 = vld [vmem:[#allocation13 + $0xbd4] sm:$0xf]  ;;  %v8023_v26 = vor.u32 %v9159_v16, %v8020_v51 }
 0x9d9   : > { %6102 = vmatpush.bf16.msrb.mxu1 %v7415_v10  ;;  %v8276_v49 = vld [vmem:[#allocation13 + $0xbf0] sm:$0xf0]  ;;  %6079 = vmatpush.bf16.msra.mxu2 %v6807_v63 }
 0x9da   : > { %v8983_v9 = vld [vmem:[#allocation13 + $0x454] sm:$0xf]  ;;  %v8279_v14 = vor.u32 %v9223_v0, %v8276_v49 }
 0x9db   : > { %6115 = vmatpush.bf16.msrb.mxu0 %v7671_v6  ;;  %6092 = vmatpush.bf16.msrb.mxu3 %v7063_v57  ;;  %v7316_v3 = vld [vmem:[#allocation13 + $0x470] sm:$0xf0] }
 0x9dc   : > { %v9047_v8 = vld [vmem:[#allocation13 + $0x654] sm:$0xf]  ;;  %v7319_v44 = vor.u32 %v8983_v9, %v7316_v3  ;;  %v10961_v9 = vpop.f32.mrf.mxu3 }
 0x9dd   : > { %6103 = vmatpush.bf16.msrb.mxu1 %v7383_v43  ;;  %v7572_v62 = vld [vmem:[#allocation13 + $0x670] sm:$0xf0]  ;;  %6080 = vmatpush.bf16.msra.mxu2 %v6775_v19 }
 0x9de   : > { %v9151_v54 = vld [vmem:[#allocation13 + $0x994] sm:$0xf]  ;;  %v7575_v32 = vor.u32 %v9047_v8, %v7572_v62 }
 0x9df   : > { %6116 = vmatpush.bf16.msrb.mxu0 %v7639_v30  ;;  %v7988_v2 = vld [vmem:[#allocation13 + $0x9b0] sm:$0xf0]  ;;  %6093 = vmatpush.bf16.msrb.mxu3 %v7031_v55 }
 0x9e0   : > { %v9215_v4 = vld [vmem:[#allocation13 + $0xb94] sm:$0xf]  ;;  %v7991_v17 = vor.u32 %v9151_v54, %v7988_v2  ;;  %6081 = vmatmul.bf16.vlgmr.msra.gmra.mxu2 %v10848_v11 }
 0x9e1   : > { %v8244_v42 = vld [vmem:[#allocation13 + $0xbb0] sm:$0xf0]  ;;  %6104 = vmatpush.bf16.msrb.mxu1 %v7351_v40  ;;  %6125 = vmatpush.bf16.msrb.mxu2 %v8023_v26 }
 0x9e2   : > { %v8975_v60 = vld [vmem:[#allocation13 + $0x414] sm:$0xf]  ;;  %v8247_v20 = vor.u32 %v9215_v4, %v8244_v42  ;;  %6094 = vmatmul.bf16.vlgmr.msrb.gmra.mxu3 %v10850_v29 }
 0x9e3   : > { %6117 = vmatpush.bf16.msrb.mxu0 %v7607_v35  ;;  %v7284_v45 = vld [vmem:[#allocation13 + $0x430] sm:$0xf0]  ;;  %6138 = vmatpush.bf16.msra.mxu3 %v8279_v14  ;;  %v10959_v35 = vpop.f32.mrf.mxu2 }
 0x9e4   : > { %v9039_v52 = vld [vmem:[#allocation13 + $0x614] sm:$0xf]  ;;  %v7287_v7 = vor.u32 %v8975_v60, %v7284_v45  ;;  %v10965_v60 = vpop.f32.mrf.mxu0 }
 0x9e5   : > { %v7540_v46 = vld [vmem:[#allocation13 + $0x630] sm:$0xf0]  ;;  %6105 = vmatpush.bf16.msrb.mxu1 %v7319_v44  ;;  %6126 = vmatpush.bf16.msrb.mxu2 %v7991_v17 }
 0x9e6   : > { %v9143_v15 = vld [vmem:[#allocation13 + $0x954] sm:$0xf]  ;;  %v7543_v36 = vor.u32 %v9039_v52, %v7540_v46 }
 0x9e7   : > { %v7956_v13 = vld [vmem:[#allocation13 + $0x970] sm:$0xf0]  ;;  %6118 = vmatpush.bf16.msrb.mxu0 %v7575_v32  ;;  %6139 = vmatpush.bf16.msra.mxu3 %v8247_v20  ;;  %v10963_v32 = vpop.f32.mrf.mxu1 }
 0x9e8   : > { %v9207_v61 = vld [vmem:[#allocation13 + $0xb54] sm:$0xf]  ;;  %v7959_v38 = vor.u32 %v9143_v15, %v7956_v13 }
 0x9e9   : > { %v8212_v33 = vld [vmem:[#allocation13 + $0xb70] sm:$0xf0]  ;;  %6106 = vmatpush.bf16.msrb.mxu1 %v7287_v7 }
 0x9ea   : > { %v9287_v34 = vld [vmem:[#allocation13 + $0xdd4] sm:$0xf]  ;;  %v8215_v27 = vor.u32 %v9207_v61, %v8212_v33  ;;  %6127 = vmatpush.bf16.msrb.mxu2 %v7959_v38  ;;  %v5889_v38 = vpop.f32.mrf.mxu3 }
 0x9eb   : > { %v8532_v10 = vld [vmem:[#allocation13 + $0xdf0] sm:$0xf0]  ;;  %6119 = vmatpush.bf16.msrb.mxu0 %v7543_v36  ;;  %v5876_v36 = vpop.f32.mrf.mxu2 }
 0x9ec   : > { %v9351_v6 = vld [vmem:[#allocation13 + $0xfd4] sm:$0xf]  ;;  %v8535_v57 = vor.u32 %v9287_v34, %v8532_v10  ;;  %6140 = vmatpush.bf16.msra.mxu3 %v8215_v27  ;;  %6107 = vmatmul.bf16.vlgmr.msrb.gmra.mxu1 %v10854_v41 }
 0x9ed   : > { %v8788_v31 = vld [vmem:[#allocation13 + $0xff0] sm:$0xf0] }
 0x9ee   : > { %v9135_v59 = vld [vmem:[#allocation13 + $0x914] sm:$0xf]  ;;  %v8791_v5 = vor.u32 %v9351_v6, %v8788_v31  ;;  %6151 = vmatpush.bf16.msra.mxu1 %v8535_v57  ;;  %6120 = vmatmul.bf16.vlgmr.msrb.gmra.mxu0 %v10856_v28 }
 0x9ef   : > { %v7924_v63 = vld [vmem:[#allocation13 + $0x930] sm:$0xf0] }
 0x9f0   : > { %v9199_v21 = vld [vmem:[#allocation13 + $0xb14] sm:$0xf]  ;;  %v7927_v48 = vor.u32 %v9135_v59, %v7924_v63  ;;  %6164 = vmatpush.bf16.msra.mxu0 %v8791_v5 }
 0x9f1   : > { %v8180_v37 = vld [vmem:[#allocation13 + $0xb30] sm:$0xf0] }
 0x9f2   : > { %v9279_v50 = vld [vmem:[#allocation13 + $0xd94] sm:$0xf]  ;;  %v8183_v25 = vor.u32 %v9199_v21, %v8180_v37  ;;  %6128 = vmatpush.bf16.msrb.mxu2 %v7927_v48  ;;  %v5902_v48 = vpop.f32.mrf.mxu1 }
 0x9f3   : > { %v8500_v1 = vld [vmem:[#allocation13 + $0xdb0] sm:$0xf0]  ;;  %v6874_v48 = vld [vmem:[#allocation13 + $0xd8] sm:$0xf] }
 0x9f4   : > { %v9343_v43 = vld [vmem:[#allocation13 + $0xf94] sm:$0xf]  ;;  %v8503_v53 = vor.u32 %v9279_v50, %v8500_v1  ;;  %6141 = vmatpush.bf16.msra.mxu3 %v8183_v25  ;;  %v5915_v25 = vpop.f32.mrf.mxu0 }
 0x9f5   : > { %v8756_v30 = vld [vmem:[#allocation13 + $0xfb0] sm:$0xf0]  ;;  %v8876_v25 = vld [vmem:[#allocation13 + $0xf4] sm:$0xf0] }
 0x9f6   : > { %v9127_v23 = vld [vmem:[#allocation13 + $0x8d4] sm:$0xf]  ;;  %v8759_v16 = vor.u32 %v9343_v43, %v8756_v30  ;;  %6152 = vmatpush.bf16.msra.mxu1 %v8503_v53  ;;  %v7002_v30 = vld [vmem:[#allocation13 + $0x1d8] sm:$0xf] }
 0x9f7   : > { %v7892_v24 = vld [vmem:[#allocation13 + $0x8f0] sm:$0xf0]  ;;  %v8972_v53 = vld [vmem:[#allocation13 + $0x3f4] sm:$0xf0] }
 0x9f8   : > { %v9191_v22 = vld [vmem:[#allocation13 + $0xad4] sm:$0xf]  ;;  %v7895_v55 = vor.u32 %v9127_v23, %v7892_v24  ;;  %6165 = vmatpush.bf16.msra.mxu0 %v8759_v16  ;;  %v8908_v23 = vld [vmem:[#allocation13 + $0x1f4] sm:$0xf0] }
 0x9f9   : > { %v8148_v18 = vld [vmem:[#allocation13 + $0xaf0] sm:$0xf0]  ;;  %v7258_v24 = vld [vmem:[#allocation13 + $0x3d8] sm:$0xf] }
 0x9fa   : > { %v9271_v51 = vld [vmem:[#allocation13 + $0xd54] sm:$0xf]  ;;  %v8151_v40 = vor.u32 %v9191_v22, %v8148_v18  ;;  %6129 = vmatpush.bf16.msrb.mxu2 %v7895_v55  ;;  %v7259_v55 = vor.u32 %v8972_v53, %v7258_v24  ;;  %v7130_v53 = vld [vmem:[#allocation13 + $0x2d8] sm:$0xf] }
 0x9fb   : > { %v8468_v0 = vld [vmem:[#allocation13 + $0xd70] sm:$0xf0] }
 0x9fc   : > { %v9335_v49 = vld [vmem:[#allocation13 + $0xf54] sm:$0xf]  ;;  %v8471_v14 = vor.u32 %v9271_v51, %v8468_v0  ;;  %6142 = vmatpush.bf16.msra.mxu3 %v8151_v40 }
 0x9fd   : > { %v8724_v19 = vld [vmem:[#allocation13 + $0xf70] sm:$0xf0] }
 0x9fe   : > { %v9119_v3 = vld [vmem:[#allocation13 + $0x894] sm:$0xf]  ;;  %v8727_v8 = vor.u32 %v9335_v49, %v8724_v19  ;;  %6153 = vmatpush.bf16.msra.mxu1 %v8471_v14  ;;  %v7003_v19 = vor.u32 %v8908_v23, %v7002_v30  ;;  %v8900_v14 = vld [vmem:[#allocation13 + $0x1b4] sm:$0xf0] }
 0x9ff   : > { %v7860_v26 = vld [vmem:[#allocation13 + $0x8b0] sm:$0xf0] }
 0xa00   : > { %v9183_v62 = vld [vmem:[#allocation13 + $0xa94] sm:$0xf]  ;;  %v7863_v45 = vor.u32 %v9119_v3, %v7860_v26  ;;  %6166 = vmatpush.bf16.msra.mxu0 %v8727_v8  ;;  %v6970_v26 = vld [vmem:[#allocation13 + $0x198] sm:$0xf] }
 0xa01   : > { %v8116_v54 = vld [vmem:[#allocation13 + $0xab0] sm:$0xf0]  ;;  %v7226_v8 = vld [vmem:[#allocation13 + $0x398] sm:$0xf] }
 0xa02   : > { %v9263_v2 = vld [vmem:[#allocation13 + $0xd14] sm:$0xf]  ;;  %v8119_v52 = vor.u32 %v9183_v62, %v8116_v54  ;;  %6130 = vmatpush.bf16.msrb.mxu2 %v7863_v45  ;;  %v8964_v62 = vld [vmem:[#allocation13 + $0x3b4] sm:$0xf0]  ;;  %v6971_v45 = vor.u32 %v8900_v14, %v6970_v26 }
 0xa03   : > { %v8436_v4 = vld [vmem:[#allocation13 + $0xd30] sm:$0xf0]  ;;  %v8868_v26 = vld [vmem:[#allocation13 + $0xb4] sm:$0xf0] }
 0xa04   : > { %v9327_v42 = vld [vmem:[#allocation13 + $0xf14] sm:$0xf]  ;;  %v8439_v46 = vor.u32 %v9263_v2, %v8436_v4  ;;  %6143 = vmatpush.bf16.msra.mxu3 %v8119_v52  ;;  %v7227_v52 = vor.u32 %v8964_v62, %v7226_v8 }
 0xa05   : > { %v8692_v44 = vld [vmem:[#allocation13 + $0xf30] sm:$0xf0] }
 0xa06   : > { %v9111_v17 = vld [vmem:[#allocation13 + $0x854] sm:$0xf]  ;;  %v8695_v15 = vor.u32 %v9327_v42, %v8692_v44  ;;  %6154 = vmatpush.bf16.msra.mxu1 %v8439_v46  ;;  %v8892_v46 = vld [vmem:[#allocation13 + $0x174] sm:$0xf0] }
 0xa07   : > { %v7828_v20 = vld [vmem:[#allocation13 + $0x870] sm:$0xf0] }
 0xa08   : > { %v9175_v13 = vld [vmem:[#allocation13 + $0xa54] sm:$0xf]  ;;  %v7831_v31 = vor.u32 %v9111_v17, %v7828_v20  ;;  %6167 = vmatpush.bf16.msra.mxu0 %v8695_v15  ;;  %v6938_v20 = vld [vmem:[#allocation13 + $0x158] sm:$0xf] }
 0xa09   : > { %v8084_v61 = vld [vmem:[#allocation13 + $0xa70] sm:$0xf0]  ;;  %v7194_v15 = vld [vmem:[#allocation13 + $0x358] sm:$0xf]  ;;  %v6939_v36 = vor.u32 %v8892_v46, %v6938_v20 }
 0xa0a   : > { %v9255_v33 = vld [vmem:[#allocation13 + $0xcd4] sm:$0xf]  ;;  %v8087_v7 = vor.u32 %v9175_v13, %v8084_v61  ;;  %6131 = vmatpush.bf16.msrb.mxu2 %v7831_v31  ;;  %v8956_v13 = vld [vmem:[#allocation13 + $0x374] sm:$0xf0] }
 0xa0b   : > { %v8404_v34 = vld [vmem:[#allocation13 + $0xcf0] sm:$0xf0]  ;;  %v7514_v61 = vld [vmem:[#allocation13 + $0x5d8] sm:$0xf]  ;;  %v7195_v38 = vor.u32 %v8956_v13, %v7194_v15 }
 0xa0c   : > { %v9319_v10 = vld [vmem:[#allocation13 + $0xed4] sm:$0xf]  ;;  %v8407_v57 = vor.u32 %v9255_v33, %v8404_v34  ;;  %6144 = vmatpush.bf16.msra.mxu3 %v8087_v7  ;;  %v9036_v33 = vld [vmem:[#allocation13 + $0x5f4] sm:$0xf0] }
 0xa0d   : > { %v8660_v6 = vld [vmem:[#allocation13 + $0xef0] sm:$0xf0]  ;;  %v7770_v34 = vld [vmem:[#allocation13 + $0x7d8] sm:$0xf] }
 0xa0e   : > { %v9103_v27 = vld [vmem:[#allocation13 + $0x814] sm:$0xf]  ;;  %v8663_v5 = vor.u32 %v9319_v10, %v8660_v6  ;;  %6155 = vmatpush.bf16.msra.mxu1 %v8407_v57  ;;  %v9100_v10 = vld [vmem:[#allocation13 + $0x7f4] sm:$0xf0]  ;;  %v5888_v6 = vadd.f32 %v10961_v9, %v10959_v35 }
 0xa0f   : > { %v7796_v59 = vld [vmem:[#allocation13 + $0x830] sm:$0xf0]  ;;  %v7771_v57 = vor.u32 %v9100_v10, %v7770_v34  ;;  %v6810_v15 = vld [vmem:[#allocation13 + $0x58] sm:$0xf] }
 0xa10   : > { %v9167_v63 = vld [vmem:[#allocation13 + $0xa14] sm:$0xf]  ;;  %v7799_v16 = vor.u32 %v9103_v27, %v7796_v59  ;;  %6168 = vmatpush.bf16.msra.mxu0 %v8663_v5  ;;  %v6906_v27 = vld [vmem:[#allocation13 + $0x118] sm:$0xf]  ;;  %v5901_v35 = vadd.f32 %v10963_v32, %v5888_v6 }
 0xa11   : > { %v8052_v21 = vld [vmem:[#allocation13 + $0xa30] sm:$0xf0]  ;;  %v8884_v59 = vld [vmem:[#allocation13 + $0x134] sm:$0xf0] }
 0xa12   : > { %v9247_v37 = vld [vmem:[#allocation13 + $0xc94] sm:$0xf]  ;;  %v8055_v22 = vor.u32 %v9167_v63, %v8052_v21  ;;  %6132 = vmatpush.bf16.msrb.mxu2 %v7799_v16  ;;  %v7515_v63 = vor.u32 %v9036_v33, %v7514_v61  ;;  %v7162_v5 = vld [vmem:[#allocation13 + $0x318] sm:$0xf]  ;;  %v6907_v9 = vor.u32 %v8884_v59, %v6906_v27 }
 0xa13   : > { %v8372_v50 = vld [vmem:[#allocation13 + $0xcb0] sm:$0xf0]  ;;  %v8948_v21 = vld [vmem:[#allocation13 + $0x334] sm:$0xf0] }
 0xa14   : > { %v9311_v1 = vld [vmem:[#allocation13 + $0xe94] sm:$0xf]  ;;  %v8375_v18 = vor.u32 %v9247_v37, %v8372_v50  ;;  %6145 = vmatpush.bf16.msra.mxu3 %v8055_v22  ;;  %v7482_v37 = vld [vmem:[#allocation13 + $0x598] sm:$0xf]  ;;  %v7163_v30 = vor.u32 %v8948_v21, %v7162_v5 }
 0xa15   : > { %v8628_v43 = vld [vmem:[#allocation13 + $0xeb0] sm:$0xf0]  ;;  %6133 = vmatmul.bf16.vlgmr.msrb.gmra.mxu2 %v10860_v39  ;;  %v9028_v50 = vld [vmem:[#allocation13 + $0x5b4] sm:$0xf0] }
 0xa16   : > { %v8631_v51 = vor.u32 %v9311_v1, %v8628_v43  ;;  %v9239_v0 = vld [vmem:[#allocation13 + $0xc54] sm:$0xf]  ;;  %6156 = vmatpush.bf16.msra.mxu1 %v8375_v18  ;;  %6177 = vmatpush.bf16.msra.mxu2 %v7003_v19  ;;  %v7738_v1 = vld [vmem:[#allocation13 + $0x798] sm:$0xf]  ;;  %v7483_v23 = vor.u32 %v9028_v50, %v7482_v37 }
 0xa17   : > { %v8340_v49 = vld [vmem:[#allocation13 + $0xc70] sm:$0xf0]  ;;  %6146 = vmatmul.bf16.vlgmr.msra.gmra.mxu3 %v10862_v56  ;;  %v9092_v43 = vld [vmem:[#allocation13 + $0x7b4] sm:$0xf0] }
 0xa18   : > { %v9303_v40 = vld [vmem:[#allocation13 + $0xe54] sm:$0xf]  ;;  %6169 = vmatpush.bf16.msra.mxu0 %v8631_v51  ;;  %v8343_v54 = vor.u32 %v9239_v0, %v8340_v49  ;;  %6190 = vmatpush.bf16.msrb.mxu3 %v7259_v55  ;;  %v7739_v24 = vor.u32 %v9092_v43, %v7738_v1  ;;  %v8940_v16 = vld [vmem:[#allocation13 + $0x2f4] sm:$0xf0]  ;;  %v5914_v0 = vadd.f32 %v10965_v60, %v5901_v35  ;;  %v5926_v55 = vpop.f32.mrf.mxu2 }
 0xa19   : > { %v8596_v3 = vld [vmem:[#allocation13 + $0xe70] sm:$0xf0]  ;;  %v7450_v22 = vld [vmem:[#allocation13 + $0x558] sm:$0xf]  ;;  %v6875_v49 = vor.u32 %v8876_v25, %v6874_v48  ;;  %v7131_v19 = vor.u32 %v8940_v16, %v7130_v53 }
 0xa1a   : > { %v8599_v2 = vor.u32 %v9303_v40, %v8596_v3  ;;  %v9231_v4 = vld [vmem:[#allocation13 + $0xc14] sm:$0xf]  ;;  %6157 = vmatpush.bf16.msra.mxu1 %v8343_v54  ;;  %6178 = vmatpush.bf16.msra.mxu2 %v6971_v45  ;;  %v9020_v32 = vld [vmem:[#allocation13 + $0x574] sm:$0xf0]  ;;  %v5939_v40 = vpop.f32.mrf.mxu3  ;;  %v5927_v62 = vadd.f32 %v5926_v55, %v5914_v0 }
 0xa1b   : > { %v8308_v42 = vld [vmem:[#allocation13 + $0xc30] sm:$0xf0]  ;;  %v7706_v18 = vld [vmem:[#allocation13 + $0x758] sm:$0xf]  ;;  %v7451_v14 = vor.u32 %v9020_v32, %v7450_v22 }
 0xa1c   : > { %v9295_v44 = vld [vmem:[#allocation13 + $0xe14] sm:$0xf]  ;;  %6170 = vmatpush.bf16.msra.mxu0 %v8599_v2  ;;  %v8311_v31 = vor.u32 %v9231_v4, %v8308_v42  ;;  %6191 = vmatpush.bf16.msrb.mxu3 %v7227_v52  ;;  %v9084_v51 = vld [vmem:[#allocation13 + $0x774] sm:$0xf0]  ;;  %v5940_v60 = vadd.f32 %v5939_v40, %v5927_v62  ;;  %v5952_v52 = vpop.f32.mrf.mxu1 }
 0xa1d   : > { %v8564_v17 = vld [vmem:[#allocation13 + $0xe30] sm:$0xf0]  ;;  %v6842_v3 = vld [vmem:[#allocation13 + $0x98] sm:$0xf]  ;;  %v7707_v8 = vor.u32 %v9084_v51, %v7706_v18 }
 0xa1e   : > { %v8567_v7 = vor.u32 %v9295_v44, %v8564_v17  ;;  %6158 = vmatpush.bf16.msra.mxu1 %v8311_v31  ;;  %6179 = vmatpush.bf16.msra.mxu2 %v6939_v36  ;;  %v7098_v54 = vld [vmem:[#allocation13 + $0x298] sm:$0xf]  ;;  %v5965_v17 = vpop.f32.mrf.mxu0  ;;  %v6843_v20 = vor.u32 %v8868_v26, %v6842_v3  ;;  %v5953_v61 = vadd.f32 %v5952_v52, %v5940_v60 }
 0xa1f   : > { %v8932_v2 = vld [vmem:[#allocation13 + $0x2b4] sm:$0xf0] }
 0xa20   : > { %6171 = vmatpush.bf16.msra.mxu0 %v8567_v7  ;;  %6192 = vmatpush.bf16.msrb.mxu3 %v7195_v38  ;;  %v7418_v4 = vld [vmem:[#allocation13 + $0x518] sm:$0xf]  ;;  %v7099_v46 = vor.u32 %v8932_v2, %v7098_v54  ;;  %v5966_v27 = vadd.f32 %v5965_v17, %v5953_v61  ;;  %v5928_v5 = vpop.f32.mrf.mxu2 }
 0xa21   : > { %6159 = vmatmul.bf16.vlgmr.msra.gmra.mxu1 %v10866_v58  ;;  %v9012_v42 = vld [vmem:[#allocation13 + $0x534] sm:$0xf0] }
 0xa22   : > { %6203 = vmatpush.bf16.msrb.mxu1 %v7515_v63  ;;  %6180 = vmatpush.bf16.msra.mxu2 %v6907_v9  ;;  %v7674_v44 = vld [vmem:[#allocation13 + $0x718] sm:$0xf]  ;;  %v7419_v33 = vor.u32 %v9012_v42, %v7418_v4  ;;  %v5941_v21 = vpop.f32.mrf.mxu3  ;;  %v6394_v43 = vrot.slane %v5966_v27, 4 }
 0xa23   : > { %6172 = vmatmul.bf16.vlgmr.msra.gmra.mxu0 %v10868_v12  ;;  %v9076_v45 = vld [vmem:[#allocation13 + $0x734] sm:$0xf0] }
 0xa24   : > { %6216 = vmatpush.bf16.msrb.mxu0 %v7771_v57  ;;  %6193 = vmatpush.bf16.msrb.mxu3 %v7163_v30  ;;  %v8860_v13 = vld [vmem:[#allocation13 + $0x74] sm:$0xf0]  ;;  %v7675_v34 = vor.u32 %v9076_v45, %v7674_v44  ;;  %v6398_v53 = vsel %vm2226_vm4, %v10953_v47, %v6394_v43  ;;  %v5954_v16 = vpop.f32.mrf.mxu1 }
 0xa25   : > { %v7066_v10 = vld [vmem:[#allocation13 + $0x258] sm:$0xf]  ;;  %v6811_v63 = vor.u32 %v8860_v13, %v6810_v15  ;;  %6406 = vst [vmem:[%s10937_s0 + $0x8] sm:$0x77] %v6398_v53 }
 0xa26   : > { %6204 = vmatpush.bf16.msrb.mxu1 %v7483_v23  ;;  %6181 = vmatpush.bf16.msra.mxu2 %v6875_v49  ;;  %v8924_v6 = vld [vmem:[#allocation13 + $0x274] sm:$0xf0]  ;;  %v5967_v22 = vpop.f32.mrf.mxu0 }
 0xa27   : > { %v7386_v31 = vld [vmem:[#allocation13 + $0x4d8] sm:$0xf]  ;;  %v7067_v57 = vor.u32 %v8924_v6, %v7066_v10 }
 0xa28   : > { %6217 = vmatpush.bf16.msrb.mxu0 %v7739_v24  ;;  %6194 = vmatpush.bf16.msrb.mxu3 %v7131_v19  ;;  %v9004_v7 = vld [vmem:[#allocation13 + $0x4f4] sm:$0xf0] }
 0xa29   : > { %v7642_v36 = vld [vmem:[#allocation13 + $0x6d8] sm:$0xf]  ;;  %v7387_v35 = vor.u32 %v9004_v7, %v7386_v31 }
 0xa2a   : > { %6205 = vmatpush.bf16.msrb.mxu1 %v7451_v14  ;;  %v9068_v38 = vld [vmem:[#allocation13 + $0x6f4] sm:$0xf0]  ;;  %6182 = vmatpush.bf16.msra.mxu2 %v6843_v20 }
 0xa2b   : > { %v6778_v59 = vld [vmem:[#allocation13 + $0x18] sm:$0xf]  ;;  %v7643_v9 = vor.u32 %v9068_v38, %v7642_v36 }
 0xa2c   : > { %6218 = vmatpush.bf16.msrb.mxu0 %v7707_v8  ;;  %6195 = vmatpush.bf16.msrb.mxu3 %v7099_v46  ;;  %v8852_v37 = vld [vmem:[#allocation13 + $0x34] sm:$0xf0] }
 0xa2d   : > { %v7034_v50 = vld [vmem:[#allocation13 + $0x218] sm:$0xf]  ;;  %v6779_v0 = vor.u32 %v8852_v37, %v6778_v59 }
 0xa2e   : > { %v8916_v1 = vld [vmem:[#allocation13 + $0x234] sm:$0xf0]  ;;  %6206 = vmatpush.bf16.msrb.mxu1 %v7419_v33  ;;  %6183 = vmatpush.bf16.msra.mxu2 %v6811_v63 }
 0xa2f   : > { %v7354_v30 = vld [vmem:[#allocation13 + $0x498] sm:$0xf]  ;;  %v7035_v49 = vor.u32 %v8916_v1, %v7034_v50 }
 0xa30   : > { %6219 = vmatpush.bf16.msrb.mxu0 %v7675_v34  ;;  %v8996_v48 = vld [vmem:[#allocation13 + $0x4b4] sm:$0xf0]  ;;  %6196 = vmatpush.bf16.msrb.mxu3 %v7067_v57 }
 0xa31   : > { %v7610_v25 = vld [vmem:[#allocation13 + $0x698] sm:$0xf]  ;;  %v7355_v19 = vor.u32 %v8996_v48, %v7354_v30 }
 0xa32   : > { %v9060_v23 = vld [vmem:[#allocation13 + $0x6b4] sm:$0xf0]  ;;  %6207 = vmatpush.bf16.msrb.mxu1 %v7387_v35  ;;  %6184 = vmatpush.bf16.msra.mxu2 %v6779_v0 }
 0xa33   : > { %v8026_v24 = vld [vmem:[#allocation13 + $0x9d8] sm:$0xf]  ;;  %v7611_v55 = vor.u32 %v9060_v23, %v7610_v25 }
 0xa34   : > { %v9164_v32 = vld [vmem:[#allocation13 + $0x9f4] sm:$0xf0]  ;;  %6220 = vmatpush.bf16.msrb.mxu0 %v7643_v9  ;;  %6197 = vmatpush.bf16.msrb.mxu3 %v7035_v49 }
 0xa35   : > { %v8282_v18 = vld [vmem:[#allocation13 + $0xbd8] sm:$0xf]  ;;  %v8027_v26 = vor.u32 %v9164_v32, %v8026_v24  ;;  %6185 = vmatmul.bf16.vlgmr.msra.gmra.mxu2 %v10848_v11 }
 0xa36   : > { %v9228_v51 = vld [vmem:[#allocation13 + $0xbf4] sm:$0xf0]  ;;  %6208 = vmatpush.bf16.msrb.mxu1 %v7355_v19  ;;  %v5978_v19 = vpop.f32.mrf.mxu2 }
 0xa37   : > { %v7322_v40 = vld [vmem:[#allocation13 + $0x458] sm:$0xf]  ;;  %v8283_v14 = vor.u32 %v9228_v51, %v8282_v18  ;;  %6229 = vmatpush.bf16.msrb.mxu2 %v8027_v26  ;;  %6198 = vmatmul.bf16.vlgmr.msrb.gmra.mxu3 %v10850_v29 }
 0xa38   : > { %v8988_v3 = vld [vmem:[#allocation13 + $0x474] sm:$0xf0]  ;;  %6221 = vmatpush.bf16.msrb.mxu0 %v7611_v55  ;;  %v5991_v55 = vpop.f32.mrf.mxu3 }
 0xa39   : > { %v7578_v8 = vld [vmem:[#allocation13 + $0x658] sm:$0xf]  ;;  %v7323_v42 = vor.u32 %v8988_v3, %v7322_v40  ;;  %6242 = vmatpush.bf16.msra.mxu3 %v8283_v14 }
 0xa3a   : > { %v9052_v47 = vld [vmem:[#allocation13 + $0x674] sm:$0xf0] }
 0xa3b   : > { %v7994_v62 = vld [vmem:[#allocation13 + $0x998] sm:$0xf]  ;;  %v7579_v44 = vor.u32 %v9052_v47, %v7578_v8  ;;  %6209 = vmatpush.bf16.msrb.mxu1 %v7323_v42  ;;  %v5992_v8 = vadd.f32 %v5991_v55, %v5978_v19 }
 0xa3c   : > { %v9156_v54 = vld [vmem:[#allocation13 + $0x9b4] sm:$0xf0] }
 0xa3d   : > { %v8250_v2 = vld [vmem:[#allocation13 + $0xb98] sm:$0xf]  ;;  %v7995_v17 = vor.u32 %v9156_v54, %v7994_v62  ;;  %6222 = vmatpush.bf16.msrb.mxu0 %v7579_v44  ;;  %v6004_v44 = vpop.f32.mrf.mxu1 }
 0xa3e   : > { %v9220_v4 = vld [vmem:[#allocation13 + $0xbb4] sm:$0xf0] }
 0xa3f   : > { %v7290_v45 = vld [vmem:[#allocation13 + $0x418] sm:$0xf]  ;;  %v8251_v20 = vor.u32 %v9220_v4, %v8250_v2  ;;  %6230 = vmatpush.bf16.msrb.mxu2 %v7995_v17 }
 0xa40   : > { %v8980_v60 = vld [vmem:[#allocation13 + $0x434] sm:$0xf0] }
 0xa41   : > { %v7546_v52 = vld [vmem:[#allocation13 + $0x618] sm:$0xf]  ;;  %v7291_v7 = vor.u32 %v8980_v60, %v7290_v45  ;;  %6243 = vmatpush.bf16.msra.mxu3 %v8251_v20  ;;  %v6017_v45 = vpop.f32.mrf.mxu0  ;;  %v6005_v60 = vadd.f32 %v6004_v44, %v5992_v8  ;;  %v7228_v8 = vld [vmem:[#allocation13 + $0x3b8] sm:$0xf0] }
 0xa42   : > { %v9044_v46 = vld [vmem:[#allocation13 + $0x634] sm:$0xf0] }
 0xa43   : > { %v7962_v15 = vld [vmem:[#allocation13 + $0x958] sm:$0xf]  ;;  %v7547_v36 = vor.u32 %v9044_v46, %v7546_v52  ;;  %6210 = vmatpush.bf16.msrb.mxu1 %v7291_v7 }
 0xa44   : > { %v9148_v13 = vld [vmem:[#allocation13 + $0x974] sm:$0xf0] }
 0xa45   : > { %v8218_v61 = vld [vmem:[#allocation13 + $0xb58] sm:$0xf]  ;;  %v7963_v38 = vor.u32 %v9148_v13, %v7962_v15  ;;  %6223 = vmatpush.bf16.msrb.mxu0 %v7547_v36 }
 0xa46   : > { %v9212_v33 = vld [vmem:[#allocation13 + $0xb74] sm:$0xf0]  ;;  %6211 = vmatmul.bf16.vlgmr.msrb.gmra.mxu1 %v10854_v41 }
 0xa47   : > { %v8538_v34 = vld [vmem:[#allocation13 + $0xdd8] sm:$0xf]  ;;  %v8219_v27 = vor.u32 %v9212_v33, %v8218_v61  ;;  %6231 = vmatpush.bf16.msrb.mxu2 %v7963_v38 }
 0xa48   : > { %v9292_v10 = vld [vmem:[#allocation13 + $0xdf4] sm:$0xf0]  ;;  %6224 = vmatmul.bf16.vlgmr.msrb.gmra.mxu0 %v10856_v28 }
 0xa49   : > { %v8794_v6 = vld [vmem:[#allocation13 + $0xfd8] sm:$0xf]  ;;  %v8539_v57 = vor.u32 %v9292_v10, %v8538_v34  ;;  %6244 = vmatpush.bf16.msra.mxu3 %v8219_v27  ;;  %v10982_v10 = vadd.f32 %v6017_v45, %v6005_v60  ;;  %v5980_v27 = vpop.f32.mrf.mxu2  ;;  %v8888_v60 = vld [vmem:[#allocation13 + $0x15c] sm:$0xf] }
 0xa4a   : > { %v9356_v31 = vld [vmem:[#allocation13 + $0xff4] sm:$0xf0] }
 0xa4b   : > { %v7930_v59 = vld [vmem:[#allocation13 + $0x918] sm:$0xf]  ;;  %v8795_v5 = vor.u32 %v9356_v31, %v8794_v6  ;;  %6255 = vmatpush.bf16.msra.mxu1 %v8539_v57 }
 0xa4c   : > { %v9140_v63 = vld [vmem:[#allocation13 + $0x934] sm:$0xf0] }
 0xa4d   : > { %v8186_v21 = vld [vmem:[#allocation13 + $0xb18] sm:$0xf]  ;;  %v7931_v9 = vor.u32 %v9140_v63, %v7930_v59  ;;  %6268 = vmatpush.bf16.msra.mxu0 %v8795_v5  ;;  %v5993_v59 = vpop.f32.mrf.mxu3 }
 0xa4e   : > { %v9204_v37 = vld [vmem:[#allocation13 + $0xb34] sm:$0xf0]  ;;  %v8944_v59 = vld [vmem:[#allocation13 + $0x31c] sm:$0xf] }
 0xa4f   : > { %v8506_v50 = vld [vmem:[#allocation13 + $0xd98] sm:$0xf]  ;;  %v8187_v30 = vor.u32 %v9204_v37, %v8186_v21  ;;  %6232 = vmatpush.bf16.msrb.mxu2 %v7931_v9 }
 0xa50   : > { %v9284_v1 = vld [vmem:[#allocation13 + $0xdb4] sm:$0xf0] }
 0xa51   : > { %v8762_v43 = vld [vmem:[#allocation13 + $0xf98] sm:$0xf]  ;;  %v8507_v23 = vor.u32 %v9284_v1, %v8506_v50  ;;  %6245 = vmatpush.bf16.msra.mxu3 %v8187_v30  ;;  %v8904_v30 = vld [vmem:[#allocation13 + $0x1dc] sm:$0xf] }
 0xa52   : > { %v9348_v35 = vld [vmem:[#allocation13 + $0xfb4] sm:$0xf0] }
 0xa53   : > { %v7898_v48 = vld [vmem:[#allocation13 + $0x8d8] sm:$0xf]  ;;  %v8763_v24 = vor.u32 %v9348_v35, %v8762_v43  ;;  %6256 = vmatpush.bf16.msra.mxu1 %v8507_v23  ;;  %v7004_v23 = vld [vmem:[#allocation13 + $0x1f8] sm:$0xf0] }
 0xa54   : > { %v9132_v25 = vld [vmem:[#allocation13 + $0x8f4] sm:$0xf0] }
 0xa55   : > { %v8154_v53 = vld [vmem:[#allocation13 + $0xad8] sm:$0xf]  ;;  %v7899_v0 = vor.u32 %v9132_v25, %v7898_v48  ;;  %6269 = vmatpush.bf16.msra.mxu0 %v8763_v24  ;;  %v6006_v48 = vpop.f32.mrf.mxu1  ;;  %v6019_v25 = vpop.f32.mrf.mxu0  ;;  %v8968_v24 = vld [vmem:[#allocation13 + $0x3dc] sm:$0xf] }
 0xa56   : > { %v9196_v16 = vld [vmem:[#allocation13 + $0xaf4] sm:$0xf0]  ;;  %v8936_v48 = vld [vmem:[#allocation13 + $0x2dc] sm:$0xf] }
 0xa57   : > { %v8474_v22 = vld [vmem:[#allocation13 + $0xd58] sm:$0xf]  ;;  %v8155_v49 = vor.u32 %v9196_v16, %v8154_v53  ;;  %6233 = vmatpush.bf16.msrb.mxu2 %v7899_v0  ;;  %v7260_v53 = vld [vmem:[#allocation13 + $0x3f8] sm:$0xf0] }
 0xa58   : > { %v9276_v32 = vld [vmem:[#allocation13 + $0xd74] sm:$0xf0]  ;;  %v7263_v19 = vor.u32 %v8968_v24, %v7260_v53  ;;  %v7132_v25 = vld [vmem:[#allocation13 + $0x2f8] sm:$0xf0] }
 0xa59   : > { %v8730_v18 = vld [vmem:[#allocation13 + $0xf58] sm:$0xf]  ;;  %v8475_v26 = vor.u32 %v9276_v32, %v8474_v22  ;;  %6246 = vmatpush.bf16.msra.mxu3 %v8155_v49  ;;  %v7007_v49 = vor.u32 %v8904_v30, %v7004_v23  ;;  %v9016_v23 = vld [vmem:[#allocation13 + $0x55c] sm:$0xf] }
 0xa5a   : > { %v9340_v51 = vld [vmem:[#allocation13 + $0xf74] sm:$0xf0]  ;;  %v7452_v24 = vld [vmem:[#allocation13 + $0x578] sm:$0xf0] }
 0xa5b   : > { %v7866_v40 = vld [vmem:[#allocation13 + $0x898] sm:$0xf]  ;;  %v8731_v14 = vor.u32 %v9340_v51, %v8730_v18  ;;  %6257 = vmatpush.bf16.msra.mxu1 %v8475_v26  ;;  %v6972_v26 = vld [vmem:[#allocation13 + $0x1b8] sm:$0xf0] }
 0xa5c   : > { %v9124_v3 = vld [vmem:[#allocation13 + $0x8b4] sm:$0xf0]  ;;  %v9080_v53 = vld [vmem:[#allocation13 + $0x75c] sm:$0xf] }
 0xa5d   : > { %v8122_v47 = vld [vmem:[#allocation13 + $0xa98] sm:$0xf]  ;;  %v7867_v52 = vor.u32 %v9124_v3, %v7866_v40  ;;  %6270 = vmatpush.bf16.msra.mxu0 %v8731_v14  ;;  %v8896_v3 = vld [vmem:[#allocation13 + $0x19c] sm:$0xf] }
 0xa5e   : > { %v9188_v62 = vld [vmem:[#allocation13 + $0xab4] sm:$0xf0]  ;;  %v8960_v14 = vld [vmem:[#allocation13 + $0x39c] sm:$0xf] }
 0xa5f   : > { %v8442_v54 = vld [vmem:[#allocation13 + $0xd18] sm:$0xf]  ;;  %v8123_v17 = vor.u32 %v9188_v62, %v8122_v47  ;;  %6234 = vmatpush.bf16.msrb.mxu2 %v7867_v52  ;;  %v7231_v44 = vor.u32 %v8960_v14, %v7228_v8  ;;  %v6940_v52 = vld [vmem:[#allocation13 + $0x178] sm:$0xf0] }
 0xa60   : > { %v9268_v2 = vld [vmem:[#allocation13 + $0xd34] sm:$0xf0]  ;;  %v9008_v14 = vld [vmem:[#allocation13 + $0x51c] sm:$0xf] }
 0xa61   : > { %v8698_v4 = vld [vmem:[#allocation13 + $0xf18] sm:$0xf]  ;;  %v8443_v15 = vor.u32 %v9268_v2, %v8442_v54  ;;  %6247 = vmatpush.bf16.msra.mxu3 %v8123_v17  ;;  %v8952_v17 = vld [vmem:[#allocation13 + $0x35c] sm:$0xf] }
 0xa62   : > { %v9332_v42 = vld [vmem:[#allocation13 + $0xf34] sm:$0xf0]  ;;  %v7420_v8 = vld [vmem:[#allocation13 + $0x538] sm:$0xf0] }
 0xa63   : > { %v7834_v20 = vld [vmem:[#allocation13 + $0x858] sm:$0xf]  ;;  %v8699_v13 = vor.u32 %v9332_v42, %v8698_v4  ;;  %6258 = vmatpush.bf16.msra.mxu1 %v8443_v15  ;;  %v6975_v42 = vor.u32 %v8896_v3, %v6972_v26  ;;  %v7516_v15 = vld [vmem:[#allocation13 + $0x5f8] sm:$0xf0] }
 0xa64   : > { %v9116_v46 = vld [vmem:[#allocation13 + $0x874] sm:$0xf0]  ;;  %v8928_v3 = vld [vmem:[#allocation13 + $0x29c] sm:$0xf] }
 0xa65   : > { %v8090_v61 = vld [vmem:[#allocation13 + $0xa58] sm:$0xf]  ;;  %v7835_v36 = vor.u32 %v9116_v46, %v7834_v20  ;;  %6271 = vmatpush.bf16.msra.mxu0 %v8699_v13  ;;  %v7196_v20 = vld [vmem:[#allocation13 + $0x378] sm:$0xf0] }
 0xa66   : > { %v9180_v33 = vld [vmem:[#allocation13 + $0xa74] sm:$0xf0]  ;;  %v9032_v46 = vld [vmem:[#allocation13 + $0x5dc] sm:$0xf] }
 0xa67   : > { %v8410_v34 = vld [vmem:[#allocation13 + $0xcd8] sm:$0xf]  ;;  %v8091_v38 = vor.u32 %v9180_v33, %v8090_v61  ;;  %6235 = vmatpush.bf16.msrb.mxu2 %v7835_v36  ;;  %v9096_v13 = vld [vmem:[#allocation13 + $0x7dc] sm:$0xf] }
 0xa68   : > { %v9260_v6 = vld [vmem:[#allocation13 + $0xcf4] sm:$0xf0]  ;;  %v7772_v61 = vld [vmem:[#allocation13 + $0x7f8] sm:$0xf0] }
 0xa69   : > { %v8666_v31 = vld [vmem:[#allocation13 + $0xed8] sm:$0xf]  ;;  %v8411_v21 = vor.u32 %v9260_v6, %v8410_v34  ;;  %6248 = vmatpush.bf16.msra.mxu3 %v8091_v38  ;;  %v6943_v6 = vor.u32 %v8888_v60, %v6940_v52  ;;  %v6908_v36 = vld [vmem:[#allocation13 + $0x138] sm:$0xf0]  ;;  %v7519_v38 = vor.u32 %v9032_v46, %v7516_v15  ;;  %v7775_v27 = vor.u32 %v9096_v13, %v7772_v61 }
 0xa6a   : > { %v9324_v7 = vld [vmem:[#allocation13 + $0xef4] sm:$0xf0]  ;;  %v7100_v26 = vld [vmem:[#allocation13 + $0x2b8] sm:$0xf0] }
 0xa6b   : > { %v7802_v63 = vld [vmem:[#allocation13 + $0x818] sm:$0xf]  ;;  %v8667_v37 = vor.u32 %v9324_v7, %v8666_v31  ;;  %6259 = vmatpush.bf16.msra.mxu1 %v8411_v21  ;;  %v7199_v31 = vor.u32 %v8952_v17, %v7196_v20  ;;  %v8880_v7 = vld [vmem:[#allocation13 + $0x11c] sm:$0xf]  ;;  %v7423_v17 = vor.u32 %v9008_v14, %v7420_v8 }
 0xa6c   : > { %v9108_v57 = vld [vmem:[#allocation13 + $0x834] sm:$0xf0]  ;;  %v9088_v21 = vld [vmem:[#allocation13 + $0x79c] sm:$0xf] }
 0xa6d   : > { %v8058_v5 = vld [vmem:[#allocation13 + $0xa18] sm:$0xf]  ;;  %v7803_v16 = vor.u32 %v9108_v57, %v7802_v63  ;;  %6272 = vmatpush.bf16.msra.mxu0 %v8667_v37  ;;  %v7164_v63 = vld [vmem:[#allocation13 + $0x338] sm:$0xf0] }
 0xa6e   : > { %v9172_v50 = vld [vmem:[#allocation13 + $0xa34] sm:$0xf0]  ;;  %v9024_v57 = vld [vmem:[#allocation13 + $0x59c] sm:$0xf] }
 0xa6f   : > { %v8378_v1 = vld [vmem:[#allocation13 + $0xc98] sm:$0xf]  ;;  %v8059_v22 = vor.u32 %v9172_v50, %v8058_v5  ;;  %6236 = vmatpush.bf16.msrb.mxu2 %v7803_v16  ;;  %v7484_v5 = vld [vmem:[#allocation13 + $0x5b8] sm:$0xf0]  ;;  %v6911_v50 = vor.u32 %v8880_v7, %v6908_v36 }
 0xa70   : > { %v9252_v43 = vld [vmem:[#allocation13 + $0xcb4] sm:$0xf0]  ;;  %v7740_v37 = vld [vmem:[#allocation13 + $0x7b8] sm:$0xf0] }
 0xa71   : > { %v8634_v35 = vld [vmem:[#allocation13 + $0xe98] sm:$0xf]  ;;  %v8379_v32 = vor.u32 %v9252_v43, %v8378_v1  ;;  %6249 = vmatpush.bf16.msra.mxu3 %v8059_v22  ;;  %v7167_v1 = vor.u32 %v8944_v59, %v7164_v63  ;;  %v8872_v43 = vld [vmem:[#allocation13 + $0xdc] sm:$0xf]  ;;  %v7743_v30 = vor.u32 %v9088_v21, %v7740_v37 }
 0xa72   : > { %v9316_v9 = vld [vmem:[#allocation13 + $0xeb4] sm:$0xf0]  ;;  %6237 = vmatmul.bf16.vlgmr.msrb.gmra.mxu2 %v10860_v39  ;;  %v7708_v16 = vld [vmem:[#allocation13 + $0x778] sm:$0xf0] }
 0xa73   : > { %v8635_v18 = vor.u32 %v9316_v9, %v8634_v35  ;;  %v8346_v51 = vld [vmem:[#allocation13 + $0xc58] sm:$0xf]  ;;  %6260 = vmatpush.bf16.msra.mxu1 %v8379_v32  ;;  %6281 = vmatpush.bf16.msra.mxu2 %v7007_v49  ;;  %v6876_v35 = vld [vmem:[#allocation13 + $0xf8] sm:$0xf0]  ;;  %v7487_v9 = vor.u32 %v9024_v57, %v7484_v5  ;;  %v7135_v32 = vor.u32 %v8936_v48, %v7132_v25 }
 0xa74   : > { %v9244_v0 = vld [vmem:[#allocation13 + $0xc74] sm:$0xf0]  ;;  %6250 = vmatmul.bf16.vlgmr.msra.gmra.mxu3 %v10862_v56  ;;  %v6879_v22 = vor.u32 %v8872_v43, %v6876_v35  ;;  %v6844_v49 = vld [vmem:[#allocation13 + $0xb8] sm:$0xf0] }
 0xa75   : > { %v8602_v55 = vld [vmem:[#allocation13 + $0xe58] sm:$0xf]  ;;  %6273 = vmatpush.bf16.msra.mxu0 %v8635_v18  ;;  %v8347_v47 = vor.u32 %v9244_v0, %v8346_v51  ;;  %6294 = vmatpush.bf16.msrb.mxu3 %v7263_v19  ;;  %v6030_v18 = vpop.f32.mrf.mxu2  ;;  %v6043_v51 = vpop.f32.mrf.mxu3  ;;  %v8864_v0 = vld [vmem:[#allocation13 + $0x9c] sm:$0xf]  ;;  %v7455_v19 = vor.u32 %v9016_v23, %v7452_v24 }
 0xa76   : > { %v9308_v40 = vld [vmem:[#allocation13 + $0xe74] sm:$0xf0]  ;;  %v6812_v60 = vld [vmem:[#allocation13 + $0x78] sm:$0xf0] }
 0xa77   : > { %v8603_v62 = vor.u32 %v9308_v40, %v8602_v55  ;;  %v8314_v54 = vld [vmem:[#allocation13 + $0xc18] sm:$0xf]  ;;  %6261 = vmatpush.bf16.msra.mxu1 %v8347_v47  ;;  %6282 = vmatpush.bf16.msra.mxu2 %v6975_v42  ;;  %v7711_v55 = vor.u32 %v9080_v53, %v7708_v16  ;;  %v6031_v40 = vadd.f32 %v6030_v18, %v10982_v10  ;;  %v9072_v47 = vld [vmem:[#allocation13 + $0x71c] sm:$0xf] }
 0xa78   : > { %v9236_v2 = vld [vmem:[#allocation13 + $0xc34] sm:$0xf0]  ;;  %v6847_v42 = vor.u32 %v8864_v0, %v6844_v49  ;;  %v8920_v20 = vld [vmem:[#allocation13 + $0x25c] sm:$0xf] }
 0xa79   : > { %v8570_v4 = vld [vmem:[#allocation13 + $0xe18] sm:$0xf]  ;;  %6274 = vmatpush.bf16.msra.mxu0 %v8603_v62  ;;  %v8315_v33 = vor.u32 %v9236_v2, %v8314_v54  ;;  %6295 = vmatpush.bf16.msrb.mxu3 %v7231_v44  ;;  %v7676_v62 = vld [vmem:[#allocation13 + $0x738] sm:$0xf0]  ;;  %v6044_v54 = vadd.f32 %v6043_v51, %v6031_v40  ;;  %v6056_v2 = vpop.f32.mrf.mxu1  ;;  %v7103_v44 = vor.u32 %v8928_v3, %v7100_v26 }
 0xa7a   : > { %v9300_v45 = vld [vmem:[#allocation13 + $0xe34] sm:$0xf0]  ;;  %v7679_v10 = vor.u32 %v9072_v47, %v7676_v62  ;;  %v7068_v46 = vld [vmem:[#allocation13 + $0x278] sm:$0xf0] }
 0xa7b   : > { %v8571_v34 = vor.u32 %v9300_v45, %v8570_v4  ;;  %6262 = vmatpush.bf16.msra.mxu1 %v8315_v33  ;;  %6283 = vmatpush.bf16.msra.mxu2 %v6943_v6  ;;  %v6069_v4 = vpop.f32.mrf.mxu0  ;;  %v8856_v45 = vld [vmem:[#allocation13 + $0x5c] sm:$0xf]  ;;  %v6057_v52 = vadd.f32 %v6056_v2, %v6044_v54 }
 0xa7c   : > { %v9000_v15 = vld [vmem:[#allocation13 + $0x4dc] sm:$0xf]  ;;  %v6815_v6 = vor.u32 %v8856_v45, %v6812_v60 }
 0xa7d   : > { %6275 = vmatpush.bf16.msra.mxu0 %v8571_v34  ;;  %6296 = vmatpush.bf16.msrb.mxu3 %v7199_v31  ;;  %v7388_v13 = vld [vmem:[#allocation13 + $0x4f8] sm:$0xf0]  ;;  %v10989_v34 = vadd.f32 %v6069_v4, %v6057_v52  ;;  %v7071_v31 = vor.u32 %v8920_v20, %v7068_v46  ;;  %v6032_v7 = vpop.f32.mrf.mxu2  ;;  %v6045_v36 = vpop.f32.mrf.mxu3 }
 0xa7e   : > { %6263 = vmatmul.bf16.vlgmr.msra.gmra.mxu1 %v10866_v58  ;;  %v9064_v61 = vld [vmem:[#allocation13 + $0x6dc] sm:$0xf]  ;;  %v7391_v63 = vor.u32 %v9000_v15, %v7388_v13 }
 0xa7f   : > { %6307 = vmatpush.bf16.msrb.mxu1 %v7519_v38  ;;  %6284 = vmatpush.bf16.msra.mxu2 %v6911_v50  ;;  %v7644_v33 = vld [vmem:[#allocation13 + $0x6f8] sm:$0xf0] }
 0xa80   : > { %6276 = vmatmul.bf16.vlgmr.msra.gmra.mxu0 %v10868_v12  ;;  %v8848_v38 = vld [vmem:[#allocation13 + $0x1c] sm:$0xf]  ;;  %v7647_v57 = vor.u32 %v9064_v61, %v7644_v33 }
 0xa81   : > { %6320 = vmatpush.bf16.msrb.mxu0 %v7775_v27  ;;  %6297 = vmatpush.bf16.msrb.mxu3 %v7167_v1  ;;  %v6780_v27 = vld [vmem:[#allocation13 + $0x38] sm:$0xf0]  ;;  %v6058_v35 = vpop.f32.mrf.mxu1 }
 0xa82   : > { %v8912_v59 = vld [vmem:[#allocation13 + $0x21c] sm:$0xf]  ;;  %v6783_v23 = vor.u32 %v8848_v38, %v6780_v27 }
 0xa83   : > { %6308 = vmatpush.bf16.msrb.mxu1 %v7487_v9  ;;  %6285 = vmatpush.bf16.msra.mxu2 %v6879_v22  ;;  %v7036_v5 = vld [vmem:[#allocation13 + $0x238] sm:$0xf0]  ;;  %v6071_v9 = vpop.f32.mrf.mxu0 }
 0xa84   : > { %v8992_v21 = vld [vmem:[#allocation13 + $0x49c] sm:$0xf]  ;;  %v7039_v24 = vor.u32 %v8912_v59, %v7036_v5 }
 0xa85   : > { %6321 = vmatpush.bf16.msrb.mxu0 %v7743_v30  ;;  %6298 = vmatpush.bf16.msrb.mxu3 %v7135_v32  ;;  %v7356_v37 = vld [vmem:[#allocation13 + $0x4b8] sm:$0xf0] }
 0xa86   : > { %v9056_v50 = vld [vmem:[#allocation13 + $0x69c] sm:$0xf]  ;;  %v7359_v53 = vor.u32 %v8992_v21, %v7356_v37 }
 0xa87   : > { %6309 = vmatpush.bf16.msrb.mxu1 %v7455_v19  ;;  %6286 = vmatpush.bf16.msra.mxu2 %v6847_v42  ;;  %v7612_v1 = vld [vmem:[#allocation13 + $0x6b8] sm:$0xf0] }
 0xa88   : > { %v9160_v43 = vld [vmem:[#allocation13 + $0x9dc] sm:$0xf]  ;;  %v7615_v16 = vor.u32 %v9056_v50, %v7612_v1 }
 0xa89   : > { %6322 = vmatpush.bf16.msrb.mxu0 %v7711_v55  ;;  %6299 = vmatpush.bf16.msrb.mxu3 %v7103_v44  ;;  %v8028_v30 = vld [vmem:[#allocation13 + $0x9f8] sm:$0xf0] }
 0xa8a   : > { %v9224_v48 = vld [vmem:[#allocation13 + $0xbdc] sm:$0xf]  ;;  %v8031_v18 = vor.u32 %v9160_v43, %v8028_v30 }
 0xa8b   : > { %6310 = vmatpush.bf16.msrb.mxu1 %v7423_v17  ;;  %v8284_v25 = vld [vmem:[#allocation13 + $0xbf8] sm:$0xf0]  ;;  %6287 = vmatpush.bf16.msra.mxu2 %v6815_v6 }
 0xa8c   : > { %v8984_v22 = vld [vmem:[#allocation13 + $0x45c] sm:$0xf]  ;;  %v8287_v51 = vor.u32 %v9224_v48, %v8284_v25 }
 0xa8d   : > { %6323 = vmatpush.bf16.msrb.mxu0 %v7679_v10  ;;  %6300 = vmatpush.bf16.msrb.mxu3 %v7071_v31  ;;  %v7324_v32 = vld [vmem:[#allocation13 + $0x478] sm:$0xf0] }
 0xa8e   : > { %v9048_v0 = vld [vmem:[#allocation13 + $0x65c] sm:$0xf]  ;;  %v7327_v26 = vor.u32 %v8984_v22, %v7324_v32 }
 0xa8f   : > { %6311 = vmatpush.bf16.msrb.mxu1 %v7391_v63  ;;  %v7580_v49 = vld [vmem:[#allocation13 + $0x678] sm:$0xf0]  ;;  %6288 = vmatpush.bf16.msra.mxu2 %v6783_v23 }
 0xa90   : > { %v9152_v19 = vld [vmem:[#allocation13 + $0x99c] sm:$0xf]  ;;  %v7583_v14 = vor.u32 %v9048_v0, %v7580_v49 }
 0xa91   : > { %6324 = vmatpush.bf16.msrb.mxu0 %v7647_v57  ;;  %v7996_v55 = vld [vmem:[#allocation13 + $0x9b8] sm:$0xf0]  ;;  %6301 = vmatpush.bf16.msrb.mxu3 %v7039_v24  ;;  %v10995_v24 = vpop.f32.mrf.mxu2 }
 0xa92   : > { %v9216_v40 = vld [vmem:[#allocation13 + $0xb9c] sm:$0xf]  ;;  %v7999_v54 = vor.u32 %v9152_v19, %v7996_v55  ;;  %6289 = vmatmul.bf16.vlgmr.msra.gmra.mxu2 %v10848_v11  ;;  %v10999_v55 = vpop.f32.mrf.mxu1 }
 0xa93   : > { %v8252_v3 = vld [vmem:[#allocation13 + $0xbb8] sm:$0xf0]  ;;  %6312 = vmatpush.bf16.msrb.mxu1 %v7359_v53  ;;  %6333 = vmatpush.bf16.msrb.mxu2 %v8031_v18  ;;  %v10997_v53 = vpop.f32.mrf.mxu3 }
 0xa94   : > { %v8976_v8 = vld [vmem:[#allocation13 + $0x41c] sm:$0xf]  ;;  %v8255_v2 = vor.u32 %v9216_v40, %v8252_v3  ;;  %6302 = vmatmul.bf16.vlgmr.msrb.gmra.mxu3 %v10850_v29  ;;  %v11001_v40 = vpop.f32.mrf.mxu0 }
 0xa95   : > { %6325 = vmatpush.bf16.msrb.mxu0 %v7615_v16  ;;  %v7292_v47 = vld [vmem:[#allocation13 + $0x438] sm:$0xf0]  ;;  %6346 = vmatpush.bf16.msra.mxu3 %v8287_v51 }
 0xa96   : > { %v9040_v62 = vld [vmem:[#allocation13 + $0x61c] sm:$0xf]  ;;  %v7295_v46 = vor.u32 %v8976_v8, %v7292_v47 }
 0xa97   : > { %v7548_v4 = vld [vmem:[#allocation13 + $0x638] sm:$0xf0]  ;;  %6313 = vmatpush.bf16.msrb.mxu1 %v7327_v26  ;;  %6334 = vmatpush.bf16.msrb.mxu2 %v7999_v54 }
 0xa98   : > { %v9144_v42 = vld [vmem:[#allocation13 + $0x95c] sm:$0xf]  ;;  %v7551_v15 = vor.u32 %v9040_v62, %v7548_v4 }
 0xa99   : > { %v7964_v44 = vld [vmem:[#allocation13 + $0x978] sm:$0xf0]  ;;  %6326 = vmatpush.bf16.msrb.mxu0 %v7583_v14  ;;  %6347 = vmatpush.bf16.msra.mxu3 %v8255_v2 }
 0xa9a   : > { %v9208_v45 = vld [vmem:[#allocation13 + $0xb5c] sm:$0xf]  ;;  %v7967_v13 = vor.u32 %v9144_v42, %v7964_v44 }
 0xa9b   : > { %v8220_v60 = vld [vmem:[#allocation13 + $0xb78] sm:$0xf0]  ;;  %6314 = vmatpush.bf16.msrb.mxu1 %v7295_v46 }
 0xa9c   : > { %v9288_v52 = vld [vmem:[#allocation13 + $0xddc] sm:$0xf]  ;;  %v8223_v61 = vor.u32 %v9208_v45, %v8220_v60  ;;  %6335 = vmatpush.bf16.msrb.mxu2 %v7967_v13 }
 0xa9d   : > { %v8540_v17 = vld [vmem:[#allocation13 + $0xdf8] sm:$0xf0]  ;;  %6327 = vmatpush.bf16.msrb.mxu0 %v7551_v15 }
 0xa9e   : > { %v9352_v10 = vld [vmem:[#allocation13 + $0xfdc] sm:$0xf]  ;;  %v8543_v31 = vor.u32 %v9288_v52, %v8540_v17  ;;  %6348 = vmatpush.bf16.msra.mxu3 %v8223_v61  ;;  %6315 = vmatmul.bf16.vlgmr.msrb.gmra.mxu1 %v10854_v41  ;;  %v6084_v17 = vpop.f32.mrf.mxu2 }
 0xa9f   : > { %v8796_v20 = vld [vmem:[#allocation13 + $0xff8] sm:$0xf0] }
 0xaa0   : > { %v9136_v33 = vld [vmem:[#allocation13 + $0x91c] sm:$0xf]  ;;  %v8799_v11 = vor.u32 %v9352_v10, %v8796_v20  ;;  %6359 = vmatpush.bf16.msra.mxu1 %v8543_v31  ;;  %6328 = vmatmul.bf16.vlgmr.msrb.gmra.mxu0 %v10856_v28  ;;  %v6097_v10 = vpop.f32.mrf.mxu3 }
 0xaa1   : > { %v7932_v6 = vld [vmem:[#allocation13 + $0x938] sm:$0xf0] }
 0xaa2   : > { %v9200_v7 = vld [vmem:[#allocation13 + $0xb1c] sm:$0xf]  ;;  %v7935_v63 = vor.u32 %v9136_v33, %v7932_v6  ;;  %6372 = vmatpush.bf16.msra.mxu0 %v8799_v11 }
 0xaa3   : > { %v8188_v29 = vld [vmem:[#allocation13 + $0xb38] sm:$0xf0] }
 0xaa4   : > { %v9280_v36 = vld [vmem:[#allocation13 + $0xd9c] sm:$0xf]  ;;  %v8191_v57 = vor.u32 %v9200_v7, %v8188_v29  ;;  %6336 = vmatpush.bf16.msrb.mxu2 %v7935_v63  ;;  %v6110_v29 = vpop.f32.mrf.mxu1 }
 0xaa5   : > { %v8508_v38 = vld [vmem:[#allocation13 + $0xdb8] sm:$0xf0] }
 0xaa6   : > { %v9344_v27 = vld [vmem:[#allocation13 + $0xf9c] sm:$0xf]  ;;  %v8511_v37 = vor.u32 %v9280_v36, %v8508_v38  ;;  %6349 = vmatpush.bf16.msra.mxu3 %v8191_v57  ;;  %v6123_v36 = vpop.f32.mrf.mxu0 }
 0xaa7   : > { %v8764_v59 = vld [vmem:[#allocation13 + $0xfb8] sm:$0xf0] }
 0xaa8   : > { %v9128_v5 = vld [vmem:[#allocation13 + $0x8dc] sm:$0xf]  ;;  %v8767_v50 = vor.u32 %v9344_v27, %v8764_v59  ;;  %6360 = vmatpush.bf16.msra.mxu1 %v8511_v37 }
 0xaa9   : > { %v7900_v21 = vld [vmem:[#allocation13 + $0x8f8] sm:$0xf0] }
 0xaaa   : > { %v9192_v1 = vld [vmem:[#allocation13 + $0xadc] sm:$0xf]  ;;  %v7903_v25 = vor.u32 %v9128_v5, %v7900_v21  ;;  %6373 = vmatpush.bf16.msra.mxu0 %v8767_v50 }
 0xaab   : > { %v8156_v43 = vld [vmem:[#allocation13 + $0xaf8] sm:$0xf0] }
 0xaac   : > { %v9272_v35 = vld [vmem:[#allocation13 + $0xd5c] sm:$0xf]  ;;  %v8159_v23 = vor.u32 %v9192_v1, %v8156_v43  ;;  %6337 = vmatpush.bf16.msrb.mxu2 %v7903_v25 }
 0xaad   : > { %v8476_v9 = vld [vmem:[#allocation13 + $0xd78] sm:$0xf0] }
 0xaae   : > { %v9336_v30 = vld [vmem:[#allocation13 + $0xf5c] sm:$0xf]  ;;  %v8479_v32 = vor.u32 %v9272_v35, %v8476_v9  ;;  %6350 = vmatpush.bf16.msra.mxu3 %v8159_v23 }
 0xaaf   : > { %v8732_v48 = vld [vmem:[#allocation13 + $0xf78] sm:$0xf0] }
 0xab0   : > { %v9120_v16 = vld [vmem:[#allocation13 + $0x89c] sm:$0xf]  ;;  %v8735_v18 = vor.u32 %v9336_v30, %v8732_v48  ;;  %6361 = vmatpush.bf16.msra.mxu1 %v8479_v32  ;;  %v6096_v48 = vadd.f32 %v10997_v53, %v10995_v24  ;;  %v6160_v24 = vpop.f32.mrf.mxu1  ;;  %v6173_v53 = vpop.f32.mrf.mxu0 }
 0xab1   : > { %v7868_v22 = vld [vmem:[#allocation13 + $0x8b8] sm:$0xf0] }
 0xab2   : > { %v9184_v41 = vld [vmem:[#allocation13 + $0xa9c] sm:$0xf]  ;;  %v7871_v3 = vor.u32 %v9120_v16, %v7868_v22  ;;  %6374 = vmatpush.bf16.msra.mxu0 %v8735_v18  ;;  %v6109_v16 = vadd.f32 %v10999_v55, %v6096_v48  ;;  %v6134_v22 = vpop.f32.mrf.mxu2 }
 0xab3   : > { %v8124_v51 = vld [vmem:[#allocation13 + $0xab8] sm:$0xf0] }
 0xab4   : > { %v9264_v28 = vld [vmem:[#allocation13 + $0xd1c] sm:$0xf]  ;;  %v8127_v26 = vor.u32 %v9184_v41, %v8124_v51  ;;  %6338 = vmatpush.bf16.msrb.mxu2 %v7871_v3 }
 0xab5   : > { %v8444_v0 = vld [vmem:[#allocation13 + $0xd38] sm:$0xf0] }
 0xab6   : > { %v9328_v49 = vld [vmem:[#allocation13 + $0xf1c] sm:$0xf]  ;;  %v8447_v47 = vor.u32 %v9264_v28, %v8444_v0  ;;  %6351 = vmatpush.bf16.msra.mxu3 %v8127_v26 }
 0xab7   : > { %v8700_v19 = vld [vmem:[#allocation13 + $0xf38] sm:$0xf0] }
 0xab8   : > { %v9112_v14 = vld [vmem:[#allocation13 + $0x85c] sm:$0xf]  ;;  %v8703_v62 = vor.u32 %v9328_v49, %v8700_v19  ;;  %6362 = vmatpush.bf16.msra.mxu1 %v8447_v47  ;;  %v6175_v55 = vpop.f32.mrf.mxu0 }
 0xab9   : > { %v7836_v8 = vld [vmem:[#allocation13 + $0x878] sm:$0xf0] }
 0xaba   : > { %v9176_v54 = vld [vmem:[#allocation13 + $0xa5c] sm:$0xf]  ;;  %v7839_v60 = vor.u32 %v9112_v14, %v7836_v8  ;;  %6375 = vmatpush.bf16.msra.mxu0 %v8703_v62  ;;  %v6136_v28 = vpop.f32.mrf.mxu2 }
 0xabb   : > { %v8092_v2 = vld [vmem:[#allocation13 + $0xa78] sm:$0xf0] }
 0xabc   : > { %v9256_v4 = vld [vmem:[#allocation13 + $0xcdc] sm:$0xf]  ;;  %v8095_v52 = vor.u32 %v9176_v54, %v8092_v2  ;;  %6339 = vmatpush.bf16.msrb.mxu2 %v7839_v60 }
 0xabd   : > { %v8412_v42 = vld [vmem:[#allocation13 + $0xcf8] sm:$0xf0] }
 0xabe   : > { %v9320_v44 = vld [vmem:[#allocation13 + $0xedc] sm:$0xf]  ;;  %v8415_v15 = vor.u32 %v9256_v4, %v8412_v42  ;;  %6352 = vmatpush.bf16.msra.mxu3 %v8095_v52 }
 0xabf   : > { %v8668_v45 = vld [vmem:[#allocation13 + $0xef8] sm:$0xf0] }
 0xac0   : > { %v9104_v20 = vld [vmem:[#allocation13 + $0x81c] sm:$0xf]  ;;  %v8671_v13 = vor.u32 %v9320_v44, %v8668_v45  ;;  %6363 = vmatpush.bf16.msra.mxu1 %v8415_v15 }
 0xac1   : > { %v7804_v46 = vld [vmem:[#allocation13 + $0x838] sm:$0xf0] }
 0xac2   : > { %v9168_v61 = vld [vmem:[#allocation13 + $0xa1c] sm:$0xf]  ;;  %v7807_v38 = vor.u32 %v9104_v20, %v7804_v46  ;;  %6376 = vmatpush.bf16.msra.mxu0 %v8671_v13 }
 0xac3   : > { %v8060_v33 = vld [vmem:[#allocation13 + $0xa38] sm:$0xf0] }
 0xac4   : > { %v9248_v6 = vld [vmem:[#allocation13 + $0xc9c] sm:$0xf]  ;;  %v8063_v27 = vor.u32 %v9168_v61, %v8060_v33  ;;  %6340 = vmatpush.bf16.msrb.mxu2 %v7807_v38 }
 0xac5   : > { %v8380_v31 = vld [vmem:[#allocation13 + $0xcb8] sm:$0xf0]  ;;  %v6225_v14 = vpop.f32.mrf.mxu0 }
 0xac6   : > { %v9312_v11 = vld [vmem:[#allocation13 + $0xe9c] sm:$0xf]  ;;  %v8383_v59 = vor.u32 %v9248_v6, %v8380_v31  ;;  %6353 = vmatpush.bf16.msra.mxu3 %v8063_v27 }
 0xac7   : > { %v8636_v7 = vld [vmem:[#allocation13 + $0xeb8] sm:$0xf0]  ;;  %6341 = vmatmul.bf16.vlgmr.msrb.gmra.mxu2 %v10860_v39  ;;  %v6122_v39 = vadd.f32 %v11001_v40, %v6109_v16 }
 0xac8   : > { %v8639_v63 = vor.u32 %v9312_v11, %v8636_v7  ;;  %v9240_v57 = vld [vmem:[#allocation13 + $0xc5c] sm:$0xf]  ;;  %6364 = vmatpush.bf16.msra.mxu1 %v8383_v59 }
 0xac9   : > { %v8348_v5 = vld [vmem:[#allocation13 + $0xc78] sm:$0xf0]  ;;  %6354 = vmatmul.bf16.vlgmr.msra.gmra.mxu3 %v10862_v56  ;;  %v6147_v56 = vpop.f32.mrf.mxu3  ;;  %v6135_v32 = vadd.f32 %v6134_v22, %v6122_v39 }
 0xaca   : > { %v9304_v21 = vld [vmem:[#allocation13 + $0xe5c] sm:$0xf]  ;;  %6377 = vmatpush.bf16.msra.mxu0 %v8639_v63  ;;  %v8351_v50 = vor.u32 %v9240_v57, %v8348_v5 }
 0xacb   : > { %v8604_v37 = vld [vmem:[#allocation13 + $0xe78] sm:$0xf0]  ;;  %v6148_v18 = vadd.f32 %v6147_v56, %v6135_v32 }
 0xacc   : > { %v8607_v1 = vor.u32 %v9304_v21, %v8604_v37  ;;  %v9232_v43 = vld [vmem:[#allocation13 + $0xc1c] sm:$0xf]  ;;  %6365 = vmatpush.bf16.msra.mxu1 %v8351_v50 }
 0xacd   : > { %v8316_v35 = vld [vmem:[#allocation13 + $0xc38] sm:$0xf0]  ;;  %v6161_v41 = vadd.f32 %v6160_v24, %v6148_v18  ;;  %v6227_v4 = vpop.f32.mrf.mxu0 }
 0xace   : > { %v9296_v9 = vld [vmem:[#allocation13 + $0xe1c] sm:$0xf]  ;;  %6378 = vmatpush.bf16.msra.mxu0 %v8607_v1  ;;  %v8319_v25 = vor.u32 %v9232_v43, %v8316_v35 }
 0xacf   : > { %v8572_v30 = vld [vmem:[#allocation13 + $0xe38] sm:$0xf0]  ;;  %v6174_v51 = vadd.f32 %v6173_v53, %v6161_v41 }
 0xad0   : > { %v8575_v23 = vor.u32 %v9296_v9, %v8572_v30  ;;  %6366 = vmatpush.bf16.msra.mxu1 %v8319_v25 }
 0xad1   : > { %v6149_v0 = vpop.f32.mrf.mxu3  ;;  %v6395_v49 = vrot.slane %v6174_v51, 4 }
 0xad2   : > { %6379 = vmatpush.bf16.msra.mxu0 %v8575_v23 }
 0xad3   : > { %6367 = vmatmul.bf16.vlgmr.msra.gmra.mxu1 %v10866_v58  ;;  %v6399_v19 = vsel %vm2226_vm4, %v10989_v34, %v6395_v49  ;;  %v6162_v58 = vpop.f32.mrf.mxu1 }
 0xad4   : > { %6407 = vst [vmem:[%s10937_s0 + $0x10] sm:$0x77] %v6399_v19 }
 0xad5   : > { %6380 = vmatmul.bf16.vlgmr.msra.gmra.mxu0 %v10868_v12  ;;  %v6186_v12 = vpop.f32.mrf.mxu2 }
 0xad9   : > { %v6199_v3 = vpop.f32.mrf.mxu3 }
 0xada   : > { %v6200_v40 = vadd.f32 %v6199_v3, %v6186_v12 }
 0xadb   : > { %v6212_v26 = vpop.f32.mrf.mxu1 }
 0xadc   : > { %v6213_v8 = vadd.f32 %v6212_v26, %v6200_v40 }
 0xadd   : > { %v6188_v62 = vpop.f32.mrf.mxu2 }
 0xade   : > { %v6226_v47 = vadd.f32 %v6225_v14, %v6213_v8 }
 0xae1   : > { %v6201_v54 = vpop.f32.mrf.mxu3 }
 0xae3   : > { %v6214_v2 = vpop.f32.mrf.mxu1 }
 0xaf5   : > { %v6238_v42 = vpop.f32.mrf.mxu2 }
 0xaf6   : > { %v6239_v45 = vadd.f32 %v6238_v42, %v6226_v47 }
 0xaf7   : > { %v6251_v44 = vpop.f32.mrf.mxu3 }
 0xaf8   : > { %v6252_v60 = vadd.f32 %v6251_v44, %v6239_v45 }
 0xafb   : > { %v6264_v52 = vpop.f32.mrf.mxu1 }
 0xafc   : > { %v6265_v17 = vadd.f32 %v6264_v52, %v6252_v60 }
 0xafd   : > { %v6277_v34 = vpop.f32.mrf.mxu0  ;;  %v6240_v20 = vpop.f32.mrf.mxu2 }
 0xafe   : > { %v6278_v10 = vadd.f32 %v6277_v34, %v6265_v17 }
 0xaff   : > { %v6253_v46 = vpop.f32.mrf.mxu3 }
 0xb03   : > { %v6266_v15 = vpop.f32.mrf.mxu1 }
 0xb05   : > { %v6279_v13 = vpop.f32.mrf.mxu0 }
 0xb15   : > { %v6290_v61 = vpop.f32.mrf.mxu2 }
 0xb17   : > { %v6303_v33 = vpop.f32.mrf.mxu3 }
 0xb18   : > { %v6304_v38 = vadd.f32 %v6303_v33, %v6290_v61 }
 0xb1b   : > { %v6316_v6 = vpop.f32.mrf.mxu1 }
 0xb1c   : > { %v6317_v27 = vadd.f32 %v6316_v6, %v6304_v38 }
 0xb1d   : > { %v6329_v31 = vpop.f32.mrf.mxu0  ;;  %v6292_v11 = vpop.f32.mrf.mxu2 }
 0xb1e   : > { %v6330_v59 = vadd.f32 %v6329_v31, %v6317_v27 }
 0xb1f   : > { %v6305_v7 = vpop.f32.mrf.mxu3 }
 0xb23   : > { %v6318_v29 = vpop.f32.mrf.mxu1 }
 0xb25   : > { %v6331_v36 = vpop.f32.mrf.mxu0 }
 0xb4a   : > { %v6342_v63 = vpop.f32.mrf.mxu2 }
 0xb4b   : > { %v6343_v5 = vadd.f32 %v6342_v63, %v6330_v59 }
 0xb4c   : > { %v6355_v57 = vpop.f32.mrf.mxu3 }
 0xb4d   : > { %v6356_v21 = vadd.f32 %v6355_v57, %v6343_v5 }
 0xb50   : > { %v6368_v37 = vpop.f32.mrf.mxu1 }
 0xb51   : > { %v6369_v1 = vadd.f32 %v6368_v37, %v6356_v21 }
 0xb52   : > { %v6381_v50 = vpop.f32.mrf.mxu0  ;;  %v6344_v35 = vpop.f32.mrf.mxu2 }
 0xb53   : > { %v6382_v43 = vadd.f32 %v6381_v50, %v6369_v1 }
 0xb54   : > { %v6357_v9 = vpop.f32.mrf.mxu3 }
 0xb55   : > { %v6396_v30 = vrot.slane %v6382_v43, 4 }
 0xb57   : > { %v6400_v48 = vsel %vm2226_vm4, %v6278_v10, %v6396_v30 }
 0xb58   : > { %v6370_v25 = vpop.f32.mrf.mxu1  ;;  %6408 = vst [vmem:[%s10937_s0 + $0x18] sm:$0x77] %v6400_v48 }
 0xb5a   : > { %v6383_v23 = vpop.f32.mrf.mxu0 }
 0xb5b PF: > { %s11097_s28 = sld [smem:[#allocation20_spill]] }
 0xb61   : > { %s37_s3 = sadd.s32 1, %s11097_s28  }
 0xb62   : > { %p34_p7 = scmp.ge.s32.totalorder %s37_s3, 4  }
 0xb64   :  { %36 = sbr.rel (!%p34_p7) target bundleno = 18 (0x12), region = 174 }
 0xb69   :  { %6430 = vsyncpa [#allocation3], 1 }
 0xb6a   :  { %6432 = vsyncpa [#allocation3 + $0x1], 1 }
 0xb6b   :  { %6433 = vsyncpa [#allocation5], 1 }
 0xb6c   :  { %6434 = vsyncpa [#allocation8], 1 }
 0xb6d   :  { %6435 = vsyncpa [#allocation11], 1 }
 0xb6e   :  { %6436 = vsyncpa [#allocation14], 1 }

</bundles_post_ra>
